<compile_context>
chip_gen: v5e
topology: v5e:2x2
jax: 0.10.0
libtpu: 0.0.40
codegen_flags: <defaults>
</compile_context>

<pallas_src>
import functools

import jax
import jax.numpy as jnp
from jax.experimental import pallas as pl
from jax.experimental.pallas import tpu as pltpu

_BN_EPS = 1e-5
_VMEM_LIMIT = 32 * 1024 * 1024          # conservative cap (v7x-safe)
_NEG = -3.0e38                          # effectively -inf for maxpool edge
_BLOCK_BYTES_BUDGET = 2 * 1024 * 1024   # per-grid-step activation budget


# ---------------------------------------------------------------------------
# In-kernel helpers (pure value-level jnp; no strided ref access anywhere)
# ---------------------------------------------------------------------------
def _elu(y):
    # ELU(alpha=1): y if y > 0 else exp(y) - 1   (exp routed to EUP)
    return jnp.where(y > 0, y, jnp.exp(jnp.minimum(y, 0.0)) - 1.0)


def _sigmoid(x):
    return 1.0 / (1.0 + jnp.exp(-x))


def _bn(raw, stats, gb, n_rows):
    """Training-mode BatchNorm1d from accumulated per-channel (sum, sumsq).

    raw: (..., C) f32; stats: (2, C) [sum; sumsq]; gb: (2, C) [gamma; beta]."""
    mean = stats[0:1, :] / n_rows
    var = jnp.maximum(stats[1:2, :] / n_rows - mean * mean, 0.0)
    scale = jax.lax.rsqrt(var + _BN_EPS) * gb[0:1, :]
    return (raw - mean) * scale + gb[1:2, :]


def _channel_stats(acc2d):
    """acc2d: (rows, C) f32 -> (2, C) [sum; sumsq] written in one store."""
    return jnp.concatenate(
        [jnp.sum(acc2d, axis=0, keepdims=True),
         jnp.sum(acc2d * acc2d, axis=0, keepdims=True)], axis=0)


# ---------------------------------------------------------------------------
# Pallas kernels
# ---------------------------------------------------------------------------
def _conv_s1_stats_kernel(xp_ref, w_ref, raw_ref, stats_ref, *, K, L_out):
    """Stride-1 Conv1d (pre-padded input) + partial channel stats.

    xp_ref:  (Bb, L+2*pad, C_in) bf16 ;  w_ref: (K*C_in, C_out) bf16
    raw_ref: (Bb, L_out, C_out) f32  ;  stats_ref: (2, C_out) f32 (this block)
    """
    bb, _, c_in = xp_ref.shape
    c_out = w_ref.shape[1]
    xb = xp_ref[...]
    taps = [xb[:, t:t + L_out, :] for t in range(K)]
    patch = jnp.concatenate(taps, axis=-1) if K > 1 else taps[0]
    acc = jnp.dot(patch.reshape(bb * L_out, K * c_in), w_ref[...],
                  preferred_element_type=jnp.float32)
    raw_ref[...] = acc.reshape(bb, L_out, c_out)
    stats_ref[...] = _channel_stats(acc)


def _conv_s2_stats_kernel(xe_ref, xo_ref, w_ref, raw_ref, stats_ref, *, K, L_out):
    """Stride-2 Conv1d from an even/odd row split of the pre-padded input.

    Padded rows: xp[2i] = xe[i], xp[2i+1] = xo[i]; tap t of output i is xp[2i+t].
    """
    bb, _, c_in = xe_ref.shape
    c_out = w_ref.shape[1]
    xe = xe_ref[...]
    xo = xo_ref[...]
    taps = []
    for t in range(K):
        src = xe if t % 2 == 0 else xo
        off = t // 2
        taps.append(src[:, off:off + L_out, :])
    patch = jnp.concatenate(taps, axis=-1) if K > 1 else taps[0]
    acc = jnp.dot(patch.reshape(bb * L_out, K * c_in), w_ref[...],
                  preferred_element_type=jnp.float32)
    raw_ref[...] = acc.reshape(bb, L_out, c_out)
    stats_ref[...] = _channel_stats(acc)


def _conv_s2_dual_stats_kernel(xe_ref, xo_ref, w1_ref, wd_ref,
                               raw1_ref, stats1_ref, rawd_ref, statsd_ref,
                               *, L_out):
    """conv1 (K=3, s=2, pad=1) + fused downsample conv (K=1, s=2, pad=0).

    Both convs read the same even/odd split of the 1-padded input:
      padded rows xp[2i]=xe[i], xp[2i+1]=xo[i];  original x[2i] = xp[2i+1] = xo[i].
    """
    bb, _, c_in = xe_ref.shape
    c_out = w1_ref.shape[1]
    xe = xe_ref[...]
    xo = xo_ref[...]
    # main conv: taps xp[2i+0], xp[2i+1], xp[2i+2]
    patch = jnp.concatenate(
        [xe[:, 0:L_out, :], xo[:, 0:L_out, :], xe[:, 1:L_out + 1, :]], axis=-1)
    acc1 = jnp.dot(patch.reshape(bb * L_out, 3 * c_in), w1_ref[...],
                   preferred_element_type=jnp.float32)
    raw1_ref[...] = acc1.reshape(bb, L_out, c_out)
    stats1_ref[...] = _channel_stats(acc1)
    # downsample conv: single tap x[2i] = xo[i]
    accd = jnp.dot(xo[:, 0:L_out, :].reshape(bb * L_out, c_in), wd_ref[...],
                   preferred_element_type=jnp.float32)
    rawd_ref[...] = accd.reshape(bb, L_out, c_out)
    statsd_ref[...] = _channel_stats(accd)


def _stem_post_kernel(re_ref, ro_ref, stats_ref, gb_ref, o_ref, *, n_rows):
    """Stem: BN (batch stats) + ELU + MaxPool1d(k=3, s=2, p=1).

    The stem conv output has been split wrapper-side into even/odd rows
    (re_ref holds y[2i], ro_ref holds y[2i+1]); maxpool output i is
    max(y[2i-1], y[2i], y[2i+1]) with the left edge treated as -inf.
    """
    bb, lh, c = re_ref.shape
    stats = jnp.sum(stats_ref[...], axis=0)
    gb = gb_ref[...]
    ye = _elu(_bn(re_ref[...], stats, gb, n_rows))
    yo = _elu(_bn(ro_ref[...], stats, gb, n_rows))
    prev = jnp.concatenate(
        [jnp.full((bb, 1, c), _NEG, jnp.float32), yo[:, :lh - 1, :]], axis=1)
    o_ref[...] = jnp.maximum(jnp.maximum(prev, ye), yo)


def _bn_elu_conv2_stats_kernel(raw1_ref, stats1_ref, gb1_ref, w2_ref,
                               raw2_ref, stats2_ref, *, n_rows):
    """Fused BN1 + ELU + conv2 (K=3, s=1, pad=1, single dot) + partial stats2."""
    bb, L, C = raw1_ref.shape
    c_out = w2_ref.shape[1]
    stats1 = jnp.sum(stats1_ref[...], axis=0)
    y = _elu(_bn(raw1_ref[...], stats1, gb1_ref[...], n_rows)).astype(jnp.bfloat16)
    zrow = jnp.zeros((bb, 1, C), jnp.bfloat16)
    yp = jnp.concatenate([zrow, y, zrow], axis=1)              # (bb, L+2, C)
    patch = jnp.concatenate(
        [yp[:, 0:L, :], yp[:, 1:L + 1, :], yp[:, 2:L + 2, :]], axis=-1)
    acc = jnp.dot(patch.reshape(bb * L, 3 * C), w2_ref[...],
                  preferred_element_type=jnp.float32)
    raw2_ref[...] = acc.reshape(bb, L, c_out)
    stats2_ref[...] = _channel_stats(acc)


def _bn_se_res_kernel(raw2_ref, stats2_ref, gb2_ref, res_ref, w1_ref, w2_ref,
                      o_ref, *, n_rows):
    """Fused BN2 + SE (avgpool->FC->ReLU->FC->sigmoid->scale) + identity residual + ELU."""
    stats2 = jnp.sum(stats2_ref[...], axis=0)
    y = _bn(raw2_ref[...], stats2, gb2_ref[...], n_rows)        # (bb, L, C) f32
    pooled = jnp.mean(y, axis=1)                                # (bb, C)
    h = jnp.maximum(jnp.dot(pooled, w1_ref[...],
                            preferred_element_type=jnp.float32), 0.0)
    s = _sigmoid(jnp.dot(h, w2_ref[...], preferred_element_type=jnp.float32))
    o_ref[...] = _elu(y * s[:, None, :] + res_ref[...])


def _bn_se_downres_kernel(raw2_ref, stats2_ref, gb2_ref,
                          rawd_ref, statsd_ref, gbd_ref,
                          w1_ref, w2_ref, o_ref, *, n_rows):
    """Same as above, but the residual is a downsample conv output needing its own BN."""
    stats2 = jnp.sum(stats2_ref[...], axis=0)
    statsd = jnp.sum(statsd_ref[...], axis=0)
    y = _bn(raw2_ref[...], stats2, gb2_ref[...], n_rows)
    r = _bn(rawd_ref[...], statsd, gbd_ref[...], n_rows)
    pooled = jnp.mean(y, axis=1)
    h = jnp.maximum(jnp.dot(pooled, w1_ref[...],
                            preferred_element_type=jnp.float32), 0.0)
    s = _sigmoid(jnp.dot(h, w2_ref[...], preferred_element_type=jnp.float32))
    o_ref[...] = _elu(y * s[:, None, :] + r)


def _head_kernel(x_ref, w_ref, b_ref, o_ref):
    """Adaptive avg pool (to 1) + Linear (with bias). Tiny -> stays gridless."""
    y = jnp.mean(x_ref[...], axis=1)                            # (B, C)
    o_ref[...] = jnp.dot(y, w_ref[...],
                         preferred_element_type=jnp.float32) + b_ref[...]


# ---------------------------------------------------------------------------
# pallas_call wrappers
# ---------------------------------------------------------------------------
def _cparams(semantics):
    return pltpu.CompilerParams(dimension_semantics=semantics,
                                vmem_limit_bytes=_VMEM_LIMIT)


def _pick_bb(batch, per_sample_bytes):
    """Largest divisor of `batch` whose block stays within the VMEM budget."""
    bb = 1
    for cand in range(1, batch + 1):
        if batch % cand == 0 and cand * per_sample_bytes <= _BLOCK_BYTES_BUDGET:
            bb = cand
    return bb


def _split_even_odd(x, pad):
    """Pad along L in HBM, cast to bf16 once, and split into even/odd rows so
    stride-2 kernels only ever need unit-stride slicing."""
    xp = jnp.pad(x, ((0, 0), (pad, pad), (0, 0))).astype(jnp.bfloat16)
    assert xp.shape[1] % 2 == 0
    return xp[:, 0::2, :], xp[:, 1::2, :]


def conv_stem_stats(x, w_packed):
    """Conv1d(K=7, stride=2, pad=3, bias=False) + per-block channel stats."""
    B, L, C_in = x.shape
    C_out = w_packed.shape[1]
    L_out = (L + 6 - 7) // 2 + 1
    xe, xo = _split_even_odd(x, 3)                    # each (B, (L+6)//2, C_in)
    Lh = xe.shape[1]
    bb = _pick_bb(B, 4 * Lh * C_in + 4 * L_out * C_out)
    nblk = B // bb
    raw, stats = pl.pallas_call(
        functools.partial(_conv_s2_stats_kernel, K=7, L_out=L_out),
        grid=(nblk,),
        in_specs=[pl.BlockSpec((bb, Lh, C_in), lambda i: (i, 0, 0)),
                  pl.BlockSpec((bb, Lh, C_in), lambda i: (i, 0, 0)),
                  pl.BlockSpec((7 * C_in, C_out), lambda i: (0, 0))],
        out_specs=[pl.BlockSpec((bb, L_out, C_out), lambda i: (i, 0, 0)),
                   pl.BlockSpec((None, 2, C_out), lambda i: (i, 0, 0))],
        out_shape=[jax.ShapeDtypeStruct((B, L_out, C_out), jnp.float32),
                   jax.ShapeDtypeStruct((nblk, 2, C_out), jnp.float32)],
        compiler_params=_cparams(("parallel",)),
        cost_estimate=pl.CostEstimate(
            flops=2 * B * L_out * 7 * C_in * C_out, transcendentals=0,
            bytes_accessed=4 * B * Lh * C_in + 4 * B * L_out * C_out
            + 2 * 7 * C_in * C_out),
    )(xe, xo, w_packed)
    return raw, stats


def conv_s1_stats(x, w_packed, *, K=3, pad=1):
    """Stride-1 Conv1d(bias=False) + per-block channel stats."""
    B, L, C_in = x.shape
    C_out = w_packed.shape[1]
    L_out = L + 2 * pad - K + 1
    Lp = L + 2 * pad
    xp = jnp.pad(x, ((0, 0), (pad, pad), (0, 0))).astype(jnp.bfloat16)
    bb = _pick_bb(B, 2 * Lp * C_in + 4 * L_out * C_out)
    nblk = B // bb
    raw, stats = pl.pallas_call(
        functools.partial(_conv_s1_stats_kernel, K=K, L_out=L_out),
        grid=(nblk,),
        in_specs=[pl.BlockSpec((bb, Lp, C_in), lambda i: (i, 0, 0)),
                  pl.BlockSpec((K * C_in, C_out), lambda i: (0, 0))],
        out_specs=[pl.BlockSpec((bb, L_out, C_out), lambda i: (i, 0, 0)),
                   pl.BlockSpec((None, 2, C_out), lambda i: (i, 0, 0))],
        out_shape=[jax.ShapeDtypeStruct((B, L_out, C_out), jnp.float32),
                   jax.ShapeDtypeStruct((nblk, 2, C_out), jnp.float32)],
        compiler_params=_cparams(("parallel",)),
        cost_estimate=pl.CostEstimate(
            flops=2 * B * L_out * K * C_in * C_out, transcendentals=0,
            bytes_accessed=2 * B * Lp * C_in + 4 * B * L_out * C_out
            + 2 * K * C_in * C_out),
    )(xp, w_packed)
    return raw, stats


def conv_s2_dual_stats(x, w1_packed, wd_packed):
    """Fused [conv1 (K=3,s=2,p=1) + downsample conv (K=1,s=2,p=0)] + stats, one x read."""
    B, L, C_in = x.shape
    C_out = w1_packed.shape[1]
    L_out = (L + 2 - 3) // 2 + 1
    xe, xo = _split_even_odd(x, 1)                    # each (B, L//2 + 1, C_in)
    Lh = xe.shape[1]
    bb = _pick_bb(B, 4 * Lh * C_in + 8 * L_out * C_out)
    nblk = B // bb
    raw1, stats1, rawd, statsd = pl.pallas_call(
        functools.partial(_conv_s2_dual_stats_kernel, L_out=L_out),
        grid=(nblk,),
        in_specs=[pl.BlockSpec((bb, Lh, C_in), lambda i: (i, 0, 0)),
                  pl.BlockSpec((bb, Lh, C_in), lambda i: (i, 0, 0)),
                  pl.BlockSpec((3 * C_in, C_out), lambda i: (0, 0)),
                  pl.BlockSpec((C_in, C_out), lambda i: (0, 0))],
        out_specs=[pl.BlockSpec((bb, L_out, C_out), lambda i: (i, 0, 0)),
                   pl.BlockSpec((None, 2, C_out), lambda i: (i, 0, 0)),
                   pl.BlockSpec((bb, L_out, C_out), lambda i: (i, 0, 0)),
                   pl.BlockSpec((None, 2, C_out), lambda i: (i, 0, 0))],
        out_shape=[jax.ShapeDtypeStruct((B, L_out, C_out), jnp.float32),
                   jax.ShapeDtypeStruct((nblk, 2, C_out), jnp.float32),
                   jax.ShapeDtypeStruct((B, L_out, C_out), jnp.float32),
                   jax.ShapeDtypeStruct((nblk, 2, C_out), jnp.float32)],
        compiler_params=_cparams(("parallel",)),
        cost_estimate=pl.CostEstimate(
            flops=2 * B * L_out * 4 * C_in * C_out, transcendentals=0,
            bytes_accessed=4 * B * Lh * C_in + 8 * B * L_out * C_out
            + 2 * 4 * C_in * C_out),
    )(xe, xo, w1_packed, wd_packed)
    return raw1, stats1, rawd, statsd


def bn_elu_maxpool(raw, stats, gb):
    """Stem BN + ELU + MaxPool1d(3, 2, 1). Even/odd decimation done once in HBM."""
    B, L, C = raw.shape
    assert L % 2 == 0
    Lh = L // 2
    nblk_in = stats.shape[0]
    raw_e = raw[:, 0::2, :]
    raw_o = raw[:, 1::2, :]
    bb = _pick_bb(B, 12 * Lh * C)
    nblk = B // bb
    return pl.pallas_call(
        functools.partial(_stem_post_kernel, n_rows=B * L),
        grid=(nblk,),
        in_specs=[pl.BlockSpec((bb, Lh, C), lambda i: (i, 0, 0)),
                  pl.BlockSpec((bb, Lh, C), lambda i: (i, 0, 0)),
                  pl.BlockSpec((nblk_in, 2, C), lambda i: (0, 0, 0)),
                  pl.BlockSpec((2, C), lambda i: (0, 0))],
        out_specs=pl.BlockSpec((bb, Lh, C), lambda i: (i, 0, 0)),
        out_shape=jax.ShapeDtypeStruct((B, Lh, C), jnp.float32),
        compiler_params=_cparams(("parallel",)),
    )(raw_e, raw_o, stats, gb)


def bn_elu_conv2_stats(raw1, stats1, gb1, w2_packed):
    B, L, C = raw1.shape
    C_out = w2_packed.shape[1]
    nblk_in = stats1.shape[0]
    bb = _pick_bb(B, 4 * L * C + 4 * L * C_out)
    nblk = B // bb
    raw2, stats2 = pl.pallas_call(
        functools.partial(_bn_elu_conv2_stats_kernel, n_rows=B * L),
        grid=(nblk,),
        in_specs=[pl.BlockSpec((bb, L, C), lambda i: (i, 0, 0)),
                  pl.BlockSpec((nblk_in, 2, C), lambda i: (0, 0, 0)),
                  pl.BlockSpec((2, C), lambda i: (0, 0)),
                  pl.BlockSpec((3 * C, C_out), lambda i: (0, 0))],
        out_specs=[pl.BlockSpec((bb, L, C_out), lambda i: (i, 0, 0)),
                   pl.BlockSpec((None, 2, C_out), lambda i: (i, 0, 0))],
        out_shape=[jax.ShapeDtypeStruct((B, L, C_out), jnp.float32),
                   jax.ShapeDtypeStruct((nblk, 2, C_out), jnp.float32)],
        compiler_params=_cparams(("parallel",)),
        cost_estimate=pl.CostEstimate(
            flops=2 * B * L * 3 * C * C_out, transcendentals=B * L * C,
            bytes_accessed=4 * B * L * (C + C_out) + 2 * 3 * C * C_out),
    )(raw1, stats1, gb1, w2_packed)
    return raw2, stats2


def bn_se_res_elu(raw2, stats2, gb2, residual, se_w1, se_w2):
    B, L, C = raw2.shape
    Cr = se_w1.shape[1]
    nblk_in = stats2.shape[0]
    bb = _pick_bb(B, 12 * L * C)
    nblk = B // bb
    return pl.pallas_call(
        functools.partial(_bn_se_res_kernel, n_rows=B * L),
        grid=(nblk,),
        in_specs=[pl.BlockSpec((bb, L, C), lambda i: (i, 0, 0)),
                  pl.BlockSpec((nblk_in, 2, C), lambda i: (0, 0, 0)),
                  pl.BlockSpec((2, C), lambda i: (0, 0)),
                  pl.BlockSpec((bb, L, C), lambda i: (i, 0, 0)),
                  pl.BlockSpec((C, Cr), lambda i: (0, 0)),
                  pl.BlockSpec((Cr, C), lambda i: (0, 0))],
        out_specs=pl.BlockSpec((bb, L, C), lambda i: (i, 0, 0)),
        out_shape=jax.ShapeDtypeStruct((B, L, C), jnp.float32),
        compiler_params=_cparams(("parallel",)),
    )(raw2, stats2, gb2, residual, se_w1, se_w2)


def bn_se_downres_elu(raw2, stats2, gb2, rawd, statsd, gbd, se_w1, se_w2):
    B, L, C = raw2.shape
    Cr = se_w1.shape[1]
    nblk2 = stats2.shape[0]
    nblkd = statsd.shape[0]
    bb = _pick_bb(B, 16 * L * C)
    nblk = B // bb
    return pl.pallas_call(
        functools.partial(_bn_se_downres_kernel, n_rows=B * L),
        grid=(nblk,),
        in_specs=[pl.BlockSpec((bb, L, C), lambda i: (i, 0, 0)),
                  pl.BlockSpec((nblk2, 2, C), lambda i: (0, 0, 0)),
                  pl.BlockSpec((2, C), lambda i: (0, 0)),
                  pl.BlockSpec((bb, L, C), lambda i: (i, 0, 0)),
                  pl.BlockSpec((nblkd, 2, C), lambda i: (0, 0, 0)),
                  pl.BlockSpec((2, C), lambda i: (0, 0)),
                  pl.BlockSpec((C, Cr), lambda i: (0, 0)),
                  pl.BlockSpec((Cr, C), lambda i: (0, 0))],
        out_specs=pl.BlockSpec((bb, L, C), lambda i: (i, 0, 0)),
        out_shape=jax.ShapeDtypeStruct((B, L, C), jnp.float32),
        compiler_params=_cparams(("parallel",)),
    )(raw2, stats2, gb2, rawd, statsd, gbd, se_w1, se_w2)


def head(x, w, b):
    B = x.shape[0]
    nc = w.shape[1]
    vmem = pl.BlockSpec(memory_space=pltpu.MemorySpace.VMEM)
    return pl.pallas_call(
        _head_kernel,
        out_shape=jax.ShapeDtypeStruct((B, nc), jnp.float32),
        in_specs=[vmem, vmem, vmem],
        out_specs=vmem,
        compiler_params=pltpu.CompilerParams(vmem_limit_bytes=_VMEM_LIMIT),
    )(x, w, b)


# ---------------------------------------------------------------------------
# Model: parameters + forward
# ---------------------------------------------------------------------------
_BLOCK_CFG = [  # (name, in_mult, mult, stride, has_downsample)
    ("SE1_1", 1, 1, 1, False), ("SE1_2", 1, 1, 1, False),
    ("SE2_1", 1, 2, 2, True),  ("SE2_2", 2, 2, 1, False),
    ("SE3_1", 2, 4, 2, True),  ("SE3_2", 4, 4, 1, False),
    ("SE4_1", 4, 8, 2, True),  ("SE4_2", 8, 8, 1, False),
]


def init_params(key, in_channels, num_classes, features, reduction=16):
    """Parameters in PyTorch layouts (conv: (C_out, C_in, K); linear: (out, in))."""
    keys = iter(jax.random.split(key, 128))

    def nrm(shape, scale=0.1):
        return scale * jax.random.normal(next(keys), shape, dtype=jnp.float32)

    p = {
        "conv1_w": nrm((features, in_channels, 7)),
        "bn1_g": 1.0 + nrm((features,)), "bn1_b": nrm((features,)),
        "fc_w": nrm((num_classes, features * 8)),
        "fc_b": nrm((num_classes,)),
        "blocks": {},
    }
    for name, in_m, m, _stride, has_down in _BLOCK_CFG:
        in_c, c = in_m * features, m * features
        cr = max(c // reduction, 1)
        bp = {
            "conv1_w": nrm((c, in_c, 3)),
            "bn1_g": 1.0 + nrm((c,)), "bn1_b": nrm((c,)),
            "conv2_w": nrm((c, c, 3)),
            "bn2_g": 1.0 + nrm((c,)), "bn2_b": nrm((c,)),
            "se_w1": nrm((cr, c)),     # Linear(channel, channel//r, bias=False)
            "se_w2": nrm((c, cr)),     # Linear(channel//r, channel, bias=False)
        }
        if has_down:
            bp["down_w"] = nrm((c, in_c, 1))
            bp["down_g"] = 1.0 + nrm((c,))
            bp["down_b"] = nrm((c,))
        p["blocks"][name] = bp
    return p


def prepare_params(p):
    """One-time re-layout for the kernels:
       conv (C_out,C_in,K) -> packed (K*C_in, C_out) bf16 (tap-major, matches
       the in-kernel patch concatenation order),
       BN (gamma, beta)    -> (2, C) f32,
       linear (out, in)    -> (in, out) f32 (+ bias row (1, out))."""
    def conv_pack(w):
        co, ci, k = w.shape
        return jnp.transpose(w, (2, 1, 0)).reshape(k * ci, co).astype(jnp.bfloat16)

    def gb(g, b):
        return jnp.stack([g, b], axis=0).astype(jnp.float32)

    q = {
        "conv1_w": conv_pack(p["conv1_w"]),
        "bn1_gb": gb(p["bn1_g"], p["bn1_b"]),
        "fc_w": jnp.transpose(p["fc_w"]).astype(jnp.float32),
        "fc_b": p["fc_b"].reshape(1, -1).astype(jnp.float32),
        "blocks": {},
    }
    for name, bp in p["blocks"].items():
        qb = {
            "conv1_w": conv_pack(bp["conv1_w"]),
            "bn1_gb": gb(bp["bn1_g"], bp["bn1_b"]),
            "conv2_w": conv_pack(bp["conv2_w"]),
            "bn2_gb": gb(bp["bn2_g"], bp["bn2_b"]),
            "se_w1": jnp.transpose(bp["se_w1"]).astype(jnp.float32),  # (C, Cr)
            "se_w2": jnp.transpose(bp["se_w2"]).astype(jnp.float32),  # (Cr, C)
        }
        if "down_w" in bp:
            qb["down_w"] = conv_pack(bp["down_w"])
            qb["down_gb"] = gb(bp["down_g"], bp["down_b"])
        q["blocks"][name] = qb
    return q


def res_se_block(x, bp, has_down):
    if has_down:
        raw1, stats1, rawd, statsd = conv_s2_dual_stats(x, bp["conv1_w"],
                                                        bp["down_w"])
    else:
        raw1, stats1 = conv_s1_stats(x, bp["conv1_w"], K=3, pad=1)
    raw2, stats2 = bn_elu_conv2_stats(raw1, stats1, bp["bn1_gb"], bp["conv2_w"])
    if has_down:
        return bn_se_downres_elu(raw2, stats2, bp["bn2_gb"],
                                 rawd, statsd, bp["down_gb"],
                                 bp["se_w1"], bp["se_w2"])
    return bn_se_res_elu(raw2, stats2, bp["bn2_gb"], x,
                         bp["se_w1"], bp["se_w2"])


def se_res1d_forward(params, x_ncl):
    """x_ncl: (B, in_channels, L) -- PyTorch NCL layout. Returns (B, num_classes)."""
    x = jnp.transpose(x_ncl, (0, 2, 1)).astype(jnp.float32)    # -> (B, L, C)
    raw0, stats0 = conv_stem_stats(x, params["conv1_w"])
    x = bn_elu_maxpool(raw0, stats0, params["bn1_gb"])
    for name, _in_m, _m, _stride, has_down in _BLOCK_CFG:
        x = res_se_block(x, params["blocks"][name], has_down)
    return head(x, params["fc_w"], params["fc_b"])


# ---------------------------------------------------------------------------
if __name__ == "__main__":
    B, IN_CH, L = 2, 4, 64
    FEATURES, NUM_CLASSES = 16, 5   # features >= reduction(16) so SE hidden >= 1

    key = jax.random.PRNGKey(0)
    k_param, k_data = jax.random.split(key)
    params = prepare_params(init_params(k_param, IN_CH, NUM_CLASSES, FEATURES))
    x = jax.random.normal(k_data, (B, IN_CH, L), dtype=jnp.float32)

    fwd = jax.jit(se_res1d_forward)
    logits = fwd(params, x)
    jax.block_until_ready(logits)
    assert logits.shape == (B, NUM_CLASSES)
    print("KERNEL_OK")
</pallas_src>

<mosaic_0001>
module attributes {stable_mosaic.version = 11 : i64} {
  func.func @_conv_s2_stats_kernel(%arg0: i32, %arg1: memref<2x35x4xbf16, #tpu.memory_space<vmem>>, %arg2: memref<2x35x4xbf16, #tpu.memory_space<vmem>>, %arg3: memref<28x16xbf16, #tpu.memory_space<vmem>>, %arg4: memref<2x32x16xf32, #tpu.memory_space<vmem>>, %arg5: memref<1x2x16xf32, #tpu.memory_space<vmem>>) attributes {dimension_semantics = [#tpu.dimension_semantics<parallel>], iteration_bounds = array<i64: 1>, scalar_prefetch = 0 : i64, scratch_operands = 0 : i64, tpu.core_type = #tpu.core_type<tc>, window_params = [{transform_indices = @transform_0, window_bounds = array<i64: 2, 35, 4>}, {transform_indices = @transform_1, window_bounds = array<i64: 2, 35, 4>}, {pipeline_mode = #tpu.pipeline_mode<synchronous>, transform_indices = @transform_2, window_bounds = array<i64: 28, 16>}, {transform_indices = @transform_3, window_bounds = array<i64: 2, 32, 16>}, {transform_indices = @transform_4, window_bounds = array<i64: 1, 2, 16>}]} {
    %c0 = arith.constant 0 : index
    %c0_0 = arith.constant 0 : index
    %c0_1 = arith.constant 0 : index
    %0 = vector.load %arg1[%c0, %c0_0, %c0_1] : memref<2x35x4xbf16, #tpu.memory_space<vmem>>, vector<2x35x4xbf16>
    %c0_2 = arith.constant 0 : index
    %c0_3 = arith.constant 0 : index
    %c0_4 = arith.constant 0 : index
    %1 = vector.load %arg2[%c0_2, %c0_3, %c0_4] : memref<2x35x4xbf16, #tpu.memory_space<vmem>>, vector<2x35x4xbf16>
    %2 = vector.extract_strided_slice %0 {offsets = [0, 0, 0], sizes = [2, 32, 4], strides = [1, 1, 1]} : vector<2x35x4xbf16> to vector<2x32x4xbf16>
    %3 = vector.extract_strided_slice %1 {offsets = [0, 0, 0], sizes = [2, 32, 4], strides = [1, 1, 1]} : vector<2x35x4xbf16> to vector<2x32x4xbf16>
    %4 = vector.extract_strided_slice %0 {offsets = [0, 1, 0], sizes = [2, 32, 4], strides = [1, 1, 1]} : vector<2x35x4xbf16> to vector<2x32x4xbf16>
    %5 = vector.extract_strided_slice %1 {offsets = [0, 1, 0], sizes = [2, 32, 4], strides = [1, 1, 1]} : vector<2x35x4xbf16> to vector<2x32x4xbf16>
    %6 = vector.extract_strided_slice %0 {offsets = [0, 2, 0], sizes = [2, 32, 4], strides = [1, 1, 1]} : vector<2x35x4xbf16> to vector<2x32x4xbf16>
    %7 = vector.extract_strided_slice %1 {offsets = [0, 2, 0], sizes = [2, 32, 4], strides = [1, 1, 1]} : vector<2x35x4xbf16> to vector<2x32x4xbf16>
    %8 = vector.extract_strided_slice %0 {offsets = [0, 3, 0], sizes = [2, 32, 4], strides = [1, 1, 1]} : vector<2x35x4xbf16> to vector<2x32x4xbf16>
    %9 = tpu.concatenate %2, %3, %4, %5, %6, %7, %8 in 2 : vector<2x32x4xbf16>, vector<2x32x4xbf16>, vector<2x32x4xbf16>, vector<2x32x4xbf16>, vector<2x32x4xbf16>, vector<2x32x4xbf16>, vector<2x32x4xbf16> -> vector<2x32x28xbf16>
    %10 = vector.shape_cast %9 : vector<2x32x28xbf16> to vector<64x28xbf16>
    %c0_5 = arith.constant 0 : index
    %c0_6 = arith.constant 0 : index
    %11 = vector.load %arg3[%c0_5, %c0_6] : memref<28x16xbf16, #tpu.memory_space<vmem>>, vector<28x16xbf16>
    %cst = arith.constant dense<0.000000e+00> : vector<64x16xf32>
    %12 = tpu.matmul %10, %11, %cst {dimension_numbers = #tpu.dot_dimension_numbers<[1], [0], [0], [1], [0, 0, 1, 1], [], []>} : vector<64x28xbf16>, vector<28x16xbf16>, vector<64x16xf32> -> vector<64x16xf32>
    %13 = vector.shape_cast %12 : vector<64x16xf32> to vector<2x32x16xf32>
    %c0_7 = arith.constant 0 : index
    %c0_8 = arith.constant 0 : index
    %c0_9 = arith.constant 0 : index
    %14 = vector.load %arg4[%c0_7, %c0_8, %c0_9] : memref<2x32x16xf32, #tpu.memory_space<vmem>>, vector<2x32x16xf32>
    tpu.vector_store %arg4[%c0_7, %c0_8, %c0_9], %13 {strides = array<i32>} : memref<2x32x16xf32, #tpu.memory_space<vmem>>, vector<2x32x16xf32>,
    %cst_10 = arith.constant dense<0.000000e+00> : vector<16xf32>
    %15 = vector.multi_reduction <add>, %12, %cst_10 [0] : vector<64x16xf32> to vector<16xf32>
    %16 = vector.shape_cast %15 : vector<16xf32> to vector<1x16xf32>
    %17 = arith.mulf %12, %12 : vector<64x16xf32>
    %cst_11 = arith.constant dense<0.000000e+00> : vector<16xf32>
    %18 = vector.multi_reduction <add>, %17, %cst_11 [0] : vector<64x16xf32> to vector<16xf32>
    %19 = vector.shape_cast %18 : vector<16xf32> to vector<1x16xf32>
    %20 = tpu.concatenate %16, %19 in 0 : vector<1x16xf32>, vector<1x16xf32> -> vector<2x16xf32>
    %c0_12 = arith.constant 0 : index
    %c0_13 = arith.constant 0 : index
    %c0_14 = arith.constant 0 : index
    %21 = vector.load %arg5[%c0_12, %c0_13, %c0_14] : memref<1x2x16xf32, #tpu.memory_space<vmem>>, vector<1x2x16xf32>
    %22 = vector.shape_cast %21 : vector<1x2x16xf32> to vector<2x16xf32>
    %23 = vector.shape_cast %20 : vector<2x16xf32> to vector<1x2x16xf32>
    tpu.vector_store %arg5[%c0_12, %c0_13, %c0_14], %23 {strides = array<i32>} : memref<1x2x16xf32, #tpu.memory_space<vmem>>, vector<1x2x16xf32>,
    return
  }
  func.func @transform_0(%arg0: i32) -> (i32, i32, i32) {
    %c0_i32 = arith.constant 0 : i32
    %c0_i32_0 = arith.constant 0 : i32
    %c0_i32_1 = arith.constant 0 : i32
    return %arg0, %c0_i32, %c0_i32_0 : i32, i32, i32
  }
  func.func @transform_1(%arg0: i32) -> (i32, i32, i32) {
    %c0_i32 = arith.constant 0 : i32
    %c0_i32_0 = arith.constant 0 : i32
    %c0_i32_1 = arith.constant 0 : i32
    return %arg0, %c0_i32, %c0_i32_0 : i32, i32, i32
  }
  func.func @transform_2(%arg0: i32) -> (i32, i32) {
    %c0_i32 = arith.constant 0 : i32
    %c0_i32_0 = arith.constant 0 : i32
    %c0_i32_1 = arith.constant 0 : i32
    return %c0_i32, %c0_i32_0 : i32, i32
  }
  func.func @transform_3(%arg0: i32) -> (i32, i32, i32) {
    %c0_i32 = arith.constant 0 : i32
    %c0_i32_0 = arith.constant 0 : i32
    %c0_i32_1 = arith.constant 0 : i32
    return %arg0, %c0_i32, %c0_i32_0 : i32, i32, i32
  }
  func.func @transform_4(%arg0: i32) -> (i32, i32, i32) {
    %c0_i32 = arith.constant 0 : i32
    %c0_i32_0 = arith.constant 0 : i32
    %c0_i32_1 = arith.constant 0 : i32
    return %arg0, %c0_i32, %c0_i32_0 : i32, i32, i32
  }
}

module attributes {stable_mosaic.version = 11 : i64} {
  func.func @_stem_post_kernel(%arg0: i32, %arg1: memref<2x16x16xf32, #tpu.memory_space<vmem>>, %arg2: memref<2x16x16xf32, #tpu.memory_space<vmem>>, %arg3: memref<1x2x16xf32, #tpu.memory_space<vmem>>, %arg4: memref<2x16xf32, #tpu.memory_space<vmem>>, %arg5: memref<2x16x16xf32, #tpu.memory_space<vmem>>) attributes {dimension_semantics = [#tpu.dimension_semantics<parallel>], iteration_bounds = array<i64: 1>, scalar_prefetch = 0 : i64, scratch_operands = 0 : i64, tpu.core_type = #tpu.core_type<tc>, window_params = [{transform_indices = @transform_0, window_bounds = array<i64: 2, 16, 16>}, {transform_indices = @transform_1, window_bounds = array<i64: 2, 16, 16>}, {pipeline_mode = #tpu.pipeline_mode<synchronous>, transform_indices = @transform_2, window_bounds = array<i64: 1, 2, 16>}, {pipeline_mode = #tpu.pipeline_mode<synchronous>, transform_indices = @transform_3, window_bounds = array<i64: 2, 16>}, {transform_indices = @transform_4, window_bounds = array<i64: 2, 16, 16>}]} {
    %c0 = arith.constant 0 : index
    %c0_0 = arith.constant 0 : index
    %c0_1 = arith.constant 0 : index
    %0 = vector.load %arg3[%c0, %c0_0, %c0_1] : memref<1x2x16xf32, #tpu.memory_space<vmem>>, vector<1x2x16xf32>
    %cst = arith.constant dense<0.000000e+00> : vector<2x16xf32>
    %1 = vector.multi_reduction <add>, %0, %cst [0] : vector<1x2x16xf32> to vector<2x16xf32>
    %c0_2 = arith.constant 0 : index
    %c0_3 = arith.constant 0 : index
    %2 = vector.load %arg4[%c0_2, %c0_3] : memref<2x16xf32, #tpu.memory_space<vmem>>, vector<2x16xf32>
    %c0_4 = arith.constant 0 : index
    %c0_5 = arith.constant 0 : index
    %c0_6 = arith.constant 0 : index
    %3 = vector.load %arg1[%c0_4, %c0_5, %c0_6] : memref<2x16x16xf32, #tpu.memory_space<vmem>>, vector<2x16x16xf32>
    %4 = vector.extract_strided_slice %1 {offsets = [0, 0], sizes = [1, 16], strides = [1, 1]} : vector<2x16xf32> to vector<1x16xf32>
    %cst_7 = arith.constant 6.400000e+01 : f32
    %5 = vector.broadcast %cst_7 : f32 to vector<1x16xf32>
    %6 = arith.divf %4, %5 : vector<1x16xf32>
    %7 = vector.extract_strided_slice %1 {offsets = [1, 0], sizes = [1, 16], strides = [1, 1]} : vector<2x16xf32> to vector<1x16xf32>
    %cst_8 = arith.constant 6.400000e+01 : f32
    %8 = vector.broadcast %cst_8 : f32 to vector<1x16xf32>
    %9 = arith.divf %7, %8 : vector<1x16xf32>
    %10 = arith.mulf %6, %6 : vector<1x16xf32>
    %11 = arith.subf %9, %10 : vector<1x16xf32>
    %cst_9 = arith.constant 0.000000e+00 : f32
    %12 = vector.broadcast %cst_9 : f32 to vector<1x16xf32>
    %13 = arith.maximumf %11, %12 : vector<1x16xf32>
    %cst_10 = arith.constant 9.99999974E-6 : f32
    %14 = vector.broadcast %cst_10 : f32 to vector<1x16xf32>
    %15 = arith.addf %13, %14 : vector<1x16xf32>
    %16 = math.rsqrt %15 : vector<1x16xf32>
    %17 = vector.extract_strided_slice %2 {offsets = [0, 0], sizes = [1, 16], strides = [1, 1]} : vector<2x16xf32> to vector<1x16xf32>
    %18 = arith.mulf %16, %17 : vector<1x16xf32>
    %19 = vector.shape_cast %6 : vector<1x16xf32> to vector<1x1x16xf32>
    %20 = vector.broadcast %19 : vector<1x1x16xf32> to vector<2x16x16xf32>
    %21 = arith.subf %3, %20 : vector<2x16x16xf32>
    %22 = vector.shape_cast %18 : vector<1x16xf32> to vector<1x1x16xf32>
    %23 = vector.broadcast %22 : vector<1x1x16xf32> to vector<2x16x16xf32>
    %24 = arith.mulf %21, %23 : vector<2x16x16xf32>
    %25 = vector.extract_strided_slice %2 {offsets = [1, 0], sizes = [1, 16], strides = [1, 1]} : vector<2x16xf32> to vector<1x16xf32>
    %26 = vector.shape_cast %25 : vector<1x16xf32> to vector<1x1x16xf32>
    %27 = vector.broadcast %26 : vector<1x1x16xf32> to vector<2x16x16xf32>
    %28 = arith.addf %24, %27 : vector<2x16x16xf32>
    %cst_11 = arith.constant 0.000000e+00 : f32
    %29 = vector.broadcast %cst_11 : f32 to vector<2x16x16xf32>
    %30 = arith.cmpf ogt, %28, %29 : vector<2x16x16xf32>
    %cst_12 = arith.constant 0.000000e+00 : f32
    %31 = vector.broadcast %cst_12 : f32 to vector<2x16x16xf32>
    %32 = arith.minimumf %28, %31 : vector<2x16x16xf32>
    %33 = math.exp %32 : vector<2x16x16xf32>
    %cst_13 = arith.constant 1.000000e+00 : f32
    %34 = vector.broadcast %cst_13 : f32 to vector<2x16x16xf32>
    %35 = arith.subf %33, %34 : vector<2x16x16xf32>
    %36 = arith.select %30, %28, %35 : vector<2x16x16xi1>, vector<2x16x16xf32>
    %c0_14 = arith.constant 0 : index
    %c0_15 = arith.constant 0 : index
    %c0_16 = arith.constant 0 : index
    %37 = vector.load %arg2[%c0_14, %c0_15, %c0_16] : memref<2x16x16xf32, #tpu.memory_space<vmem>>, vector<2x16x16xf32>
    %38 = vector.extract_strided_slice %1 {offsets = [0, 0], sizes = [1, 16], strides = [1, 1]} : vector<2x16xf32> to vector<1x16xf32>
    %cst_17 = arith.constant 6.400000e+01 : f32
    %39 = vector.broadcast %cst_17 : f32 to vector<1x16xf32>
    %40 = arith.divf %38, %39 : vector<1x16xf32>
    %41 = vector.extract_strided_slice %1 {offsets = [1, 0], sizes = [1, 16], strides = [1, 1]} : vector<2x16xf32> to vector<1x16xf32>
    %cst_18 = arith.constant 6.400000e+01 : f32
    %42 = vector.broadcast %cst_18 : f32 to vector<1x16xf32>
    %43 = arith.divf %41, %42 : vector<1x16xf32>
    %44 = arith.mulf %40, %40 : vector<1x16xf32>
    %45 = arith.subf %43, %44 : vector<1x16xf32>
    %cst_19 = arith.constant 0.000000e+00 : f32
    %46 = vector.broadcast %cst_19 : f32 to vector<1x16xf32>
    %47 = arith.maximumf %45, %46 : vector<1x16xf32>
    %cst_20 = arith.constant 9.99999974E-6 : f32
    %48 = vector.broadcast %cst_20 : f32 to vector<1x16xf32>
    %49 = arith.addf %47, %48 : vector<1x16xf32>
    %50 = math.rsqrt %49 : vector<1x16xf32>
    %51 = vector.extract_strided_slice %2 {offsets = [0, 0], sizes = [1, 16], strides = [1, 1]} : vector<2x16xf32> to vector<1x16xf32>
    %52 = arith.mulf %50, %51 : vector<1x16xf32>
    %53 = vector.shape_cast %40 : vector<1x16xf32> to vector<1x1x16xf32>
    %54 = vector.broadcast %53 : vector<1x1x16xf32> to vector<2x16x16xf32>
    %55 = arith.subf %37, %54 : vector<2x16x16xf32>
    %56 = vector.shape_cast %52 : vector<1x16xf32> to vector<1x1x16xf32>
    %57 = vector.broadcast %56 : vector<1x1x16xf32> to vector<2x16x16xf32>
    %58 = arith.mulf %55, %57 : vector<2x16x16xf32>
    %59 = vector.extract_strided_slice %2 {offsets = [1, 0], sizes = [1, 16], strides = [1, 1]} : vector<2x16xf32> to vector<1x16xf32>
    %60 = vector.shape_cast %59 : vector<1x16xf32> to vector<1x1x16xf32>
    %61 = vector.broadcast %60 : vector<1x1x16xf32> to vector<2x16x16xf32>
    %62 = arith.addf %58, %61 : vector<2x16x16xf32>
    %cst_21 = arith.constant 0.000000e+00 : f32
    %63 = vector.broadcast %cst_21 : f32 to vector<2x16x16xf32>
    %64 = arith.cmpf ogt, %62, %63 : vector<2x16x16xf32>
    %cst_22 = arith.constant 0.000000e+00 : f32
    %65 = vector.broadcast %cst_22 : f32 to vector<2x16x16xf32>
    %66 = arith.minimumf %62, %65 : vector<2x16x16xf32>
    %67 = math.exp %66 : vector<2x16x16xf32>
    %cst_23 = arith.constant 1.000000e+00 : f32
    %68 = vector.broadcast %cst_23 : f32 to vector<2x16x16xf32>
    %69 = arith.subf %67, %68 : vector<2x16x16xf32>
    %70 = arith.select %64, %62, %69 : vector<2x16x16xi1>, vector<2x16x16xf32>
    %cst_24 = arith.constant -3.000000e+38 : f32
    %71 = vector.broadcast %cst_24 : f32 to vector<2x1x16xf32>
    %72 = vector.extract_strided_slice %70 {offsets = [0, 0, 0], sizes = [2, 15, 16], strides = [1, 1, 1]} : vector<2x16x16xf32> to vector<2x15x16xf32>
    %73 = tpu.concatenate %71, %72 in 1 : vector<2x1x16xf32>, vector<2x15x16xf32> -> vector<2x16x16xf32>
    %74 = arith.maximumf %73, %36 : vector<2x16x16xf32>
    %75 = arith.maximumf %74, %70 : vector<2x16x16xf32>
    %c0_25 = arith.constant 0 : index
    %c0_26 = arith.constant 0 : index
    %c0_27 = arith.constant 0 : index
    %76 = vector.load %arg5[%c0_25, %c0_26, %c0_27] : memref<2x16x16xf32, #tpu.memory_space<vmem>>, vector<2x16x16xf32>
    tpu.vector_store %arg5[%c0_25, %c0_26, %c0_27], %75 {strides = array<i32>} : memref<2x16x16xf32, #tpu.memory_space<vmem>>, vector<2x16x16xf32>,
    return
  }
  func.func @transform_0(%arg0: i32) -> (i32, i32, i32) {
    %c0_i32 = arith.constant 0 : i32
    %c0_i32_0 = arith.constant 0 : i32
    %c0_i32_1 = arith.constant 0 : i32
    return %arg0, %c0_i32, %c0_i32_0 : i32, i32, i32
  }
  func.func @transform_1(%arg0: i32) -> (i32, i32, i32) {
    %c0_i32 = arith.constant 0 : i32
    %c0_i32_0 = arith.constant 0 : i32
    %c0_i32_1 = arith.constant 0 : i32
    return %arg0, %c0_i32, %c0_i32_0 : i32, i32, i32
  }
  func.func @transform_2(%arg0: i32) -> (i32, i32, i32) {
    %c0_i32 = arith.constant 0 : i32
    %c0_i32_0 = arith.constant 0 : i32
    %c0_i32_1 = arith.constant 0 : i32
    %c0_i32_2 = arith.constant 0 : i32
    return %c0_i32, %c0_i32_0, %c0_i32_1 : i32, i32, i32
  }
  func.func @transform_3(%arg0: i32) -> (i32, i32) {
    %c0_i32 = arith.constant 0 : i32
    %c0_i32_0 = arith.constant 0 : i32
    %c0_i32_1 = arith.constant 0 : i32
    return %c0_i32, %c0_i32_0 : i32, i32
  }
  func.func @transform_4(%arg0: i32) -> (i32, i32, i32) {
    %c0_i32 = arith.constant 0 : i32
    %c0_i32_0 = arith.constant 0 : i32
    %c0_i32_1 = arith.constant 0 : i32
    return %arg0, %c0_i32, %c0_i32_0 : i32, i32, i32
  }
}

module attributes {stable_mosaic.version = 11 : i64} {
  func.func @_conv_s1_stats_kernel(%arg0: i32, %arg1: memref<2x18x16xbf16, #tpu.memory_space<vmem>>, %arg2: memref<48x16xbf16, #tpu.memory_space<vmem>>, %arg3: memref<2x16x16xf32, #tpu.memory_space<vmem>>, %arg4: memref<1x2x16xf32, #tpu.memory_space<vmem>>) attributes {dimension_semantics = [#tpu.dimension_semantics<parallel>], iteration_bounds = array<i64: 1>, scalar_prefetch = 0 : i64, scratch_operands = 0 : i64, tpu.core_type = #tpu.core_type<tc>, window_params = [{transform_indices = @transform_0, window_bounds = array<i64: 2, 18, 16>}, {pipeline_mode = #tpu.pipeline_mode<synchronous>, transform_indices = @transform_1, window_bounds = array<i64: 48, 16>}, {transform_indices = @transform_2, window_bounds = array<i64: 2, 16, 16>}, {transform_indices = @transform_3, window_bounds = array<i64: 1, 2, 16>}]} {
    %c0 = arith.constant 0 : index
    %c0_0 = arith.constant 0 : index
    %c0_1 = arith.constant 0 : index
    %0 = vector.load %arg1[%c0, %c0_0, %c0_1] : memref<2x18x16xbf16, #tpu.memory_space<vmem>>, vector<2x18x16xbf16>
    %1 = vector.extract_strided_slice %0 {offsets = [0, 0, 0], sizes = [2, 16, 16], strides = [1, 1, 1]} : vector<2x18x16xbf16> to vector<2x16x16xbf16>
    %2 = vector.extract_strided_slice %0 {offsets = [0, 1, 0], sizes = [2, 16, 16], strides = [1, 1, 1]} : vector<2x18x16xbf16> to vector<2x16x16xbf16>
    %3 = vector.extract_strided_slice %0 {offsets = [0, 2, 0], sizes = [2, 16, 16], strides = [1, 1, 1]} : vector<2x18x16xbf16> to vector<2x16x16xbf16>
    %4 = tpu.concatenate %1, %2, %3 in 2 : vector<2x16x16xbf16>, vector<2x16x16xbf16>, vector<2x16x16xbf16> -> vector<2x16x48xbf16>
    %5 = vector.shape_cast %4 : vector<2x16x48xbf16> to vector<32x48xbf16>
    %c0_2 = arith.constant 0 : index
    %c0_3 = arith.constant 0 : index
    %6 = vector.load %arg2[%c0_2, %c0_3] : memref<48x16xbf16, #tpu.memory_space<vmem>>, vector<48x16xbf16>
    %cst = arith.constant dense<0.000000e+00> : vector<32x16xf32>
    %7 = tpu.matmul %5, %6, %cst {dimension_numbers = #tpu.dot_dimension_numbers<[1], [0], [0], [1], [0, 0, 1, 1], [], []>} : vector<32x48xbf16>, vector<48x16xbf16>, vector<32x16xf32> -> vector<32x16xf32>
    %8 = vector.shape_cast %7 : vector<32x16xf32> to vector<2x16x16xf32>
    %c0_4 = arith.constant 0 : index
    %c0_5 = arith.constant 0 : index
    %c0_6 = arith.constant 0 : index
    %9 = vector.load %arg3[%c0_4, %c0_5, %c0_6] : memref<2x16x16xf32, #tpu.memory_space<vmem>>, vector<2x16x16xf32>
    tpu.vector_store %arg3[%c0_4, %c0_5, %c0_6], %8 {strides = array<i32>} : memref<2x16x16xf32, #tpu.memory_space<vmem>>, vector<2x16x16xf32>,
    %cst_7 = arith.constant dense<0.000000e+00> : vector<16xf32>
    %10 = vector.multi_reduction <add>, %7, %cst_7 [0] : vector<32x16xf32> to vector<16xf32>
    %11 = vector.shape_cast %10 : vector<16xf32> to vector<1x16xf32>
    %12 = arith.mulf %7, %7 : vector<32x16xf32>
    %cst_8 = arith.constant dense<0.000000e+00> : vector<16xf32>
    %13 = vector.multi_reduction <add>, %12, %cst_8 [0] : vector<32x16xf32> to vector<16xf32>
    %14 = vector.shape_cast %13 : vector<16xf32> to vector<1x16xf32>
    %15 = tpu.concatenate %11, %14 in 0 : vector<1x16xf32>, vector<1x16xf32> -> vector<2x16xf32>
    %c0_9 = arith.constant 0 : index
    %c0_10 = arith.constant 0 : index
    %c0_11 = arith.constant 0 : index
    %16 = vector.load %arg4[%c0_9, %c0_10, %c0_11] : memref<1x2x16xf32, #tpu.memory_space<vmem>>, vector<1x2x16xf32>
    %17 = vector.shape_cast %16 : vector<1x2x16xf32> to vector<2x16xf32>
    %18 = vector.shape_cast %15 : vector<2x16xf32> to vector<1x2x16xf32>
    tpu.vector_store %arg4[%c0_9, %c0_10, %c0_11], %18 {strides = array<i32>} : memref<1x2x16xf32, #tpu.memory_space<vmem>>, vector<1x2x16xf32>,
    return
  }
  func.func @transform_0(%arg0: i32) -> (i32, i32, i32) {
    %c0_i32 = arith.constant 0 : i32
    %c0_i32_0 = arith.constant 0 : i32
    %c0_i32_1 = arith.constant 0 : i32
    return %arg0, %c0_i32, %c0_i32_0 : i32, i32, i32
  }
  func.func @transform_1(%arg0: i32) -> (i32, i32) {
    %c0_i32 = arith.constant 0 : i32
    %c0_i32_0 = arith.constant 0 : i32
    %c0_i32_1 = arith.constant 0 : i32
    return %c0_i32, %c0_i32_0 : i32, i32
  }
  func.func @transform_2(%arg0: i32) -> (i32, i32, i32) {
    %c0_i32 = arith.constant 0 : i32
    %c0_i32_0 = arith.constant 0 : i32
    %c0_i32_1 = arith.constant 0 : i32
    return %arg0, %c0_i32, %c0_i32_0 : i32, i32, i32
  }
  func.func @transform_3(%arg0: i32) -> (i32, i32, i32) {
    %c0_i32 = arith.constant 0 : i32
    %c0_i32_0 = arith.constant 0 : i32
    %c0_i32_1 = arith.constant 0 : i32
    return %arg0, %c0_i32, %c0_i32_0 : i32, i32, i32
  }
}

module attributes {stable_mosaic.version = 11 : i64} {
  func.func @_bn_elu_conv2_stats_kernel(%arg0: i32, %arg1: memref<2x16x16xf32, #tpu.memory_space<vmem>>, %arg2: memref<1x2x16xf32, #tpu.memory_space<vmem>>, %arg3: memref<2x16xf32, #tpu.memory_space<vmem>>, %arg4: memref<48x16xbf16, #tpu.memory_space<vmem>>, %arg5: memref<2x16x16xf32, #tpu.memory_space<vmem>>, %arg6: memref<1x2x16xf32, #tpu.memory_space<vmem>>) attributes {dimension_semantics = [#tpu.dimension_semantics<parallel>], iteration_bounds = array<i64: 1>, scalar_prefetch = 0 : i64, scratch_operands = 0 : i64, tpu.core_type = #tpu.core_type<tc>, window_params = [{transform_indices = @transform_0, window_bounds = array<i64: 2, 16, 16>}, {pipeline_mode = #tpu.pipeline_mode<synchronous>, transform_indices = @transform_1, window_bounds = array<i64: 1, 2, 16>}, {pipeline_mode = #tpu.pipeline_mode<synchronous>, transform_indices = @transform_2, window_bounds = array<i64: 2, 16>}, {pipeline_mode = #tpu.pipeline_mode<synchronous>, transform_indices = @transform_3, window_bounds = array<i64: 48, 16>}, {transform_indices = @transform_4, window_bounds = array<i64: 2, 16, 16>}, {transform_indices = @transform_5, window_bounds = array<i64: 1, 2, 16>}]} {
    %c0 = arith.constant 0 : index
    %c0_0 = arith.constant 0 : index
    %c0_1 = arith.constant 0 : index
    %0 = vector.load %arg2[%c0, %c0_0, %c0_1] : memref<1x2x16xf32, #tpu.memory_space<vmem>>, vector<1x2x16xf32>
    %cst = arith.constant dense<0.000000e+00> : vector<2x16xf32>
    %1 = vector.multi_reduction <add>, %0, %cst [0] : vector<1x2x16xf32> to vector<2x16xf32>
    %c0_2 = arith.constant 0 : index
    %c0_3 = arith.constant 0 : index
    %c0_4 = arith.constant 0 : index
    %2 = vector.load %arg1[%c0_2, %c0_3, %c0_4] : memref<2x16x16xf32, #tpu.memory_space<vmem>>, vector<2x16x16xf32>
    %c0_5 = arith.constant 0 : index
    %c0_6 = arith.constant 0 : index
    %3 = vector.load %arg3[%c0_5, %c0_6] : memref<2x16xf32, #tpu.memory_space<vmem>>, vector<2x16xf32>
    %4 = vector.extract_strided_slice %1 {offsets = [0, 0], sizes = [1, 16], strides = [1, 1]} : vector<2x16xf32> to vector<1x16xf32>
    %cst_7 = arith.constant 3.200000e+01 : f32
    %5 = vector.broadcast %cst_7 : f32 to vector<1x16xf32>
    %6 = arith.divf %4, %5 : vector<1x16xf32>
    %7 = vector.extract_strided_slice %1 {offsets = [1, 0], sizes = [1, 16], strides = [1, 1]} : vector<2x16xf32> to vector<1x16xf32>
    %cst_8 = arith.constant 3.200000e+01 : f32
    %8 = vector.broadcast %cst_8 : f32 to vector<1x16xf32>
    %9 = arith.divf %7, %8 : vector<1x16xf32>
    %10 = arith.mulf %6, %6 : vector<1x16xf32>
    %11 = arith.subf %9, %10 : vector<1x16xf32>
    %cst_9 = arith.constant 0.000000e+00 : f32
    %12 = vector.broadcast %cst_9 : f32 to vector<1x16xf32>
    %13 = arith.maximumf %11, %12 : vector<1x16xf32>
    %cst_10 = arith.constant 9.99999974E-6 : f32
    %14 = vector.broadcast %cst_10 : f32 to vector<1x16xf32>
    %15 = arith.addf %13, %14 : vector<1x16xf32>
    %16 = math.rsqrt %15 : vector<1x16xf32>
    %17 = vector.extract_strided_slice %3 {offsets = [0, 0], sizes = [1, 16], strides = [1, 1]} : vector<2x16xf32> to vector<1x16xf32>
    %18 = arith.mulf %16, %17 : vector<1x16xf32>
    %19 = vector.shape_cast %6 : vector<1x16xf32> to vector<1x1x16xf32>
    %20 = vector.broadcast %19 : vector<1x1x16xf32> to vector<2x16x16xf32>
    %21 = arith.subf %2, %20 : vector<2x16x16xf32>
    %22 = vector.shape_cast %18 : vector<1x16xf32> to vector<1x1x16xf32>
    %23 = vector.broadcast %22 : vector<1x1x16xf32> to vector<2x16x16xf32>
    %24 = arith.mulf %21, %23 : vector<2x16x16xf32>
    %25 = vector.extract_strided_slice %3 {offsets = [1, 0], sizes = [1, 16], strides = [1, 1]} : vector<2x16xf32> to vector<1x16xf32>
    %26 = vector.shape_cast %25 : vector<1x16xf32> to vector<1x1x16xf32>
    %27 = vector.broadcast %26 : vector<1x1x16xf32> to vector<2x16x16xf32>
    %28 = arith.addf %24, %27 : vector<2x16x16xf32>
    %cst_11 = arith.constant 0.000000e+00 : f32
    %29 = vector.broadcast %cst_11 : f32 to vector<2x16x16xf32>
    %30 = arith.cmpf ogt, %28, %29 : vector<2x16x16xf32>
    %cst_12 = arith.constant 0.000000e+00 : f32
    %31 = vector.broadcast %cst_12 : f32 to vector<2x16x16xf32>
    %32 = arith.minimumf %28, %31 : vector<2x16x16xf32>
    %33 = math.exp %32 : vector<2x16x16xf32>
    %cst_13 = arith.constant 1.000000e+00 : f32
    %34 = vector.broadcast %cst_13 : f32 to vector<2x16x16xf32>
    %35 = arith.subf %33, %34 : vector<2x16x16xf32>
    %36 = arith.select %30, %28, %35 : vector<2x16x16xi1>, vector<2x16x16xf32>
    %37 = arith.truncf %36 : vector<2x16x16xf32> to vector<2x16x16xbf16>
    %cst_14 = arith.constant 0.000000e+00 : bf16
    %38 = vector.broadcast %cst_14 : bf16 to vector<2x1x16xbf16>
    %39 = tpu.concatenate %38, %37, %38 in 1 : vector<2x1x16xbf16>, vector<2x16x16xbf16>, vector<2x1x16xbf16> -> vector<2x18x16xbf16>
    %40 = vector.extract_strided_slice %39 {offsets = [0, 0, 0], sizes = [2, 16, 16], strides = [1, 1, 1]} : vector<2x18x16xbf16> to vector<2x16x16xbf16>
    %41 = vector.extract_strided_slice %39 {offsets = [0, 1, 0], sizes = [2, 16, 16], strides = [1, 1, 1]} : vector<2x18x16xbf16> to vector<2x16x16xbf16>
    %42 = vector.extract_strided_slice %39 {offsets = [0, 2, 0], sizes = [2, 16, 16], strides = [1, 1, 1]} : vector<2x18x16xbf16> to vector<2x16x16xbf16>
    %43 = tpu.concatenate %40, %41, %42 in 2 : vector<2x16x16xbf16>, vector<2x16x16xbf16>, vector<2x16x16xbf16> -> vector<2x16x48xbf16>
    %44 = vector.shape_cast %43 : vector<2x16x48xbf16> to vector<32x48xbf16>
    %c0_15 = arith.constant 0 : index
    %c0_16 = arith.constant 0 : index
    %45 = vector.load %arg4[%c0_15, %c0_16] : memref<48x16xbf16, #tpu.memory_space<vmem>>, vector<48x16xbf16>
    %cst_17 = arith.constant dense<0.000000e+00> : vector<32x16xf32>
    %46 = tpu.matmul %44, %45, %cst_17 {dimension_numbers = #tpu.dot_dimension_numbers<[1], [0], [0], [1], [0, 0, 1, 1], [], []>} : vector<32x48xbf16>, vector<48x16xbf16>, vector<32x16xf32> -> vector<32x16xf32>
    %47 = vector.shape_cast %46 : vector<32x16xf32> to vector<2x16x16xf32>
    %c0_18 = arith.constant 0 : index
    %c0_19 = arith.constant 0 : index
    %c0_20 = arith.constant 0 : index
    %48 = vector.load %arg5[%c0_18, %c0_19, %c0_20] : memref<2x16x16xf32, #tpu.memory_space<vmem>>, vector<2x16x16xf32>
    tpu.vector_store %arg5[%c0_18, %c0_19, %c0_20], %47 {strides = array<i32>} : memref<2x16x16xf32, #tpu.memory_space<vmem>>, vector<2x16x16xf32>,
    %cst_21 = arith.constant dense<0.000000e+00> : vector<16xf32>
    %49 = vector.multi_reduction <add>, %46, %cst_21 [0] : vector<32x16xf32> to vector<16xf32>
    %50 = vector.shape_cast %49 : vector<16xf32> to vector<1x16xf32>
    %51 = arith.mulf %46, %46 : vector<32x16xf32>
    %cst_22 = arith.constant dense<0.000000e+00> : vector<16xf32>
    %52 = vector.multi_reduction <add>, %51, %cst_22 [0] : vector<32x16xf32> to vector<16xf32>
    %53 = vector.shape_cast %52 : vector<16xf32> to vector<1x16xf32>
    %54 = tpu.concatenate %50, %53 in 0 : vector<1x16xf32>, vector<1x16xf32> -> vector<2x16xf32>
    %c0_23 = arith.constant 0 : index
    %c0_24 = arith.constant 0 : index
    %c0_25 = arith.constant 0 : index
    %55 = vector.load %arg6[%c0_23, %c0_24, %c0_25] : memref<1x2x16xf32, #tpu.memory_space<vmem>>, vector<1x2x16xf32>
    %56 = vector.shape_cast %55 : vector<1x2x16xf32> to vector<2x16xf32>
    %57 = vector.shape_cast %54 : vector<2x16xf32> to vector<1x2x16xf32>
    tpu.vector_store %arg6[%c0_23, %c0_24, %c0_25], %57 {strides = array<i32>} : memref<1x2x16xf32, #tpu.memory_space<vmem>>, vector<1x2x16xf32>,
    return
  }
  func.func @transform_0(%arg0: i32) -> (i32, i32, i32) {
    %c0_i32 = arith.constant 0 : i32
    %c0_i32_0 = arith.constant 0 : i32
    %c0_i32_1 = arith.constant 0 : i32
    return %arg0, %c0_i32, %c0_i32_0 : i32, i32, i32
  }
  func.func @transform_1(%arg0: i32) -> (i32, i32, i32) {
    %c0_i32 = arith.constant 0 : i32
    %c0_i32_0 = arith.constant 0 : i32
    %c0_i32_1 = arith.constant 0 : i32
    %c0_i32_2 = arith.constant 0 : i32
    return %c0_i32, %c0_i32_0, %c0_i32_1 : i32, i32, i32
  }
  func.func @transform_2(%arg0: i32) -> (i32, i32) {
    %c0_i32 = arith.constant 0 : i32
    %c0_i32_0 = arith.constant 0 : i32
    %c0_i32_1 = arith.constant 0 : i32
    return %c0_i32, %c0_i32_0 : i32, i32
  }
  func.func @transform_3(%arg0: i32) -> (i32, i32) {
    %c0_i32 = arith.constant 0 : i32
    %c0_i32_0 = arith.constant 0 : i32
    %c0_i32_1 = arith.constant 0 : i32
    return %c0_i32, %c0_i32_0 : i32, i32
  }
  func.func @transform_4(%arg0: i32) -> (i32, i32, i32) {
    %c0_i32 = arith.constant 0 : i32
    %c0_i32_0 = arith.constant 0 : i32
    %c0_i32_1 = arith.constant 0 : i32
    return %arg0, %c0_i32, %c0_i32_0 : i32, i32, i32
  }
  func.func @transform_5(%arg0: i32) -> (i32, i32, i32) {
    %c0_i32 = arith.constant 0 : i32
    %c0_i32_0 = arith.constant 0 : i32
    %c0_i32_1 = arith.constant 0 : i32
    return %arg0, %c0_i32, %c0_i32_0 : i32, i32, i32
  }
}

module attributes {stable_mosaic.version = 11 : i64} {
  func.func @_bn_se_res_kernel(%arg0: i32, %arg1: memref<2x16x16xf32, #tpu.memory_space<vmem>>, %arg2: memref<1x2x16xf32, #tpu.memory_space<vmem>>, %arg3: memref<2x16xf32, #tpu.memory_space<vmem>>, %arg4: memref<2x16x16xf32, #tpu.memory_space<vmem>>, %arg5: memref<16x1xf32, #tpu.memory_space<vmem>>, %arg6: memref<1x16xf32, #tpu.memory_space<vmem>>, %arg7: memref<2x16x16xf32, #tpu.memory_space<vmem>>) attributes {dimension_semantics = [#tpu.dimension_semantics<parallel>], iteration_bounds = array<i64: 1>, scalar_prefetch = 0 : i64, scratch_operands = 0 : i64, tpu.core_type = #tpu.core_type<tc>, window_params = [{transform_indices = @transform_0, window_bounds = array<i64: 2, 16, 16>}, {pipeline_mode = #tpu.pipeline_mode<synchronous>, transform_indices = @transform_1, window_bounds = array<i64: 1, 2, 16>}, {pipeline_mode = #tpu.pipeline_mode<synchronous>, transform_indices = @transform_2, window_bounds = array<i64: 2, 16>}, {transform_indices = @transform_3, window_bounds = array<i64: 2, 16, 16>}, {pipeline_mode = #tpu.pipeline_mode<synchronous>, transform_indices = @transform_4, window_bounds = array<i64: 16, 1>}, {pipeline_mode = #tpu.pipeline_mode<synchronous>, transform_indices = @transform_5, window_bounds = array<i64: 1, 16>}, {transform_indices = @transform_6, window_bounds = array<i64: 2, 16, 16>}]} {
    %c0 = arith.constant 0 : index
    %c0_0 = arith.constant 0 : index
    %c0_1 = arith.constant 0 : index
    %0 = vector.load %arg2[%c0, %c0_0, %c0_1] : memref<1x2x16xf32, #tpu.memory_space<vmem>>, vector<1x2x16xf32>
    %cst = arith.constant dense<0.000000e+00> : vector<2x16xf32>
    %1 = vector.multi_reduction <add>, %0, %cst [0] : vector<1x2x16xf32> to vector<2x16xf32>
    %c0_2 = arith.constant 0 : index
    %c0_3 = arith.constant 0 : index
    %c0_4 = arith.constant 0 : index
    %2 = vector.load %arg1[%c0_2, %c0_3, %c0_4] : memref<2x16x16xf32, #tpu.memory_space<vmem>>, vector<2x16x16xf32>
    %c0_5 = arith.constant 0 : index
    %c0_6 = arith.constant 0 : index
    %3 = vector.load %arg3[%c0_5, %c0_6] : memref<2x16xf32, #tpu.memory_space<vmem>>, vector<2x16xf32>
    %4 = vector.extract_strided_slice %1 {offsets = [0, 0], sizes = [1, 16], strides = [1, 1]} : vector<2x16xf32> to vector<1x16xf32>
    %cst_7 = arith.constant 3.200000e+01 : f32
    %5 = vector.broadcast %cst_7 : f32 to vector<1x16xf32>
    %6 = arith.divf %4, %5 : vector<1x16xf32>
    %7 = vector.extract_strided_slice %1 {offsets = [1, 0], sizes = [1, 16], strides = [1, 1]} : vector<2x16xf32> to vector<1x16xf32>
    %cst_8 = arith.constant 3.200000e+01 : f32
    %8 = vector.broadcast %cst_8 : f32 to vector<1x16xf32>
    %9 = arith.divf %7, %8 : vector<1x16xf32>
    %10 = arith.mulf %6, %6 : vector<1x16xf32>
    %11 = arith.subf %9, %10 : vector<1x16xf32>
    %cst_9 = arith.constant 0.000000e+00 : f32
    %12 = vector.broadcast %cst_9 : f32 to vector<1x16xf32>
    %13 = arith.maximumf %11, %12 : vector<1x16xf32>
    %cst_10 = arith.constant 9.99999974E-6 : f32
    %14 = vector.broadcast %cst_10 : f32 to vector<1x16xf32>
    %15 = arith.addf %13, %14 : vector<1x16xf32>
    %16 = math.rsqrt %15 : vector<1x16xf32>
    %17 = vector.extract_strided_slice %3 {offsets = [0, 0], sizes = [1, 16], strides = [1, 1]} : vector<2x16xf32> to vector<1x16xf32>
    %18 = arith.mulf %16, %17 : vector<1x16xf32>
    %19 = vector.shape_cast %6 : vector<1x16xf32> to vector<1x1x16xf32>
    %20 = vector.broadcast %19 : vector<1x1x16xf32> to vector<2x16x16xf32>
    %21 = arith.subf %2, %20 : vector<2x16x16xf32>
    %22 = vector.shape_cast %18 : vector<1x16xf32> to vector<1x1x16xf32>
    %23 = vector.broadcast %22 : vector<1x1x16xf32> to vector<2x16x16xf32>
    %24 = arith.mulf %21, %23 : vector<2x16x16xf32>
    %25 = vector.extract_strided_slice %3 {offsets = [1, 0], sizes = [1, 16], strides = [1, 1]} : vector<2x16xf32> to vector<1x16xf32>
    %26 = vector.shape_cast %25 : vector<1x16xf32> to vector<1x1x16xf32>
    %27 = vector.broadcast %26 : vector<1x1x16xf32> to vector<2x16x16xf32>
    %28 = arith.addf %24, %27 : vector<2x16x16xf32>
    %cst_11 = arith.constant dense<0.000000e+00> : vector<2x16xf32>
    %29 = vector.multi_reduction <add>, %28, %cst_11 [1] : vector<2x16x16xf32> to vector<2x16xf32>
    %cst_12 = arith.constant 1.600000e+01 : f32
    %30 = vector.broadcast %cst_12 : f32 to vector<2x16xf32>
    %31 = arith.divf %29, %30 : vector<2x16xf32>
    %c0_13 = arith.constant 0 : index
    %c0_14 = arith.constant 0 : index
    %32 = vector.load %arg5[%c0_13, %c0_14] : memref<16x1xf32, #tpu.memory_space<vmem>>, vector<16x1xf32>
    %cst_15 = arith.constant dense<0.000000e+00> : vector<2x1xf32>
    %33 = tpu.matmul %31, %32, %cst_15 {dimension_numbers = #tpu.dot_dimension_numbers<[1], [0], [0], [1], [0, 0, 1, 1], [], []>} : vector<2x16xf32>, vector<16x1xf32>, vector<2x1xf32> -> vector<2x1xf32>
    %cst_16 = arith.constant 0.000000e+00 : f32
    %34 = vector.broadcast %cst_16 : f32 to vector<2x1xf32>
    %35 = arith.maximumf %33, %34 : vector<2x1xf32>
    %c0_17 = arith.constant 0 : index
    %c0_18 = arith.constant 0 : index
    %36 = vector.load %arg6[%c0_17, %c0_18] : memref<1x16xf32, #tpu.memory_space<vmem>>, vector<1x16xf32>
    %cst_19 = arith.constant dense<0.000000e+00> : vector<2x16xf32>
    %37 = tpu.matmul %35, %36, %cst_19 {dimension_numbers = #tpu.dot_dimension_numbers<[1], [0], [0], [1], [0, 0, 1, 1], [], []>} : vector<2x1xf32>, vector<1x16xf32>, vector<2x16xf32> -> vector<2x16xf32>
    %cst_20 = arith.constant 0.000000e+00 : f32
    %38 = vector.broadcast %cst_20 : f32 to vector<2x16xf32>
    %39 = arith.subf %38, %37 : vector<2x16xf32>
    %40 = math.exp %39 : vector<2x16xf32>
    %cst_21 = arith.constant 1.000000e+00 : f32
    %41 = vector.broadcast %cst_21 : f32 to vector<2x16xf32>
    %42 = arith.addf %41, %40 : vector<2x16xf32>
    %cst_22 = arith.constant 1.000000e+00 : f32
    %43 = vector.broadcast %cst_22 : f32 to vector<2x16xf32>
    %44 = arith.divf %43, %42 : vector<2x16xf32>
    %45 = vector.shape_cast %44 : vector<2x16xf32> to vector<2x1x16xf32>
    %46 = vector.broadcast %45 : vector<2x1x16xf32> to vector<2x16x16xf32>
    %47 = arith.mulf %28, %46 : vector<2x16x16xf32>
    %c0_23 = arith.constant 0 : index
    %c0_24 = arith.constant 0 : index
    %c0_25 = arith.constant 0 : index
    %48 = vector.load %arg4[%c0_23, %c0_24, %c0_25] : memref<2x16x16xf32, #tpu.memory_space<vmem>>, vector<2x16x16xf32>
    %49 = arith.addf %47, %48 : vector<2x16x16xf32>
    %cst_26 = arith.constant 0.000000e+00 : f32
    %50 = vector.broadcast %cst_26 : f32 to vector<2x16x16xf32>
    %51 = arith.cmpf ogt, %49, %50 : vector<2x16x16xf32>
    %cst_27 = arith.constant 0.000000e+00 : f32
    %52 = vector.broadcast %cst_27 : f32 to vector<2x16x16xf32>
    %53 = arith.minimumf %49, %52 : vector<2x16x16xf32>
    %54 = math.exp %53 : vector<2x16x16xf32>
    %cst_28 = arith.constant 1.000000e+00 : f32
    %55 = vector.broadcast %cst_28 : f32 to vector<2x16x16xf32>
    %56 = arith.subf %54, %55 : vector<2x16x16xf32>
    %57 = arith.select %51, %49, %56 : vector<2x16x16xi1>, vector<2x16x16xf32>
    %c0_29 = arith.constant 0 : index
    %c0_30 = arith.constant 0 : index
    %c0_31 = arith.constant 0 : index
    %58 = vector.load %arg7[%c0_29, %c0_30, %c0_31] : memref<2x16x16xf32, #tpu.memory_space<vmem>>, vector<2x16x16xf32>
    tpu.vector_store %arg7[%c0_29, %c0_30, %c0_31], %57 {strides = array<i32>} : memref<2x16x16xf32, #tpu.memory_space<vmem>>, vector<2x16x16xf32>,
    return
  }
  func.func @transform_0(%arg0: i32) -> (i32, i32, i32) {
    %c0_i32 = arith.constant 0 : i32
    %c0_i32_0 = arith.constant 0 : i32
    %c0_i32_1 = arith.constant 0 : i32
    return %arg0, %c0_i32, %c0_i32_0 : i32, i32, i32
  }
  func.func @transform_1(%arg0: i32) -> (i32, i32, i32) {
    %c0_i32 = arith.constant 0 : i32
    %c0_i32_0 = arith.constant 0 : i32
    %c0_i32_1 = arith.constant 0 : i32
    %c0_i32_2 = arith.constant 0 : i32
    return %c0_i32, %c0_i32_0, %c0_i32_1 : i32, i32, i32
  }
  func.func @transform_2(%arg0: i32) -> (i32, i32) {
    %c0_i32 = arith.constant 0 : i32
    %c0_i32_0 = arith.constant 0 : i32
    %c0_i32_1 = arith.constant 0 : i32
    return %c0_i32, %c0_i32_0 : i32, i32
  }
  func.func @transform_3(%arg0: i32) -> (i32, i32, i32) {
    %c0_i32 = arith.constant 0 : i32
    %c0_i32_0 = arith.constant 0 : i32
    %c0_i32_1 = arith.constant 0 : i32
    return %arg0, %c0_i32, %c0_i32_0 : i32, i32, i32
  }
  func.func @transform_4(%arg0: i32) -> (i32, i32) {
    %c0_i32 = arith.constant 0 : i32
    %c0_i32_0 = arith.constant 0 : i32
    %c0_i32_1 = arith.constant 0 : i32
    return %c0_i32, %c0_i32_0 : i32, i32
  }
  func.func @transform_5(%arg0: i32) -> (i32, i32) {
    %c0_i32 = arith.constant 0 : i32
    %c0_i32_0 = arith.constant 0 : i32
    %c0_i32_1 = arith.constant 0 : i32
    return %c0_i32, %c0_i32_0 : i32, i32
  }
  func.func @transform_6(%arg0: i32) -> (i32, i32, i32) {
    %c0_i32 = arith.constant 0 : i32
    %c0_i32_0 = arith.constant 0 : i32
    %c0_i32_1 = arith.constant 0 : i32
    return %arg0, %c0_i32, %c0_i32_0 : i32, i32, i32
  }
}

module attributes {stable_mosaic.version = 11 : i64} {
  func.func @_bn_elu_conv2_stats_kernel(%arg0: i32, %arg1: memref<2x8x32xf32, #tpu.memory_space<vmem>>, %arg2: memref<1x2x32xf32, #tpu.memory_space<vmem>>, %arg3: memref<2x32xf32, #tpu.memory_space<vmem>>, %arg4: memref<96x32xbf16, #tpu.memory_space<vmem>>, %arg5: memref<2x8x32xf32, #tpu.memory_space<vmem>>, %arg6: memref<1x2x32xf32, #tpu.memory_space<vmem>>) attributes {dimension_semantics = [#tpu.dimension_semantics<parallel>], iteration_bounds = array<i64: 1>, scalar_prefetch = 0 : i64, scratch_operands = 0 : i64, tpu.core_type = #tpu.core_type<tc>, window_params = [{transform_indices = @transform_0, window_bounds = array<i64: 2, 8, 32>}, {pipeline_mode = #tpu.pipeline_mode<synchronous>, transform_indices = @transform_1, window_bounds = array<i64: 1, 2, 32>}, {pipeline_mode = #tpu.pipeline_mode<synchronous>, transform_indices = @transform_2, window_bounds = array<i64: 2, 32>}, {pipeline_mode = #tpu.pipeline_mode<synchronous>, transform_indices = @transform_3, window_bounds = array<i64: 96, 32>}, {transform_indices = @transform_4, window_bounds = array<i64: 2, 8, 32>}, {transform_indices = @transform_5, window_bounds = array<i64: 1, 2, 32>}]} {
    %c0 = arith.constant 0 : index
    %c0_0 = arith.constant 0 : index
    %c0_1 = arith.constant 0 : index
    %0 = vector.load %arg2[%c0, %c0_0, %c0_1] : memref<1x2x32xf32, #tpu.memory_space<vmem>>, vector<1x2x32xf32>
    %cst = arith.constant dense<0.000000e+00> : vector<2x32xf32>
    %1 = vector.multi_reduction <add>, %0, %cst [0] : vector<1x2x32xf32> to vector<2x32xf32>
    %c0_2 = arith.constant 0 : index
    %c0_3 = arith.constant 0 : index
    %c0_4 = arith.constant 0 : index
    %2 = vector.load %arg1[%c0_2, %c0_3, %c0_4] : memref<2x8x32xf32, #tpu.memory_space<vmem>>, vector<2x8x32xf32>
    %c0_5 = arith.constant 0 : index
    %c0_6 = arith.constant 0 : index
    %3 = vector.load %arg3[%c0_5, %c0_6] : memref<2x32xf32, #tpu.memory_space<vmem>>, vector<2x32xf32>
    %4 = vector.extract_strided_slice %1 {offsets = [0, 0], sizes = [1, 32], strides = [1, 1]} : vector<2x32xf32> to vector<1x32xf32>
    %cst_7 = arith.constant 1.600000e+01 : f32
    %5 = vector.broadcast %cst_7 : f32 to vector<1x32xf32>
    %6 = arith.divf %4, %5 : vector<1x32xf32>
    %7 = vector.extract_strided_slice %1 {offsets = [1, 0], sizes = [1, 32], strides = [1, 1]} : vector<2x32xf32> to vector<1x32xf32>
    %cst_8 = arith.constant 1.600000e+01 : f32
    %8 = vector.broadcast %cst_8 : f32 to vector<1x32xf32>
    %9 = arith.divf %7, %8 : vector<1x32xf32>
    %10 = arith.mulf %6, %6 : vector<1x32xf32>
    %11 = arith.subf %9, %10 : vector<1x32xf32>
    %cst_9 = arith.constant 0.000000e+00 : f32
    %12 = vector.broadcast %cst_9 : f32 to vector<1x32xf32>
    %13 = arith.maximumf %11, %12 : vector<1x32xf32>
    %cst_10 = arith.constant 9.99999974E-6 : f32
    %14 = vector.broadcast %cst_10 : f32 to vector<1x32xf32>
    %15 = arith.addf %13, %14 : vector<1x32xf32>
    %16 = math.rsqrt %15 : vector<1x32xf32>
    %17 = vector.extract_strided_slice %3 {offsets = [0, 0], sizes = [1, 32], strides = [1, 1]} : vector<2x32xf32> to vector<1x32xf32>
    %18 = arith.mulf %16, %17 : vector<1x32xf32>
    %19 = vector.shape_cast %6 : vector<1x32xf32> to vector<1x1x32xf32>
    %20 = vector.broadcast %19 : vector<1x1x32xf32> to vector<2x8x32xf32>
    %21 = arith.subf %2, %20 : vector<2x8x32xf32>
    %22 = vector.shape_cast %18 : vector<1x32xf32> to vector<1x1x32xf32>
    %23 = vector.broadcast %22 : vector<1x1x32xf32> to vector<2x8x32xf32>
    %24 = arith.mulf %21, %23 : vector<2x8x32xf32>
    %25 = vector.extract_strided_slice %3 {offsets = [1, 0], sizes = [1, 32], strides = [1, 1]} : vector<2x32xf32> to vector<1x32xf32>
    %26 = vector.shape_cast %25 : vector<1x32xf32> to vector<1x1x32xf32>
    %27 = vector.broadcast %26 : vector<1x1x32xf32> to vector<2x8x32xf32>
    %28 = arith.addf %24, %27 : vector<2x8x32xf32>
    %cst_11 = arith.constant 0.000000e+00 : f32
    %29 = vector.broadcast %cst_11 : f32 to vector<2x8x32xf32>
    %30 = arith.cmpf ogt, %28, %29 : vector<2x8x32xf32>
    %cst_12 = arith.constant 0.000000e+00 : f32
    %31 = vector.broadcast %cst_12 : f32 to vector<2x8x32xf32>
    %32 = arith.minimumf %28, %31 : vector<2x8x32xf32>
    %33 = math.exp %32 : vector<2x8x32xf32>
    %cst_13 = arith.constant 1.000000e+00 : f32
    %34 = vector.broadcast %cst_13 : f32 to vector<2x8x32xf32>
    %35 = arith.subf %33, %34 : vector<2x8x32xf32>
    %36 = arith.select %30, %28, %35 : vector<2x8x32xi1>, vector<2x8x32xf32>
    %37 = arith.truncf %36 : vector<2x8x32xf32> to vector<2x8x32xbf16>
    %cst_14 = arith.constant 0.000000e+00 : bf16
    %38 = vector.broadcast %cst_14 : bf16 to vector<2x1x32xbf16>
    %39 = tpu.concatenate %38, %37, %38 in 1 : vector<2x1x32xbf16>, vector<2x8x32xbf16>, vector<2x1x32xbf16> -> vector<2x10x32xbf16>
    %40 = vector.extract_strided_slice %39 {offsets = [0, 0, 0], sizes = [2, 8, 32], strides = [1, 1, 1]} : vector<2x10x32xbf16> to vector<2x8x32xbf16>
    %41 = vector.extract_strided_slice %39 {offsets = [0, 1, 0], sizes = [2, 8, 32], strides = [1, 1, 1]} : vector<2x10x32xbf16> to vector<2x8x32xbf16>
    %42 = vector.extract_strided_slice %39 {offsets = [0, 2, 0], sizes = [2, 8, 32], strides = [1, 1, 1]} : vector<2x10x32xbf16> to vector<2x8x32xbf16>
    %43 = tpu.concatenate %40, %41, %42 in 2 : vector<2x8x32xbf16>, vector<2x8x32xbf16>, vector<2x8x32xbf16> -> vector<2x8x96xbf16>
    %44 = vector.shape_cast %43 : vector<2x8x96xbf16> to vector<16x96xbf16>
    %c0_15 = arith.constant 0 : index
    %c0_16 = arith.constant 0 : index
    %45 = vector.load %arg4[%c0_15, %c0_16] : memref<96x32xbf16, #tpu.memory_space<vmem>>, vector<96x32xbf16>
    %cst_17 = arith.constant dense<0.000000e+00> : vector<16x32xf32>
    %46 = tpu.matmul %44, %45, %cst_17 {dimension_numbers = #tpu.dot_dimension_numbers<[1], [0], [0], [1], [0, 0, 1, 1], [], []>} : vector<16x96xbf16>, vector<96x32xbf16>, vector<16x32xf32> -> vector<16x32xf32>
    %47 = vector.shape_cast %46 : vector<16x32xf32> to vector<2x8x32xf32>
    %c0_18 = arith.constant 0 : index
    %c0_19 = arith.constant 0 : index
    %c0_20 = arith.constant 0 : index
    %48 = vector.load %arg5[%c0_18, %c0_19, %c0_20] : memref<2x8x32xf32, #tpu.memory_space<vmem>>, vector<2x8x32xf32>
    tpu.vector_store %arg5[%c0_18, %c0_19, %c0_20], %47 {strides = array<i32>} : memref<2x8x32xf32, #tpu.memory_space<vmem>>, vector<2x8x32xf32>,
    %cst_21 = arith.constant dense<0.000000e+00> : vector<32xf32>
    %49 = vector.multi_reduction <add>, %46, %cst_21 [0] : vector<16x32xf32> to vector<32xf32>
    %50 = vector.shape_cast %49 : vector<32xf32> to vector<1x32xf32>
    %51 = arith.mulf %46, %46 : vector<16x32xf32>
    %cst_22 = arith.constant dense<0.000000e+00> : vector<32xf32>
    %52 = vector.multi_reduction <add>, %51, %cst_22 [0] : vector<16x32xf32> to vector<32xf32>
    %53 = vector.shape_cast %52 : vector<32xf32> to vector<1x32xf32>
    %54 = tpu.concatenate %50, %53 in 0 : vector<1x32xf32>, vector<1x32xf32> -> vector<2x32xf32>
    %c0_23 = arith.constant 0 : index
    %c0_24 = arith.constant 0 : index
    %c0_25 = arith.constant 0 : index
    %55 = vector.load %arg6[%c0_23, %c0_24, %c0_25] : memref<1x2x32xf32, #tpu.memory_space<vmem>>, vector<1x2x32xf32>
    %56 = vector.shape_cast %55 : vector<1x2x32xf32> to vector<2x32xf32>
    %57 = vector.shape_cast %54 : vector<2x32xf32> to vector<1x2x32xf32>
    tpu.vector_store %arg6[%c0_23, %c0_24, %c0_25], %57 {strides = array<i32>} : memref<1x2x32xf32, #tpu.memory_space<vmem>>, vector<1x2x32xf32>,
    return
  }
  func.func @transform_0(%arg0: i32) -> (i32, i32, i32) {
    %c0_i32 = arith.constant 0 : i32
    %c0_i32_0 = arith.constant 0 : i32
    %c0_i32_1 = arith.constant 0 : i32
    return %arg0, %c0_i32, %c0_i32_0 : i32, i32, i32
  }
  func.func @transform_1(%arg0: i32) -> (i32, i32, i32) {
    %c0_i32 = arith.constant 0 : i32
    %c0_i32_0 = arith.constant 0 : i32
    %c0_i32_1 = arith.constant 0 : i32
    %c0_i32_2 = arith.constant 0 : i32
    return %c0_i32, %c0_i32_0, %c0_i32_1 : i32, i32, i32
  }
  func.func @transform_2(%arg0: i32) -> (i32, i32) {
    %c0_i32 = arith.constant 0 : i32
    %c0_i32_0 = arith.constant 0 : i32
    %c0_i32_1 = arith.constant 0 : i32
    return %c0_i32, %c0_i32_0 : i32, i32
  }
  func.func @transform_3(%arg0: i32) -> (i32, i32) {
    %c0_i32 = arith.constant 0 : i32
    %c0_i32_0 = arith.constant 0 : i32
    %c0_i32_1 = arith.constant 0 : i32
    return %c0_i32, %c0_i32_0 : i32, i32
  }
  func.func @transform_4(%arg0: i32) -> (i32, i32, i32) {
    %c0_i32 = arith.constant 0 : i32
    %c0_i32_0 = arith.constant 0 : i32
    %c0_i32_1 = arith.constant 0 : i32
    return %arg0, %c0_i32, %c0_i32_0 : i32, i32, i32
  }
  func.func @transform_5(%arg0: i32) -> (i32, i32, i32) {
    %c0_i32 = arith.constant 0 : i32
    %c0_i32_0 = arith.constant 0 : i32
    %c0_i32_1 = arith.constant 0 : i32
    return %arg0, %c0_i32, %c0_i32_0 : i32, i32, i32
  }
}

module attributes {stable_mosaic.version = 11 : i64} {
  func.func @_conv_s2_dual_stats_kernel(%arg0: i32, %arg1: memref<2x9x16xbf16, #tpu.memory_space<vmem>>, %arg2: memref<2x9x16xbf16, #tpu.memory_space<vmem>>, %arg3: memref<48x32xbf16, #tpu.memory_space<vmem>>, %arg4: memref<16x32xbf16, #tpu.memory_space<vmem>>, %arg5: memref<2x8x32xf32, #tpu.memory_space<vmem>>, %arg6: memref<1x2x32xf32, #tpu.memory_space<vmem>>, %arg7: memref<2x8x32xf32, #tpu.memory_space<vmem>>, %arg8: memref<1x2x32xf32, #tpu.memory_space<vmem>>) attributes {dimension_semantics = [#tpu.dimension_semantics<parallel>], iteration_bounds = array<i64: 1>, scalar_prefetch = 0 : i64, scratch_operands = 0 : i64, tpu.core_type = #tpu.core_type<tc>, window_params = [{transform_indices = @transform_0, window_bounds = array<i64: 2, 9, 16>}, {transform_indices = @transform_1, window_bounds = array<i64: 2, 9, 16>}, {pipeline_mode = #tpu.pipeline_mode<synchronous>, transform_indices = @transform_2, window_bounds = array<i64: 48, 32>}, {pipeline_mode = #tpu.pipeline_mode<synchronous>, transform_indices = @transform_3, window_bounds = array<i64: 16, 32>}, {transform_indices = @transform_4, window_bounds = array<i64: 2, 8, 32>}, {transform_indices = @transform_5, window_bounds = array<i64: 1, 2, 32>}, {transform_indices = @transform_6, window_bounds = array<i64: 2, 8, 32>}, {transform_indices = @transform_7, window_bounds = array<i64: 1, 2, 32>}]} {
    %c0 = arith.constant 0 : index
    %c0_0 = arith.constant 0 : index
    %c0_1 = arith.constant 0 : index
    %0 = vector.load %arg1[%c0, %c0_0, %c0_1] : memref<2x9x16xbf16, #tpu.memory_space<vmem>>, vector<2x9x16xbf16>
    %c0_2 = arith.constant 0 : index
    %c0_3 = arith.constant 0 : index
    %c0_4 = arith.constant 0 : index
    %1 = vector.load %arg2[%c0_2, %c0_3, %c0_4] : memref<2x9x16xbf16, #tpu.memory_space<vmem>>, vector<2x9x16xbf16>
    %2 = vector.extract_strided_slice %0 {offsets = [0, 0, 0], sizes = [2, 8, 16], strides = [1, 1, 1]} : vector<2x9x16xbf16> to vector<2x8x16xbf16>
    %3 = vector.extract_strided_slice %1 {offsets = [0, 0, 0], sizes = [2, 8, 16], strides = [1, 1, 1]} : vector<2x9x16xbf16> to vector<2x8x16xbf16>
    %4 = vector.extract_strided_slice %0 {offsets = [0, 1, 0], sizes = [2, 8, 16], strides = [1, 1, 1]} : vector<2x9x16xbf16> to vector<2x8x16xbf16>
    %5 = tpu.concatenate %2, %3, %4 in 2 : vector<2x8x16xbf16>, vector<2x8x16xbf16>, vector<2x8x16xbf16> -> vector<2x8x48xbf16>
    %6 = vector.shape_cast %5 : vector<2x8x48xbf16> to vector<16x48xbf16>
    %c0_5 = arith.constant 0 : index
    %c0_6 = arith.constant 0 : index
    %7 = vector.load %arg3[%c0_5, %c0_6] : memref<48x32xbf16, #tpu.memory_space<vmem>>, vector<48x32xbf16>
    %cst = arith.constant dense<0.000000e+00> : vector<16x32xf32>
    %8 = tpu.matmul %6, %7, %cst {dimension_numbers = #tpu.dot_dimension_numbers<[1], [0], [0], [1], [0, 0, 1, 1], [], []>} : vector<16x48xbf16>, vector<48x32xbf16>, vector<16x32xf32> -> vector<16x32xf32>
    %9 = vector.shape_cast %8 : vector<16x32xf32> to vector<2x8x32xf32>
    %c0_7 = arith.constant 0 : index
    %c0_8 = arith.constant 0 : index
    %c0_9 = arith.constant 0 : index
    %10 = vector.load %arg5[%c0_7, %c0_8, %c0_9] : memref<2x8x32xf32, #tpu.memory_space<vmem>>, vector<2x8x32xf32>
    tpu.vector_store %arg5[%c0_7, %c0_8, %c0_9], %9 {strides = array<i32>} : memref<2x8x32xf32, #tpu.memory_space<vmem>>, vector<2x8x32xf32>,
    %cst_10 = arith.constant dense<0.000000e+00> : vector<32xf32>
    %11 = vector.multi_reduction <add>, %8, %cst_10 [0] : vector<16x32xf32> to vector<32xf32>
    %12 = vector.shape_cast %11 : vector<32xf32> to vector<1x32xf32>
    %13 = arith.mulf %8, %8 : vector<16x32xf32>
    %cst_11 = arith.constant dense<0.000000e+00> : vector<32xf32>
    %14 = vector.multi_reduction <add>, %13, %cst_11 [0] : vector<16x32xf32> to vector<32xf32>
    %15 = vector.shape_cast %14 : vector<32xf32> to vector<1x32xf32>
    %16 = tpu.concatenate %12, %15 in 0 : vector<1x32xf32>, vector<1x32xf32> -> vector<2x32xf32>
    %c0_12 = arith.constant 0 : index
    %c0_13 = arith.constant 0 : index
    %c0_14 = arith.constant 0 : index
    %17 = vector.load %arg6[%c0_12, %c0_13, %c0_14] : memref<1x2x32xf32, #tpu.memory_space<vmem>>, vector<1x2x32xf32>
    %18 = vector.shape_cast %17 : vector<1x2x32xf32> to vector<2x32xf32>
    %19 = vector.shape_cast %16 : vector<2x32xf32> to vector<1x2x32xf32>
    tpu.vector_store %arg6[%c0_12, %c0_13, %c0_14], %19 {strides = array<i32>} : memref<1x2x32xf32, #tpu.memory_space<vmem>>, vector<1x2x32xf32>,
    %20 = vector.extract_strided_slice %1 {offsets = [0, 0, 0], sizes = [2, 8, 16], strides = [1, 1, 1]} : vector<2x9x16xbf16> to vector<2x8x16xbf16>
    %21 = vector.shape_cast %20 : vector<2x8x16xbf16> to vector<16x16xbf16>
    %c0_15 = arith.constant 0 : index
    %c0_16 = arith.constant 0 : index
    %22 = vector.load %arg4[%c0_15, %c0_16] : memref<16x32xbf16, #tpu.memory_space<vmem>>, vector<16x32xbf16>
    %cst_17 = arith.constant dense<0.000000e+00> : vector<16x32xf32>
    %23 = tpu.matmul %21, %22, %cst_17 {dimension_numbers = #tpu.dot_dimension_numbers<[1], [0], [0], [1], [0, 0, 1, 1], [], []>} : vector<16x16xbf16>, vector<16x32xbf16>, vector<16x32xf32> -> vector<16x32xf32>
    %24 = vector.shape_cast %23 : vector<16x32xf32> to vector<2x8x32xf32>
    %c0_18 = arith.constant 0 : index
    %c0_19 = arith.constant 0 : index
    %c0_20 = arith.constant 0 : index
    %25 = vector.load %arg7[%c0_18, %c0_19, %c0_20] : memref<2x8x32xf32, #tpu.memory_space<vmem>>, vector<2x8x32xf32>
    tpu.vector_store %arg7[%c0_18, %c0_19, %c0_20], %24 {strides = array<i32>} : memref<2x8x32xf32, #tpu.memory_space<vmem>>, vector<2x8x32xf32>,
    %cst_21 = arith.constant dense<0.000000e+00> : vector<32xf32>
    %26 = vector.multi_reduction <add>, %23, %cst_21 [0] : vector<16x32xf32> to vector<32xf32>
    %27 = vector.shape_cast %26 : vector<32xf32> to vector<1x32xf32>
    %28 = arith.mulf %23, %23 : vector<16x32xf32>
    %cst_22 = arith.constant dense<0.000000e+00> : vector<32xf32>
    %29 = vector.multi_reduction <add>, %28, %cst_22 [0] : vector<16x32xf32> to vector<32xf32>
    %30 = vector.shape_cast %29 : vector<32xf32> to vector<1x32xf32>
    %31 = tpu.concatenate %27, %30 in 0 : vector<1x32xf32>, vector<1x32xf32> -> vector<2x32xf32>
    %c0_23 = arith.constant 0 : index
    %c0_24 = arith.constant 0 : index
    %c0_25 = arith.constant 0 : index
    %32 = vector.load %arg8[%c0_23, %c0_24, %c0_25] : memref<1x2x32xf32, #tpu.memory_space<vmem>>, vector<1x2x32xf32>
    %33 = vector.shape_cast %32 : vector<1x2x32xf32> to vector<2x32xf32>
    %34 = vector.shape_cast %31 : vector<2x32xf32> to vector<1x2x32xf32>
    tpu.vector_store %arg8[%c0_23, %c0_24, %c0_25], %34 {strides = array<i32>} : memref<1x2x32xf32, #tpu.memory_space<vmem>>, vector<1x2x32xf32>,
    return
  }
  func.func @transform_0(%arg0: i32) -> (i32, i32, i32) {
    %c0_i32 = arith.constant 0 : i32
    %c0_i32_0 = arith.constant 0 : i32
    %c0_i32_1 = arith.constant 0 : i32
    return %arg0, %c0_i32, %c0_i32_0 : i32, i32, i32
  }
  func.func @transform_1(%arg0: i32) -> (i32, i32, i32) {
    %c0_i32 = arith.constant 0 : i32
    %c0_i32_0 = arith.constant 0 : i32
    %c0_i32_1 = arith.constant 0 : i32
    return %arg0, %c0_i32, %c0_i32_0 : i32, i32, i32
  }
  func.func @transform_2(%arg0: i32) -> (i32, i32) {
    %c0_i32 = arith.constant 0 : i32
    %c0_i32_0 = arith.constant 0 : i32
    %c0_i32_1 = arith.constant 0 : i32
    return %c0_i32, %c0_i32_0 : i32, i32
  }
  func.func @transform_3(%arg0: i32) -> (i32, i32) {
    %c0_i32 = arith.constant 0 : i32
    %c0_i32_0 = arith.constant 0 : i32
    %c0_i32_1 = arith.constant 0 : i32
    return %c0_i32, %c0_i32_0 : i32, i32
  }
  func.func @transform_4(%arg0: i32) -> (i32, i32, i32) {
    %c0_i32 = arith.constant 0 : i32
    %c0_i32_0 = arith.constant 0 : i32
    %c0_i32_1 = arith.constant 0 : i32
    return %arg0, %c0_i32, %c0_i32_0 : i32, i32, i32
  }
  func.func @transform_5(%arg0: i32) -> (i32, i32, i32) {
    %c0_i32 = arith.constant 0 : i32
    %c0_i32_0 = arith.constant 0 : i32
    %c0_i32_1 = arith.constant 0 : i32
    return %arg0, %c0_i32, %c0_i32_0 : i32, i32, i32
  }
  func.func @transform_6(%arg0: i32) -> (i32, i32, i32) {
    %c0_i32 = arith.constant 0 : i32
    %c0_i32_0 = arith.constant 0 : i32
    %c0_i32_1 = arith.constant 0 : i32
    return %arg0, %c0_i32, %c0_i32_0 : i32, i32, i32
  }
  func.func @transform_7(%arg0: i32) -> (i32, i32, i32) {
    %c0_i32 = arith.constant 0 : i32
    %c0_i32_0 = arith.constant 0 : i32
    %c0_i32_1 = arith.constant 0 : i32
    return %arg0, %c0_i32, %c0_i32_0 : i32, i32, i32
  }
}

module attributes {stable_mosaic.version = 11 : i64} {
  func.func @_bn_se_downres_kernel(%arg0: i32, %arg1: memref<2x8x32xf32, #tpu.memory_space<vmem>>, %arg2: memref<1x2x32xf32, #tpu.memory_space<vmem>>, %arg3: memref<2x32xf32, #tpu.memory_space<vmem>>, %arg4: memref<2x8x32xf32, #tpu.memory_space<vmem>>, %arg5: memref<1x2x32xf32, #tpu.memory_space<vmem>>, %arg6: memref<2x32xf32, #tpu.memory_space<vmem>>, %arg7: memref<32x2xf32, #tpu.memory_space<vmem>>, %arg8: memref<2x32xf32, #tpu.memory_space<vmem>>, %arg9: memref<2x8x32xf32, #tpu.memory_space<vmem>>) attributes {dimension_semantics = [#tpu.dimension_semantics<parallel>], iteration_bounds = array<i64: 1>, scalar_prefetch = 0 : i64, scratch_operands = 0 : i64, tpu.core_type = #tpu.core_type<tc>, window_params = [{transform_indices = @transform_0, window_bounds = array<i64: 2, 8, 32>}, {pipeline_mode = #tpu.pipeline_mode<synchronous>, transform_indices = @transform_1, window_bounds = array<i64: 1, 2, 32>}, {pipeline_mode = #tpu.pipeline_mode<synchronous>, transform_indices = @transform_2, window_bounds = array<i64: 2, 32>}, {transform_indices = @transform_3, window_bounds = array<i64: 2, 8, 32>}, {pipeline_mode = #tpu.pipeline_mode<synchronous>, transform_indices = @transform_4, window_bounds = array<i64: 1, 2, 32>}, {pipeline_mode = #tpu.pipeline_mode<synchronous>, transform_indices = @transform_5, window_bounds = array<i64: 2, 32>}, {pipeline_mode = #tpu.pipeline_mode<synchronous>, transform_indices = @transform_6, window_bounds = array<i64: 32, 2>}, {pipeline_mode = #tpu.pipeline_mode<synchronous>, transform_indices = @transform_7, window_bounds = array<i64: 2, 32>}, {transform_indices = @transform_8, window_bounds = array<i64: 2, 8, 32>}]} {
    %c0 = arith.constant 0 : index
    %c0_0 = arith.constant 0 : index
    %c0_1 = arith.constant 0 : index
    %0 = vector.load %arg2[%c0, %c0_0, %c0_1] : memref<1x2x32xf32, #tpu.memory_space<vmem>>, vector<1x2x32xf32>
    %cst = arith.constant dense<0.000000e+00> : vector<2x32xf32>
    %1 = vector.multi_reduction <add>, %0, %cst [0] : vector<1x2x32xf32> to vector<2x32xf32>
    %c0_2 = arith.constant 0 : index
    %c0_3 = arith.constant 0 : index
    %c0_4 = arith.constant 0 : index
    %2 = vector.load %arg5[%c0_2, %c0_3, %c0_4] : memref<1x2x32xf32, #tpu.memory_space<vmem>>, vector<1x2x32xf32>
    %cst_5 = arith.constant dense<0.000000e+00> : vector<2x32xf32>
    %3 = vector.multi_reduction <add>, %2, %cst_5 [0] : vector<1x2x32xf32> to vector<2x32xf32>
    %c0_6 = arith.constant 0 : index
    %c0_7 = arith.constant 0 : index
    %c0_8 = arith.constant 0 : index
    %4 = vector.load %arg1[%c0_6, %c0_7, %c0_8] : memref<2x8x32xf32, #tpu.memory_space<vmem>>, vector<2x8x32xf32>
    %c0_9 = arith.constant 0 : index
    %c0_10 = arith.constant 0 : index
    %5 = vector.load %arg3[%c0_9, %c0_10] : memref<2x32xf32, #tpu.memory_space<vmem>>, vector<2x32xf32>
    %6 = vector.extract_strided_slice %1 {offsets = [0, 0], sizes = [1, 32], strides = [1, 1]} : vector<2x32xf32> to vector<1x32xf32>
    %cst_11 = arith.constant 1.600000e+01 : f32
    %7 = vector.broadcast %cst_11 : f32 to vector<1x32xf32>
    %8 = arith.divf %6, %7 : vector<1x32xf32>
    %9 = vector.extract_strided_slice %1 {offsets = [1, 0], sizes = [1, 32], strides = [1, 1]} : vector<2x32xf32> to vector<1x32xf32>
    %cst_12 = arith.constant 1.600000e+01 : f32
    %10 = vector.broadcast %cst_12 : f32 to vector<1x32xf32>
    %11 = arith.divf %9, %10 : vector<1x32xf32>
    %12 = arith.mulf %8, %8 : vector<1x32xf32>
    %13 = arith.subf %11, %12 : vector<1x32xf32>
    %cst_13 = arith.constant 0.000000e+00 : f32
    %14 = vector.broadcast %cst_13 : f32 to vector<1x32xf32>
    %15 = arith.maximumf %13, %14 : vector<1x32xf32>
    %cst_14 = arith.constant 9.99999974E-6 : f32
    %16 = vector.broadcast %cst_14 : f32 to vector<1x32xf32>
    %17 = arith.addf %15, %16 : vector<1x32xf32>
    %18 = math.rsqrt %17 : vector<1x32xf32>
    %19 = vector.extract_strided_slice %5 {offsets = [0, 0], sizes = [1, 32], strides = [1, 1]} : vector<2x32xf32> to vector<1x32xf32>
    %20 = arith.mulf %18, %19 : vector<1x32xf32>
    %21 = vector.shape_cast %8 : vector<1x32xf32> to vector<1x1x32xf32>
    %22 = vector.broadcast %21 : vector<1x1x32xf32> to vector<2x8x32xf32>
    %23 = arith.subf %4, %22 : vector<2x8x32xf32>
    %24 = vector.shape_cast %20 : vector<1x32xf32> to vector<1x1x32xf32>
    %25 = vector.broadcast %24 : vector<1x1x32xf32> to vector<2x8x32xf32>
    %26 = arith.mulf %23, %25 : vector<2x8x32xf32>
    %27 = vector.extract_strided_slice %5 {offsets = [1, 0], sizes = [1, 32], strides = [1, 1]} : vector<2x32xf32> to vector<1x32xf32>
    %28 = vector.shape_cast %27 : vector<1x32xf32> to vector<1x1x32xf32>
    %29 = vector.broadcast %28 : vector<1x1x32xf32> to vector<2x8x32xf32>
    %30 = arith.addf %26, %29 : vector<2x8x32xf32>
    %c0_15 = arith.constant 0 : index
    %c0_16 = arith.constant 0 : index
    %c0_17 = arith.constant 0 : index
    %31 = vector.load %arg4[%c0_15, %c0_16, %c0_17] : memref<2x8x32xf32, #tpu.memory_space<vmem>>, vector<2x8x32xf32>
    %c0_18 = arith.constant 0 : index
    %c0_19 = arith.constant 0 : index
    %32 = vector.load %arg6[%c0_18, %c0_19] : memref<2x32xf32, #tpu.memory_space<vmem>>, vector<2x32xf32>
    %33 = vector.extract_strided_slice %3 {offsets = [0, 0], sizes = [1, 32], strides = [1, 1]} : vector<2x32xf32> to vector<1x32xf32>
    %cst_20 = arith.constant 1.600000e+01 : f32
    %34 = vector.broadcast %cst_20 : f32 to vector<1x32xf32>
    %35 = arith.divf %33, %34 : vector<1x32xf32>
    %36 = vector.extract_strided_slice %3 {offsets = [1, 0], sizes = [1, 32], strides = [1, 1]} : vector<2x32xf32> to vector<1x32xf32>
    %cst_21 = arith.constant 1.600000e+01 : f32
    %37 = vector.broadcast %cst_21 : f32 to vector<1x32xf32>
    %38 = arith.divf %36, %37 : vector<1x32xf32>
    %39 = arith.mulf %35, %35 : vector<1x32xf32>
    %40 = arith.subf %38, %39 : vector<1x32xf32>
    %cst_22 = arith.constant 0.000000e+00 : f32
    %41 = vector.broadcast %cst_22 : f32 to vector<1x32xf32>
    %42 = arith.maximumf %40, %41 : vector<1x32xf32>
    %cst_23 = arith.constant 9.99999974E-6 : f32
    %43 = vector.broadcast %cst_23 : f32 to vector<1x32xf32>
    %44 = arith.addf %42, %43 : vector<1x32xf32>
    %45 = math.rsqrt %44 : vector<1x32xf32>
    %46 = vector.extract_strided_slice %32 {offsets = [0, 0], sizes = [1, 32], strides = [1, 1]} : vector<2x32xf32> to vector<1x32xf32>
    %47 = arith.mulf %45, %46 : vector<1x32xf32>
    %48 = vector.shape_cast %35 : vector<1x32xf32> to vector<1x1x32xf32>
    %49 = vector.broadcast %48 : vector<1x1x32xf32> to vector<2x8x32xf32>
    %50 = arith.subf %31, %49 : vector<2x8x32xf32>
    %51 = vector.shape_cast %47 : vector<1x32xf32> to vector<1x1x32xf32>
    %52 = vector.broadcast %51 : vector<1x1x32xf32> to vector<2x8x32xf32>
    %53 = arith.mulf %50, %52 : vector<2x8x32xf32>
    %54 = vector.extract_strided_slice %32 {offsets = [1, 0], sizes = [1, 32], strides = [1, 1]} : vector<2x32xf32> to vector<1x32xf32>
    %55 = vector.shape_cast %54 : vector<1x32xf32> to vector<1x1x32xf32>
    %56 = vector.broadcast %55 : vector<1x1x32xf32> to vector<2x8x32xf32>
    %57 = arith.addf %53, %56 : vector<2x8x32xf32>
    %cst_24 = arith.constant dense<0.000000e+00> : vector<2x32xf32>
    %58 = vector.multi_reduction <add>, %30, %cst_24 [1] : vector<2x8x32xf32> to vector<2x32xf32>
    %cst_25 = arith.constant 8.000000e+00 : f32
    %59 = vector.broadcast %cst_25 : f32 to vector<2x32xf32>
    %60 = arith.divf %58, %59 : vector<2x32xf32>
    %c0_26 = arith.constant 0 : index
    %c0_27 = arith.constant 0 : index
    %61 = vector.load %arg7[%c0_26, %c0_27] : memref<32x2xf32, #tpu.memory_space<vmem>>, vector<32x2xf32>
    %cst_28 = arith.constant dense<0.000000e+00> : vector<2x2xf32>
    %62 = tpu.matmul %60, %61, %cst_28 {dimension_numbers = #tpu.dot_dimension_numbers<[1], [0], [0], [1], [0, 0, 1, 1], [], []>} : vector<2x32xf32>, vector<32x2xf32>, vector<2x2xf32> -> vector<2x2xf32>
    %cst_29 = arith.constant 0.000000e+00 : f32
    %63 = vector.broadcast %cst_29 : f32 to vector<2x2xf32>
    %64 = arith.maximumf %62, %63 : vector<2x2xf32>
    %c0_30 = arith.constant 0 : index
    %c0_31 = arith.constant 0 : index
    %65 = vector.load %arg8[%c0_30, %c0_31] : memref<2x32xf32, #tpu.memory_space<vmem>>, vector<2x32xf32>
    %cst_32 = arith.constant dense<0.000000e+00> : vector<2x32xf32>
    %66 = tpu.matmul %64, %65, %cst_32 {dimension_numbers = #tpu.dot_dimension_numbers<[1], [0], [0], [1], [0, 0, 1, 1], [], []>} : vector<2x2xf32>, vector<2x32xf32>, vector<2x32xf32> -> vector<2x32xf32>
    %cst_33 = arith.constant 0.000000e+00 : f32
    %67 = vector.broadcast %cst_33 : f32 to vector<2x32xf32>
    %68 = arith.subf %67, %66 : vector<2x32xf32>
    %69 = math.exp %68 : vector<2x32xf32>
    %cst_34 = arith.constant 1.000000e+00 : f32
    %70 = vector.broadcast %cst_34 : f32 to vector<2x32xf32>
    %71 = arith.addf %70, %69 : vector<2x32xf32>
    %cst_35 = arith.constant 1.000000e+00 : f32
    %72 = vector.broadcast %cst_35 : f32 to vector<2x32xf32>
    %73 = arith.divf %72, %71 : vector<2x32xf32>
    %74 = vector.shape_cast %73 : vector<2x32xf32> to vector<2x1x32xf32>
    %75 = vector.broadcast %74 : vector<2x1x32xf32> to vector<2x8x32xf32>
    %76 = arith.mulf %30, %75 : vector<2x8x32xf32>
    %77 = arith.addf %76, %57 : vector<2x8x32xf32>
    %cst_36 = arith.constant 0.000000e+00 : f32
    %78 = vector.broadcast %cst_36 : f32 to vector<2x8x32xf32>
    %79 = arith.cmpf ogt, %77, %78 : vector<2x8x32xf32>
    %cst_37 = arith.constant 0.000000e+00 : f32
    %80 = vector.broadcast %cst_37 : f32 to vector<2x8x32xf32>
    %81 = arith.minimumf %77, %80 : vector<2x8x32xf32>
    %82 = math.exp %81 : vector<2x8x32xf32>
    %cst_38 = arith.constant 1.000000e+00 : f32
    %83 = vector.broadcast %cst_38 : f32 to vector<2x8x32xf32>
    %84 = arith.subf %82, %83 : vector<2x8x32xf32>
    %85 = arith.select %79, %77, %84 : vector<2x8x32xi1>, vector<2x8x32xf32>
    %c0_39 = arith.constant 0 : index
    %c0_40 = arith.constant 0 : index
    %c0_41 = arith.constant 0 : index
    %86 = vector.load %arg9[%c0_39, %c0_40, %c0_41] : memref<2x8x32xf32, #tpu.memory_space<vmem>>, vector<2x8x32xf32>
    tpu.vector_store %arg9[%c0_39, %c0_40, %c0_41], %85 {strides = array<i32>} : memref<2x8x32xf32, #tpu.memory_space<vmem>>, vector<2x8x32xf32>,
    return
  }
  func.func @transform_0(%arg0: i32) -> (i32, i32, i32) {
    %c0_i32 = arith.constant 0 : i32
    %c0_i32_0 = arith.constant 0 : i32
    %c0_i32_1 = arith.constant 0 : i32
    return %arg0, %c0_i32, %c0_i32_0 : i32, i32, i32
  }
  func.func @transform_1(%arg0: i32) -> (i32, i32, i32) {
    %c0_i32 = arith.constant 0 : i32
    %c0_i32_0 = arith.constant 0 : i32
    %c0_i32_1 = arith.constant 0 : i32
    %c0_i32_2 = arith.constant 0 : i32
    return %c0_i32, %c0_i32_0, %c0_i32_1 : i32, i32, i32
  }
  func.func @transform_2(%arg0: i32) -> (i32, i32) {
    %c0_i32 = arith.constant 0 : i32
    %c0_i32_0 = arith.constant 0 : i32
    %c0_i32_1 = arith.constant 0 : i32
    return %c0_i32, %c0_i32_0 : i32, i32
  }
  func.func @transform_3(%arg0: i32) -> (i32, i32, i32) {
    %c0_i32 = arith.constant 0 : i32
    %c0_i32_0 = arith.constant 0 : i32
    %c0_i32_1 = arith.constant 0 : i32
    return %arg0, %c0_i32, %c0_i32_0 : i32, i32, i32
  }
  func.func @transform_4(%arg0: i32) -> (i32, i32, i32) {
    %c0_i32 = arith.constant 0 : i32
    %c0_i32_0 = arith.constant 0 : i32
    %c0_i32_1 = arith.constant 0 : i32
    %c0_i32_2 = arith.constant 0 : i32
    return %c0_i32, %c0_i32_0, %c0_i32_1 : i32, i32, i32
  }
  func.func @transform_5(%arg0: i32) -> (i32, i32) {
    %c0_i32 = arith.constant 0 : i32
    %c0_i32_0 = arith.constant 0 : i32
    %c0_i32_1 = arith.constant 0 : i32
    return %c0_i32, %c0_i32_0 : i32, i32
  }
  func.func @transform_6(%arg0: i32) -> (i32, i32) {
    %c0_i32 = arith.constant 0 : i32
    %c0_i32_0 = arith.constant 0 : i32
    %c0_i32_1 = arith.constant 0 : i32
    return %c0_i32, %c0_i32_0 : i32, i32
  }
  func.func @transform_7(%arg0: i32) -> (i32, i32) {
    %c0_i32 = arith.constant 0 : i32
    %c0_i32_0 = arith.constant 0 : i32
    %c0_i32_1 = arith.constant 0 : i32
    return %c0_i32, %c0_i32_0 : i32, i32
  }
  func.func @transform_8(%arg0: i32) -> (i32, i32, i32) {
    %c0_i32 = arith.constant 0 : i32
    %c0_i32_0 = arith.constant 0 : i32
    %c0_i32_1 = arith.constant 0 : i32
    return %arg0, %c0_i32, %c0_i32_0 : i32, i32, i32
  }
}

module attributes {stable_mosaic.version = 11 : i64} {
  func.func @_conv_s1_stats_kernel(%arg0: i32, %arg1: memref<2x10x32xbf16, #tpu.memory_space<vmem>>, %arg2: memref<96x32xbf16, #tpu.memory_space<vmem>>, %arg3: memref<2x8x32xf32, #tpu.memory_space<vmem>>, %arg4: memref<1x2x32xf32, #tpu.memory_space<vmem>>) attributes {dimension_semantics = [#tpu.dimension_semantics<parallel>], iteration_bounds = array<i64: 1>, scalar_prefetch = 0 : i64, scratch_operands = 0 : i64, tpu.core_type = #tpu.core_type<tc>, window_params = [{transform_indices = @transform_0, window_bounds = array<i64: 2, 10, 32>}, {pipeline_mode = #tpu.pipeline_mode<synchronous>, transform_indices = @transform_1, window_bounds = array<i64: 96, 32>}, {transform_indices = @transform_2, window_bounds = array<i64: 2, 8, 32>}, {transform_indices = @transform_3, window_bounds = array<i64: 1, 2, 32>}]} {
    %c0 = arith.constant 0 : index
    %c0_0 = arith.constant 0 : index
    %c0_1 = arith.constant 0 : index
    %0 = vector.load %arg1[%c0, %c0_0, %c0_1] : memref<2x10x32xbf16, #tpu.memory_space<vmem>>, vector<2x10x32xbf16>
    %1 = vector.extract_strided_slice %0 {offsets = [0, 0, 0], sizes = [2, 8, 32], strides = [1, 1, 1]} : vector<2x10x32xbf16> to vector<2x8x32xbf16>
    %2 = vector.extract_strided_slice %0 {offsets = [0, 1, 0], sizes = [2, 8, 32], strides = [1, 1, 1]} : vector<2x10x32xbf16> to vector<2x8x32xbf16>
    %3 = vector.extract_strided_slice %0 {offsets = [0, 2, 0], sizes = [2, 8, 32], strides = [1, 1, 1]} : vector<2x10x32xbf16> to vector<2x8x32xbf16>
    %4 = tpu.concatenate %1, %2, %3 in 2 : vector<2x8x32xbf16>, vector<2x8x32xbf16>, vector<2x8x32xbf16> -> vector<2x8x96xbf16>
    %5 = vector.shape_cast %4 : vector<2x8x96xbf16> to vector<16x96xbf16>
    %c0_2 = arith.constant 0 : index
    %c0_3 = arith.constant 0 : index
    %6 = vector.load %arg2[%c0_2, %c0_3] : memref<96x32xbf16, #tpu.memory_space<vmem>>, vector<96x32xbf16>
    %cst = arith.constant dense<0.000000e+00> : vector<16x32xf32>
    %7 = tpu.matmul %5, %6, %cst {dimension_numbers = #tpu.dot_dimension_numbers<[1], [0], [0], [1], [0, 0, 1, 1], [], []>} : vector<16x96xbf16>, vector<96x32xbf16>, vector<16x32xf32> -> vector<16x32xf32>
    %8 = vector.shape_cast %7 : vector<16x32xf32> to vector<2x8x32xf32>
    %c0_4 = arith.constant 0 : index
    %c0_5 = arith.constant 0 : index
    %c0_6 = arith.constant 0 : index
    %9 = vector.load %arg3[%c0_4, %c0_5, %c0_6] : memref<2x8x32xf32, #tpu.memory_space<vmem>>, vector<2x8x32xf32>
    tpu.vector_store %arg3[%c0_4, %c0_5, %c0_6], %8 {strides = array<i32>} : memref<2x8x32xf32, #tpu.memory_space<vmem>>, vector<2x8x32xf32>,
    %cst_7 = arith.constant dense<0.000000e+00> : vector<32xf32>
    %10 = vector.multi_reduction <add>, %7, %cst_7 [0] : vector<16x32xf32> to vector<32xf32>
    %11 = vector.shape_cast %10 : vector<32xf32> to vector<1x32xf32>
    %12 = arith.mulf %7, %7 : vector<16x32xf32>
    %cst_8 = arith.constant dense<0.000000e+00> : vector<32xf32>
    %13 = vector.multi_reduction <add>, %12, %cst_8 [0] : vector<16x32xf32> to vector<32xf32>
    %14 = vector.shape_cast %13 : vector<32xf32> to vector<1x32xf32>
    %15 = tpu.concatenate %11, %14 in 0 : vector<1x32xf32>, vector<1x32xf32> -> vector<2x32xf32>
    %c0_9 = arith.constant 0 : index
    %c0_10 = arith.constant 0 : index
    %c0_11 = arith.constant 0 : index
    %16 = vector.load %arg4[%c0_9, %c0_10, %c0_11] : memref<1x2x32xf32, #tpu.memory_space<vmem>>, vector<1x2x32xf32>
    %17 = vector.shape_cast %16 : vector<1x2x32xf32> to vector<2x32xf32>
    %18 = vector.shape_cast %15 : vector<2x32xf32> to vector<1x2x32xf32>
    tpu.vector_store %arg4[%c0_9, %c0_10, %c0_11], %18 {strides = array<i32>} : memref<1x2x32xf32, #tpu.memory_space<vmem>>, vector<1x2x32xf32>,
    return
  }
  func.func @transform_0(%arg0: i32) -> (i32, i32, i32) {
    %c0_i32 = arith.constant 0 : i32
    %c0_i32_0 = arith.constant 0 : i32
    %c0_i32_1 = arith.constant 0 : i32
    return %arg0, %c0_i32, %c0_i32_0 : i32, i32, i32
  }
  func.func @transform_1(%arg0: i32) -> (i32, i32) {
    %c0_i32 = arith.constant 0 : i32
    %c0_i32_0 = arith.constant 0 : i32
    %c0_i32_1 = arith.constant 0 : i32
    return %c0_i32, %c0_i32_0 : i32, i32
  }
  func.func @transform_2(%arg0: i32) -> (i32, i32, i32) {
    %c0_i32 = arith.constant 0 : i32
    %c0_i32_0 = arith.constant 0 : i32
    %c0_i32_1 = arith.constant 0 : i32
    return %arg0, %c0_i32, %c0_i32_0 : i32, i32, i32
  }
  func.func @transform_3(%arg0: i32) -> (i32, i32, i32) {
    %c0_i32 = arith.constant 0 : i32
    %c0_i32_0 = arith.constant 0 : i32
    %c0_i32_1 = arith.constant 0 : i32
    return %arg0, %c0_i32, %c0_i32_0 : i32, i32, i32
  }
}

module attributes {stable_mosaic.version = 11 : i64} {
  func.func @_bn_se_res_kernel(%arg0: i32, %arg1: memref<2x8x32xf32, #tpu.memory_space<vmem>>, %arg2: memref<1x2x32xf32, #tpu.memory_space<vmem>>, %arg3: memref<2x32xf32, #tpu.memory_space<vmem>>, %arg4: memref<2x8x32xf32, #tpu.memory_space<vmem>>, %arg5: memref<32x2xf32, #tpu.memory_space<vmem>>, %arg6: memref<2x32xf32, #tpu.memory_space<vmem>>, %arg7: memref<2x8x32xf32, #tpu.memory_space<vmem>>) attributes {dimension_semantics = [#tpu.dimension_semantics<parallel>], iteration_bounds = array<i64: 1>, scalar_prefetch = 0 : i64, scratch_operands = 0 : i64, tpu.core_type = #tpu.core_type<tc>, window_params = [{transform_indices = @transform_0, window_bounds = array<i64: 2, 8, 32>}, {pipeline_mode = #tpu.pipeline_mode<synchronous>, transform_indices = @transform_1, window_bounds = array<i64: 1, 2, 32>}, {pipeline_mode = #tpu.pipeline_mode<synchronous>, transform_indices = @transform_2, window_bounds = array<i64: 2, 32>}, {transform_indices = @transform_3, window_bounds = array<i64: 2, 8, 32>}, {pipeline_mode = #tpu.pipeline_mode<synchronous>, transform_indices = @transform_4, window_bounds = array<i64: 32, 2>}, {pipeline_mode = #tpu.pipeline_mode<synchronous>, transform_indices = @transform_5, window_bounds = array<i64: 2, 32>}, {transform_indices = @transform_6, window_bounds = array<i64: 2, 8, 32>}]} {
    %c0 = arith.constant 0 : index
    %c0_0 = arith.constant 0 : index
    %c0_1 = arith.constant 0 : index
    %0 = vector.load %arg2[%c0, %c0_0, %c0_1] : memref<1x2x32xf32, #tpu.memory_space<vmem>>, vector<1x2x32xf32>
    %cst = arith.constant dense<0.000000e+00> : vector<2x32xf32>
    %1 = vector.multi_reduction <add>, %0, %cst [0] : vector<1x2x32xf32> to vector<2x32xf32>
    %c0_2 = arith.constant 0 : index
    %c0_3 = arith.constant 0 : index
    %c0_4 = arith.constant 0 : index
    %2 = vector.load %arg1[%c0_2, %c0_3, %c0_4] : memref<2x8x32xf32, #tpu.memory_space<vmem>>, vector<2x8x32xf32>
    %c0_5 = arith.constant 0 : index
    %c0_6 = arith.constant 0 : index
    %3 = vector.load %arg3[%c0_5, %c0_6] : memref<2x32xf32, #tpu.memory_space<vmem>>, vector<2x32xf32>
    %4 = vector.extract_strided_slice %1 {offsets = [0, 0], sizes = [1, 32], strides = [1, 1]} : vector<2x32xf32> to vector<1x32xf32>
    %cst_7 = arith.constant 1.600000e+01 : f32
    %5 = vector.broadcast %cst_7 : f32 to vector<1x32xf32>
    %6 = arith.divf %4, %5 : vector<1x32xf32>
    %7 = vector.extract_strided_slice %1 {offsets = [1, 0], sizes = [1, 32], strides = [1, 1]} : vector<2x32xf32> to vector<1x32xf32>
    %cst_8 = arith.constant 1.600000e+01 : f32
    %8 = vector.broadcast %cst_8 : f32 to vector<1x32xf32>
    %9 = arith.divf %7, %8 : vector<1x32xf32>
    %10 = arith.mulf %6, %6 : vector<1x32xf32>
    %11 = arith.subf %9, %10 : vector<1x32xf32>
    %cst_9 = arith.constant 0.000000e+00 : f32
    %12 = vector.broadcast %cst_9 : f32 to vector<1x32xf32>
    %13 = arith.maximumf %11, %12 : vector<1x32xf32>
    %cst_10 = arith.constant 9.99999974E-6 : f32
    %14 = vector.broadcast %cst_10 : f32 to vector<1x32xf32>
    %15 = arith.addf %13, %14 : vector<1x32xf32>
    %16 = math.rsqrt %15 : vector<1x32xf32>
    %17 = vector.extract_strided_slice %3 {offsets = [0, 0], sizes = [1, 32], strides = [1, 1]} : vector<2x32xf32> to vector<1x32xf32>
    %18 = arith.mulf %16, %17 : vector<1x32xf32>
    %19 = vector.shape_cast %6 : vector<1x32xf32> to vector<1x1x32xf32>
    %20 = vector.broadcast %19 : vector<1x1x32xf32> to vector<2x8x32xf32>
    %21 = arith.subf %2, %20 : vector<2x8x32xf32>
    %22 = vector.shape_cast %18 : vector<1x32xf32> to vector<1x1x32xf32>
    %23 = vector.broadcast %22 : vector<1x1x32xf32> to vector<2x8x32xf32>
    %24 = arith.mulf %21, %23 : vector<2x8x32xf32>
    %25 = vector.extract_strided_slice %3 {offsets = [1, 0], sizes = [1, 32], strides = [1, 1]} : vector<2x32xf32> to vector<1x32xf32>
    %26 = vector.shape_cast %25 : vector<1x32xf32> to vector<1x1x32xf32>
    %27 = vector.broadcast %26 : vector<1x1x32xf32> to vector<2x8x32xf32>
    %28 = arith.addf %24, %27 : vector<2x8x32xf32>
    %cst_11 = arith.constant dense<0.000000e+00> : vector<2x32xf32>
    %29 = vector.multi_reduction <add>, %28, %cst_11 [1] : vector<2x8x32xf32> to vector<2x32xf32>
    %cst_12 = arith.constant 8.000000e+00 : f32
    %30 = vector.broadcast %cst_12 : f32 to vector<2x32xf32>
    %31 = arith.divf %29, %30 : vector<2x32xf32>
    %c0_13 = arith.constant 0 : index
    %c0_14 = arith.constant 0 : index
    %32 = vector.load %arg5[%c0_13, %c0_14] : memref<32x2xf32, #tpu.memory_space<vmem>>, vector<32x2xf32>
    %cst_15 = arith.constant dense<0.000000e+00> : vector<2x2xf32>
    %33 = tpu.matmul %31, %32, %cst_15 {dimension_numbers = #tpu.dot_dimension_numbers<[1], [0], [0], [1], [0, 0, 1, 1], [], []>} : vector<2x32xf32>, vector<32x2xf32>, vector<2x2xf32> -> vector<2x2xf32>
    %cst_16 = arith.constant 0.000000e+00 : f32
    %34 = vector.broadcast %cst_16 : f32 to vector<2x2xf32>
    %35 = arith.maximumf %33, %34 : vector<2x2xf32>
    %c0_17 = arith.constant 0 : index
    %c0_18 = arith.constant 0 : index
    %36 = vector.load %arg6[%c0_17, %c0_18] : memref<2x32xf32, #tpu.memory_space<vmem>>, vector<2x32xf32>
    %cst_19 = arith.constant dense<0.000000e+00> : vector<2x32xf32>
    %37 = tpu.matmul %35, %36, %cst_19 {dimension_numbers = #tpu.dot_dimension_numbers<[1], [0], [0], [1], [0, 0, 1, 1], [], []>} : vector<2x2xf32>, vector<2x32xf32>, vector<2x32xf32> -> vector<2x32xf32>
    %cst_20 = arith.constant 0.000000e+00 : f32
    %38 = vector.broadcast %cst_20 : f32 to vector<2x32xf32>
    %39 = arith.subf %38, %37 : vector<2x32xf32>
    %40 = math.exp %39 : vector<2x32xf32>
    %cst_21 = arith.constant 1.000000e+00 : f32
    %41 = vector.broadcast %cst_21 : f32 to vector<2x32xf32>
    %42 = arith.addf %41, %40 : vector<2x32xf32>
    %cst_22 = arith.constant 1.000000e+00 : f32
    %43 = vector.broadcast %cst_22 : f32 to vector<2x32xf32>
    %44 = arith.divf %43, %42 : vector<2x32xf32>
    %45 = vector.shape_cast %44 : vector<2x32xf32> to vector<2x1x32xf32>
    %46 = vector.broadcast %45 : vector<2x1x32xf32> to vector<2x8x32xf32>
    %47 = arith.mulf %28, %46 : vector<2x8x32xf32>
    %c0_23 = arith.constant 0 : index
    %c0_24 = arith.constant 0 : index
    %c0_25 = arith.constant 0 : index
    %48 = vector.load %arg4[%c0_23, %c0_24, %c0_25] : memref<2x8x32xf32, #tpu.memory_space<vmem>>, vector<2x8x32xf32>
    %49 = arith.addf %47, %48 : vector<2x8x32xf32>
    %cst_26 = arith.constant 0.000000e+00 : f32
    %50 = vector.broadcast %cst_26 : f32 to vector<2x8x32xf32>
    %51 = arith.cmpf ogt, %49, %50 : vector<2x8x32xf32>
    %cst_27 = arith.constant 0.000000e+00 : f32
    %52 = vector.broadcast %cst_27 : f32 to vector<2x8x32xf32>
    %53 = arith.minimumf %49, %52 : vector<2x8x32xf32>
    %54 = math.exp %53 : vector<2x8x32xf32>
    %cst_28 = arith.constant 1.000000e+00 : f32
    %55 = vector.broadcast %cst_28 : f32 to vector<2x8x32xf32>
    %56 = arith.subf %54, %55 : vector<2x8x32xf32>
    %57 = arith.select %51, %49, %56 : vector<2x8x32xi1>, vector<2x8x32xf32>
    %c0_29 = arith.constant 0 : index
    %c0_30 = arith.constant 0 : index
    %c0_31 = arith.constant 0 : index
    %58 = vector.load %arg7[%c0_29, %c0_30, %c0_31] : memref<2x8x32xf32, #tpu.memory_space<vmem>>, vector<2x8x32xf32>
    tpu.vector_store %arg7[%c0_29, %c0_30, %c0_31], %57 {strides = array<i32>} : memref<2x8x32xf32, #tpu.memory_space<vmem>>, vector<2x8x32xf32>,
    return
  }
  func.func @transform_0(%arg0: i32) -> (i32, i32, i32) {
    %c0_i32 = arith.constant 0 : i32
    %c0_i32_0 = arith.constant 0 : i32
    %c0_i32_1 = arith.constant 0 : i32
    return %arg0, %c0_i32, %c0_i32_0 : i32, i32, i32
  }
  func.func @transform_1(%arg0: i32) -> (i32, i32, i32) {
    %c0_i32 = arith.constant 0 : i32
    %c0_i32_0 = arith.constant 0 : i32
    %c0_i32_1 = arith.constant 0 : i32
    %c0_i32_2 = arith.constant 0 : i32
    return %c0_i32, %c0_i32_0, %c0_i32_1 : i32, i32, i32
  }
  func.func @transform_2(%arg0: i32) -> (i32, i32) {
    %c0_i32 = arith.constant 0 : i32
    %c0_i32_0 = arith.constant 0 : i32
    %c0_i32_1 = arith.constant 0 : i32
    return %c0_i32, %c0_i32_0 : i32, i32
  }
  func.func @transform_3(%arg0: i32) -> (i32, i32, i32) {
    %c0_i32 = arith.constant 0 : i32
    %c0_i32_0 = arith.constant 0 : i32
    %c0_i32_1 = arith.constant 0 : i32
    return %arg0, %c0_i32, %c0_i32_0 : i32, i32, i32
  }
  func.func @transform_4(%arg0: i32) -> (i32, i32) {
    %c0_i32 = arith.constant 0 : i32
    %c0_i32_0 = arith.constant 0 : i32
    %c0_i32_1 = arith.constant 0 : i32
    return %c0_i32, %c0_i32_0 : i32, i32
  }
  func.func @transform_5(%arg0: i32) -> (i32, i32) {
    %c0_i32 = arith.constant 0 : i32
    %c0_i32_0 = arith.constant 0 : i32
    %c0_i32_1 = arith.constant 0 : i32
    return %c0_i32, %c0_i32_0 : i32, i32
  }
  func.func @transform_6(%arg0: i32) -> (i32, i32, i32) {
    %c0_i32 = arith.constant 0 : i32
    %c0_i32_0 = arith.constant 0 : i32
    %c0_i32_1 = arith.constant 0 : i32
    return %arg0, %c0_i32, %c0_i32_0 : i32, i32, i32
  }
}

module attributes {stable_mosaic.version = 11 : i64} {
  func.func @_bn_elu_conv2_stats_kernel(%arg0: i32, %arg1: memref<2x4x64xf32, #tpu.memory_space<vmem>>, %arg2: memref<1x2x64xf32, #tpu.memory_space<vmem>>, %arg3: memref<2x64xf32, #tpu.memory_space<vmem>>, %arg4: memref<192x64xbf16, #tpu.memory_space<vmem>>, %arg5: memref<2x4x64xf32, #tpu.memory_space<vmem>>, %arg6: memref<1x2x64xf32, #tpu.memory_space<vmem>>) attributes {dimension_semantics = [#tpu.dimension_semantics<parallel>], iteration_bounds = array<i64: 1>, scalar_prefetch = 0 : i64, scratch_operands = 0 : i64, tpu.core_type = #tpu.core_type<tc>, window_params = [{transform_indices = @transform_0, window_bounds = array<i64: 2, 4, 64>}, {pipeline_mode = #tpu.pipeline_mode<synchronous>, transform_indices = @transform_1, window_bounds = array<i64: 1, 2, 64>}, {pipeline_mode = #tpu.pipeline_mode<synchronous>, transform_indices = @transform_2, window_bounds = array<i64: 2, 64>}, {pipeline_mode = #tpu.pipeline_mode<synchronous>, transform_indices = @transform_3, window_bounds = array<i64: 192, 64>}, {transform_indices = @transform_4, window_bounds = array<i64: 2, 4, 64>}, {transform_indices = @transform_5, window_bounds = array<i64: 1, 2, 64>}]} {
    %c0 = arith.constant 0 : index
    %c0_0 = arith.constant 0 : index
    %c0_1 = arith.constant 0 : index
    %0 = vector.load %arg2[%c0, %c0_0, %c0_1] : memref<1x2x64xf32, #tpu.memory_space<vmem>>, vector<1x2x64xf32>
    %cst = arith.constant dense<0.000000e+00> : vector<2x64xf32>
    %1 = vector.multi_reduction <add>, %0, %cst [0] : vector<1x2x64xf32> to vector<2x64xf32>
    %c0_2 = arith.constant 0 : index
    %c0_3 = arith.constant 0 : index
    %c0_4 = arith.constant 0 : index
    %2 = vector.load %arg1[%c0_2, %c0_3, %c0_4] : memref<2x4x64xf32, #tpu.memory_space<vmem>>, vector<2x4x64xf32>
    %c0_5 = arith.constant 0 : index
    %c0_6 = arith.constant 0 : index
    %3 = vector.load %arg3[%c0_5, %c0_6] : memref<2x64xf32, #tpu.memory_space<vmem>>, vector<2x64xf32>
    %4 = vector.extract_strided_slice %1 {offsets = [0, 0], sizes = [1, 64], strides = [1, 1]} : vector<2x64xf32> to vector<1x64xf32>
    %cst_7 = arith.constant 8.000000e+00 : f32
    %5 = vector.broadcast %cst_7 : f32 to vector<1x64xf32>
    %6 = arith.divf %4, %5 : vector<1x64xf32>
    %7 = vector.extract_strided_slice %1 {offsets = [1, 0], sizes = [1, 64], strides = [1, 1]} : vector<2x64xf32> to vector<1x64xf32>
    %cst_8 = arith.constant 8.000000e+00 : f32
    %8 = vector.broadcast %cst_8 : f32 to vector<1x64xf32>
    %9 = arith.divf %7, %8 : vector<1x64xf32>
    %10 = arith.mulf %6, %6 : vector<1x64xf32>
    %11 = arith.subf %9, %10 : vector<1x64xf32>
    %cst_9 = arith.constant 0.000000e+00 : f32
    %12 = vector.broadcast %cst_9 : f32 to vector<1x64xf32>
    %13 = arith.maximumf %11, %12 : vector<1x64xf32>
    %cst_10 = arith.constant 9.99999974E-6 : f32
    %14 = vector.broadcast %cst_10 : f32 to vector<1x64xf32>
    %15 = arith.addf %13, %14 : vector<1x64xf32>
    %16 = math.rsqrt %15 : vector<1x64xf32>
    %17 = vector.extract_strided_slice %3 {offsets = [0, 0], sizes = [1, 64], strides = [1, 1]} : vector<2x64xf32> to vector<1x64xf32>
    %18 = arith.mulf %16, %17 : vector<1x64xf32>
    %19 = vector.shape_cast %6 : vector<1x64xf32> to vector<1x1x64xf32>
    %20 = vector.broadcast %19 : vector<1x1x64xf32> to vector<2x4x64xf32>
    %21 = arith.subf %2, %20 : vector<2x4x64xf32>
    %22 = vector.shape_cast %18 : vector<1x64xf32> to vector<1x1x64xf32>
    %23 = vector.broadcast %22 : vector<1x1x64xf32> to vector<2x4x64xf32>
    %24 = arith.mulf %21, %23 : vector<2x4x64xf32>
    %25 = vector.extract_strided_slice %3 {offsets = [1, 0], sizes = [1, 64], strides = [1, 1]} : vector<2x64xf32> to vector<1x64xf32>
    %26 = vector.shape_cast %25 : vector<1x64xf32> to vector<1x1x64xf32>
    %27 = vector.broadcast %26 : vector<1x1x64xf32> to vector<2x4x64xf32>
    %28 = arith.addf %24, %27 : vector<2x4x64xf32>
    %cst_11 = arith.constant 0.000000e+00 : f32
    %29 = vector.broadcast %cst_11 : f32 to vector<2x4x64xf32>
    %30 = arith.cmpf ogt, %28, %29 : vector<2x4x64xf32>
    %cst_12 = arith.constant 0.000000e+00 : f32
    %31 = vector.broadcast %cst_12 : f32 to vector<2x4x64xf32>
    %32 = arith.minimumf %28, %31 : vector<2x4x64xf32>
    %33 = math.exp %32 : vector<2x4x64xf32>
    %cst_13 = arith.constant 1.000000e+00 : f32
    %34 = vector.broadcast %cst_13 : f32 to vector<2x4x64xf32>
    %35 = arith.subf %33, %34 : vector<2x4x64xf32>
    %36 = arith.select %30, %28, %35 : vector<2x4x64xi1>, vector<2x4x64xf32>
    %37 = arith.truncf %36 : vector<2x4x64xf32> to vector<2x4x64xbf16>
    %cst_14 = arith.constant 0.000000e+00 : bf16
    %38 = vector.broadcast %cst_14 : bf16 to vector<2x1x64xbf16>
    %39 = tpu.concatenate %38, %37, %38 in 1 : vector<2x1x64xbf16>, vector<2x4x64xbf16>, vector<2x1x64xbf16> -> vector<2x6x64xbf16>
    %40 = vector.extract_strided_slice %39 {offsets = [0, 0, 0], sizes = [2, 4, 64], strides = [1, 1, 1]} : vector<2x6x64xbf16> to vector<2x4x64xbf16>
    %41 = vector.extract_strided_slice %39 {offsets = [0, 1, 0], sizes = [2, 4, 64], strides = [1, 1, 1]} : vector<2x6x64xbf16> to vector<2x4x64xbf16>
    %42 = vector.extract_strided_slice %39 {offsets = [0, 2, 0], sizes = [2, 4, 64], strides = [1, 1, 1]} : vector<2x6x64xbf16> to vector<2x4x64xbf16>
    %43 = tpu.concatenate %40, %41, %42 in 2 : vector<2x4x64xbf16>, vector<2x4x64xbf16>, vector<2x4x64xbf16> -> vector<2x4x192xbf16>
    %44 = vector.shape_cast %43 : vector<2x4x192xbf16> to vector<8x192xbf16>
    %c0_15 = arith.constant 0 : index
    %c0_16 = arith.constant 0 : index
    %45 = vector.load %arg4[%c0_15, %c0_16] : memref<192x64xbf16, #tpu.memory_space<vmem>>, vector<192x64xbf16>
    %cst_17 = arith.constant dense<0.000000e+00> : vector<8x64xf32>
    %46 = tpu.matmul %44, %45, %cst_17 {dimension_numbers = #tpu.dot_dimension_numbers<[1], [0], [0], [1], [0, 0, 1, 1], [], []>} : vector<8x192xbf16>, vector<192x64xbf16>, vector<8x64xf32> -> vector<8x64xf32>
    %47 = vector.shape_cast %46 : vector<8x64xf32> to vector<2x4x64xf32>
    %c0_18 = arith.constant 0 : index
    %c0_19 = arith.constant 0 : index
    %c0_20 = arith.constant 0 : index
    %48 = vector.load %arg5[%c0_18, %c0_19, %c0_20] : memref<2x4x64xf32, #tpu.memory_space<vmem>>, vector<2x4x64xf32>
    tpu.vector_store %arg5[%c0_18, %c0_19, %c0_20], %47 {strides = array<i32>} : memref<2x4x64xf32, #tpu.memory_space<vmem>>, vector<2x4x64xf32>,
    %cst_21 = arith.constant dense<0.000000e+00> : vector<64xf32>
    %49 = vector.multi_reduction <add>, %46, %cst_21 [0] : vector<8x64xf32> to vector<64xf32>
    %50 = vector.shape_cast %49 : vector<64xf32> to vector<1x64xf32>
    %51 = arith.mulf %46, %46 : vector<8x64xf32>
    %cst_22 = arith.constant dense<0.000000e+00> : vector<64xf32>
    %52 = vector.multi_reduction <add>, %51, %cst_22 [0] : vector<8x64xf32> to vector<64xf32>
    %53 = vector.shape_cast %52 : vector<64xf32> to vector<1x64xf32>
    %54 = tpu.concatenate %50, %53 in 0 : vector<1x64xf32>, vector<1x64xf32> -> vector<2x64xf32>
    %c0_23 = arith.constant 0 : index
    %c0_24 = arith.constant 0 : index
    %c0_25 = arith.constant 0 : index
    %55 = vector.load %arg6[%c0_23, %c0_24, %c0_25] : memref<1x2x64xf32, #tpu.memory_space<vmem>>, vector<1x2x64xf32>
    %56 = vector.shape_cast %55 : vector<1x2x64xf32> to vector<2x64xf32>
    %57 = vector.shape_cast %54 : vector<2x64xf32> to vector<1x2x64xf32>
    tpu.vector_store %arg6[%c0_23, %c0_24, %c0_25], %57 {strides = array<i32>} : memref<1x2x64xf32, #tpu.memory_space<vmem>>, vector<1x2x64xf32>,
    return
  }
  func.func @transform_0(%arg0: i32) -> (i32, i32, i32) {
    %c0_i32 = arith.constant 0 : i32
    %c0_i32_0 = arith.constant 0 : i32
    %c0_i32_1 = arith.constant 0 : i32
    return %arg0, %c0_i32, %c0_i32_0 : i32, i32, i32
  }
  func.func @transform_1(%arg0: i32) -> (i32, i32, i32) {
    %c0_i32 = arith.constant 0 : i32
    %c0_i32_0 = arith.constant 0 : i32
    %c0_i32_1 = arith.constant 0 : i32
    %c0_i32_2 = arith.constant 0 : i32
    return %c0_i32, %c0_i32_0, %c0_i32_1 : i32, i32, i32
  }
  func.func @transform_2(%arg0: i32) -> (i32, i32) {
    %c0_i32 = arith.constant 0 : i32
    %c0_i32_0 = arith.constant 0 : i32
    %c0_i32_1 = arith.constant 0 : i32
    return %c0_i32, %c0_i32_0 : i32, i32
  }
  func.func @transform_3(%arg0: i32) -> (i32, i32) {
    %c0_i32 = arith.constant 0 : i32
    %c0_i32_0 = arith.constant 0 : i32
    %c0_i32_1 = arith.constant 0 : i32
    return %c0_i32, %c0_i32_0 : i32, i32
  }
  func.func @transform_4(%arg0: i32) -> (i32, i32, i32) {
    %c0_i32 = arith.constant 0 : i32
    %c0_i32_0 = arith.constant 0 : i32
    %c0_i32_1 = arith.constant 0 : i32
    return %arg0, %c0_i32, %c0_i32_0 : i32, i32, i32
  }
  func.func @transform_5(%arg0: i32) -> (i32, i32, i32) {
    %c0_i32 = arith.constant 0 : i32
    %c0_i32_0 = arith.constant 0 : i32
    %c0_i32_1 = arith.constant 0 : i32
    return %arg0, %c0_i32, %c0_i32_0 : i32, i32, i32
  }
}

module attributes {stable_mosaic.version = 11 : i64} {
  func.func @_conv_s2_dual_stats_kernel(%arg0: i32, %arg1: memref<2x5x32xbf16, #tpu.memory_space<vmem>>, %arg2: memref<2x5x32xbf16, #tpu.memory_space<vmem>>, %arg3: memref<96x64xbf16, #tpu.memory_space<vmem>>, %arg4: memref<32x64xbf16, #tpu.memory_space<vmem>>, %arg5: memref<2x4x64xf32, #tpu.memory_space<vmem>>, %arg6: memref<1x2x64xf32, #tpu.memory_space<vmem>>, %arg7: memref<2x4x64xf32, #tpu.memory_space<vmem>>, %arg8: memref<1x2x64xf32, #tpu.memory_space<vmem>>) attributes {dimension_semantics = [#tpu.dimension_semantics<parallel>], iteration_bounds = array<i64: 1>, scalar_prefetch = 0 : i64, scratch_operands = 0 : i64, tpu.core_type = #tpu.core_type<tc>, window_params = [{transform_indices = @transform_0, window_bounds = array<i64: 2, 5, 32>}, {transform_indices = @transform_1, window_bounds = array<i64: 2, 5, 32>}, {pipeline_mode = #tpu.pipeline_mode<synchronous>, transform_indices = @transform_2, window_bounds = array<i64: 96, 64>}, {pipeline_mode = #tpu.pipeline_mode<synchronous>, transform_indices = @transform_3, window_bounds = array<i64: 32, 64>}, {transform_indices = @transform_4, window_bounds = array<i64: 2, 4, 64>}, {transform_indices = @transform_5, window_bounds = array<i64: 1, 2, 64>}, {transform_indices = @transform_6, window_bounds = array<i64: 2, 4, 64>}, {transform_indices = @transform_7, window_bounds = array<i64: 1, 2, 64>}]} {
    %c0 = arith.constant 0 : index
    %c0_0 = arith.constant 0 : index
    %c0_1 = arith.constant 0 : index
    %0 = vector.load %arg1[%c0, %c0_0, %c0_1] : memref<2x5x32xbf16, #tpu.memory_space<vmem>>, vector<2x5x32xbf16>
    %c0_2 = arith.constant 0 : index
    %c0_3 = arith.constant 0 : index
    %c0_4 = arith.constant 0 : index
    %1 = vector.load %arg2[%c0_2, %c0_3, %c0_4] : memref<2x5x32xbf16, #tpu.memory_space<vmem>>, vector<2x5x32xbf16>
    %2 = vector.extract_strided_slice %0 {offsets = [0, 0, 0], sizes = [2, 4, 32], strides = [1, 1, 1]} : vector<2x5x32xbf16> to vector<2x4x32xbf16>
    %3 = vector.extract_strided_slice %1 {offsets = [0, 0, 0], sizes = [2, 4, 32], strides = [1, 1, 1]} : vector<2x5x32xbf16> to vector<2x4x32xbf16>
    %4 = vector.extract_strided_slice %0 {offsets = [0, 1, 0], sizes = [2, 4, 32], strides = [1, 1, 1]} : vector<2x5x32xbf16> to vector<2x4x32xbf16>
    %5 = tpu.concatenate %2, %3, %4 in 2 : vector<2x4x32xbf16>, vector<2x4x32xbf16>, vector<2x4x32xbf16> -> vector<2x4x96xbf16>
    %6 = vector.shape_cast %5 : vector<2x4x96xbf16> to vector<8x96xbf16>
    %c0_5 = arith.constant 0 : index
    %c0_6 = arith.constant 0 : index
    %7 = vector.load %arg3[%c0_5, %c0_6] : memref<96x64xbf16, #tpu.memory_space<vmem>>, vector<96x64xbf16>
    %cst = arith.constant dense<0.000000e+00> : vector<8x64xf32>
    %8 = tpu.matmul %6, %7, %cst {dimension_numbers = #tpu.dot_dimension_numbers<[1], [0], [0], [1], [0, 0, 1, 1], [], []>} : vector<8x96xbf16>, vector<96x64xbf16>, vector<8x64xf32> -> vector<8x64xf32>
    %9 = vector.shape_cast %8 : vector<8x64xf32> to vector<2x4x64xf32>
    %c0_7 = arith.constant 0 : index
    %c0_8 = arith.constant 0 : index
    %c0_9 = arith.constant 0 : index
    %10 = vector.load %arg5[%c0_7, %c0_8, %c0_9] : memref<2x4x64xf32, #tpu.memory_space<vmem>>, vector<2x4x64xf32>
    tpu.vector_store %arg5[%c0_7, %c0_8, %c0_9], %9 {strides = array<i32>} : memref<2x4x64xf32, #tpu.memory_space<vmem>>, vector<2x4x64xf32>,
    %cst_10 = arith.constant dense<0.000000e+00> : vector<64xf32>
    %11 = vector.multi_reduction <add>, %8, %cst_10 [0] : vector<8x64xf32> to vector<64xf32>
    %12 = vector.shape_cast %11 : vector<64xf32> to vector<1x64xf32>
    %13 = arith.mulf %8, %8 : vector<8x64xf32>
    %cst_11 = arith.constant dense<0.000000e+00> : vector<64xf32>
    %14 = vector.multi_reduction <add>, %13, %cst_11 [0] : vector<8x64xf32> to vector<64xf32>
    %15 = vector.shape_cast %14 : vector<64xf32> to vector<1x64xf32>
    %16 = tpu.concatenate %12, %15 in 0 : vector<1x64xf32>, vector<1x64xf32> -> vector<2x64xf32>
    %c0_12 = arith.constant 0 : index
    %c0_13 = arith.constant 0 : index
    %c0_14 = arith.constant 0 : index
    %17 = vector.load %arg6[%c0_12, %c0_13, %c0_14] : memref<1x2x64xf32, #tpu.memory_space<vmem>>, vector<1x2x64xf32>
    %18 = vector.shape_cast %17 : vector<1x2x64xf32> to vector<2x64xf32>
    %19 = vector.shape_cast %16 : vector<2x64xf32> to vector<1x2x64xf32>
    tpu.vector_store %arg6[%c0_12, %c0_13, %c0_14], %19 {strides = array<i32>} : memref<1x2x64xf32, #tpu.memory_space<vmem>>, vector<1x2x64xf32>,
    %20 = vector.extract_strided_slice %1 {offsets = [0, 0, 0], sizes = [2, 4, 32], strides = [1, 1, 1]} : vector<2x5x32xbf16> to vector<2x4x32xbf16>
    %21 = vector.shape_cast %20 : vector<2x4x32xbf16> to vector<8x32xbf16>
    %c0_15 = arith.constant 0 : index
    %c0_16 = arith.constant 0 : index
    %22 = vector.load %arg4[%c0_15, %c0_16] : memref<32x64xbf16, #tpu.memory_space<vmem>>, vector<32x64xbf16>
    %cst_17 = arith.constant dense<0.000000e+00> : vector<8x64xf32>
    %23 = tpu.matmul %21, %22, %cst_17 {dimension_numbers = #tpu.dot_dimension_numbers<[1], [0], [0], [1], [0, 0, 1, 1], [], []>} : vector<8x32xbf16>, vector<32x64xbf16>, vector<8x64xf32> -> vector<8x64xf32>
    %24 = vector.shape_cast %23 : vector<8x64xf32> to vector<2x4x64xf32>
    %c0_18 = arith.constant 0 : index
    %c0_19 = arith.constant 0 : index
    %c0_20 = arith.constant 0 : index
    %25 = vector.load %arg7[%c0_18, %c0_19, %c0_20] : memref<2x4x64xf32, #tpu.memory_space<vmem>>, vector<2x4x64xf32>
    tpu.vector_store %arg7[%c0_18, %c0_19, %c0_20], %24 {strides = array<i32>} : memref<2x4x64xf32, #tpu.memory_space<vmem>>, vector<2x4x64xf32>,
    %cst_21 = arith.constant dense<0.000000e+00> : vector<64xf32>
    %26 = vector.multi_reduction <add>, %23, %cst_21 [0] : vector<8x64xf32> to vector<64xf32>
    %27 = vector.shape_cast %26 : vector<64xf32> to vector<1x64xf32>
    %28 = arith.mulf %23, %23 : vector<8x64xf32>
    %cst_22 = arith.constant dense<0.000000e+00> : vector<64xf32>
    %29 = vector.multi_reduction <add>, %28, %cst_22 [0] : vector<8x64xf32> to vector<64xf32>
    %30 = vector.shape_cast %29 : vector<64xf32> to vector<1x64xf32>
    %31 = tpu.concatenate %27, %30 in 0 : vector<1x64xf32>, vector<1x64xf32> -> vector<2x64xf32>
    %c0_23 = arith.constant 0 : index
    %c0_24 = arith.constant 0 : index
    %c0_25 = arith.constant 0 : index
    %32 = vector.load %arg8[%c0_23, %c0_24, %c0_25] : memref<1x2x64xf32, #tpu.memory_space<vmem>>, vector<1x2x64xf32>
    %33 = vector.shape_cast %32 : vector<1x2x64xf32> to vector<2x64xf32>
    %34 = vector.shape_cast %31 : vector<2x64xf32> to vector<1x2x64xf32>
    tpu.vector_store %arg8[%c0_23, %c0_24, %c0_25], %34 {strides = array<i32>} : memref<1x2x64xf32, #tpu.memory_space<vmem>>, vector<1x2x64xf32>,
    return
  }
  func.func @transform_0(%arg0: i32) -> (i32, i32, i32) {
    %c0_i32 = arith.constant 0 : i32
    %c0_i32_0 = arith.constant 0 : i32
    %c0_i32_1 = arith.constant 0 : i32
    return %arg0, %c0_i32, %c0_i32_0 : i32, i32, i32
  }
  func.func @transform_1(%arg0: i32) -> (i32, i32, i32) {
    %c0_i32 = arith.constant 0 : i32
    %c0_i32_0 = arith.constant 0 : i32
    %c0_i32_1 = arith.constant 0 : i32
    return %arg0, %c0_i32, %c0_i32_0 : i32, i32, i32
  }
  func.func @transform_2(%arg0: i32) -> (i32, i32) {
    %c0_i32 = arith.constant 0 : i32
    %c0_i32_0 = arith.constant 0 : i32
    %c0_i32_1 = arith.constant 0 : i32
    return %c0_i32, %c0_i32_0 : i32, i32
  }
  func.func @transform_3(%arg0: i32) -> (i32, i32) {
    %c0_i32 = arith.constant 0 : i32
    %c0_i32_0 = arith.constant 0 : i32
    %c0_i32_1 = arith.constant 0 : i32
    return %c0_i32, %c0_i32_0 : i32, i32
  }
  func.func @transform_4(%arg0: i32) -> (i32, i32, i32) {
    %c0_i32 = arith.constant 0 : i32
    %c0_i32_0 = arith.constant 0 : i32
    %c0_i32_1 = arith.constant 0 : i32
    return %arg0, %c0_i32, %c0_i32_0 : i32, i32, i32
  }
  func.func @transform_5(%arg0: i32) -> (i32, i32, i32) {
    %c0_i32 = arith.constant 0 : i32
    %c0_i32_0 = arith.constant 0 : i32
    %c0_i32_1 = arith.constant 0 : i32
    return %arg0, %c0_i32, %c0_i32_0 : i32, i32, i32
  }
  func.func @transform_6(%arg0: i32) -> (i32, i32, i32) {
    %c0_i32 = arith.constant 0 : i32
    %c0_i32_0 = arith.constant 0 : i32
    %c0_i32_1 = arith.constant 0 : i32
    return %arg0, %c0_i32, %c0_i32_0 : i32, i32, i32
  }
  func.func @transform_7(%arg0: i32) -> (i32, i32, i32) {
    %c0_i32 = arith.constant 0 : i32
    %c0_i32_0 = arith.constant 0 : i32
    %c0_i32_1 = arith.constant 0 : i32
    return %arg0, %c0_i32, %c0_i32_0 : i32, i32, i32
  }
}

module attributes {stable_mosaic.version = 11 : i64} {
  func.func @_bn_se_downres_kernel(%arg0: i32, %arg1: memref<2x4x64xf32, #tpu.memory_space<vmem>>, %arg2: memref<1x2x64xf32, #tpu.memory_space<vmem>>, %arg3: memref<2x64xf32, #tpu.memory_space<vmem>>, %arg4: memref<2x4x64xf32, #tpu.memory_space<vmem>>, %arg5: memref<1x2x64xf32, #tpu.memory_space<vmem>>, %arg6: memref<2x64xf32, #tpu.memory_space<vmem>>, %arg7: memref<64x4xf32, #tpu.memory_space<vmem>>, %arg8: memref<4x64xf32, #tpu.memory_space<vmem>>, %arg9: memref<2x4x64xf32, #tpu.memory_space<vmem>>) attributes {dimension_semantics = [#tpu.dimension_semantics<parallel>], iteration_bounds = array<i64: 1>, scalar_prefetch = 0 : i64, scratch_operands = 0 : i64, tpu.core_type = #tpu.core_type<tc>, window_params = [{transform_indices = @transform_0, window_bounds = array<i64: 2, 4, 64>}, {pipeline_mode = #tpu.pipeline_mode<synchronous>, transform_indices = @transform_1, window_bounds = array<i64: 1, 2, 64>}, {pipeline_mode = #tpu.pipeline_mode<synchronous>, transform_indices = @transform_2, window_bounds = array<i64: 2, 64>}, {transform_indices = @transform_3, window_bounds = array<i64: 2, 4, 64>}, {pipeline_mode = #tpu.pipeline_mode<synchronous>, transform_indices = @transform_4, window_bounds = array<i64: 1, 2, 64>}, {pipeline_mode = #tpu.pipeline_mode<synchronous>, transform_indices = @transform_5, window_bounds = array<i64: 2, 64>}, {pipeline_mode = #tpu.pipeline_mode<synchronous>, transform_indices = @transform_6, window_bounds = array<i64: 64, 4>}, {pipeline_mode = #tpu.pipeline_mode<synchronous>, transform_indices = @transform_7, window_bounds = array<i64: 4, 64>}, {transform_indices = @transform_8, window_bounds = array<i64: 2, 4, 64>}]} {
    %c0 = arith.constant 0 : index
    %c0_0 = arith.constant 0 : index
    %c0_1 = arith.constant 0 : index
    %0 = vector.load %arg2[%c0, %c0_0, %c0_1] : memref<1x2x64xf32, #tpu.memory_space<vmem>>, vector<1x2x64xf32>
    %cst = arith.constant dense<0.000000e+00> : vector<2x64xf32>
    %1 = vector.multi_reduction <add>, %0, %cst [0] : vector<1x2x64xf32> to vector<2x64xf32>
    %c0_2 = arith.constant 0 : index
    %c0_3 = arith.constant 0 : index
    %c0_4 = arith.constant 0 : index
    %2 = vector.load %arg5[%c0_2, %c0_3, %c0_4] : memref<1x2x64xf32, #tpu.memory_space<vmem>>, vector<1x2x64xf32>
    %cst_5 = arith.constant dense<0.000000e+00> : vector<2x64xf32>
    %3 = vector.multi_reduction <add>, %2, %cst_5 [0] : vector<1x2x64xf32> to vector<2x64xf32>
    %c0_6 = arith.constant 0 : index
    %c0_7 = arith.constant 0 : index
    %c0_8 = arith.constant 0 : index
    %4 = vector.load %arg1[%c0_6, %c0_7, %c0_8] : memref<2x4x64xf32, #tpu.memory_space<vmem>>, vector<2x4x64xf32>
    %c0_9 = arith.constant 0 : index
    %c0_10 = arith.constant 0 : index
    %5 = vector.load %arg3[%c0_9, %c0_10] : memref<2x64xf32, #tpu.memory_space<vmem>>, vector<2x64xf32>
    %6 = vector.extract_strided_slice %1 {offsets = [0, 0], sizes = [1, 64], strides = [1, 1]} : vector<2x64xf32> to vector<1x64xf32>
    %cst_11 = arith.constant 8.000000e+00 : f32
    %7 = vector.broadcast %cst_11 : f32 to vector<1x64xf32>
    %8 = arith.divf %6, %7 : vector<1x64xf32>
    %9 = vector.extract_strided_slice %1 {offsets = [1, 0], sizes = [1, 64], strides = [1, 1]} : vector<2x64xf32> to vector<1x64xf32>
    %cst_12 = arith.constant 8.000000e+00 : f32
    %10 = vector.broadcast %cst_12 : f32 to vector<1x64xf32>
    %11 = arith.divf %9, %10 : vector<1x64xf32>
    %12 = arith.mulf %8, %8 : vector<1x64xf32>
    %13 = arith.subf %11, %12 : vector<1x64xf32>
    %cst_13 = arith.constant 0.000000e+00 : f32
    %14 = vector.broadcast %cst_13 : f32 to vector<1x64xf32>
    %15 = arith.maximumf %13, %14 : vector<1x64xf32>
    %cst_14 = arith.constant 9.99999974E-6 : f32
    %16 = vector.broadcast %cst_14 : f32 to vector<1x64xf32>
    %17 = arith.addf %15, %16 : vector<1x64xf32>
    %18 = math.rsqrt %17 : vector<1x64xf32>
    %19 = vector.extract_strided_slice %5 {offsets = [0, 0], sizes = [1, 64], strides = [1, 1]} : vector<2x64xf32> to vector<1x64xf32>
    %20 = arith.mulf %18, %19 : vector<1x64xf32>
    %21 = vector.shape_cast %8 : vector<1x64xf32> to vector<1x1x64xf32>
    %22 = vector.broadcast %21 : vector<1x1x64xf32> to vector<2x4x64xf32>
    %23 = arith.subf %4, %22 : vector<2x4x64xf32>
    %24 = vector.shape_cast %20 : vector<1x64xf32> to vector<1x1x64xf32>
    %25 = vector.broadcast %24 : vector<1x1x64xf32> to vector<2x4x64xf32>
    %26 = arith.mulf %23, %25 : vector<2x4x64xf32>
    %27 = vector.extract_strided_slice %5 {offsets = [1, 0], sizes = [1, 64], strides = [1, 1]} : vector<2x64xf32> to vector<1x64xf32>
    %28 = vector.shape_cast %27 : vector<1x64xf32> to vector<1x1x64xf32>
    %29 = vector.broadcast %28 : vector<1x1x64xf32> to vector<2x4x64xf32>
    %30 = arith.addf %26, %29 : vector<2x4x64xf32>
    %c0_15 = arith.constant 0 : index
    %c0_16 = arith.constant 0 : index
    %c0_17 = arith.constant 0 : index
    %31 = vector.load %arg4[%c0_15, %c0_16, %c0_17] : memref<2x4x64xf32, #tpu.memory_space<vmem>>, vector<2x4x64xf32>
    %c0_18 = arith.constant 0 : index
    %c0_19 = arith.constant 0 : index
    %32 = vector.load %arg6[%c0_18, %c0_19] : memref<2x64xf32, #tpu.memory_space<vmem>>, vector<2x64xf32>
    %33 = vector.extract_strided_slice %3 {offsets = [0, 0], sizes = [1, 64], strides = [1, 1]} : vector<2x64xf32> to vector<1x64xf32>
    %cst_20 = arith.constant 8.000000e+00 : f32
    %34 = vector.broadcast %cst_20 : f32 to vector<1x64xf32>
    %35 = arith.divf %33, %34 : vector<1x64xf32>
    %36 = vector.extract_strided_slice %3 {offsets = [1, 0], sizes = [1, 64], strides = [1, 1]} : vector<2x64xf32> to vector<1x64xf32>
    %cst_21 = arith.constant 8.000000e+00 : f32
    %37 = vector.broadcast %cst_21 : f32 to vector<1x64xf32>
    %38 = arith.divf %36, %37 : vector<1x64xf32>
    %39 = arith.mulf %35, %35 : vector<1x64xf32>
    %40 = arith.subf %38, %39 : vector<1x64xf32>
    %cst_22 = arith.constant 0.000000e+00 : f32
    %41 = vector.broadcast %cst_22 : f32 to vector<1x64xf32>
    %42 = arith.maximumf %40, %41 : vector<1x64xf32>
    %cst_23 = arith.constant 9.99999974E-6 : f32
    %43 = vector.broadcast %cst_23 : f32 to vector<1x64xf32>
    %44 = arith.addf %42, %43 : vector<1x64xf32>
    %45 = math.rsqrt %44 : vector<1x64xf32>
    %46 = vector.extract_strided_slice %32 {offsets = [0, 0], sizes = [1, 64], strides = [1, 1]} : vector<2x64xf32> to vector<1x64xf32>
    %47 = arith.mulf %45, %46 : vector<1x64xf32>
    %48 = vector.shape_cast %35 : vector<1x64xf32> to vector<1x1x64xf32>
    %49 = vector.broadcast %48 : vector<1x1x64xf32> to vector<2x4x64xf32>
    %50 = arith.subf %31, %49 : vector<2x4x64xf32>
    %51 = vector.shape_cast %47 : vector<1x64xf32> to vector<1x1x64xf32>
    %52 = vector.broadcast %51 : vector<1x1x64xf32> to vector<2x4x64xf32>
    %53 = arith.mulf %50, %52 : vector<2x4x64xf32>
    %54 = vector.extract_strided_slice %32 {offsets = [1, 0], sizes = [1, 64], strides = [1, 1]} : vector<2x64xf32> to vector<1x64xf32>
    %55 = vector.shape_cast %54 : vector<1x64xf32> to vector<1x1x64xf32>
    %56 = vector.broadcast %55 : vector<1x1x64xf32> to vector<2x4x64xf32>
    %57 = arith.addf %53, %56 : vector<2x4x64xf32>
    %cst_24 = arith.constant dense<0.000000e+00> : vector<2x64xf32>
    %58 = vector.multi_reduction <add>, %30, %cst_24 [1] : vector<2x4x64xf32> to vector<2x64xf32>
    %cst_25 = arith.constant 4.000000e+00 : f32
    %59 = vector.broadcast %cst_25 : f32 to vector<2x64xf32>
    %60 = arith.divf %58, %59 : vector<2x64xf32>
    %c0_26 = arith.constant 0 : index
    %c0_27 = arith.constant 0 : index
    %61 = vector.load %arg7[%c0_26, %c0_27] : memref<64x4xf32, #tpu.memory_space<vmem>>, vector<64x4xf32>
    %cst_28 = arith.constant dense<0.000000e+00> : vector<2x4xf32>
    %62 = tpu.matmul %60, %61, %cst_28 {dimension_numbers = #tpu.dot_dimension_numbers<[1], [0], [0], [1], [0, 0, 1, 1], [], []>} : vector<2x64xf32>, vector<64x4xf32>, vector<2x4xf32> -> vector<2x4xf32>
    %cst_29 = arith.constant 0.000000e+00 : f32
    %63 = vector.broadcast %cst_29 : f32 to vector<2x4xf32>
    %64 = arith.maximumf %62, %63 : vector<2x4xf32>
    %c0_30 = arith.constant 0 : index
    %c0_31 = arith.constant 0 : index
    %65 = vector.load %arg8[%c0_30, %c0_31] : memref<4x64xf32, #tpu.memory_space<vmem>>, vector<4x64xf32>
    %cst_32 = arith.constant dense<0.000000e+00> : vector<2x64xf32>
    %66 = tpu.matmul %64, %65, %cst_32 {dimension_numbers = #tpu.dot_dimension_numbers<[1], [0], [0], [1], [0, 0, 1, 1], [], []>} : vector<2x4xf32>, vector<4x64xf32>, vector<2x64xf32> -> vector<2x64xf32>
    %cst_33 = arith.constant 0.000000e+00 : f32
    %67 = vector.broadcast %cst_33 : f32 to vector<2x64xf32>
    %68 = arith.subf %67, %66 : vector<2x64xf32>
    %69 = math.exp %68 : vector<2x64xf32>
    %cst_34 = arith.constant 1.000000e+00 : f32
    %70 = vector.broadcast %cst_34 : f32 to vector<2x64xf32>
    %71 = arith.addf %70, %69 : vector<2x64xf32>
    %cst_35 = arith.constant 1.000000e+00 : f32
    %72 = vector.broadcast %cst_35 : f32 to vector<2x64xf32>
    %73 = arith.divf %72, %71 : vector<2x64xf32>
    %74 = vector.shape_cast %73 : vector<2x64xf32> to vector<2x1x64xf32>
    %75 = vector.broadcast %74 : vector<2x1x64xf32> to vector<2x4x64xf32>
    %76 = arith.mulf %30, %75 : vector<2x4x64xf32>
    %77 = arith.addf %76, %57 : vector<2x4x64xf32>
    %cst_36 = arith.constant 0.000000e+00 : f32
    %78 = vector.broadcast %cst_36 : f32 to vector<2x4x64xf32>
    %79 = arith.cmpf ogt, %77, %78 : vector<2x4x64xf32>
    %cst_37 = arith.constant 0.000000e+00 : f32
    %80 = vector.broadcast %cst_37 : f32 to vector<2x4x64xf32>
    %81 = arith.minimumf %77, %80 : vector<2x4x64xf32>
    %82 = math.exp %81 : vector<2x4x64xf32>
    %cst_38 = arith.constant 1.000000e+00 : f32
    %83 = vector.broadcast %cst_38 : f32 to vector<2x4x64xf32>
    %84 = arith.subf %82, %83 : vector<2x4x64xf32>
    %85 = arith.select %79, %77, %84 : vector<2x4x64xi1>, vector<2x4x64xf32>
    %c0_39 = arith.constant 0 : index
    %c0_40 = arith.constant 0 : index
    %c0_41 = arith.constant 0 : index
    %86 = vector.load %arg9[%c0_39, %c0_40, %c0_41] : memref<2x4x64xf32, #tpu.memory_space<vmem>>, vector<2x4x64xf32>
    tpu.vector_store %arg9[%c0_39, %c0_40, %c0_41], %85 {strides = array<i32>} : memref<2x4x64xf32, #tpu.memory_space<vmem>>, vector<2x4x64xf32>,
    return
  }
  func.func @transform_0(%arg0: i32) -> (i32, i32, i32) {
    %c0_i32 = arith.constant 0 : i32
    %c0_i32_0 = arith.constant 0 : i32
    %c0_i32_1 = arith.constant 0 : i32
    return %arg0, %c0_i32, %c0_i32_0 : i32, i32, i32
  }
  func.func @transform_1(%arg0: i32) -> (i32, i32, i32) {
    %c0_i32 = arith.constant 0 : i32
    %c0_i32_0 = arith.constant 0 : i32
    %c0_i32_1 = arith.constant 0 : i32
    %c0_i32_2 = arith.constant 0 : i32
    return %c0_i32, %c0_i32_0, %c0_i32_1 : i32, i32, i32
  }
  func.func @transform_2(%arg0: i32) -> (i32, i32) {
    %c0_i32 = arith.constant 0 : i32
    %c0_i32_0 = arith.constant 0 : i32
    %c0_i32_1 = arith.constant 0 : i32
    return %c0_i32, %c0_i32_0 : i32, i32
  }
  func.func @transform_3(%arg0: i32) -> (i32, i32, i32) {
    %c0_i32 = arith.constant 0 : i32
    %c0_i32_0 = arith.constant 0 : i32
    %c0_i32_1 = arith.constant 0 : i32
    return %arg0, %c0_i32, %c0_i32_0 : i32, i32, i32
  }
  func.func @transform_4(%arg0: i32) -> (i32, i32, i32) {
    %c0_i32 = arith.constant 0 : i32
    %c0_i32_0 = arith.constant 0 : i32
    %c0_i32_1 = arith.constant 0 : i32
    %c0_i32_2 = arith.constant 0 : i32
    return %c0_i32, %c0_i32_0, %c0_i32_1 : i32, i32, i32
  }
  func.func @transform_5(%arg0: i32) -> (i32, i32) {
    %c0_i32 = arith.constant 0 : i32
    %c0_i32_0 = arith.constant 0 : i32
    %c0_i32_1 = arith.constant 0 : i32
    return %c0_i32, %c0_i32_0 : i32, i32
  }
  func.func @transform_6(%arg0: i32) -> (i32, i32) {
    %c0_i32 = arith.constant 0 : i32
    %c0_i32_0 = arith.constant 0 : i32
    %c0_i32_1 = arith.constant 0 : i32
    return %c0_i32, %c0_i32_0 : i32, i32
  }
  func.func @transform_7(%arg0: i32) -> (i32, i32) {
    %c0_i32 = arith.constant 0 : i32
    %c0_i32_0 = arith.constant 0 : i32
    %c0_i32_1 = arith.constant 0 : i32
    return %c0_i32, %c0_i32_0 : i32, i32
  }
  func.func @transform_8(%arg0: i32) -> (i32, i32, i32) {
    %c0_i32 = arith.constant 0 : i32
    %c0_i32_0 = arith.constant 0 : i32
    %c0_i32_1 = arith.constant 0 : i32
    return %arg0, %c0_i32, %c0_i32_0 : i32, i32, i32
  }
}

module attributes {stable_mosaic.version = 11 : i64} {
  func.func @_conv_s1_stats_kernel(%arg0: i32, %arg1: memref<2x6x64xbf16, #tpu.memory_space<vmem>>, %arg2: memref<192x64xbf16, #tpu.memory_space<vmem>>, %arg3: memref<2x4x64xf32, #tpu.memory_space<vmem>>, %arg4: memref<1x2x64xf32, #tpu.memory_space<vmem>>) attributes {dimension_semantics = [#tpu.dimension_semantics<parallel>], iteration_bounds = array<i64: 1>, scalar_prefetch = 0 : i64, scratch_operands = 0 : i64, tpu.core_type = #tpu.core_type<tc>, window_params = [{transform_indices = @transform_0, window_bounds = array<i64: 2, 6, 64>}, {pipeline_mode = #tpu.pipeline_mode<synchronous>, transform_indices = @transform_1, window_bounds = array<i64: 192, 64>}, {transform_indices = @transform_2, window_bounds = array<i64: 2, 4, 64>}, {transform_indices = @transform_3, window_bounds = array<i64: 1, 2, 64>}]} {
    %c0 = arith.constant 0 : index
    %c0_0 = arith.constant 0 : index
    %c0_1 = arith.constant 0 : index
    %0 = vector.load %arg1[%c0, %c0_0, %c0_1] : memref<2x6x64xbf16, #tpu.memory_space<vmem>>, vector<2x6x64xbf16>
    %1 = vector.extract_strided_slice %0 {offsets = [0, 0, 0], sizes = [2, 4, 64], strides = [1, 1, 1]} : vector<2x6x64xbf16> to vector<2x4x64xbf16>
    %2 = vector.extract_strided_slice %0 {offsets = [0, 1, 0], sizes = [2, 4, 64], strides = [1, 1, 1]} : vector<2x6x64xbf16> to vector<2x4x64xbf16>
    %3 = vector.extract_strided_slice %0 {offsets = [0, 2, 0], sizes = [2, 4, 64], strides = [1, 1, 1]} : vector<2x6x64xbf16> to vector<2x4x64xbf16>
    %4 = tpu.concatenate %1, %2, %3 in 2 : vector<2x4x64xbf16>, vector<2x4x64xbf16>, vector<2x4x64xbf16> -> vector<2x4x192xbf16>
    %5 = vector.shape_cast %4 : vector<2x4x192xbf16> to vector<8x192xbf16>
    %c0_2 = arith.constant 0 : index
    %c0_3 = arith.constant 0 : index
    %6 = vector.load %arg2[%c0_2, %c0_3] : memref<192x64xbf16, #tpu.memory_space<vmem>>, vector<192x64xbf16>
    %cst = arith.constant dense<0.000000e+00> : vector<8x64xf32>
    %7 = tpu.matmul %5, %6, %cst {dimension_numbers = #tpu.dot_dimension_numbers<[1], [0], [0], [1], [0, 0, 1, 1], [], []>} : vector<8x192xbf16>, vector<192x64xbf16>, vector<8x64xf32> -> vector<8x64xf32>
    %8 = vector.shape_cast %7 : vector<8x64xf32> to vector<2x4x64xf32>
    %c0_4 = arith.constant 0 : index
    %c0_5 = arith.constant 0 : index
    %c0_6 = arith.constant 0 : index
    %9 = vector.load %arg3[%c0_4, %c0_5, %c0_6] : memref<2x4x64xf32, #tpu.memory_space<vmem>>, vector<2x4x64xf32>
    tpu.vector_store %arg3[%c0_4, %c0_5, %c0_6], %8 {strides = array<i32>} : memref<2x4x64xf32, #tpu.memory_space<vmem>>, vector<2x4x64xf32>,
    %cst_7 = arith.constant dense<0.000000e+00> : vector<64xf32>
    %10 = vector.multi_reduction <add>, %7, %cst_7 [0] : vector<8x64xf32> to vector<64xf32>
    %11 = vector.shape_cast %10 : vector<64xf32> to vector<1x64xf32>
    %12 = arith.mulf %7, %7 : vector<8x64xf32>
    %cst_8 = arith.constant dense<0.000000e+00> : vector<64xf32>
    %13 = vector.multi_reduction <add>, %12, %cst_8 [0] : vector<8x64xf32> to vector<64xf32>
    %14 = vector.shape_cast %13 : vector<64xf32> to vector<1x64xf32>
    %15 = tpu.concatenate %11, %14 in 0 : vector<1x64xf32>, vector<1x64xf32> -> vector<2x64xf32>
    %c0_9 = arith.constant 0 : index
    %c0_10 = arith.constant 0 : index
    %c0_11 = arith.constant 0 : index
    %16 = vector.load %arg4[%c0_9, %c0_10, %c0_11] : memref<1x2x64xf32, #tpu.memory_space<vmem>>, vector<1x2x64xf32>
    %17 = vector.shape_cast %16 : vector<1x2x64xf32> to vector<2x64xf32>
    %18 = vector.shape_cast %15 : vector<2x64xf32> to vector<1x2x64xf32>
    tpu.vector_store %arg4[%c0_9, %c0_10, %c0_11], %18 {strides = array<i32>} : memref<1x2x64xf32, #tpu.memory_space<vmem>>, vector<1x2x64xf32>,
    return
  }
  func.func @transform_0(%arg0: i32) -> (i32, i32, i32) {
    %c0_i32 = arith.constant 0 : i32
    %c0_i32_0 = arith.constant 0 : i32
    %c0_i32_1 = arith.constant 0 : i32
    return %arg0, %c0_i32, %c0_i32_0 : i32, i32, i32
  }
  func.func @transform_1(%arg0: i32) -> (i32, i32) {
    %c0_i32 = arith.constant 0 : i32
    %c0_i32_0 = arith.constant 0 : i32
    %c0_i32_1 = arith.constant 0 : i32
    return %c0_i32, %c0_i32_0 : i32, i32
  }
  func.func @transform_2(%arg0: i32) -> (i32, i32, i32) {
    %c0_i32 = arith.constant 0 : i32
    %c0_i32_0 = arith.constant 0 : i32
    %c0_i32_1 = arith.constant 0 : i32
    return %arg0, %c0_i32, %c0_i32_0 : i32, i32, i32
  }
  func.func @transform_3(%arg0: i32) -> (i32, i32, i32) {
    %c0_i32 = arith.constant 0 : i32
    %c0_i32_0 = arith.constant 0 : i32
    %c0_i32_1 = arith.constant 0 : i32
    return %arg0, %c0_i32, %c0_i32_0 : i32, i32, i32
  }
}

module attributes {stable_mosaic.version = 11 : i64} {
  func.func @_bn_se_res_kernel(%arg0: i32, %arg1: memref<2x4x64xf32, #tpu.memory_space<vmem>>, %arg2: memref<1x2x64xf32, #tpu.memory_space<vmem>>, %arg3: memref<2x64xf32, #tpu.memory_space<vmem>>, %arg4: memref<2x4x64xf32, #tpu.memory_space<vmem>>, %arg5: memref<64x4xf32, #tpu.memory_space<vmem>>, %arg6: memref<4x64xf32, #tpu.memory_space<vmem>>, %arg7: memref<2x4x64xf32, #tpu.memory_space<vmem>>) attributes {dimension_semantics = [#tpu.dimension_semantics<parallel>], iteration_bounds = array<i64: 1>, scalar_prefetch = 0 : i64, scratch_operands = 0 : i64, tpu.core_type = #tpu.core_type<tc>, window_params = [{transform_indices = @transform_0, window_bounds = array<i64: 2, 4, 64>}, {pipeline_mode = #tpu.pipeline_mode<synchronous>, transform_indices = @transform_1, window_bounds = array<i64: 1, 2, 64>}, {pipeline_mode = #tpu.pipeline_mode<synchronous>, transform_indices = @transform_2, window_bounds = array<i64: 2, 64>}, {transform_indices = @transform_3, window_bounds = array<i64: 2, 4, 64>}, {pipeline_mode = #tpu.pipeline_mode<synchronous>, transform_indices = @transform_4, window_bounds = array<i64: 64, 4>}, {pipeline_mode = #tpu.pipeline_mode<synchronous>, transform_indices = @transform_5, window_bounds = array<i64: 4, 64>}, {transform_indices = @transform_6, window_bounds = array<i64: 2, 4, 64>}]} {
    %c0 = arith.constant 0 : index
    %c0_0 = arith.constant 0 : index
    %c0_1 = arith.constant 0 : index
    %0 = vector.load %arg2[%c0, %c0_0, %c0_1] : memref<1x2x64xf32, #tpu.memory_space<vmem>>, vector<1x2x64xf32>
    %cst = arith.constant dense<0.000000e+00> : vector<2x64xf32>
    %1 = vector.multi_reduction <add>, %0, %cst [0] : vector<1x2x64xf32> to vector<2x64xf32>
    %c0_2 = arith.constant 0 : index
    %c0_3 = arith.constant 0 : index
    %c0_4 = arith.constant 0 : index
    %2 = vector.load %arg1[%c0_2, %c0_3, %c0_4] : memref<2x4x64xf32, #tpu.memory_space<vmem>>, vector<2x4x64xf32>
    %c0_5 = arith.constant 0 : index
    %c0_6 = arith.constant 0 : index
    %3 = vector.load %arg3[%c0_5, %c0_6] : memref<2x64xf32, #tpu.memory_space<vmem>>, vector<2x64xf32>
    %4 = vector.extract_strided_slice %1 {offsets = [0, 0], sizes = [1, 64], strides = [1, 1]} : vector<2x64xf32> to vector<1x64xf32>
    %cst_7 = arith.constant 8.000000e+00 : f32
    %5 = vector.broadcast %cst_7 : f32 to vector<1x64xf32>
    %6 = arith.divf %4, %5 : vector<1x64xf32>
    %7 = vector.extract_strided_slice %1 {offsets = [1, 0], sizes = [1, 64], strides = [1, 1]} : vector<2x64xf32> to vector<1x64xf32>
    %cst_8 = arith.constant 8.000000e+00 : f32
    %8 = vector.broadcast %cst_8 : f32 to vector<1x64xf32>
    %9 = arith.divf %7, %8 : vector<1x64xf32>
    %10 = arith.mulf %6, %6 : vector<1x64xf32>
    %11 = arith.subf %9, %10 : vector<1x64xf32>
    %cst_9 = arith.constant 0.000000e+00 : f32
    %12 = vector.broadcast %cst_9 : f32 to vector<1x64xf32>
    %13 = arith.maximumf %11, %12 : vector<1x64xf32>
    %cst_10 = arith.constant 9.99999974E-6 : f32
    %14 = vector.broadcast %cst_10 : f32 to vector<1x64xf32>
    %15 = arith.addf %13, %14 : vector<1x64xf32>
    %16 = math.rsqrt %15 : vector<1x64xf32>
    %17 = vector.extract_strided_slice %3 {offsets = [0, 0], sizes = [1, 64], strides = [1, 1]} : vector<2x64xf32> to vector<1x64xf32>
    %18 = arith.mulf %16, %17 : vector<1x64xf32>
    %19 = vector.shape_cast %6 : vector<1x64xf32> to vector<1x1x64xf32>
    %20 = vector.broadcast %19 : vector<1x1x64xf32> to vector<2x4x64xf32>
    %21 = arith.subf %2, %20 : vector<2x4x64xf32>
    %22 = vector.shape_cast %18 : vector<1x64xf32> to vector<1x1x64xf32>
    %23 = vector.broadcast %22 : vector<1x1x64xf32> to vector<2x4x64xf32>
    %24 = arith.mulf %21, %23 : vector<2x4x64xf32>
    %25 = vector.extract_strided_slice %3 {offsets = [1, 0], sizes = [1, 64], strides = [1, 1]} : vector<2x64xf32> to vector<1x64xf32>
    %26 = vector.shape_cast %25 : vector<1x64xf32> to vector<1x1x64xf32>
    %27 = vector.broadcast %26 : vector<1x1x64xf32> to vector<2x4x64xf32>
    %28 = arith.addf %24, %27 : vector<2x4x64xf32>
    %cst_11 = arith.constant dense<0.000000e+00> : vector<2x64xf32>
    %29 = vector.multi_reduction <add>, %28, %cst_11 [1] : vector<2x4x64xf32> to vector<2x64xf32>
    %cst_12 = arith.constant 4.000000e+00 : f32
    %30 = vector.broadcast %cst_12 : f32 to vector<2x64xf32>
    %31 = arith.divf %29, %30 : vector<2x64xf32>
    %c0_13 = arith.constant 0 : index
    %c0_14 = arith.constant 0 : index
    %32 = vector.load %arg5[%c0_13, %c0_14] : memref<64x4xf32, #tpu.memory_space<vmem>>, vector<64x4xf32>
    %cst_15 = arith.constant dense<0.000000e+00> : vector<2x4xf32>
    %33 = tpu.matmul %31, %32, %cst_15 {dimension_numbers = #tpu.dot_dimension_numbers<[1], [0], [0], [1], [0, 0, 1, 1], [], []>} : vector<2x64xf32>, vector<64x4xf32>, vector<2x4xf32> -> vector<2x4xf32>
    %cst_16 = arith.constant 0.000000e+00 : f32
    %34 = vector.broadcast %cst_16 : f32 to vector<2x4xf32>
    %35 = arith.maximumf %33, %34 : vector<2x4xf32>
    %c0_17 = arith.constant 0 : index
    %c0_18 = arith.constant 0 : index
    %36 = vector.load %arg6[%c0_17, %c0_18] : memref<4x64xf32, #tpu.memory_space<vmem>>, vector<4x64xf32>
    %cst_19 = arith.constant dense<0.000000e+00> : vector<2x64xf32>
    %37 = tpu.matmul %35, %36, %cst_19 {dimension_numbers = #tpu.dot_dimension_numbers<[1], [0], [0], [1], [0, 0, 1, 1], [], []>} : vector<2x4xf32>, vector<4x64xf32>, vector<2x64xf32> -> vector<2x64xf32>
    %cst_20 = arith.constant 0.000000e+00 : f32
    %38 = vector.broadcast %cst_20 : f32 to vector<2x64xf32>
    %39 = arith.subf %38, %37 : vector<2x64xf32>
    %40 = math.exp %39 : vector<2x64xf32>
    %cst_21 = arith.constant 1.000000e+00 : f32
    %41 = vector.broadcast %cst_21 : f32 to vector<2x64xf32>
    %42 = arith.addf %41, %40 : vector<2x64xf32>
    %cst_22 = arith.constant 1.000000e+00 : f32
    %43 = vector.broadcast %cst_22 : f32 to vector<2x64xf32>
    %44 = arith.divf %43, %42 : vector<2x64xf32>
    %45 = vector.shape_cast %44 : vector<2x64xf32> to vector<2x1x64xf32>
    %46 = vector.broadcast %45 : vector<2x1x64xf32> to vector<2x4x64xf32>
    %47 = arith.mulf %28, %46 : vector<2x4x64xf32>
    %c0_23 = arith.constant 0 : index
    %c0_24 = arith.constant 0 : index
    %c0_25 = arith.constant 0 : index
    %48 = vector.load %arg4[%c0_23, %c0_24, %c0_25] : memref<2x4x64xf32, #tpu.memory_space<vmem>>, vector<2x4x64xf32>
    %49 = arith.addf %47, %48 : vector<2x4x64xf32>
    %cst_26 = arith.constant 0.000000e+00 : f32
    %50 = vector.broadcast %cst_26 : f32 to vector<2x4x64xf32>
    %51 = arith.cmpf ogt, %49, %50 : vector<2x4x64xf32>
    %cst_27 = arith.constant 0.000000e+00 : f32
    %52 = vector.broadcast %cst_27 : f32 to vector<2x4x64xf32>
    %53 = arith.minimumf %49, %52 : vector<2x4x64xf32>
    %54 = math.exp %53 : vector<2x4x64xf32>
    %cst_28 = arith.constant 1.000000e+00 : f32
    %55 = vector.broadcast %cst_28 : f32 to vector<2x4x64xf32>
    %56 = arith.subf %54, %55 : vector<2x4x64xf32>
    %57 = arith.select %51, %49, %56 : vector<2x4x64xi1>, vector<2x4x64xf32>
    %c0_29 = arith.constant 0 : index
    %c0_30 = arith.constant 0 : index
    %c0_31 = arith.constant 0 : index
    %58 = vector.load %arg7[%c0_29, %c0_30, %c0_31] : memref<2x4x64xf32, #tpu.memory_space<vmem>>, vector<2x4x64xf32>
    tpu.vector_store %arg7[%c0_29, %c0_30, %c0_31], %57 {strides = array<i32>} : memref<2x4x64xf32, #tpu.memory_space<vmem>>, vector<2x4x64xf32>,
    return
  }
  func.func @transform_0(%arg0: i32) -> (i32, i32, i32) {
    %c0_i32 = arith.constant 0 : i32
    %c0_i32_0 = arith.constant 0 : i32
    %c0_i32_1 = arith.constant 0 : i32
    return %arg0, %c0_i32, %c0_i32_0 : i32, i32, i32
  }
  func.func @transform_1(%arg0: i32) -> (i32, i32, i32) {
    %c0_i32 = arith.constant 0 : i32
    %c0_i32_0 = arith.constant 0 : i32
    %c0_i32_1 = arith.constant 0 : i32
    %c0_i32_2 = arith.constant 0 : i32
    return %c0_i32, %c0_i32_0, %c0_i32_1 : i32, i32, i32
  }
  func.func @transform_2(%arg0: i32) -> (i32, i32) {
    %c0_i32 = arith.constant 0 : i32
    %c0_i32_0 = arith.constant 0 : i32
    %c0_i32_1 = arith.constant 0 : i32
    return %c0_i32, %c0_i32_0 : i32, i32
  }
  func.func @transform_3(%arg0: i32) -> (i32, i32, i32) {
    %c0_i32 = arith.constant 0 : i32
    %c0_i32_0 = arith.constant 0 : i32
    %c0_i32_1 = arith.constant 0 : i32
    return %arg0, %c0_i32, %c0_i32_0 : i32, i32, i32
  }
  func.func @transform_4(%arg0: i32) -> (i32, i32) {
    %c0_i32 = arith.constant 0 : i32
    %c0_i32_0 = arith.constant 0 : i32
    %c0_i32_1 = arith.constant 0 : i32
    return %c0_i32, %c0_i32_0 : i32, i32
  }
  func.func @transform_5(%arg0: i32) -> (i32, i32) {
    %c0_i32 = arith.constant 0 : i32
    %c0_i32_0 = arith.constant 0 : i32
    %c0_i32_1 = arith.constant 0 : i32
    return %c0_i32, %c0_i32_0 : i32, i32
  }
  func.func @transform_6(%arg0: i32) -> (i32, i32, i32) {
    %c0_i32 = arith.constant 0 : i32
    %c0_i32_0 = arith.constant 0 : i32
    %c0_i32_1 = arith.constant 0 : i32
    return %arg0, %c0_i32, %c0_i32_0 : i32, i32, i32
  }
}

module attributes {stable_mosaic.version = 11 : i64} {
  func.func @_conv_s2_dual_stats_kernel(%arg0: i32, %arg1: memref<2x3x64xbf16, #tpu.memory_space<vmem>>, %arg2: memref<2x3x64xbf16, #tpu.memory_space<vmem>>, %arg3: memref<192x128xbf16, #tpu.memory_space<vmem>>, %arg4: memref<64x128xbf16, #tpu.memory_space<vmem>>, %arg5: memref<2x2x128xf32, #tpu.memory_space<vmem>>, %arg6: memref<1x2x128xf32, #tpu.memory_space<vmem>>, %arg7: memref<2x2x128xf32, #tpu.memory_space<vmem>>, %arg8: memref<1x2x128xf32, #tpu.memory_space<vmem>>) attributes {dimension_semantics = [#tpu.dimension_semantics<parallel>], iteration_bounds = array<i64: 1>, scalar_prefetch = 0 : i64, scratch_operands = 0 : i64, tpu.core_type = #tpu.core_type<tc>, window_params = [{transform_indices = @transform_0, window_bounds = array<i64: 2, 3, 64>}, {transform_indices = @transform_1, window_bounds = array<i64: 2, 3, 64>}, {pipeline_mode = #tpu.pipeline_mode<synchronous>, transform_indices = @transform_2, window_bounds = array<i64: 192, 128>}, {pipeline_mode = #tpu.pipeline_mode<synchronous>, transform_indices = @transform_3, window_bounds = array<i64: 64, 128>}, {transform_indices = @transform_4, window_bounds = array<i64: 2, 2, 128>}, {transform_indices = @transform_5, window_bounds = array<i64: 1, 2, 128>}, {transform_indices = @transform_6, window_bounds = array<i64: 2, 2, 128>}, {transform_indices = @transform_7, window_bounds = array<i64: 1, 2, 128>}]} {
    %c0 = arith.constant 0 : index
    %c0_0 = arith.constant 0 : index
    %c0_1 = arith.constant 0 : index
    %0 = vector.load %arg1[%c0, %c0_0, %c0_1] : memref<2x3x64xbf16, #tpu.memory_space<vmem>>, vector<2x3x64xbf16>
    %c0_2 = arith.constant 0 : index
    %c0_3 = arith.constant 0 : index
    %c0_4 = arith.constant 0 : index
    %1 = vector.load %arg2[%c0_2, %c0_3, %c0_4] : memref<2x3x64xbf16, #tpu.memory_space<vmem>>, vector<2x3x64xbf16>
    %2 = vector.extract_strided_slice %0 {offsets = [0, 0, 0], sizes = [2, 2, 64], strides = [1, 1, 1]} : vector<2x3x64xbf16> to vector<2x2x64xbf16>
    %3 = vector.extract_strided_slice %1 {offsets = [0, 0, 0], sizes = [2, 2, 64], strides = [1, 1, 1]} : vector<2x3x64xbf16> to vector<2x2x64xbf16>
    %4 = vector.extract_strided_slice %0 {offsets = [0, 1, 0], sizes = [2, 2, 64], strides = [1, 1, 1]} : vector<2x3x64xbf16> to vector<2x2x64xbf16>
    %5 = tpu.concatenate %2, %3, %4 in 2 : vector<2x2x64xbf16>, vector<2x2x64xbf16>, vector<2x2x64xbf16> -> vector<2x2x192xbf16>
    %6 = vector.shape_cast %5 : vector<2x2x192xbf16> to vector<4x192xbf16>
    %c0_5 = arith.constant 0 : index
    %c0_6 = arith.constant 0 : index
    %7 = vector.load %arg3[%c0_5, %c0_6] : memref<192x128xbf16, #tpu.memory_space<vmem>>, vector<192x128xbf16>
    %cst = arith.constant dense<0.000000e+00> : vector<4x128xf32>
    %8 = tpu.matmul %6, %7, %cst {dimension_numbers = #tpu.dot_dimension_numbers<[1], [0], [0], [1], [0, 0, 1, 1], [], []>} : vector<4x192xbf16>, vector<192x128xbf16>, vector<4x128xf32> -> vector<4x128xf32>
    %9 = vector.shape_cast %8 : vector<4x128xf32> to vector<2x2x128xf32>
    %c0_7 = arith.constant 0 : index
    %c0_8 = arith.constant 0 : index
    %c0_9 = arith.constant 0 : index
    %10 = vector.load %arg5[%c0_7, %c0_8, %c0_9] : memref<2x2x128xf32, #tpu.memory_space<vmem>>, vector<2x2x128xf32>
    tpu.vector_store %arg5[%c0_7, %c0_8, %c0_9], %9 {strides = array<i32>} : memref<2x2x128xf32, #tpu.memory_space<vmem>>, vector<2x2x128xf32>,
    %cst_10 = arith.constant dense<0.000000e+00> : vector<128xf32>
    %11 = vector.multi_reduction <add>, %8, %cst_10 [0] : vector<4x128xf32> to vector<128xf32>
    %12 = vector.shape_cast %11 : vector<128xf32> to vector<1x128xf32>
    %13 = arith.mulf %8, %8 : vector<4x128xf32>
    %cst_11 = arith.constant dense<0.000000e+00> : vector<128xf32>
    %14 = vector.multi_reduction <add>, %13, %cst_11 [0] : vector<4x128xf32> to vector<128xf32>
    %15 = vector.shape_cast %14 : vector<128xf32> to vector<1x128xf32>
    %16 = tpu.concatenate %12, %15 in 0 : vector<1x128xf32>, vector<1x128xf32> -> vector<2x128xf32>
    %c0_12 = arith.constant 0 : index
    %c0_13 = arith.constant 0 : index
    %c0_14 = arith.constant 0 : index
    %17 = vector.load %arg6[%c0_12, %c0_13, %c0_14] : memref<1x2x128xf32, #tpu.memory_space<vmem>>, vector<1x2x128xf32>
    %18 = vector.shape_cast %17 : vector<1x2x128xf32> to vector<2x128xf32>
    %19 = vector.shape_cast %16 : vector<2x128xf32> to vector<1x2x128xf32>
    tpu.vector_store %arg6[%c0_12, %c0_13, %c0_14], %19 {strides = array<i32>} : memref<1x2x128xf32, #tpu.memory_space<vmem>>, vector<1x2x128xf32>,
    %20 = vector.extract_strided_slice %1 {offsets = [0, 0, 0], sizes = [2, 2, 64], strides = [1, 1, 1]} : vector<2x3x64xbf16> to vector<2x2x64xbf16>
    %21 = vector.shape_cast %20 : vector<2x2x64xbf16> to vector<4x64xbf16>
    %c0_15 = arith.constant 0 : index
    %c0_16 = arith.constant 0 : index
    %22 = vector.load %arg4[%c0_15, %c0_16] : memref<64x128xbf16, #tpu.memory_space<vmem>>, vector<64x128xbf16>
    %cst_17 = arith.constant dense<0.000000e+00> : vector<4x128xf32>
    %23 = tpu.matmul %21, %22, %cst_17 {dimension_numbers = #tpu.dot_dimension_numbers<[1], [0], [0], [1], [0, 0, 1, 1], [], []>} : vector<4x64xbf16>, vector<64x128xbf16>, vector<4x128xf32> -> vector<4x128xf32>
    %24 = vector.shape_cast %23 : vector<4x128xf32> to vector<2x2x128xf32>
    %c0_18 = arith.constant 0 : index
    %c0_19 = arith.constant 0 : index
    %c0_20 = arith.constant 0 : index
    %25 = vector.load %arg7[%c0_18, %c0_19, %c0_20] : memref<2x2x128xf32, #tpu.memory_space<vmem>>, vector<2x2x128xf32>
    tpu.vector_store %arg7[%c0_18, %c0_19, %c0_20], %24 {strides = array<i32>} : memref<2x2x128xf32, #tpu.memory_space<vmem>>, vector<2x2x128xf32>,
    %cst_21 = arith.constant dense<0.000000e+00> : vector<128xf32>
    %26 = vector.multi_reduction <add>, %23, %cst_21 [0] : vector<4x128xf32> to vector<128xf32>
    %27 = vector.shape_cast %26 : vector<128xf32> to vector<1x128xf32>
    %28 = arith.mulf %23, %23 : vector<4x128xf32>
    %cst_22 = arith.constant dense<0.000000e+00> : vector<128xf32>
    %29 = vector.multi_reduction <add>, %28, %cst_22 [0] : vector<4x128xf32> to vector<128xf32>
    %30 = vector.shape_cast %29 : vector<128xf32> to vector<1x128xf32>
    %31 = tpu.concatenate %27, %30 in 0 : vector<1x128xf32>, vector<1x128xf32> -> vector<2x128xf32>
    %c0_23 = arith.constant 0 : index
    %c0_24 = arith.constant 0 : index
    %c0_25 = arith.constant 0 : index
    %32 = vector.load %arg8[%c0_23, %c0_24, %c0_25] : memref<1x2x128xf32, #tpu.memory_space<vmem>>, vector<1x2x128xf32>
    %33 = vector.shape_cast %32 : vector<1x2x128xf32> to vector<2x128xf32>
    %34 = vector.shape_cast %31 : vector<2x128xf32> to vector<1x2x128xf32>
    tpu.vector_store %arg8[%c0_23, %c0_24, %c0_25], %34 {strides = array<i32>} : memref<1x2x128xf32, #tpu.memory_space<vmem>>, vector<1x2x128xf32>,
    return
  }
  func.func @transform_0(%arg0: i32) -> (i32, i32, i32) {
    %c0_i32 = arith.constant 0 : i32
    %c0_i32_0 = arith.constant 0 : i32
    %c0_i32_1 = arith.constant 0 : i32
    return %arg0, %c0_i32, %c0_i32_0 : i32, i32, i32
  }
  func.func @transform_1(%arg0: i32) -> (i32, i32, i32) {
    %c0_i32 = arith.constant 0 : i32
    %c0_i32_0 = arith.constant 0 : i32
    %c0_i32_1 = arith.constant 0 : i32
    return %arg0, %c0_i32, %c0_i32_0 : i32, i32, i32
  }
  func.func @transform_2(%arg0: i32) -> (i32, i32) {
    %c0_i32 = arith.constant 0 : i32
    %c0_i32_0 = arith.constant 0 : i32
    %c0_i32_1 = arith.constant 0 : i32
    return %c0_i32, %c0_i32_0 : i32, i32
  }
  func.func @transform_3(%arg0: i32) -> (i32, i32) {
    %c0_i32 = arith.constant 0 : i32
    %c0_i32_0 = arith.constant 0 : i32
    %c0_i32_1 = arith.constant 0 : i32
    return %c0_i32, %c0_i32_0 : i32, i32
  }
  func.func @transform_4(%arg0: i32) -> (i32, i32, i32) {
    %c0_i32 = arith.constant 0 : i32
    %c0_i32_0 = arith.constant 0 : i32
    %c0_i32_1 = arith.constant 0 : i32
    return %arg0, %c0_i32, %c0_i32_0 : i32, i32, i32
  }
  func.func @transform_5(%arg0: i32) -> (i32, i32, i32) {
    %c0_i32 = arith.constant 0 : i32
    %c0_i32_0 = arith.constant 0 : i32
    %c0_i32_1 = arith.constant 0 : i32
    return %arg0, %c0_i32, %c0_i32_0 : i32, i32, i32
  }
  func.func @transform_6(%arg0: i32) -> (i32, i32, i32) {
    %c0_i32 = arith.constant 0 : i32
    %c0_i32_0 = arith.constant 0 : i32
    %c0_i32_1 = arith.constant 0 : i32
    return %arg0, %c0_i32, %c0_i32_0 : i32, i32, i32
  }
  func.func @transform_7(%arg0: i32) -> (i32, i32, i32) {
    %c0_i32 = arith.constant 0 : i32
    %c0_i32_0 = arith.constant 0 : i32
    %c0_i32_1 = arith.constant 0 : i32
    return %arg0, %c0_i32, %c0_i32_0 : i32, i32, i32
  }
}

module attributes {stable_mosaic.version = 11 : i64} {
  func.func @_bn_elu_conv2_stats_kernel(%arg0: i32, %arg1: memref<2x2x128xf32, #tpu.memory_space<vmem>>, %arg2: memref<1x2x128xf32, #tpu.memory_space<vmem>>, %arg3: memref<2x128xf32, #tpu.memory_space<vmem>>, %arg4: memref<384x128xbf16, #tpu.memory_space<vmem>>, %arg5: memref<2x2x128xf32, #tpu.memory_space<vmem>>, %arg6: memref<1x2x128xf32, #tpu.memory_space<vmem>>) attributes {dimension_semantics = [#tpu.dimension_semantics<parallel>], iteration_bounds = array<i64: 1>, scalar_prefetch = 0 : i64, scratch_operands = 0 : i64, tpu.core_type = #tpu.core_type<tc>, window_params = [{transform_indices = @transform_0, window_bounds = array<i64: 2, 2, 128>}, {pipeline_mode = #tpu.pipeline_mode<synchronous>, transform_indices = @transform_1, window_bounds = array<i64: 1, 2, 128>}, {pipeline_mode = #tpu.pipeline_mode<synchronous>, transform_indices = @transform_2, window_bounds = array<i64: 2, 128>}, {pipeline_mode = #tpu.pipeline_mode<synchronous>, transform_indices = @transform_3, window_bounds = array<i64: 384, 128>}, {transform_indices = @transform_4, window_bounds = array<i64: 2, 2, 128>}, {transform_indices = @transform_5, window_bounds = array<i64: 1, 2, 128>}]} {
    %c0 = arith.constant 0 : index
    %c0_0 = arith.constant 0 : index
    %c0_1 = arith.constant 0 : index
    %0 = vector.load %arg2[%c0, %c0_0, %c0_1] : memref<1x2x128xf32, #tpu.memory_space<vmem>>, vector<1x2x128xf32>
    %cst = arith.constant dense<0.000000e+00> : vector<2x128xf32>
    %1 = vector.multi_reduction <add>, %0, %cst [0] : vector<1x2x128xf32> to vector<2x128xf32>
    %c0_2 = arith.constant 0 : index
    %c0_3 = arith.constant 0 : index
    %c0_4 = arith.constant 0 : index
    %2 = vector.load %arg1[%c0_2, %c0_3, %c0_4] : memref<2x2x128xf32, #tpu.memory_space<vmem>>, vector<2x2x128xf32>
    %c0_5 = arith.constant 0 : index
    %c0_6 = arith.constant 0 : index
    %3 = vector.load %arg3[%c0_5, %c0_6] : memref<2x128xf32, #tpu.memory_space<vmem>>, vector<2x128xf32>
    %4 = vector.extract_strided_slice %1 {offsets = [0, 0], sizes = [1, 128], strides = [1, 1]} : vector<2x128xf32> to vector<1x128xf32>
    %cst_7 = arith.constant 4.000000e+00 : f32
    %5 = vector.broadcast %cst_7 : f32 to vector<1x128xf32>
    %6 = arith.divf %4, %5 : vector<1x128xf32>
    %7 = vector.extract_strided_slice %1 {offsets = [1, 0], sizes = [1, 128], strides = [1, 1]} : vector<2x128xf32> to vector<1x128xf32>
    %cst_8 = arith.constant 4.000000e+00 : f32
    %8 = vector.broadcast %cst_8 : f32 to vector<1x128xf32>
    %9 = arith.divf %7, %8 : vector<1x128xf32>
    %10 = arith.mulf %6, %6 : vector<1x128xf32>
    %11 = arith.subf %9, %10 : vector<1x128xf32>
    %cst_9 = arith.constant 0.000000e+00 : f32
    %12 = vector.broadcast %cst_9 : f32 to vector<1x128xf32>
    %13 = arith.maximumf %11, %12 : vector<1x128xf32>
    %cst_10 = arith.constant 9.99999974E-6 : f32
    %14 = vector.broadcast %cst_10 : f32 to vector<1x128xf32>
    %15 = arith.addf %13, %14 : vector<1x128xf32>
    %16 = math.rsqrt %15 : vector<1x128xf32>
    %17 = vector.extract_strided_slice %3 {offsets = [0, 0], sizes = [1, 128], strides = [1, 1]} : vector<2x128xf32> to vector<1x128xf32>
    %18 = arith.mulf %16, %17 : vector<1x128xf32>
    %19 = vector.shape_cast %6 : vector<1x128xf32> to vector<1x1x128xf32>
    %20 = vector.broadcast %19 : vector<1x1x128xf32> to vector<2x2x128xf32>
    %21 = arith.subf %2, %20 : vector<2x2x128xf32>
    %22 = vector.shape_cast %18 : vector<1x128xf32> to vector<1x1x128xf32>
    %23 = vector.broadcast %22 : vector<1x1x128xf32> to vector<2x2x128xf32>
    %24 = arith.mulf %21, %23 : vector<2x2x128xf32>
    %25 = vector.extract_strided_slice %3 {offsets = [1, 0], sizes = [1, 128], strides = [1, 1]} : vector<2x128xf32> to vector<1x128xf32>
    %26 = vector.shape_cast %25 : vector<1x128xf32> to vector<1x1x128xf32>
    %27 = vector.broadcast %26 : vector<1x1x128xf32> to vector<2x2x128xf32>
    %28 = arith.addf %24, %27 : vector<2x2x128xf32>
    %cst_11 = arith.constant 0.000000e+00 : f32
    %29 = vector.broadcast %cst_11 : f32 to vector<2x2x128xf32>
    %30 = arith.cmpf ogt, %28, %29 : vector<2x2x128xf32>
    %cst_12 = arith.constant 0.000000e+00 : f32
    %31 = vector.broadcast %cst_12 : f32 to vector<2x2x128xf32>
    %32 = arith.minimumf %28, %31 : vector<2x2x128xf32>
    %33 = math.exp %32 : vector<2x2x128xf32>
    %cst_13 = arith.constant 1.000000e+00 : f32
    %34 = vector.broadcast %cst_13 : f32 to vector<2x2x128xf32>
    %35 = arith.subf %33, %34 : vector<2x2x128xf32>
    %36 = arith.select %30, %28, %35 : vector<2x2x128xi1>, vector<2x2x128xf32>
    %37 = arith.truncf %36 : vector<2x2x128xf32> to vector<2x2x128xbf16>
    %cst_14 = arith.constant 0.000000e+00 : bf16
    %38 = vector.broadcast %cst_14 : bf16 to vector<2x1x128xbf16>
    %39 = tpu.concatenate %38, %37, %38 in 1 : vector<2x1x128xbf16>, vector<2x2x128xbf16>, vector<2x1x128xbf16> -> vector<2x4x128xbf16>
    %40 = vector.extract_strided_slice %39 {offsets = [0, 0, 0], sizes = [2, 2, 128], strides = [1, 1, 1]} : vector<2x4x128xbf16> to vector<2x2x128xbf16>
    %41 = vector.extract_strided_slice %39 {offsets = [0, 1, 0], sizes = [2, 2, 128], strides = [1, 1, 1]} : vector<2x4x128xbf16> to vector<2x2x128xbf16>
    %42 = vector.extract_strided_slice %39 {offsets = [0, 2, 0], sizes = [2, 2, 128], strides = [1, 1, 1]} : vector<2x4x128xbf16> to vector<2x2x128xbf16>
    %43 = tpu.concatenate %40, %41, %42 in 2 : vector<2x2x128xbf16>, vector<2x2x128xbf16>, vector<2x2x128xbf16> -> vector<2x2x384xbf16>
    %44 = vector.shape_cast %43 : vector<2x2x384xbf16> to vector<4x384xbf16>
    %c0_15 = arith.constant 0 : index
    %c0_16 = arith.constant 0 : index
    %45 = vector.load %arg4[%c0_15, %c0_16] : memref<384x128xbf16, #tpu.memory_space<vmem>>, vector<384x128xbf16>
    %cst_17 = arith.constant dense<0.000000e+00> : vector<4x128xf32>
    %46 = tpu.matmul %44, %45, %cst_17 {dimension_numbers = #tpu.dot_dimension_numbers<[1], [0], [0], [1], [0, 0, 1, 1], [], []>} : vector<4x384xbf16>, vector<384x128xbf16>, vector<4x128xf32> -> vector<4x128xf32>
    %47 = vector.shape_cast %46 : vector<4x128xf32> to vector<2x2x128xf32>
    %c0_18 = arith.constant 0 : index
    %c0_19 = arith.constant 0 : index
    %c0_20 = arith.constant 0 : index
    %48 = vector.load %arg5[%c0_18, %c0_19, %c0_20] : memref<2x2x128xf32, #tpu.memory_space<vmem>>, vector<2x2x128xf32>
    tpu.vector_store %arg5[%c0_18, %c0_19, %c0_20], %47 {strides = array<i32>} : memref<2x2x128xf32, #tpu.memory_space<vmem>>, vector<2x2x128xf32>,
    %cst_21 = arith.constant dense<0.000000e+00> : vector<128xf32>
    %49 = vector.multi_reduction <add>, %46, %cst_21 [0] : vector<4x128xf32> to vector<128xf32>
    %50 = vector.shape_cast %49 : vector<128xf32> to vector<1x128xf32>
    %51 = arith.mulf %46, %46 : vector<4x128xf32>
    %cst_22 = arith.constant dense<0.000000e+00> : vector<128xf32>
    %52 = vector.multi_reduction <add>, %51, %cst_22 [0] : vector<4x128xf32> to vector<128xf32>
    %53 = vector.shape_cast %52 : vector<128xf32> to vector<1x128xf32>
    %54 = tpu.concatenate %50, %53 in 0 : vector<1x128xf32>, vector<1x128xf32> -> vector<2x128xf32>
    %c0_23 = arith.constant 0 : index
    %c0_24 = arith.constant 0 : index
    %c0_25 = arith.constant 0 : index
    %55 = vector.load %arg6[%c0_23, %c0_24, %c0_25] : memref<1x2x128xf32, #tpu.memory_space<vmem>>, vector<1x2x128xf32>
    %56 = vector.shape_cast %55 : vector<1x2x128xf32> to vector<2x128xf32>
    %57 = vector.shape_cast %54 : vector<2x128xf32> to vector<1x2x128xf32>
    tpu.vector_store %arg6[%c0_23, %c0_24, %c0_25], %57 {strides = array<i32>} : memref<1x2x128xf32, #tpu.memory_space<vmem>>, vector<1x2x128xf32>,
    return
  }
  func.func @transform_0(%arg0: i32) -> (i32, i32, i32) {
    %c0_i32 = arith.constant 0 : i32
    %c0_i32_0 = arith.constant 0 : i32
    %c0_i32_1 = arith.constant 0 : i32
    return %arg0, %c0_i32, %c0_i32_0 : i32, i32, i32
  }
  func.func @transform_1(%arg0: i32) -> (i32, i32, i32) {
    %c0_i32 = arith.constant 0 : i32
    %c0_i32_0 = arith.constant 0 : i32
    %c0_i32_1 = arith.constant 0 : i32
    %c0_i32_2 = arith.constant 0 : i32
    return %c0_i32, %c0_i32_0, %c0_i32_1 : i32, i32, i32
  }
  func.func @transform_2(%arg0: i32) -> (i32, i32) {
    %c0_i32 = arith.constant 0 : i32
    %c0_i32_0 = arith.constant 0 : i32
    %c0_i32_1 = arith.constant 0 : i32
    return %c0_i32, %c0_i32_0 : i32, i32
  }
  func.func @transform_3(%arg0: i32) -> (i32, i32) {
    %c0_i32 = arith.constant 0 : i32
    %c0_i32_0 = arith.constant 0 : i32
    %c0_i32_1 = arith.constant 0 : i32
    return %c0_i32, %c0_i32_0 : i32, i32
  }
  func.func @transform_4(%arg0: i32) -> (i32, i32, i32) {
    %c0_i32 = arith.constant 0 : i32
    %c0_i32_0 = arith.constant 0 : i32
    %c0_i32_1 = arith.constant 0 : i32
    return %arg0, %c0_i32, %c0_i32_0 : i32, i32, i32
  }
  func.func @transform_5(%arg0: i32) -> (i32, i32, i32) {
    %c0_i32 = arith.constant 0 : i32
    %c0_i32_0 = arith.constant 0 : i32
    %c0_i32_1 = arith.constant 0 : i32
    return %arg0, %c0_i32, %c0_i32_0 : i32, i32, i32
  }
}

module attributes {stable_mosaic.version = 11 : i64} {
  func.func @_bn_se_downres_kernel(%arg0: i32, %arg1: memref<2x2x128xf32, #tpu.memory_space<vmem>>, %arg2: memref<1x2x128xf32, #tpu.memory_space<vmem>>, %arg3: memref<2x128xf32, #tpu.memory_space<vmem>>, %arg4: memref<2x2x128xf32, #tpu.memory_space<vmem>>, %arg5: memref<1x2x128xf32, #tpu.memory_space<vmem>>, %arg6: memref<2x128xf32, #tpu.memory_space<vmem>>, %arg7: memref<128x8xf32, #tpu.memory_space<vmem>>, %arg8: memref<8x128xf32, #tpu.memory_space<vmem>>, %arg9: memref<2x2x128xf32, #tpu.memory_space<vmem>>) attributes {dimension_semantics = [#tpu.dimension_semantics<parallel>], iteration_bounds = array<i64: 1>, scalar_prefetch = 0 : i64, scratch_operands = 0 : i64, tpu.core_type = #tpu.core_type<tc>, window_params = [{transform_indices = @transform_0, window_bounds = array<i64: 2, 2, 128>}, {pipeline_mode = #tpu.pipeline_mode<synchronous>, transform_indices = @transform_1, window_bounds = array<i64: 1, 2, 128>}, {pipeline_mode = #tpu.pipeline_mode<synchronous>, transform_indices = @transform_2, window_bounds = array<i64: 2, 128>}, {transform_indices = @transform_3, window_bounds = array<i64: 2, 2, 128>}, {pipeline_mode = #tpu.pipeline_mode<synchronous>, transform_indices = @transform_4, window_bounds = array<i64: 1, 2, 128>}, {pipeline_mode = #tpu.pipeline_mode<synchronous>, transform_indices = @transform_5, window_bounds = array<i64: 2, 128>}, {pipeline_mode = #tpu.pipeline_mode<synchronous>, transform_indices = @transform_6, window_bounds = array<i64: 128, 8>}, {pipeline_mode = #tpu.pipeline_mode<synchronous>, transform_indices = @transform_7, window_bounds = array<i64: 8, 128>}, {transform_indices = @transform_8, window_bounds = array<i64: 2, 2, 128>}]} {
    %c0 = arith.constant 0 : index
    %c0_0 = arith.constant 0 : index
    %c0_1 = arith.constant 0 : index
    %0 = vector.load %arg2[%c0, %c0_0, %c0_1] : memref<1x2x128xf32, #tpu.memory_space<vmem>>, vector<1x2x128xf32>
    %cst = arith.constant dense<0.000000e+00> : vector<2x128xf32>
    %1 = vector.multi_reduction <add>, %0, %cst [0] : vector<1x2x128xf32> to vector<2x128xf32>
    %c0_2 = arith.constant 0 : index
    %c0_3 = arith.constant 0 : index
    %c0_4 = arith.constant 0 : index
    %2 = vector.load %arg5[%c0_2, %c0_3, %c0_4] : memref<1x2x128xf32, #tpu.memory_space<vmem>>, vector<1x2x128xf32>
    %cst_5 = arith.constant dense<0.000000e+00> : vector<2x128xf32>
    %3 = vector.multi_reduction <add>, %2, %cst_5 [0] : vector<1x2x128xf32> to vector<2x128xf32>
    %c0_6 = arith.constant 0 : index
    %c0_7 = arith.constant 0 : index
    %c0_8 = arith.constant 0 : index
    %4 = vector.load %arg1[%c0_6, %c0_7, %c0_8] : memref<2x2x128xf32, #tpu.memory_space<vmem>>, vector<2x2x128xf32>
    %c0_9 = arith.constant 0 : index
    %c0_10 = arith.constant 0 : index
    %5 = vector.load %arg3[%c0_9, %c0_10] : memref<2x128xf32, #tpu.memory_space<vmem>>, vector<2x128xf32>
    %6 = vector.extract_strided_slice %1 {offsets = [0, 0], sizes = [1, 128], strides = [1, 1]} : vector<2x128xf32> to vector<1x128xf32>
    %cst_11 = arith.constant 4.000000e+00 : f32
    %7 = vector.broadcast %cst_11 : f32 to vector<1x128xf32>
    %8 = arith.divf %6, %7 : vector<1x128xf32>
    %9 = vector.extract_strided_slice %1 {offsets = [1, 0], sizes = [1, 128], strides = [1, 1]} : vector<2x128xf32> to vector<1x128xf32>
    %cst_12 = arith.constant 4.000000e+00 : f32
    %10 = vector.broadcast %cst_12 : f32 to vector<1x128xf32>
    %11 = arith.divf %9, %10 : vector<1x128xf32>
    %12 = arith.mulf %8, %8 : vector<1x128xf32>
    %13 = arith.subf %11, %12 : vector<1x128xf32>
    %cst_13 = arith.constant 0.000000e+00 : f32
    %14 = vector.broadcast %cst_13 : f32 to vector<1x128xf32>
    %15 = arith.maximumf %13, %14 : vector<1x128xf32>
    %cst_14 = arith.constant 9.99999974E-6 : f32
    %16 = vector.broadcast %cst_14 : f32 to vector<1x128xf32>
    %17 = arith.addf %15, %16 : vector<1x128xf32>
    %18 = math.rsqrt %17 : vector<1x128xf32>
    %19 = vector.extract_strided_slice %5 {offsets = [0, 0], sizes = [1, 128], strides = [1, 1]} : vector<2x128xf32> to vector<1x128xf32>
    %20 = arith.mulf %18, %19 : vector<1x128xf32>
    %21 = vector.shape_cast %8 : vector<1x128xf32> to vector<1x1x128xf32>
    %22 = vector.broadcast %21 : vector<1x1x128xf32> to vector<2x2x128xf32>
    %23 = arith.subf %4, %22 : vector<2x2x128xf32>
    %24 = vector.shape_cast %20 : vector<1x128xf32> to vector<1x1x128xf32>
    %25 = vector.broadcast %24 : vector<1x1x128xf32> to vector<2x2x128xf32>
    %26 = arith.mulf %23, %25 : vector<2x2x128xf32>
    %27 = vector.extract_strided_slice %5 {offsets = [1, 0], sizes = [1, 128], strides = [1, 1]} : vector<2x128xf32> to vector<1x128xf32>
    %28 = vector.shape_cast %27 : vector<1x128xf32> to vector<1x1x128xf32>
    %29 = vector.broadcast %28 : vector<1x1x128xf32> to vector<2x2x128xf32>
    %30 = arith.addf %26, %29 : vector<2x2x128xf32>
    %c0_15 = arith.constant 0 : index
    %c0_16 = arith.constant 0 : index
    %c0_17 = arith.constant 0 : index
    %31 = vector.load %arg4[%c0_15, %c0_16, %c0_17] : memref<2x2x128xf32, #tpu.memory_space<vmem>>, vector<2x2x128xf32>
    %c0_18 = arith.constant 0 : index
    %c0_19 = arith.constant 0 : index
    %32 = vector.load %arg6[%c0_18, %c0_19] : memref<2x128xf32, #tpu.memory_space<vmem>>, vector<2x128xf32>
    %33 = vector.extract_strided_slice %3 {offsets = [0, 0], sizes = [1, 128], strides = [1, 1]} : vector<2x128xf32> to vector<1x128xf32>
    %cst_20 = arith.constant 4.000000e+00 : f32
    %34 = vector.broadcast %cst_20 : f32 to vector<1x128xf32>
    %35 = arith.divf %33, %34 : vector<1x128xf32>
    %36 = vector.extract_strided_slice %3 {offsets = [1, 0], sizes = [1, 128], strides = [1, 1]} : vector<2x128xf32> to vector<1x128xf32>
    %cst_21 = arith.constant 4.000000e+00 : f32
    %37 = vector.broadcast %cst_21 : f32 to vector<1x128xf32>
    %38 = arith.divf %36, %37 : vector<1x128xf32>
    %39 = arith.mulf %35, %35 : vector<1x128xf32>
    %40 = arith.subf %38, %39 : vector<1x128xf32>
    %cst_22 = arith.constant 0.000000e+00 : f32
    %41 = vector.broadcast %cst_22 : f32 to vector<1x128xf32>
    %42 = arith.maximumf %40, %41 : vector<1x128xf32>
    %cst_23 = arith.constant 9.99999974E-6 : f32
    %43 = vector.broadcast %cst_23 : f32 to vector<1x128xf32>
    %44 = arith.addf %42, %43 : vector<1x128xf32>
    %45 = math.rsqrt %44 : vector<1x128xf32>
    %46 = vector.extract_strided_slice %32 {offsets = [0, 0], sizes = [1, 128], strides = [1, 1]} : vector<2x128xf32> to vector<1x128xf32>
    %47 = arith.mulf %45, %46 : vector<1x128xf32>
    %48 = vector.shape_cast %35 : vector<1x128xf32> to vector<1x1x128xf32>
    %49 = vector.broadcast %48 : vector<1x1x128xf32> to vector<2x2x128xf32>
    %50 = arith.subf %31, %49 : vector<2x2x128xf32>
    %51 = vector.shape_cast %47 : vector<1x128xf32> to vector<1x1x128xf32>
    %52 = vector.broadcast %51 : vector<1x1x128xf32> to vector<2x2x128xf32>
    %53 = arith.mulf %50, %52 : vector<2x2x128xf32>
    %54 = vector.extract_strided_slice %32 {offsets = [1, 0], sizes = [1, 128], strides = [1, 1]} : vector<2x128xf32> to vector<1x128xf32>
    %55 = vector.shape_cast %54 : vector<1x128xf32> to vector<1x1x128xf32>
    %56 = vector.broadcast %55 : vector<1x1x128xf32> to vector<2x2x128xf32>
    %57 = arith.addf %53, %56 : vector<2x2x128xf32>
    %cst_24 = arith.constant dense<0.000000e+00> : vector<2x128xf32>
    %58 = vector.multi_reduction <add>, %30, %cst_24 [1] : vector<2x2x128xf32> to vector<2x128xf32>
    %cst_25 = arith.constant 2.000000e+00 : f32
    %59 = vector.broadcast %cst_25 : f32 to vector<2x128xf32>
    %60 = arith.divf %58, %59 : vector<2x128xf32>
    %c0_26 = arith.constant 0 : index
    %c0_27 = arith.constant 0 : index
    %61 = vector.load %arg7[%c0_26, %c0_27] : memref<128x8xf32, #tpu.memory_space<vmem>>, vector<128x8xf32>
    %cst_28 = arith.constant dense<0.000000e+00> : vector<2x8xf32>
    %62 = tpu.matmul %60, %61, %cst_28 {dimension_numbers = #tpu.dot_dimension_numbers<[1], [0], [0], [1], [0, 0, 1, 1], [], []>} : vector<2x128xf32>, vector<128x8xf32>, vector<2x8xf32> -> vector<2x8xf32>
    %cst_29 = arith.constant 0.000000e+00 : f32
    %63 = vector.broadcast %cst_29 : f32 to vector<2x8xf32>
    %64 = arith.maximumf %62, %63 : vector<2x8xf32>
    %c0_30 = arith.constant 0 : index
    %c0_31 = arith.constant 0 : index
    %65 = vector.load %arg8[%c0_30, %c0_31] : memref<8x128xf32, #tpu.memory_space<vmem>>, vector<8x128xf32>
    %cst_32 = arith.constant dense<0.000000e+00> : vector<2x128xf32>
    %66 = tpu.matmul %64, %65, %cst_32 {dimension_numbers = #tpu.dot_dimension_numbers<[1], [0], [0], [1], [0, 0, 1, 1], [], []>} : vector<2x8xf32>, vector<8x128xf32>, vector<2x128xf32> -> vector<2x128xf32>
    %cst_33 = arith.constant 0.000000e+00 : f32
    %67 = vector.broadcast %cst_33 : f32 to vector<2x128xf32>
    %68 = arith.subf %67, %66 : vector<2x128xf32>
    %69 = math.exp %68 : vector<2x128xf32>
    %cst_34 = arith.constant 1.000000e+00 : f32
    %70 = vector.broadcast %cst_34 : f32 to vector<2x128xf32>
    %71 = arith.addf %70, %69 : vector<2x128xf32>
    %cst_35 = arith.constant 1.000000e+00 : f32
    %72 = vector.broadcast %cst_35 : f32 to vector<2x128xf32>
    %73 = arith.divf %72, %71 : vector<2x128xf32>
    %74 = vector.shape_cast %73 : vector<2x128xf32> to vector<2x1x128xf32>
    %75 = vector.broadcast %74 : vector<2x1x128xf32> to vector<2x2x128xf32>
    %76 = arith.mulf %30, %75 : vector<2x2x128xf32>
    %77 = arith.addf %76, %57 : vector<2x2x128xf32>
    %cst_36 = arith.constant 0.000000e+00 : f32
    %78 = vector.broadcast %cst_36 : f32 to vector<2x2x128xf32>
    %79 = arith.cmpf ogt, %77, %78 : vector<2x2x128xf32>
    %cst_37 = arith.constant 0.000000e+00 : f32
    %80 = vector.broadcast %cst_37 : f32 to vector<2x2x128xf32>
    %81 = arith.minimumf %77, %80 : vector<2x2x128xf32>
    %82 = math.exp %81 : vector<2x2x128xf32>
    %cst_38 = arith.constant 1.000000e+00 : f32
    %83 = vector.broadcast %cst_38 : f32 to vector<2x2x128xf32>
    %84 = arith.subf %82, %83 : vector<2x2x128xf32>
    %85 = arith.select %79, %77, %84 : vector<2x2x128xi1>, vector<2x2x128xf32>
    %c0_39 = arith.constant 0 : index
    %c0_40 = arith.constant 0 : index
    %c0_41 = arith.constant 0 : index
    %86 = vector.load %arg9[%c0_39, %c0_40, %c0_41] : memref<2x2x128xf32, #tpu.memory_space<vmem>>, vector<2x2x128xf32>
    tpu.vector_store %arg9[%c0_39, %c0_40, %c0_41], %85 {strides = array<i32>} : memref<2x2x128xf32, #tpu.memory_space<vmem>>, vector<2x2x128xf32>,
    return
  }
  func.func @transform_0(%arg0: i32) -> (i32, i32, i32) {
    %c0_i32 = arith.constant 0 : i32
    %c0_i32_0 = arith.constant 0 : i32
    %c0_i32_1 = arith.constant 0 : i32
    return %arg0, %c0_i32, %c0_i32_0 : i32, i32, i32
  }
  func.func @transform_1(%arg0: i32) -> (i32, i32, i32) {
    %c0_i32 = arith.constant 0 : i32
    %c0_i32_0 = arith.constant 0 : i32
    %c0_i32_1 = arith.constant 0 : i32
    %c0_i32_2 = arith.constant 0 : i32
    return %c0_i32, %c0_i32_0, %c0_i32_1 : i32, i32, i32
  }
  func.func @transform_2(%arg0: i32) -> (i32, i32) {
    %c0_i32 = arith.constant 0 : i32
    %c0_i32_0 = arith.constant 0 : i32
    %c0_i32_1 = arith.constant 0 : i32
    return %c0_i32, %c0_i32_0 : i32, i32
  }
  func.func @transform_3(%arg0: i32) -> (i32, i32, i32) {
    %c0_i32 = arith.constant 0 : i32
    %c0_i32_0 = arith.constant 0 : i32
    %c0_i32_1 = arith.constant 0 : i32
    return %arg0, %c0_i32, %c0_i32_0 : i32, i32, i32
  }
  func.func @transform_4(%arg0: i32) -> (i32, i32, i32) {
    %c0_i32 = arith.constant 0 : i32
    %c0_i32_0 = arith.constant 0 : i32
    %c0_i32_1 = arith.constant 0 : i32
    %c0_i32_2 = arith.constant 0 : i32
    return %c0_i32, %c0_i32_0, %c0_i32_1 : i32, i32, i32
  }
  func.func @transform_5(%arg0: i32) -> (i32, i32) {
    %c0_i32 = arith.constant 0 : i32
    %c0_i32_0 = arith.constant 0 : i32
    %c0_i32_1 = arith.constant 0 : i32
    return %c0_i32, %c0_i32_0 : i32, i32
  }
  func.func @transform_6(%arg0: i32) -> (i32, i32) {
    %c0_i32 = arith.constant 0 : i32
    %c0_i32_0 = arith.constant 0 : i32
    %c0_i32_1 = arith.constant 0 : i32
    return %c0_i32, %c0_i32_0 : i32, i32
  }
  func.func @transform_7(%arg0: i32) -> (i32, i32) {
    %c0_i32 = arith.constant 0 : i32
    %c0_i32_0 = arith.constant 0 : i32
    %c0_i32_1 = arith.constant 0 : i32
    return %c0_i32, %c0_i32_0 : i32, i32
  }
  func.func @transform_8(%arg0: i32) -> (i32, i32, i32) {
    %c0_i32 = arith.constant 0 : i32
    %c0_i32_0 = arith.constant 0 : i32
    %c0_i32_1 = arith.constant 0 : i32
    return %arg0, %c0_i32, %c0_i32_0 : i32, i32, i32
  }
}

module attributes {stable_mosaic.version = 11 : i64} {
  func.func @_conv_s1_stats_kernel(%arg0: i32, %arg1: memref<2x4x128xbf16, #tpu.memory_space<vmem>>, %arg2: memref<384x128xbf16, #tpu.memory_space<vmem>>, %arg3: memref<2x2x128xf32, #tpu.memory_space<vmem>>, %arg4: memref<1x2x128xf32, #tpu.memory_space<vmem>>) attributes {dimension_semantics = [#tpu.dimension_semantics<parallel>], iteration_bounds = array<i64: 1>, scalar_prefetch = 0 : i64, scratch_operands = 0 : i64, tpu.core_type = #tpu.core_type<tc>, window_params = [{transform_indices = @transform_0, window_bounds = array<i64: 2, 4, 128>}, {pipeline_mode = #tpu.pipeline_mode<synchronous>, transform_indices = @transform_1, window_bounds = array<i64: 384, 128>}, {transform_indices = @transform_2, window_bounds = array<i64: 2, 2, 128>}, {transform_indices = @transform_3, window_bounds = array<i64: 1, 2, 128>}]} {
    %c0 = arith.constant 0 : index
    %c0_0 = arith.constant 0 : index
    %c0_1 = arith.constant 0 : index
    %0 = vector.load %arg1[%c0, %c0_0, %c0_1] : memref<2x4x128xbf16, #tpu.memory_space<vmem>>, vector<2x4x128xbf16>
    %1 = vector.extract_strided_slice %0 {offsets = [0, 0, 0], sizes = [2, 2, 128], strides = [1, 1, 1]} : vector<2x4x128xbf16> to vector<2x2x128xbf16>
    %2 = vector.extract_strided_slice %0 {offsets = [0, 1, 0], sizes = [2, 2, 128], strides = [1, 1, 1]} : vector<2x4x128xbf16> to vector<2x2x128xbf16>
    %3 = vector.extract_strided_slice %0 {offsets = [0, 2, 0], sizes = [2, 2, 128], strides = [1, 1, 1]} : vector<2x4x128xbf16> to vector<2x2x128xbf16>
    %4 = tpu.concatenate %1, %2, %3 in 2 : vector<2x2x128xbf16>, vector<2x2x128xbf16>, vector<2x2x128xbf16> -> vector<2x2x384xbf16>
    %5 = vector.shape_cast %4 : vector<2x2x384xbf16> to vector<4x384xbf16>
    %c0_2 = arith.constant 0 : index
    %c0_3 = arith.constant 0 : index
    %6 = vector.load %arg2[%c0_2, %c0_3] : memref<384x128xbf16, #tpu.memory_space<vmem>>, vector<384x128xbf16>
    %cst = arith.constant dense<0.000000e+00> : vector<4x128xf32>
    %7 = tpu.matmul %5, %6, %cst {dimension_numbers = #tpu.dot_dimension_numbers<[1], [0], [0], [1], [0, 0, 1, 1], [], []>} : vector<4x384xbf16>, vector<384x128xbf16>, vector<4x128xf32> -> vector<4x128xf32>
    %8 = vector.shape_cast %7 : vector<4x128xf32> to vector<2x2x128xf32>
    %c0_4 = arith.constant 0 : index
    %c0_5 = arith.constant 0 : index
    %c0_6 = arith.constant 0 : index
    %9 = vector.load %arg3[%c0_4, %c0_5, %c0_6] : memref<2x2x128xf32, #tpu.memory_space<vmem>>, vector<2x2x128xf32>
    tpu.vector_store %arg3[%c0_4, %c0_5, %c0_6], %8 {strides = array<i32>} : memref<2x2x128xf32, #tpu.memory_space<vmem>>, vector<2x2x128xf32>,
    %cst_7 = arith.constant dense<0.000000e+00> : vector<128xf32>
    %10 = vector.multi_reduction <add>, %7, %cst_7 [0] : vector<4x128xf32> to vector<128xf32>
    %11 = vector.shape_cast %10 : vector<128xf32> to vector<1x128xf32>
    %12 = arith.mulf %7, %7 : vector<4x128xf32>
    %cst_8 = arith.constant dense<0.000000e+00> : vector<128xf32>
    %13 = vector.multi_reduction <add>, %12, %cst_8 [0] : vector<4x128xf32> to vector<128xf32>
    %14 = vector.shape_cast %13 : vector<128xf32> to vector<1x128xf32>
    %15 = tpu.concatenate %11, %14 in 0 : vector<1x128xf32>, vector<1x128xf32> -> vector<2x128xf32>
    %c0_9 = arith.constant 0 : index
    %c0_10 = arith.constant 0 : index
    %c0_11 = arith.constant 0 : index
    %16 = vector.load %arg4[%c0_9, %c0_10, %c0_11] : memref<1x2x128xf32, #tpu.memory_space<vmem>>, vector<1x2x128xf32>
    %17 = vector.shape_cast %16 : vector<1x2x128xf32> to vector<2x128xf32>
    %18 = vector.shape_cast %15 : vector<2x128xf32> to vector<1x2x128xf32>
    tpu.vector_store %arg4[%c0_9, %c0_10, %c0_11], %18 {strides = array<i32>} : memref<1x2x128xf32, #tpu.memory_space<vmem>>, vector<1x2x128xf32>,
    return
  }
  func.func @transform_0(%arg0: i32) -> (i32, i32, i32) {
    %c0_i32 = arith.constant 0 : i32
    %c0_i32_0 = arith.constant 0 : i32
    %c0_i32_1 = arith.constant 0 : i32
    return %arg0, %c0_i32, %c0_i32_0 : i32, i32, i32
  }
  func.func @transform_1(%arg0: i32) -> (i32, i32) {
    %c0_i32 = arith.constant 0 : i32
    %c0_i32_0 = arith.constant 0 : i32
    %c0_i32_1 = arith.constant 0 : i32
    return %c0_i32, %c0_i32_0 : i32, i32
  }
  func.func @transform_2(%arg0: i32) -> (i32, i32, i32) {
    %c0_i32 = arith.constant 0 : i32
    %c0_i32_0 = arith.constant 0 : i32
    %c0_i32_1 = arith.constant 0 : i32
    return %arg0, %c0_i32, %c0_i32_0 : i32, i32, i32
  }
  func.func @transform_3(%arg0: i32) -> (i32, i32, i32) {
    %c0_i32 = arith.constant 0 : i32
    %c0_i32_0 = arith.constant 0 : i32
    %c0_i32_1 = arith.constant 0 : i32
    return %arg0, %c0_i32, %c0_i32_0 : i32, i32, i32
  }
}

module attributes {stable_mosaic.version = 11 : i64} {
  func.func @_bn_se_res_kernel(%arg0: i32, %arg1: memref<2x2x128xf32, #tpu.memory_space<vmem>>, %arg2: memref<1x2x128xf32, #tpu.memory_space<vmem>>, %arg3: memref<2x128xf32, #tpu.memory_space<vmem>>, %arg4: memref<2x2x128xf32, #tpu.memory_space<vmem>>, %arg5: memref<128x8xf32, #tpu.memory_space<vmem>>, %arg6: memref<8x128xf32, #tpu.memory_space<vmem>>, %arg7: memref<2x2x128xf32, #tpu.memory_space<vmem>>) attributes {dimension_semantics = [#tpu.dimension_semantics<parallel>], iteration_bounds = array<i64: 1>, scalar_prefetch = 0 : i64, scratch_operands = 0 : i64, tpu.core_type = #tpu.core_type<tc>, window_params = [{transform_indices = @transform_0, window_bounds = array<i64: 2, 2, 128>}, {pipeline_mode = #tpu.pipeline_mode<synchronous>, transform_indices = @transform_1, window_bounds = array<i64: 1, 2, 128>}, {pipeline_mode = #tpu.pipeline_mode<synchronous>, transform_indices = @transform_2, window_bounds = array<i64: 2, 128>}, {transform_indices = @transform_3, window_bounds = array<i64: 2, 2, 128>}, {pipeline_mode = #tpu.pipeline_mode<synchronous>, transform_indices = @transform_4, window_bounds = array<i64: 128, 8>}, {pipeline_mode = #tpu.pipeline_mode<synchronous>, transform_indices = @transform_5, window_bounds = array<i64: 8, 128>}, {transform_indices = @transform_6, window_bounds = array<i64: 2, 2, 128>}]} {
    %c0 = arith.constant 0 : index
    %c0_0 = arith.constant 0 : index
    %c0_1 = arith.constant 0 : index
    %0 = vector.load %arg2[%c0, %c0_0, %c0_1] : memref<1x2x128xf32, #tpu.memory_space<vmem>>, vector<1x2x128xf32>
    %cst = arith.constant dense<0.000000e+00> : vector<2x128xf32>
    %1 = vector.multi_reduction <add>, %0, %cst [0] : vector<1x2x128xf32> to vector<2x128xf32>
    %c0_2 = arith.constant 0 : index
    %c0_3 = arith.constant 0 : index
    %c0_4 = arith.constant 0 : index
    %2 = vector.load %arg1[%c0_2, %c0_3, %c0_4] : memref<2x2x128xf32, #tpu.memory_space<vmem>>, vector<2x2x128xf32>
    %c0_5 = arith.constant 0 : index
    %c0_6 = arith.constant 0 : index
    %3 = vector.load %arg3[%c0_5, %c0_6] : memref<2x128xf32, #tpu.memory_space<vmem>>, vector<2x128xf32>
    %4 = vector.extract_strided_slice %1 {offsets = [0, 0], sizes = [1, 128], strides = [1, 1]} : vector<2x128xf32> to vector<1x128xf32>
    %cst_7 = arith.constant 4.000000e+00 : f32
    %5 = vector.broadcast %cst_7 : f32 to vector<1x128xf32>
    %6 = arith.divf %4, %5 : vector<1x128xf32>
    %7 = vector.extract_strided_slice %1 {offsets = [1, 0], sizes = [1, 128], strides = [1, 1]} : vector<2x128xf32> to vector<1x128xf32>
    %cst_8 = arith.constant 4.000000e+00 : f32
    %8 = vector.broadcast %cst_8 : f32 to vector<1x128xf32>
    %9 = arith.divf %7, %8 : vector<1x128xf32>
    %10 = arith.mulf %6, %6 : vector<1x128xf32>
    %11 = arith.subf %9, %10 : vector<1x128xf32>
    %cst_9 = arith.constant 0.000000e+00 : f32
    %12 = vector.broadcast %cst_9 : f32 to vector<1x128xf32>
    %13 = arith.maximumf %11, %12 : vector<1x128xf32>
    %cst_10 = arith.constant 9.99999974E-6 : f32
    %14 = vector.broadcast %cst_10 : f32 to vector<1x128xf32>
    %15 = arith.addf %13, %14 : vector<1x128xf32>
    %16 = math.rsqrt %15 : vector<1x128xf32>
    %17 = vector.extract_strided_slice %3 {offsets = [0, 0], sizes = [1, 128], strides = [1, 1]} : vector<2x128xf32> to vector<1x128xf32>
    %18 = arith.mulf %16, %17 : vector<1x128xf32>
    %19 = vector.shape_cast %6 : vector<1x128xf32> to vector<1x1x128xf32>
    %20 = vector.broadcast %19 : vector<1x1x128xf32> to vector<2x2x128xf32>
    %21 = arith.subf %2, %20 : vector<2x2x128xf32>
    %22 = vector.shape_cast %18 : vector<1x128xf32> to vector<1x1x128xf32>
    %23 = vector.broadcast %22 : vector<1x1x128xf32> to vector<2x2x128xf32>
    %24 = arith.mulf %21, %23 : vector<2x2x128xf32>
    %25 = vector.extract_strided_slice %3 {offsets = [1, 0], sizes = [1, 128], strides = [1, 1]} : vector<2x128xf32> to vector<1x128xf32>
    %26 = vector.shape_cast %25 : vector<1x128xf32> to vector<1x1x128xf32>
    %27 = vector.broadcast %26 : vector<1x1x128xf32> to vector<2x2x128xf32>
    %28 = arith.addf %24, %27 : vector<2x2x128xf32>
    %cst_11 = arith.constant dense<0.000000e+00> : vector<2x128xf32>
    %29 = vector.multi_reduction <add>, %28, %cst_11 [1] : vector<2x2x128xf32> to vector<2x128xf32>
    %cst_12 = arith.constant 2.000000e+00 : f32
    %30 = vector.broadcast %cst_12 : f32 to vector<2x128xf32>
    %31 = arith.divf %29, %30 : vector<2x128xf32>
    %c0_13 = arith.constant 0 : index
    %c0_14 = arith.constant 0 : index
    %32 = vector.load %arg5[%c0_13, %c0_14] : memref<128x8xf32, #tpu.memory_space<vmem>>, vector<128x8xf32>
    %cst_15 = arith.constant dense<0.000000e+00> : vector<2x8xf32>
    %33 = tpu.matmul %31, %32, %cst_15 {dimension_numbers = #tpu.dot_dimension_numbers<[1], [0], [0], [1], [0, 0, 1, 1], [], []>} : vector<2x128xf32>, vector<128x8xf32>, vector<2x8xf32> -> vector<2x8xf32>
    %cst_16 = arith.constant 0.000000e+00 : f32
    %34 = vector.broadcast %cst_16 : f32 to vector<2x8xf32>
    %35 = arith.maximumf %33, %34 : vector<2x8xf32>
    %c0_17 = arith.constant 0 : index
    %c0_18 = arith.constant 0 : index
    %36 = vector.load %arg6[%c0_17, %c0_18] : memref<8x128xf32, #tpu.memory_space<vmem>>, vector<8x128xf32>
    %cst_19 = arith.constant dense<0.000000e+00> : vector<2x128xf32>
    %37 = tpu.matmul %35, %36, %cst_19 {dimension_numbers = #tpu.dot_dimension_numbers<[1], [0], [0], [1], [0, 0, 1, 1], [], []>} : vector<2x8xf32>, vector<8x128xf32>, vector<2x128xf32> -> vector<2x128xf32>
    %cst_20 = arith.constant 0.000000e+00 : f32
    %38 = vector.broadcast %cst_20 : f32 to vector<2x128xf32>
    %39 = arith.subf %38, %37 : vector<2x128xf32>
    %40 = math.exp %39 : vector<2x128xf32>
    %cst_21 = arith.constant 1.000000e+00 : f32
    %41 = vector.broadcast %cst_21 : f32 to vector<2x128xf32>
    %42 = arith.addf %41, %40 : vector<2x128xf32>
    %cst_22 = arith.constant 1.000000e+00 : f32
    %43 = vector.broadcast %cst_22 : f32 to vector<2x128xf32>
    %44 = arith.divf %43, %42 : vector<2x128xf32>
    %45 = vector.shape_cast %44 : vector<2x128xf32> to vector<2x1x128xf32>
    %46 = vector.broadcast %45 : vector<2x1x128xf32> to vector<2x2x128xf32>
    %47 = arith.mulf %28, %46 : vector<2x2x128xf32>
    %c0_23 = arith.constant 0 : index
    %c0_24 = arith.constant 0 : index
    %c0_25 = arith.constant 0 : index
    %48 = vector.load %arg4[%c0_23, %c0_24, %c0_25] : memref<2x2x128xf32, #tpu.memory_space<vmem>>, vector<2x2x128xf32>
    %49 = arith.addf %47, %48 : vector<2x2x128xf32>
    %cst_26 = arith.constant 0.000000e+00 : f32
    %50 = vector.broadcast %cst_26 : f32 to vector<2x2x128xf32>
    %51 = arith.cmpf ogt, %49, %50 : vector<2x2x128xf32>
    %cst_27 = arith.constant 0.000000e+00 : f32
    %52 = vector.broadcast %cst_27 : f32 to vector<2x2x128xf32>
    %53 = arith.minimumf %49, %52 : vector<2x2x128xf32>
    %54 = math.exp %53 : vector<2x2x128xf32>
    %cst_28 = arith.constant 1.000000e+00 : f32
    %55 = vector.broadcast %cst_28 : f32 to vector<2x2x128xf32>
    %56 = arith.subf %54, %55 : vector<2x2x128xf32>
    %57 = arith.select %51, %49, %56 : vector<2x2x128xi1>, vector<2x2x128xf32>
    %c0_29 = arith.constant 0 : index
    %c0_30 = arith.constant 0 : index
    %c0_31 = arith.constant 0 : index
    %58 = vector.load %arg7[%c0_29, %c0_30, %c0_31] : memref<2x2x128xf32, #tpu.memory_space<vmem>>, vector<2x2x128xf32>
    tpu.vector_store %arg7[%c0_29, %c0_30, %c0_31], %57 {strides = array<i32>} : memref<2x2x128xf32, #tpu.memory_space<vmem>>, vector<2x2x128xf32>,
    return
  }
  func.func @transform_0(%arg0: i32) -> (i32, i32, i32) {
    %c0_i32 = arith.constant 0 : i32
    %c0_i32_0 = arith.constant 0 : i32
    %c0_i32_1 = arith.constant 0 : i32
    return %arg0, %c0_i32, %c0_i32_0 : i32, i32, i32
  }
  func.func @transform_1(%arg0: i32) -> (i32, i32, i32) {
    %c0_i32 = arith.constant 0 : i32
    %c0_i32_0 = arith.constant 0 : i32
    %c0_i32_1 = arith.constant 0 : i32
    %c0_i32_2 = arith.constant 0 : i32
    return %c0_i32, %c0_i32_0, %c0_i32_1 : i32, i32, i32
  }
  func.func @transform_2(%arg0: i32) -> (i32, i32) {
    %c0_i32 = arith.constant 0 : i32
    %c0_i32_0 = arith.constant 0 : i32
    %c0_i32_1 = arith.constant 0 : i32
    return %c0_i32, %c0_i32_0 : i32, i32
  }
  func.func @transform_3(%arg0: i32) -> (i32, i32, i32) {
    %c0_i32 = arith.constant 0 : i32
    %c0_i32_0 = arith.constant 0 : i32
    %c0_i32_1 = arith.constant 0 : i32
    return %arg0, %c0_i32, %c0_i32_0 : i32, i32, i32
  }
  func.func @transform_4(%arg0: i32) -> (i32, i32) {
    %c0_i32 = arith.constant 0 : i32
    %c0_i32_0 = arith.constant 0 : i32
    %c0_i32_1 = arith.constant 0 : i32
    return %c0_i32, %c0_i32_0 : i32, i32
  }
  func.func @transform_5(%arg0: i32) -> (i32, i32) {
    %c0_i32 = arith.constant 0 : i32
    %c0_i32_0 = arith.constant 0 : i32
    %c0_i32_1 = arith.constant 0 : i32
    return %c0_i32, %c0_i32_0 : i32, i32
  }
  func.func @transform_6(%arg0: i32) -> (i32, i32, i32) {
    %c0_i32 = arith.constant 0 : i32
    %c0_i32_0 = arith.constant 0 : i32
    %c0_i32_1 = arith.constant 0 : i32
    return %arg0, %c0_i32, %c0_i32_0 : i32, i32, i32
  }
}

module attributes {stable_mosaic.version = 11 : i64} {
  func.func @_head_kernel(%arg0: memref<2x2x128xf32, #tpu.memory_space<vmem>>, %arg1: memref<128x5xf32, #tpu.memory_space<vmem>>, %arg2: memref<1x5xf32, #tpu.memory_space<vmem>>, %arg3: memref<2x5xf32, #tpu.memory_space<vmem>>) attributes {dimension_semantics = [], scalar_prefetch = 0 : i64, scratch_operands = 0 : i64, tpu.core_type = #tpu.core_type<tc>} {
    %c0 = arith.constant 0 : index
    %c0_0 = arith.constant 0 : index
    %c0_1 = arith.constant 0 : index
    %0 = vector.load %arg0[%c0, %c0_0, %c0_1] : memref<2x2x128xf32, #tpu.memory_space<vmem>>, vector<2x2x128xf32>
    %cst = arith.constant dense<0.000000e+00> : vector<2x128xf32>
    %1 = vector.multi_reduction <add>, %0, %cst [1] : vector<2x2x128xf32> to vector<2x128xf32>
    %cst_2 = arith.constant 2.000000e+00 : f32
    %2 = vector.broadcast %cst_2 : f32 to vector<2x128xf32>
    %3 = arith.divf %1, %2 : vector<2x128xf32>
    %c0_3 = arith.constant 0 : index
    %c0_4 = arith.constant 0 : index
    %4 = vector.load %arg1[%c0_3, %c0_4] : memref<128x5xf32, #tpu.memory_space<vmem>>, vector<128x5xf32>
    %cst_5 = arith.constant dense<0.000000e+00> : vector<2x5xf32>
    %5 = tpu.matmul %3, %4, %cst_5 {dimension_numbers = #tpu.dot_dimension_numbers<[1], [0], [0], [1], [0, 0, 1, 1], [], []>} : vector<2x128xf32>, vector<128x5xf32>, vector<2x5xf32> -> vector<2x5xf32>
    %c0_6 = arith.constant 0 : index
    %c0_7 = arith.constant 0 : index
    %6 = vector.load %arg2[%c0_6, %c0_7] : memref<1x5xf32, #tpu.memory_space<vmem>>, vector<1x5xf32>
    %7 = vector.broadcast %6 : vector<1x5xf32> to vector<2x5xf32>
    %8 = arith.addf %5, %7 : vector<2x5xf32>
    %c0_8 = arith.constant 0 : index
    %c0_9 = arith.constant 0 : index
    %9 = vector.load %arg3[%c0_8, %c0_9] : memref<2x5xf32, #tpu.memory_space<vmem>>, vector<2x5xf32>
    tpu.vector_store %arg3[%c0_8, %c0_9], %8 {strides = array<i32>} : memref<2x5xf32, #tpu.memory_space<vmem>>, vector<2x5xf32>,
    return
  }
}

</mosaic_0001>

<bundles_post_ra>
// kernel: se_res1d_forward.28
= control target key start
LH: loop header
LB: loop body
LE: loop exit
PB: predicated region body
PF: predicated region fallthrough
CT: control target
= control target key end

     0   :  { %v195_v0 = vmov 64.0   ;;  %vm136_vm7 = vcmask 1040384   ;;  %vm157_vm13 = vcmask 130048   ;;  %s288_s2 = inlined_call_operand.vmem [shape: f32[1,2,16], index: 2, kind: input, shape index: {}]   ;;  %s289_s3 = inlined_call_operand.vmem [shape: f32[2,16], index: 3, kind: input, shape index: {}]   ;;  %s290_s0 = inlined_call_operand.vmem [shape: f32[2,16,16], index: 0, kind: input, shape index: {}]   ;;  %s291_s1 = inlined_call_operand.vmem [shape: f32[2,16,16], index: 1, kind: input, shape index: {}]   ;;  %s292_s4 = inlined_call_operand.vmem [shape: f32[2,16,16], index: 4, kind: output, shape index: {}]  }
   0x1   :  { %175 = vrcp.f32 %v195_v0  ;;  %v17_v5 = vld [vmem:[%s288_s2] sm:$0x3]  ;;  %v21_v25 = vld [vmem:[%s290_s0 + $0x8] sm:$0xff]  ;;  %v94_v27 = vld [vmem:[%s291_s1 + $0x10] sm:$0xff] }
   0x2   :  { %v19_v17 = vld [vmem:[%s289_s3] sm:$0x3]  ;;  %v93_v26 = vld [vmem:[%s291_s1 + $0x8] sm:$0xff]  ;;  %v22_v28 = vld [vmem:[%s290_s0 + $0x10] sm:$0xff] }
   0x3   :  { %v20_v20 = vld [vmem:[%s290_s0] sm:$0xff]  ;;  %v50_v21 = vrot.slane %v19_v17, 7  ;;  %v23_v29 = vld [vmem:[%s290_s0 + $0x18] sm:$0xff]  ;;  %v63_v42 = vperm.slane %v19_v17, 1 }
   0x4   :  { %v92_v23 = vld [vmem:[%s291_s1] sm:$0xff]  ;;  %v95_v30 = vld [vmem:[%s291_s1 + $0x18] sm:$0xff] }
   0x7   :  { %v176_v1 = vpop.eup %175 }
   0x8   :  { %v25_v2 = vmul.f32 64.0, %v176_v1  ;;  %vm29_vm0 = vweird.f32 %v176_v1 }
   0xa   :  { %v26_v3 = vsub.f32 1.0, %v25_v2 }
   0xc   :  { %v27_v4 = vmul.f32 %v176_v1, %v26_v3 }
   0xe   :  { %v28_v6 = vadd.f32 %v176_v1, %v27_v4 }
  0x10   :  { %v30_v7 = vsel %vm29_vm0, %v176_v1, %v28_v6 }
  0x11   :  { %v31_v8 = vmul.f32 %v30_v7, %v17_v5 }
  0x13   :  { %v32_v9 = vmul.f32 %v31_v8, %v31_v8  ;;  %v53_v22 = vperm.slane %v31_v8, 0 }
  0x15   :  { %v34_v10 = vrot.slane %v32_v9, 7  ;;  %v54_v32 = vsub.f32 %v20_v20, %v53_v22  ;;  %v96_v34 = vsub.f32 %v92_v23, %v53_v22  ;;  %v55_v35 = vsub.f32 %v21_v25, %v53_v22 }
  0x16   :  { %v97_v36 = vsub.f32 %v93_v26, %v53_v22  ;;  %v56_v37 = vsub.f32 %v22_v28, %v53_v22  ;;  %v98_v38 = vsub.f32 %v94_v27, %v53_v22  ;;  %v57_v39 = vsub.f32 %v23_v29, %v53_v22 }
  0x17   :  { %v36_v11 = vsub.f32 %v31_v8, %v34_v10  ;;  %v99_v40 = vsub.f32 %v95_v30, %v53_v22 }
  0x19   :  { %v37_v12 = vmax.f32 %v36_v11, 0.0 }
  0x1b   :  { %v38_v13 = vadd.f32 1e-05, %v37_v12 }
  0x1d   :  { %177 = vrsqrt.f32 %v38_v13  ;;  %vm45_vm1 = vweird.f32 %v38_v13 }
  0x23   :  { %v178_v14 = vpop.eup %177 }
  0x24   :  { %v40_v15 = vmul.f32 %v178_v14, %v38_v13  ;;  %vm46_vm2 = vweird.f32 %v178_v14 }
  0x25   :  { %vm47_vm3 = vmor %vm45_vm1, %vm46_vm2 }
  0x26   :  { %v41_v16 = vmul.f32 %v178_v14, %v40_v15 }
  0x28   :  { %v42_v18 = vmul.f32 0.5, %v41_v16 }
  0x2a   :  { %v43_v19 = vsub.f32 1.5, %v42_v18 }
  0x2c   :  { %v44_v24 = vmul.f32 %v178_v14, %v43_v19 }
  0x2e   :  { %v48_v31 = vsel %vm47_vm3, %v178_v14, %v44_v24 }
  0x2f   :  { %v52_v33 = vmul.f32 %v50_v21, %v48_v31 }
  0x31   :  { %v58_v41 = vperm.slane %v52_v33, 1 }
  0x33   :  { %v59_v43 = vmul.f32 %v58_v41, %v54_v32  ;;  %v100_v44 = vmul.f32 %v96_v34, %v58_v41  ;;  %v60_v45 = vmul.f32 %v58_v41, %v55_v35  ;;  %v101_v46 = vmul.f32 %v97_v36, %v58_v41 }
  0x34   :  { %v61_v47 = vmul.f32 %v58_v41, %v56_v37  ;;  %v102_v48 = vmul.f32 %v98_v38, %v58_v41  ;;  %v62_v49 = vmul.f32 %v58_v41, %v57_v39  ;;  %v103_v50 = vmul.f32 %v99_v40, %v58_v41 }
  0x35   :  { %v64_v51 = vadd.f32 %v63_v42, %v59_v43  ;;  %v104_v52 = vadd.f32 %v100_v44, %v63_v42  ;;  %v65_v53 = vadd.f32 %v63_v42, %v60_v45  ;;  %v105_v54 = vadd.f32 %v101_v46, %v63_v42 }
  0x36   :  { %v251_v55 = vadd.f32 %v63_v42, %v61_v47  ;;  %v106_v56 = vadd.f32 %v102_v48, %v63_v42  ;;  %v253_v59 = vadd.f32 %v63_v42, %v62_v49  ;;  %v255_v62 = vadd.f32 %v103_v50, %v63_v42 }
  0x37   :  { %v72_v57 = vmin.f32 %v64_v51, 0.0  ;;  %v112_v58 = vmin.f32 %v104_v52, 0.0  ;;  %v73_v60 = vmin.f32 %v65_v53, 0.0  ;;  %v113_v61 = vmin.f32 %v105_v54, 0.0 }
  0x38   :  { %v74_v1 = vmin.f32 %v251_v55, 0.0  ;;  %v114_v4 = vmin.f32 %v106_v56, 0.0  ;;  %v75_v6 = vmin.f32 %v253_v59, 0.0  ;;  %v115_v8 = vmin.f32 %v255_v62, 0.0 }
  0x39   :  { %v76_v63 = vmul.f32 1.442695, %v72_v57  ;;  %v116_v0 = vmul.f32 1.442695, %v112_v58  ;;  %v78_v2 = vmul.f32 1.442695, %v73_v60 }
  0x3a   :  { %v118_v3 = vmul.f32 1.442695, %v113_v61  ;;  %v80_v5 = vmul.f32 1.442695, %v74_v1  ;;  %v120_v7 = vmul.f32 1.442695, %v114_v4 }
  0x3b   :  { %179 = vpow2.f32 %v76_v63  ;;  %v82_v9 = vmul.f32 1.442695, %v75_v6  ;;  %v122_v10 = vmul.f32 1.442695, %v115_v8  ;;  %vm108_vm4 = vcmp.gt.f32.partialorder %v104_v52, 0.0 }
  0x3c   :  { %181 = vpow2.f32 %v116_v0  ;;  %vm68_vm5 = vcmp.gt.f32.partialorder %v64_v51, 0.0  ;;  %vm109_vm6 = vcmp.gt.f32.partialorder %v105_v54, 0.0  ;;  %vm69_vm8 = vcmp.gt.f32.partialorder %v65_v53, 0.0 }
  0x3d   :  { %183 = vpow2.f32 %v78_v2  ;;  %vm110_vm9 = vcmp.gt.f32.partialorder %v106_v56, 0.0  ;;  %vm70_vm10 = vcmp.gt.f32.partialorder %v251_v55, 0.0  ;;  %vm111_vm11 = vcmp.gt.f32.partialorder %v255_v62, 0.0 }
  0x3e   :  { %185 = vpow2.f32 %v118_v3  ;;  %vm71_vm12 = vcmp.gt.f32.partialorder %v253_v59, 0.0 }
  0x3f   :  { %187 = vpow2.f32 %v80_v5 }
  0x40   :  { %189 = vpow2.f32 %v120_v7 }
  0x41   :  { %v180_v11 = vpop.eup %179  ;;  %191 = vpow2.f32 %v82_v9 }
  0x42   :  { %v182_v12 = vpop.eup %181  ;;  %v166_v13 = vadd.f32 -1.0, %v180_v11  ;;  %193 = vpow2.f32 %v122_v10 }
  0x43   :  { %v184_v14 = vpop.eup %183  ;;  %v170_v15 = vadd.f32 -1.0, %v182_v12 }
  0x44   :  { %v186_v16 = vpop.eup %185  ;;  %v167_v17 = vadd.f32 -1.0, %v184_v14  ;;  %v88_v22 = vsel %vm68_vm5, %v64_v51, %v166_v13 }
  0x45   :  { %v188_v18 = vpop.eup %187  ;;  %v128_v19 = vsel %vm108_vm4, %v104_v52, %v170_v15  ;;  %v171_v20 = vadd.f32 -1.0, %v186_v16 }
  0x46   :  { %v190_v21 = vpop.eup %189  ;;  %v137_v23 = vrot.slane %v128_v19, 7  ;;  %v168_v24 = vadd.f32 -1.0, %v188_v18  ;;  %v89_v30 = vsel %vm69_vm8, %v65_v53, %v167_v17 }
  0x47   :  { %v192_v25 = vpop.eup %191  ;;  %v129_v26 = vsel %vm109_vm6, %v105_v54, %v171_v20  ;;  %v172_v27 = vadd.f32 -1.0, %v190_v21 }
  0x48   :  { %v194_v28 = vpop.eup %193  ;;  %v147_v29 = vsel %vm136_vm7, -3e+38, %v137_v23  ;;  %v138_v31 = vrot.slane %v129_v26, 7  ;;  %v169_v32 = vadd.f32 -1.0, %v192_v25  ;;  %v90_v37 = vsel %vm70_vm10, %v251_v55, %v168_v24 }
  0x49   :  { %v149_v33 = vmax.f32 %v147_v29, %v88_v22  ;;  %v130_v34 = vsel %vm110_vm9, %v106_v56, %v172_v27  ;;  %v173_v35 = vadd.f32 -1.0, %v194_v28 }
  0x4a   :  { %v139_v36 = vsel %vm136_vm7, %v137_v23, %v138_v31  ;;  %v140_v38 = vrot.slane %v130_v34, 7  ;;  %v91_v43 = vsel %vm71_vm12, %v253_v59, %v169_v32 }
  0x4b   :  { %v153_v39 = vmax.f32 %v149_v33, %v128_v19  ;;  %v150_v40 = vmax.f32 %v139_v36, %v89_v30  ;;  %v131_v41 = vsel %vm111_vm11, %v255_v62, %v173_v35 }
  0x4c   :  { %v148_v42 = vsel %vm136_vm7, -3e+38, %v140_v38  ;;  %v141_v44 = vrot.slane %v131_v41, 7 }
  0x4d   :  { %158 = vst.msk [vmem:[%s292_s4] sm:$0xff] %vm157_vm13, %v153_v39  ;;  %v154_v45 = vmax.f32 %v150_v40, %v129_v26  ;;  %v151_v46 = vmax.f32 %v148_v42, %v90_v37 }
  0x4e   :  { %v142_v47 = vsel %vm136_vm7, %v140_v38, %v141_v44 }
  0x4f   :  { %159 = vst.msk [vmem:[%s292_s4 + $0x8] sm:$0xff] %vm157_vm13, %v154_v45  ;;  %v155_v48 = vmax.f32 %v151_v46, %v130_v34  ;;  %v152_v49 = vmax.f32 %v142_v47, %v91_v43 }
  0x51   :  { %160 = vst.msk [vmem:[%s292_s4 + $0x10] sm:$0xff] %vm157_vm13, %v155_v48  ;;  %v156_v50 = vmax.f32 %v152_v49, %v131_v41 }
  0x53   :  { %161 = vst.msk [vmem:[%s292_s4 + $0x18] sm:$0xff] %vm157_vm13, %v156_v50 }

// kernel: se_res1d_forward.29
= control target key start
LH: loop header
LB: loop body
LE: loop exit
PB: predicated region body
PF: predicated region fallthrough
CT: control target
= control target key end

     0   :  { %vm36_vm0 = vsmask.f32 7424  ;;  %vm65_vm1 = vcmask 1046528   ;;  %s213_s22 = smov 32   ;;  %vm76_vm2 = vcmask 130048   ;;  %vm81_vm3 = vcmask 261120   ;;  %s284_s0 = inlined_call_operand.vmem [shape: bf16[2,18,16], index: 0, kind: input, shape index: {}]   ;;  %s285_s1 = inlined_call_operand.vmem [shape: bf16[48,16], index: 1, kind: input, shape index: {}]   ;;  %s286_s2 = inlined_call_operand.vmem [shape: f32[2,16,16], index: 2, kind: output, shape index: {0}]   ;;  %s287_s3 = inlined_call_operand.vmem [shape: f32[1,2,16], index: 3, kind: output, shape index: {1}]  }
   0x1   :  { %v203_v0 = vld [vmem:[%s284_s0 + $0xc] sm:$0xff]  ;;  %v19_v1 = vld [vmem:[%s284_s0 + $0x14] sm:$0x1]  ;;  %v202_v2 = vld [vmem:[%s284_s0] sm:$0xff]  ;;  %vm110_vm4 = vcmask 392192   ;;  %vm168_vm5 = vcmask 1040384  }
   0x2   :  { %v33_v3 = vunpack.c.l.b16 %v19_v1  ;;  %v16_v4 = vld [vmem:[%s284_s0 + $0x8] sm:$0x1]  ;;  %v206_v5 = vld [vmem:[%s285_s1 + $0x10] sm:$0xff]  ;;  %v50_v6 = vshrl.u32 %v203_v0, 16  ;;  %v52_v7 = vshll.u32 %v203_v0, 16  ;;  %v38_v10 = vshrl.u32 %v202_v2, 16 }
   0x3   :  { %v32_v8 = vunpack.c.l.b16 %v16_v4  ;;  %v40_v11 = vshll.u32 %v202_v2, 16  ;;  %120 = vmatpush.bf16.msra.mxu0 %v206_v5  ;;  %207 = vmatpush.bf16.msra.mxu1 %v206_v5  ;;  %s212_s0 = smov 16   ;;  %v69_v23 = vrot.slane %v203_v0, 1  ;;  %v66_v25 = vrot.slane %v202_v2, 1  ;;  %v205_v29 = vld [vmem:[%s285_s1 + $0x8] sm:$0xff]  ;;  %v204_v30 = vld [vmem:[%s285_s1] sm:$0xff] }
   0x4   :  { %v35_v9 = vpack.c.b16 %v33_v3, %v33_v3  ;;  %v54_v12 = vrot.slane %v52_v7, 1  ;;  %vm170_vm6 = vcmask 123904  }
   0x5   :  { %v34_v13 = vpack.c.b16 %v32_v8, %v32_v8  ;;  %v42_v15 = vrot.slane %v40_v11, 1 }
   0x6   :  { %v57_v14 = vshll.u32 %v35_v9, 16  ;;  %v55_v16 = vor.u32 %v54_v12, %v50_v6  ;;  %v70_v24 = vrot.slane %v35_v9, 1 }
   0x7   :  { %v45_v17 = vshll.u32 %v34_v13, 16  ;;  %v43_v19 = vor.u32 %v42_v15, %v38_v10  ;;  %v67_v26 = vrot.slane %v34_v13, 1  ;;  %121 = vmatpush.bf16.msra.mxu0 %v205_v29  ;;  %208 = vmatpush.bf16.msra.mxu1 %v205_v29 }
   0x8   :  { %v59_v18 = vrot.slane %v57_v14, 1  ;;  %v71_v27 = vsel %vm65_vm1, %v69_v23, %v70_v24 }
   0x9   :  { %v47_v20 = vrot.slane %v45_v17, 1  ;;  %v68_v28 = vsel %vm65_vm1, %v66_v25, %v67_v26 }
   0xa   :  { %v60_v21 = vsel %vm36_vm0, %v55_v16, %v59_v18 }
   0xb   :  { %63 = vrot.lane.b32.xlu1 %v60_v21, %s212_s0  ;;  %v48_v22 = vsel %vm36_vm0, %v43_v19, %v47_v20  ;;  %122 = vmatpush.bf16.msra.mxu0 %v204_v30 }
   0xc   :  { %61 = vrot.lane.b32.xlu0 %v48_v22, %s212_s0  ;;  %209 = vmatpush.bf16.msra.mxu1 %v204_v30 }
  0x13   :  { %74 = vrot.lane.b32.xlu1 %v71_v27, %s213_s22 }
  0x14   :  { %72 = vrot.lane.b32.xlu0 %v68_v28, %s213_s22 }
  0x7d   :  { %v64_v31 = vpop.permute.xlu1 %63 }
  0x7e   :  { %v62_v32 = vpop.permute.xlu0 %61  ;;  %v80_v33 = vsel %vm76_vm2, %v203_v0, %v64_v31 }
  0x7f   :  { %v78_v35 = vsel %vm76_vm2, %v202_v2, %v62_v32 }
  0x85   :  { %v75_v34 = vpop.permute.xlu1 %74 }
  0x86   :  { %v73_v36 = vpop.permute.xlu0 %72  ;;  %v85_v37 = vsel %vm81_vm3, %v80_v33, %v75_v34 }
  0x87   :  { %v83_v38 = vsel %vm81_vm3, %v78_v35, %v73_v36  ;;  %201 = vmatmul.msk.bf16.vlgmr.msra.gmra.mxu1 %vm110_vm4, %v85_v37 }
  0x88   :  { %200 = vmatmul.msk.bf16.vlgmr.msra.gmra.mxu0 %vm110_vm4, %v83_v38 }
 0x104   :  { %v129_v39 = vpop.f32.mrf.mxu1 }
 0x105   :  { %v124_v40 = vpop.f32.mrf.mxu0  ;;  %136 = vst.msk [vmem:[%s286_s2 + $0x10] sm:$0xff] %vm76_vm2, %v129_v39  ;;  %v153_v45 = vmul.f32 %v129_v39, %v129_v39  ;;  %v141_v50 = vsel %vm76_vm2, %v129_v39, 0.0 }
 0x106   :  { %134 = vst.msk [vmem:[%s286_s2] sm:$0xff] %vm76_vm2, %v124_v40  ;;  %v151_v41 = vmul.f32 %v124_v40, %v124_v40  ;;  %v138_v44 = vsel %vm76_vm2, %v124_v40, 0.0 }
 0x107   :  { %v158_v55 = vsel %vm76_vm2, %v153_v45, 0.0 }
 0x108   :  { %v155_v49 = vsel %vm76_vm2, %v151_v41, 0.0 }
 0x10c   :  { %v131_v42 = vpop.f32.mrf.mxu1 }
 0x10d   :  { %v126_v43 = vpop.f32.mrf.mxu0  ;;  %137 = vst.msk [vmem:[%s286_s2 + $0x18] sm:$0xff] %vm76_vm2, %v131_v42  ;;  %v154_v52 = vmul.f32 %v131_v42, %v131_v42  ;;  %v143_v56 = vsel %vm76_vm2, %v131_v42, 0.0 }
 0x10e   :  { %135 = vst.msk [vmem:[%s286_s2 + $0x8] sm:$0xff] %vm76_vm2, %v126_v43  ;;  %v139_v46 = vsel %vm76_vm2, %v126_v43, 0.0  ;;  %v152_v47 = vmul.f32 %v126_v43, %v126_v43 }
 0x10f   :  { %v140_v48 = vadd.f32 %v139_v46, %v138_v44  ;;  %v160_v59 = vsel %vm76_vm2, %v154_v52, 0.0 }
 0x110   :  { %v156_v51 = vsel %vm76_vm2, %v152_v47, 0.0 }
 0x111   :  { %v157_v53 = vadd.f32 %v156_v51, %v155_v49  ;;  %v142_v54 = vadd.f32 %v141_v50, %v140_v48 }
 0x113   :  { %v144_v57 = vadd.f32 %v143_v56, %v142_v54  ;;  %v159_v58 = vadd.f32 %v158_v55, %v157_v53 }
 0x115   :  { %v145_v60 = vrot.slane %v144_v57, 4  ;;  %v161_v61 = vadd.f32 %v160_v59, %v159_v58 }
 0x117   :  { %v146_v62 = vadd.f32 %v145_v60, %v144_v57  ;;  %v162_v63 = vrot.slane %v161_v61, 4 }
 0x119   :  { %v147_v0 = vrot.slane %v146_v62, 2  ;;  %v163_v1 = vadd.f32 %v162_v63, %v161_v61 }
 0x11b   :  { %v148_v2 = vadd.f32 %v147_v0, %v146_v62  ;;  %v164_v3 = vrot.slane %v163_v1, 2 }
 0x11d   :  { %v149_v4 = vrot.slane %v148_v2, 1  ;;  %v165_v5 = vadd.f32 %v164_v3, %v163_v1 }
 0x11f   :  { %v166_v6 = vrot.slane %v165_v5, 1  ;;  %v150_v7 = vadd.f32 %v149_v4, %v148_v2 }
 0x121   :  { %v167_v8 = vadd.f32 %v166_v6, %v165_v5 }
 0x123   :  { %v169_v9 = vsel %vm168_vm5, %v150_v7, %v167_v8 }
 0x124   :  { %171 = vst.msk [vmem:[%s287_s3] sm:$0x3] %vm170_vm6, %v169_v9 }

// kernel: se_res1d_forward.30
= control target key start
LH: loop header
LB: loop body
LE: loop exit
PB: predicated region body
PF: predicated region fallthrough
CT: control target
= control target key end

     0   :  { %v321_v0 = vmov 32.0   ;;  %vm127_vm8 = vcmask 1040384   ;;  %vm128_vm9 = vsmask.f32 256  ;;  %vm134_vm11 = vsmask.f32 7424  ;;  %s412_s1 = inlined_call_operand.vmem [shape: f32[1,2,16], index: 1, kind: input, shape index: {}]   ;;  %s413_s2 = inlined_call_operand.vmem [shape: f32[2,16], index: 2, kind: input, shape index: {}]   ;;  %s414_s0 = inlined_call_operand.vmem [shape: f32[2,16,16], index: 0, kind: input, shape index: {}]   ;;  %s415_s3 = inlined_call_operand.vmem [shape: bf16[48,16], index: 3, kind: input, shape index: {}]   ;;  %s416_s4 = inlined_call_operand.vmem [shape: f32[2,16,16], index: 4, kind: output, shape index: {0}]   ;;  %s417_s5 = inlined_call_operand.vmem [shape: f32[1,2,16], index: 5, kind: output, shape index: {1}]  }
   0x1   :  { %309 = vrcp.f32 %v321_v0  ;;  %v20_v5 = vld [vmem:[%s412_s1] sm:$0x3]  ;;  %v24_v21 = vld [vmem:[%s414_s0 + $0x10] sm:$0xff]  ;;  %v25_v23 = vld [vmem:[%s414_s0 + $0x18] sm:$0xff]  ;;  %s322_s29 = smov 16   ;;  %vm167_vm12 = vcmask 1046528  }
   0x2   :  { %v26_v17 = vld [vmem:[%s413_s2] sm:$0x3]  ;;  %v23_v26 = vld [vmem:[%s414_s0 + $0x8] sm:$0xff]  ;;  %v302_v59 = vld [vmem:[%s415_s3 + $0x10] sm:$0xff]  ;;  %s323_s30 = smov 32   ;;  %vm183_vm13 = vcmask 261120  }
   0x3   :  { %v53_v22 = vrot.slane %v26_v17, 7  ;;  %v22_v25 = vld [vmem:[%s414_s0] sm:$0xff]  ;;  %v66_v34 = vperm.slane %v26_v17, 1  ;;  %222 = vmatpush.bf16.msra.mxu0 %v302_v59  ;;  %303 = vmatpush.bf16.msra.mxu1 %v302_v59  ;;  %vm129_vm10 = vmand %vm127_vm8, %vm128_vm9  ;;  %vm178_vm14 = vcmask 130048   ;;  %vm212_vm15 = vcmask 392192  }
   0x7   :  { %v310_v1 = vpop.eup %309 }
   0x8   :  { %v28_v2 = vmul.f32 32.0, %v310_v1  ;;  %vm32_vm0 = vweird.f32 %v310_v1 }
   0xa   :  { %v29_v3 = vsub.f32 1.0, %v28_v2 }
   0xc   :  { %v30_v4 = vmul.f32 %v310_v1, %v29_v3 }
   0xe   :  { %v31_v6 = vadd.f32 %v310_v1, %v30_v4 }
  0x10   :  { %v33_v7 = vsel %vm32_vm0, %v310_v1, %v31_v6  ;;  %vm272_vm0 = vcmask 123904  }
  0x11   :  { %v34_v8 = vmul.f32 %v33_v7, %v20_v5 }
  0x13   :  { %v35_v9 = vmul.f32 %v34_v8, %v34_v8  ;;  %v56_v20 = vperm.slane %v34_v8, 0 }
  0x15   :  { %v37_v10 = vrot.slane %v35_v9, 7  ;;  %v59_v28 = vsub.f32 %v24_v21, %v56_v20  ;;  %v60_v30 = vsub.f32 %v25_v23, %v56_v20  ;;  %v57_v31 = vsub.f32 %v22_v25, %v56_v20 }
  0x16   :  { %v58_v32 = vsub.f32 %v23_v26, %v56_v20 }
  0x17   :  { %v39_v11 = vsub.f32 %v34_v8, %v37_v10 }
  0x19   :  { %v40_v12 = vmax.f32 %v39_v11, 0.0 }
  0x1b   :  { %v41_v13 = vadd.f32 1e-05, %v40_v12 }
  0x1d   :  { %311 = vrsqrt.f32 %v41_v13  ;;  %vm48_vm1 = vweird.f32 %v41_v13 }
  0x23   :  { %v312_v14 = vpop.eup %311 }
  0x24   :  { %v43_v15 = vmul.f32 %v312_v14, %v41_v13  ;;  %vm49_vm2 = vweird.f32 %v312_v14 }
  0x25   :  { %vm50_vm3 = vmor %vm48_vm1, %vm49_vm2 }
  0x26   :  { %v44_v16 = vmul.f32 %v312_v14, %v43_v15 }
  0x28   :  { %v45_v18 = vmul.f32 0.5, %v44_v16 }
  0x2a   :  { %v46_v19 = vsub.f32 1.5, %v45_v18 }
  0x2c   :  { %v47_v24 = vmul.f32 %v312_v14, %v46_v19 }
  0x2e   :  { %v51_v27 = vsel %vm50_vm3, %v312_v14, %v47_v24 }
  0x2f   :  { %v55_v29 = vmul.f32 %v53_v22, %v51_v27 }
  0x31   :  { %v61_v33 = vperm.slane %v55_v29, 1 }
  0x33   :  { %v64_v35 = vmul.f32 %v61_v33, %v59_v28  ;;  %v65_v36 = vmul.f32 %v61_v33, %v60_v30  ;;  %v62_v37 = vmul.f32 %v61_v33, %v57_v31  ;;  %v63_v38 = vmul.f32 %v61_v33, %v58_v32 }
  0x35   :  { %v69_v39 = vadd.f32 %v66_v34, %v64_v35  ;;  %v70_v40 = vadd.f32 %v66_v34, %v65_v36  ;;  %v67_v41 = vadd.f32 %v66_v34, %v62_v37  ;;  %v68_v42 = vadd.f32 %v66_v34, %v63_v38 }
  0x37   :  { %v77_v43 = vmin.f32 %v69_v39, 0.0  ;;  %v78_v44 = vmin.f32 %v70_v40, 0.0  ;;  %v75_v45 = vmin.f32 %v67_v41, 0.0  ;;  %v76_v46 = vmin.f32 %v68_v42, 0.0 }
  0x38   :  { %vm73_vm4 = vcmp.gt.f32.partialorder %v69_v39, 0.0  ;;  %vm74_vm5 = vcmp.gt.f32.partialorder %v70_v40, 0.0  ;;  %vm71_vm6 = vcmp.gt.f32.partialorder %v67_v41, 0.0  ;;  %vm72_vm7 = vcmp.gt.f32.partialorder %v68_v42, 0.0 }
  0x39   :  { %v83_v47 = vmul.f32 1.442695, %v77_v43  ;;  %v85_v48 = vmul.f32 1.442695, %v78_v44  ;;  %v79_v49 = vmul.f32 1.442695, %v75_v45 }
  0x3a   :  { %v81_v50 = vmul.f32 1.442695, %v76_v46  ;;  %v300_v43 = vld [vmem:[%s415_s3] sm:$0xff] }
  0x3b   :  { %313 = vpow2.f32 %v83_v47 }
  0x3c   :  { %315 = vpow2.f32 %v85_v48 }
  0x3d   :  { %317 = vpow2.f32 %v79_v49 }
  0x3e   :  { %319 = vpow2.f32 %v81_v50 }
  0x41   :  { %v314_v51 = vpop.eup %313 }
  0x42   :  { %v316_v52 = vpop.eup %315  ;;  %v284_v53 = vadd.f32 -1.0, %v314_v51 }
  0x43   :  { %v318_v54 = vpop.eup %317  ;;  %v285_v55 = vadd.f32 -1.0, %v316_v52 }
  0x44   :  { %v320_v56 = vpop.eup %319  ;;  %v93_v57 = vsel %vm73_vm4, %v69_v39, %v284_v53  ;;  %v282_v58 = vadd.f32 -1.0, %v318_v54 }
  0x45   :  { %v94_v60 = vsel %vm74_vm5, %v70_v40, %v285_v55  ;;  %v97_v61 = vpack.c.bf16 %v93_v57, %v93_v57  ;;  %v283_v62 = vadd.f32 -1.0, %v320_v56 }
  0x46   :  { %v98_v63 = vpack.c.bf16 %v94_v60, %v94_v60  ;;  %v91_v0 = vsel %vm71_vm6, %v67_v41, %v282_v58 }
  0x47   :  { %v105_v1 = vunpack.c.l.b16 %v97_v61  ;;  %v92_v2 = vsel %vm72_vm7, %v68_v42, %v283_v62  ;;  %v95_v3 = vpack.c.bf16 %v91_v0, %v91_v0  ;;  %v301_v42 = vld [vmem:[%s415_s3 + $0x8] sm:$0xff] }
  0x48   :  { %v106_v4 = vunpack.c.l.b16 %v98_v63  ;;  %v96_v5 = vpack.c.bf16 %v92_v2, %v92_v2  ;;  %223 = vmatpush.bf16.msra.mxu0 %v301_v42  ;;  %304 = vmatpush.bf16.msra.mxu1 %v301_v42 }
  0x49   :  { %v103_v6 = vunpack.c.l.b16 %v95_v3 }
  0x4a   :  { %v108_v7 = vpack.c.b16 %v106_v4, %v105_v1  ;;  %v104_v8 = vunpack.c.l.b16 %v96_v5 }
  0x4c   :  { %v117_v9 = vshrl.u32 %v108_v7, 16  ;;  %v120_v10 = vshll.u32 %v108_v7, 16  ;;  %v107_v11 = vpack.c.b16 %v104_v8, %v103_v6  ;;  %224 = vmatpush.bf16.msra.mxu0 %v300_v43  ;;  %305 = vmatpush.bf16.msra.mxu1 %v300_v43 }
  0x4e   :  { %v119_v12 = vrot.slane %v117_v9, 7  ;;  %v110_v13 = vshrl.u32 %v107_v11, 16  ;;  %v113_v14 = vshll.u32 %v107_v11, 16 }
  0x50   :  { %v122_v15 = vor.u32 %v120_v10, %v119_v12  ;;  %v133_v16 = vsel %vm129_vm10, %v119_v12, 0  ;;  %v112_v17 = vrot.slane %v110_v13, 7 }
  0x51   :  { %v155_v18 = vshll.u32 %v133_v16, 16  ;;  %v172_v37 = vrot.slane %v133_v16, 1 }
  0x52   :  { %v131_v19 = vsel %vm129_vm10, 0, %v122_v15  ;;  %v115_v20 = vor.u32 %v113_v14, %v112_v17  ;;  %v132_v21 = vsel %vm129_vm10, %v112_v17, 0 }
  0x53   :  { %v148_v22 = vshrl.u32 %v131_v19, 16  ;;  %v150_v23 = vshll.u32 %v131_v19, 16  ;;  %v143_v24 = vshll.u32 %v132_v21, 16  ;;  %v157_v27 = vrot.slane %v155_v18, 1 }
  0x54   :  { %v130_v25 = vsel %vm129_vm10, 0, %v115_v20  ;;  %v171_v36 = vrot.slane %v131_v19, 1  ;;  %v169_v39 = vrot.slane %v132_v21, 1 }
  0x55   :  { %v152_v26 = vrot.slane %v150_v23, 1  ;;  %v136_v28 = vshrl.u32 %v130_v25, 16  ;;  %v138_v29 = vshll.u32 %v130_v25, 16  ;;  %v145_v32 = vrot.slane %v143_v24, 1 }
  0x56   :  { %v168_v38 = vrot.slane %v130_v25, 1  ;;  %v173_v40 = vsel %vm167_vm12, %v171_v36, %v172_v37 }
  0x57   :  { %v153_v30 = vor.u32 %v152_v26, %v148_v22  ;;  %v140_v31 = vrot.slane %v138_v29, 1 }
  0x58   :  { %v170_v41 = vsel %vm167_vm12, %v168_v38, %v169_v39 }
  0x59   :  { %v158_v33 = vsel %vm134_vm11, %v153_v30, %v157_v27  ;;  %v141_v34 = vor.u32 %v140_v31, %v136_v28 }
  0x5a   :  { %161 = vrot.lane.b32.xlu1 %v158_v33, %s322_s29 }
  0x5b   :  { %v146_v35 = vsel %vm134_vm11, %v141_v34, %v145_v32 }
  0x5c   :  { %159 = vrot.lane.b32.xlu0 %v146_v35, %s322_s29 }
  0x62   :  { %176 = vrot.lane.b32.xlu1 %v173_v40, %s323_s30 }
  0x64   :  { %174 = vrot.lane.b32.xlu0 %v170_v41, %s323_s30 }
  0xcc   :  { %v162_v44 = vpop.permute.xlu1 %161 }
  0xcd   :  { %v182_v46 = vsel %vm178_vm14, %v131_v19, %v162_v44 }
  0xce   :  { %v160_v45 = vpop.permute.xlu0 %159 }
  0xcf   :  { %v180_v49 = vsel %vm178_vm14, %v130_v25, %v160_v45 }
  0xd4   :  { %v177_v47 = vpop.permute.xlu1 %176 }
  0xd5   :  { %v187_v48 = vsel %vm183_vm13, %v182_v46, %v177_v47 }
  0xd6   :  { %v175_v50 = vpop.permute.xlu0 %174  ;;  %299 = vmatmul.msk.bf16.vlgmr.msra.gmra.mxu1 %vm212_vm15, %v187_v48 }
  0xd7   :  { %v185_v51 = vsel %vm183_vm13, %v180_v49, %v175_v50 }
  0xd8   :  { %298 = vmatmul.msk.bf16.vlgmr.msra.gmra.mxu0 %vm212_vm15, %v185_v51 }
 0x153   :  { %v231_v52 = vpop.f32.mrf.mxu1 }
 0x154   :  { %238 = vst.msk [vmem:[%s416_s4 + $0x10] sm:$0xff] %vm178_vm14, %v231_v52  ;;  %v255_v58 = vmul.f32 %v231_v52, %v231_v52  ;;  %v243_v63 = vsel %vm178_vm14, %v231_v52, 0.0 }
 0x155   :  { %v226_v53 = vpop.f32.mrf.mxu0 }
 0x156   :  { %236 = vst.msk [vmem:[%s416_s4] sm:$0xff] %vm178_vm14, %v226_v53  ;;  %v253_v55 = vmul.f32 %v226_v53, %v226_v53  ;;  %v240_v57 = vsel %vm178_vm14, %v226_v53, 0.0  ;;  %v260_v4 = vsel %vm178_vm14, %v255_v58, 0.0 }
 0x158   :  { %v257_v62 = vsel %vm178_vm14, %v253_v55, 0.0 }
 0x15b   :  { %v233_v54 = vpop.f32.mrf.mxu1 }
 0x15c   :  { %239 = vst.msk [vmem:[%s416_s4 + $0x18] sm:$0xff] %vm178_vm14, %v233_v54  ;;  %v256_v1 = vmul.f32 %v233_v54, %v233_v54  ;;  %v245_v5 = vsel %vm178_vm14, %v233_v54, 0.0 }
 0x15d   :  { %v228_v56 = vpop.f32.mrf.mxu0 }
 0x15e   :  { %237 = vst.msk [vmem:[%s416_s4 + $0x8] sm:$0xff] %vm178_vm14, %v228_v56  ;;  %v241_v59 = vsel %vm178_vm14, %v228_v56, 0.0  ;;  %v254_v60 = vmul.f32 %v228_v56, %v228_v56  ;;  %v262_v8 = vsel %vm178_vm14, %v256_v1, 0.0 }
 0x15f   :  { %v242_v61 = vadd.f32 %v241_v59, %v240_v57 }
 0x160   :  { %v258_v0 = vsel %vm178_vm14, %v254_v60, 0.0 }
 0x161   :  { %v259_v2 = vadd.f32 %v258_v0, %v257_v62  ;;  %v244_v3 = vadd.f32 %v243_v63, %v242_v61 }
 0x163   :  { %v246_v6 = vadd.f32 %v245_v5, %v244_v3  ;;  %v261_v7 = vadd.f32 %v260_v4, %v259_v2 }
 0x165   :  { %v247_v9 = vrot.slane %v246_v6, 4  ;;  %v263_v10 = vadd.f32 %v262_v8, %v261_v7 }
 0x167   :  { %v248_v11 = vadd.f32 %v247_v9, %v246_v6  ;;  %v264_v12 = vrot.slane %v263_v10, 4 }
 0x169   :  { %v249_v13 = vrot.slane %v248_v11, 2  ;;  %v265_v14 = vadd.f32 %v264_v12, %v263_v10 }
 0x16b   :  { %v250_v15 = vadd.f32 %v249_v13, %v248_v11  ;;  %v266_v16 = vrot.slane %v265_v14, 2 }
 0x16d   :  { %v251_v17 = vrot.slane %v250_v15, 1  ;;  %v267_v18 = vadd.f32 %v266_v16, %v265_v14 }
 0x16f   :  { %v268_v19 = vrot.slane %v267_v18, 1  ;;  %v252_v20 = vadd.f32 %v251_v17, %v250_v15 }
 0x171   :  { %v269_v21 = vadd.f32 %v268_v19, %v267_v18 }
 0x173   :  { %v271_v22 = vsel %vm127_vm8, %v252_v20, %v269_v21 }
 0x174   :  { %273 = vst.msk [vmem:[%s417_s5] sm:$0x3] %vm272_vm0, %v271_v22 }

// kernel: se_res1d_forward.27
= control target key start
LH: loop header
LB: loop body
LE: loop exit
PB: predicated region body
PF: predicated region fallthrough
CT: control target
= control target key end

     0   :  { %s513_s25 = smov 4   ;;  %vm194_vm0 = vcmask 1046528   ;;  %vm91_vm1 = vsmask.f32 7424  ;;  %s514_s8 = smov 16   ;;  %vm344_vm3 = vcmask 1045504   ;;  %s801_s1 = inlined_call_operand.vmem [shape: bf16[2,35,4], index: 1, kind: input, shape index: {}]   ;;  %s802_s0 = inlined_call_operand.vmem [shape: bf16[2,35,4], index: 0, kind: input, shape index: {}]   ;;  %s803_s2 = inlined_call_operand.vmem [shape: bf16[28,16], index: 2, kind: input, shape index: {}]   ;;  %s804_s3 = inlined_call_operand.vmem [shape: f32[2,32,16], index: 3, kind: output, shape index: {0}]   ;;  %s805_s4 = inlined_call_operand.vmem [shape: f32[1,2,16], index: 4, kind: output, shape index: {1}]  }
   0x1   :  { %v547_v0 = vld [vmem:[%s801_s1 + $0x14] sm:$0xff]  ;;  %v552_v1 = vld [vmem:[%s801_s1] sm:$0xff]  ;;  %v557_v2 = vld [vmem:[%s801_s1 + $0x8] sm:$0xff]  ;;  %s515_s9 = smov 12   ;;  %s516_s10 = smov 8   ;;  %vm266_vm4 = vcmask 31744  }
   0x2   :  { %v562_v3 = vld [vmem:[%s802_s0] sm:$0xff]  ;;  %v567_v4 = vld [vmem:[%s802_s0 + $0x8] sm:$0xff]  ;;  %81 = vrot.lane.b32.xlu1 %v547_v0, %s513_s25  ;;  %77 = vrot.lane.b32.xlu0 %v552_v1, %s513_s25  ;;  %v147_v5 = vshrl.u32 %v552_v1, 16  ;;  %v149_v6 = vshll.u32 %v552_v1, 16  ;;  %v154_v7 = vshll.u32 %v557_v2, 16  ;;  %v169_v18 = vshll.u32 %v547_v0, 16 }
   0x3   :  { %v579_v8 = vld [vmem:[%s802_s0 + $0x14] sm:$0xff]  ;;  %v93_v9 = vshrl.u32 %v562_v3, 16  ;;  %v95_v10 = vshll.u32 %v562_v3, 16  ;;  %v100_v11 = vshll.u32 %v567_v4, 16  ;;  %v195_v12 = vrot.slane %v562_v3, 1  ;;  %v588_v13 = vld [vmem:[%s801_s1 + $0x1c] sm:$0xff] }
   0x4   :  { %v593_v14 = vld [vmem:[%s802_s0 + $0x1c] sm:$0xff]  ;;  %v151_v15 = vrot.slane %v149_v6, 1  ;;  %v595_v16 = vrot.slane %v154_v7, 1  ;;  %v196_v17 = vrot.slane %v567_v4, 1  ;;  %v167_v21 = vshrl.u32 %v547_v0, 16  ;;  %s517_s15 = smov 20  }
   0x5   :  { %v97_v19 = vrot.slane %v95_v10, 1  ;;  %v102_v20 = vrot.slane %v100_v11, 1  ;;  %v113_v24 = vshrl.u32 %v579_v8, 16  ;;  %v115_v25 = vshll.u32 %v579_v8, 16  ;;  %v21_v26 = vld [vmem:[%s802_s0 + $0x10] sm:$0x3] }
   0x6   :  { %v152_v22 = vor.u32 %v151_v15, %v147_v5  ;;  %v197_v23 = vsel %vm194_vm0, %v195_v12, %v196_v17  ;;  %v171_v28 = vrot.slane %v169_v18, 1  ;;  %v174_v29 = vshll.u32 %v588_v13, 16  ;;  %v31_v41 = vld [vmem:[%s801_s1 + $0x10] sm:$0x3]  ;;  %v26_v58 = vld [vmem:[%s802_s0 + $0x24] sm:$0x3] }
   0x7   :  { %v98_v27 = vor.u32 %v97_v19, %v93_v9  ;;  %205 = vrot.lane.b32.xlu2 %v197_v23, %s514_s8  ;;  %v120_v30 = vshll.u32 %v593_v14, 16  ;;  %v117_v32 = vrot.slane %v115_v25, 1  ;;  %v87_v35 = vunpack.c.l.b16 %v21_v26  ;;  %s518_s17 = smov 24  }
   0x8   :  { %v157_v31 = vsel %vm91_vm1, %v152_v22, %v595_v16  ;;  %v172_v37 = vor.u32 %v171_v28, %v167_v21  ;;  %v622_v38 = vrot.slane %v174_v29, 1  ;;  %v104_v43 = vshrl.u32 %v567_v4, 16 }
   0x9   :  { %v103_v33 = vsel %vm91_vm1, %v98_v27, %v102_v20  ;;  %v122_v34 = vrot.slane %v120_v30, 1  ;;  %v118_v36 = vor.u32 %v117_v32, %v113_v24  ;;  %v624_v39 = vpack.c.b16 %v87_v35, %v87_v35 }
   0xa   :  { %186 = vrot.lane.b32.xlu1 %v157_v31, %s515_s9  ;;  %132 = vrot.lane.b32.xlu0 %v103_v33, %s516_s10  ;;  %v177_v42 = vsel %vm91_vm1, %v172_v37, %v622_v38  ;;  %v142_v45 = vunpack.c.l.b16 %v31_v41  ;;  %v213_v46 = vrot.slane %v552_v1, 1  ;;  %v214_v47 = vrot.slane %v557_v2, 1 }
   0xb   :  { %v123_v40 = vsel %vm91_vm1, %v118_v36, %v122_v34  ;;  %v108_v44 = vshll.u32 %v624_v39, 16  ;;  %v200_v48 = vrot.slane %v579_v8, 1  ;;  %v201_v49 = vrot.slane %v593_v14, 1 }
   0xc   :  { %v106_v50 = vor.u32 %v104_v43, %v102_v20  ;;  %v144_v52 = vpack.c.b16 %v142_v45, %v142_v45  ;;  %v232_v53 = vrot.slane %v93_v9, 1  ;;  %v215_v54 = vsel %vm194_vm0, %v213_v46, %v214_v47 }
   0xd   :  { %v110_v51 = vrot.slane %v108_v44, 1  ;;  %v233_v55 = vrot.slane %v95_v10, 2  ;;  %v235_v56 = vrot.slane %v104_v43, 1  ;;  %v236_v57 = vrot.slane %v100_v11, 2  ;;  %v36_v11 = vld [vmem:[%s801_s1 + $0x24] sm:$0x3] }
   0xe   :  { %v202_v59 = vsel %vm194_vm0, %v200_v48, %v201_v49  ;;  %v158_v61 = vshrl.u32 %v557_v2, 16  ;;  %v162_v62 = vshll.u32 %v144_v52, 16  ;;  %v88_v63 = vunpack.c.l.b16 %v26_v58 }
   0xf   :  { %136 = vrot.lane.b32.xlu2 %v123_v40, %s516_s10  ;;  %v111_v60 = vsel %vm91_vm1, %v106_v50, %v110_v51  ;;  %v234_v1 = vor.u32 %v233_v55, %v232_v53  ;;  %v237_v5 = vor.u32 %v236_v57, %v235_v56  ;;  %vm231_vm2 = vsmask.f32 6400  ;;  %v500_v53 = vld [vmem:[%s803_s2 + $0x8] sm:$0x30]  ;;  %v499_v56 = vld [vmem:[%s803_s2] sm:$0xff] }
  0x10   :  { %v160_v6 = vor.u32 %v158_v61, %v595_v16  ;;  %v164_v7 = vrot.slane %v162_v62, 1  ;;  %v90_v9 = vpack.c.b16 %v88_v63, %v88_v63  ;;  %v124_v12 = vshrl.u32 %v593_v14, 16 }
  0x11   :  { %v238_v10 = vsel %vm231_vm2, %v234_v1, %v237_v5  ;;  %v218_v15 = vrot.slane %v547_v0, 1  ;;  %v219_v16 = vrot.slane %v588_v13, 1  ;;  %v143_v20 = vunpack.c.l.b16 %v36_v11 }
  0x12   :  { %190 = vrot.lane.b32.xlu1 %v177_v42, %s515_s9  ;;  %79 = vrot.lane.b32.xlu0 %v557_v2, %s513_s25  ;;  %v165_v18 = vsel %vm91_vm1, %v160_v6, %v164_v7  ;;  %v128_v19 = vshll.u32 %v90_v9, 16  ;;  %v198_v21 = vrot.slane %v624_v39, 1  ;;  %v126_v22 = vor.u32 %v124_v12, %v122_v34 }
  0x13   :  { %v220_v0 = vsel %vm194_vm0, %v218_v15, %v219_v16  ;;  %v145_v26 = vpack.c.b16 %v143_v20, %v143_v20  ;;  %v245_v27 = vrot.slane %v113_v24, 1  ;;  %v246_v28 = vrot.slane %v115_v25, 2 }
  0x14   :  { %v130_v23 = vrot.slane %v128_v19, 1  ;;  %v248_v29 = vrot.slane %v124_v12, 1  ;;  %v249_v31 = vrot.slane %v120_v30, 2  ;;  %v199_v32 = vsel %vm194_vm0, %v196_v17, %v198_v21 }
  0x15   :  { %v178_v34 = vshrl.u32 %v588_v13, 16  ;;  %v182_v35 = vshll.u32 %v145_v26, 16  ;;  %v247_v36 = vor.u32 %v246_v28, %v245_v27  ;;  %v216_v25 = vrot.slane %v144_v52, 1 }
  0x16   :  { %v131_v33 = vsel %vm91_vm1, %v126_v22, %v130_v23  ;;  %v250_v24 = vor.u32 %v249_v31, %v248_v29  ;;  %v239_v40 = vshrl.u32 %v624_v39, 16  ;;  %v242_v43 = vrot.slane %v108_v44, 2 }
  0x17   :  { %223 = vrot.lane.b32.xlu2 %v215_v54, %s517_s15  ;;  %v180_v30 = vor.u32 %v178_v34, %v622_v38  ;;  %v184_v37 = vrot.slane %v182_v35, 1  ;;  %v217_v41 = vsel %vm194_vm0, %v214_v47, %v216_v25  ;;  %v203_v45 = vrot.slane %v90_v9, 1 }
  0x18   :  { %v251_v17 = vsel %vm231_vm2, %v247_v36, %v250_v24  ;;  %v241_v42 = vrot.slane %v239_v40, 1  ;;  %v252_v46 = vshrl.u32 %v90_v9, 16  ;;  %v221_v38 = vrot.slane %v145_v26, 1 }
  0x19   :  { %v204_v2 = vsel %vm194_vm0, %v201_v49, %v203_v45  ;;  %v255_v50 = vrot.slane %v128_v19, 2  ;;  %v485_v49 = vld [vmem:[%s803_s2 + $0x8] sm:$0xf]  ;;  %vm284_vm5 = vcmask 97280   ;;  %vm275_vm6 = vcmask 64512  }
  0x1a   :  { %209 = vrot.lane.b32.xlu1 %v202_v59, %s514_s8  ;;  %134 = vrot.lane.b32.xlu0 %v111_v60, %s516_s10  ;;  %v243_v48 = vor.u32 %v242_v43, %v241_v42  ;;  %v254_v47 = vrot.slane %v252_v46, 1  ;;  %v222_v51 = vsel %vm194_vm0, %v219_v16, %v221_v38  ;;  %v486_v54 = vor.u32 %v500_v53, %v485_v49 }
  0x1b   :  { %vm293_vm7 = vcmask 130048   ;;  %vm302_vm8 = vcmask 162816   ;;  %vm311_vm9 = vcmask 195584   ;;  %vm335_vm10 = vcmask 228352  }
  0x1c   :  { %v244_v52 = vsel %vm231_vm2, %v237_v5, %v243_v48  ;;  %v256_v39 = vor.u32 %v255_v50, %v254_v47  ;;  %v346_v55 = vsel %vm344_vm3, %v486_v54, 0  ;;  %vm435_vm11 = vcmask 1040384  }
  0x1d   :  { %354 = vmatpush.bf16.msra.mxu0 %v346_v55  ;;  %502 = vmatpush.bf16.msra.mxu2 %v346_v55  ;;  %vm437_vm12 = vcmask 123904  }
  0x1e   :  { %v257_v44 = vsel %vm231_vm2, %v250_v24, %v256_v39  ;;  %501 = vmatpush.bf16.msra.mxu1 %v346_v55  ;;  %503 = vmatpush.bf16.msra.mxu3 %v346_v55 }
  0x1f   :  { %258 = vrot.lane.b32.xlu2 %v238_v10, %s518_s17 }
  0x21   :  { %355 = vmatpush.bf16.msra.mxu0 %v499_v56  ;;  %505 = vmatpush.bf16.msra.mxu2 %v499_v56 }
  0x22   :  { %188 = vrot.lane.b32.xlu1 %v165_v18, %s515_s9  ;;  %83 = vrot.lane.b32.xlu0 %v588_v13, %s513_s25  ;;  %v185_v13 = vsel %vm91_vm1, %v180_v30, %v184_v37 }
  0x23   :  { %504 = vmatpush.bf16.msra.mxu1 %v499_v56  ;;  %506 = vmatpush.bf16.msra.mxu3 %v499_v56 }
  0x27   :  { %227 = vrot.lane.b32.xlu2 %v220_v0, %s517_s15 }
  0x2a   :  { %207 = vrot.lane.b32.xlu1 %v199_v32, %s514_s8  ;;  %138 = vrot.lane.b32.xlu0 %v131_v33, %s516_s10 }
  0x2f   :  { %262 = vrot.lane.b32.xlu2 %v251_v17, %s518_s17 }
  0x32   :  { %225 = vrot.lane.b32.xlu1 %v217_v41, %s517_s15  ;;  %192 = vrot.lane.b32.xlu0 %v185_v13, %s515_s9 }
  0x37   :  { %211 = vrot.lane.b32.xlu2 %v204_v2, %s514_s8 }
  0x3a   :  { %229 = vrot.lane.b32.xlu1 %v222_v51, %s517_s15  ;;  %260 = vrot.lane.b32.xlu0 %v244_v52, %s518_s17 }
  0x3f   :  { %264 = vrot.lane.b32.xlu2 %v257_v44, %s518_s17 }
  0x61   :  { %v206_v57 = vpop.permute.xlu2 %205 }
  0x69   :  { %v137_v58 = vpop.permute.xlu2 %136 }
  0x71   :  { %v224_v59 = vpop.permute.xlu2 %223 }
  0x74   :  { %v82_v60 = vpop.permute.xlu1 %81  ;;  %v78_v61 = vpop.permute.xlu0 %77 }
  0x75   :  { %v268_v63 = vsel %vm266_vm4, %v562_v3, %v78_v61  ;;  %v272_v18 = vsel %vm266_vm4, %v579_v8, %v82_v60 }
  0x76   :  { %v281_v19 = vsel %vm275_vm6, %v272_v18, %v137_v58 }
  0x79   :  { %v259_v62 = vpop.permute.xlu2 %258 }
  0x7c   :  { %v187_v1 = vpop.permute.xlu1 %186  ;;  %v133_v5 = vpop.permute.xlu0 %132 }
  0x7d   :  { %v277_v6 = vsel %vm275_vm6, %v268_v63, %v133_v5 }
  0x7e   :  { %v286_v7 = vsel %vm284_vm5, %v277_v6, %v187_v1 }
  0x7f   :  { %v295_v9 = vsel %vm293_vm7, %v286_v7, %v206_v57 }
  0x80   :  { %v304_v10 = vsel %vm302_vm8, %v295_v9, %v224_v59 }
  0x81   :  { %v313_v11 = vsel %vm311_vm9, %v304_v10, %v259_v62  ;;  %v228_v12 = vpop.permute.xlu2 %227 }
  0x82   :  { %487 = vmatmul.msk.bf16.vlgmr.msra.gmra.mxu0 %vm335_vm10, %v313_v11 }
  0x84   :  { %v191_v3 = vpop.permute.xlu1 %190  ;;  %v80_v15 = vpop.permute.xlu0 %79 }
  0x85   :  { %v290_v20 = vsel %vm284_vm5, %v281_v19, %v191_v3  ;;  %v270_v35 = vsel %vm266_vm4, %v567_v4, %v80_v15 }
  0x89   :  { %v263_v16 = vpop.permute.xlu2 %262 }
  0x8c   :  { %v210_v21 = vpop.permute.xlu1 %209  ;;  %v135_v22 = vpop.permute.xlu0 %134 }
  0x8d   :  { %v299_v23 = vsel %vm293_vm7, %v290_v20, %v210_v21  ;;  %v279_v24 = vsel %vm275_vm6, %v270_v35, %v135_v22 }
  0x8e   :  { %v308_v0 = vsel %vm302_vm8, %v299_v23, %v228_v12 }
  0x8f   :  { %v317_v26 = vsel %vm311_vm9, %v308_v0, %v263_v16 }
  0x90   :  { %489 = vmatmul.msk.bf16.vlgmr.msra.gmra.mxu2 %vm335_vm10, %v317_v26 }
  0x91   :  { %v212_v8 = vpop.permute.xlu2 %211 }
  0x94   :  { %v189_v27 = vpop.permute.xlu1 %188  ;;  %v84_v28 = vpop.permute.xlu0 %83 }
  0x95   :  { %v274_v34 = vsel %vm266_vm4, %v593_v14, %v84_v28  ;;  %v288_v30 = vsel %vm284_vm5, %v279_v24, %v189_v27 }
  0x99   :  { %v265_v40 = vpop.permute.xlu2 %264 }
  0x9c   :  { %v208_v29 = vpop.permute.xlu1 %207  ;;  %v139_v31 = vpop.permute.xlu0 %138 }
  0x9d   :  { %v283_v36 = vsel %vm275_vm6, %v274_v34, %v139_v31  ;;  %v297_v37 = vsel %vm293_vm7, %v288_v30, %v208_v29 }
  0xa4   :  { %v226_v32 = vpop.permute.xlu1 %225  ;;  %v193_v33 = vpop.permute.xlu0 %192 }
  0xa5   :  { %v292_v25 = vsel %vm284_vm5, %v283_v36, %v193_v33  ;;  %v306_v17 = vsel %vm302_vm8, %v297_v37, %v226_v32 }
  0xa6   :  { %v301_v41 = vsel %vm293_vm7, %v292_v25, %v212_v8 }
  0xac   :  { %v230_v13 = vpop.permute.xlu1 %229  ;;  %v261_v14 = vpop.permute.xlu0 %260 }
  0xad   :  { %v310_v42 = vsel %vm302_vm8, %v301_v41, %v230_v13  ;;  %v315_v4 = vsel %vm311_vm9, %v306_v17, %v261_v14 }
  0xae   :  { %488 = vmatmul.msk.bf16.vlgmr.msra.gmra.mxu1 %vm335_vm10, %v315_v4  ;;  %v319_v43 = vsel %vm311_vm9, %v310_v42, %v265_v40 }
  0xaf   :  { %490 = vmatmul.msk.bf16.vlgmr.msra.gmra.mxu3 %vm335_vm10, %v319_v43 }
  0xff   :  { %v357_v45 = vpop.f32.mrf.mxu0 }
 0x100   :  { %377 = vst.msk [vmem:[%s804_s3] sm:$0xff] %vm293_vm7, %v357_v45  ;;  %v406_v50 = vmul.f32 %v357_v45, %v357_v45  ;;  %v385_v39 = vsel %vm293_vm7, %v357_v45, 0.0 }
 0x102   :  { %v414_v54 = vsel %vm293_vm7, %v406_v50, 0.0 }
 0x107   :  { %v359_v46 = vpop.f32.mrf.mxu0 }
 0x108   :  { %378 = vst.msk [vmem:[%s804_s3 + $0x8] sm:$0xff] %vm293_vm7, %v359_v46  ;;  %v407_v47 = vmul.f32 %v359_v46, %v359_v46  ;;  %v386_v51 = vsel %vm293_vm7, %v359_v46, 0.0 }
 0x109   :  { %v387_v53 = vadd.f32 %v386_v51, %v385_v39 }
 0x10a   :  { %v415_v44 = vsel %vm293_vm7, %v407_v47, 0.0 }
 0x10b   :  { %v416_v57 = vadd.f32 %v415_v44, %v414_v54 }
 0x113   :  { %v367_v38 = vpop.f32.mrf.mxu2 }
 0x114   :  { %381 = vst.msk [vmem:[%s804_s3 + $0x20] sm:$0xff] %vm293_vm7, %v367_v38  ;;  %v410_v60 = vmul.f32 %v367_v38, %v367_v38  ;;  %v392_v5 = vsel %vm293_vm7, %v367_v38, 0.0 }
 0x116   :  { %v421_v11 = vsel %vm293_vm7, %v410_v60, 0.0 }
 0x11b   :  { %v369_v48 = vpop.f32.mrf.mxu2 }
 0x11c   :  { %382 = vst.msk [vmem:[%s804_s3 + $0x28] sm:$0xff] %vm293_vm7, %v369_v48  ;;  %v411_v6 = vmul.f32 %v369_v48, %v369_v48  ;;  %v394_v12 = vsel %vm293_vm7, %v369_v48, 0.0 }
 0x11e   :  { %v423_v19 = vsel %vm293_vm7, %v411_v6, 0.0 }
 0x12b   :  { %v362_v2 = vpop.f32.mrf.mxu1 }
 0x12c   :  { %379 = vst.msk [vmem:[%s804_s3 + $0x10] sm:$0xff] %vm293_vm7, %v362_v2  ;;  %v408_v52 = vmul.f32 %v362_v2, %v362_v2  ;;  %v388_v49 = vsel %vm293_vm7, %v362_v2, 0.0 }
 0x12d   :  { %v389_v58 = vadd.f32 %v388_v49, %v387_v53 }
 0x12e   :  { %v417_v55 = vsel %vm293_vm7, %v408_v52, 0.0 }
 0x12f   :  { %v418_v63 = vadd.f32 %v417_v55, %v416_v57 }
 0x132   :  { %v372_v56 = vpop.f32.mrf.mxu3 }
 0x133   :  { %383 = vst.msk [vmem:[%s804_s3 + $0x30] sm:$0xff] %vm293_vm7, %v372_v56  ;;  %v364_v59 = vpop.f32.mrf.mxu1  ;;  %v412_v3 = vmul.f32 %v372_v56, %v372_v56  ;;  %v396_v16 = vsel %vm293_vm7, %v372_v56, 0.0 }
 0x134   :  { %380 = vst.msk [vmem:[%s804_s3 + $0x18] sm:$0xff] %vm293_vm7, %v364_v59  ;;  %v390_v61 = vsel %vm293_vm7, %v364_v59, 0.0  ;;  %v409_v62 = vmul.f32 %v364_v59, %v364_v59 }
 0x135   :  { %v391_v1 = vadd.f32 %v390_v61, %v389_v58  ;;  %v425_v26 = vsel %vm293_vm7, %v412_v3, 0.0 }
 0x136   :  { %v419_v7 = vsel %vm293_vm7, %v409_v62, 0.0 }
 0x137   :  { %v393_v9 = vadd.f32 %v392_v5, %v391_v1  ;;  %v420_v10 = vadd.f32 %v419_v7, %v418_v63 }
 0x139   :  { %v422_v15 = vadd.f32 %v421_v11, %v420_v10  ;;  %v395_v18 = vadd.f32 %v394_v12, %v393_v9 }
 0x13a   :  { %v374_v20 = vpop.f32.mrf.mxu3 }
 0x13b   :  { %384 = vst.msk [vmem:[%s804_s3 + $0x38] sm:$0xff] %vm293_vm7, %v374_v20  ;;  %v397_v21 = vadd.f32 %v396_v16, %v395_v18  ;;  %v398_v22 = vsel %vm293_vm7, %v374_v20, 0.0  ;;  %v413_v23 = vmul.f32 %v374_v20, %v374_v20  ;;  %v424_v0 = vadd.f32 %v423_v19, %v422_v15 }
 0x13d   :  { %v399_v27 = vadd.f32 %v398_v22, %v397_v21  ;;  %v426_v28 = vadd.f32 %v425_v26, %v424_v0  ;;  %v427_v29 = vsel %vm293_vm7, %v413_v23, 0.0 }
 0x13f   :  { %v400_v31 = vrot.slane %v399_v27, 4  ;;  %v428_v8 = vadd.f32 %v427_v29, %v426_v28 }
 0x141   :  { %v401_v32 = vadd.f32 %v400_v31, %v399_v27  ;;  %v429_v33 = vrot.slane %v428_v8, 4 }
 0x143   :  { %v402_v34 = vrot.slane %v401_v32, 2  ;;  %v430_v35 = vadd.f32 %v429_v33, %v428_v8 }
 0x145   :  { %v403_v36 = vadd.f32 %v402_v34, %v401_v32  ;;  %v431_v24 = vrot.slane %v430_v35, 2 }
 0x147   :  { %v404_v25 = vrot.slane %v403_v36, 1  ;;  %v432_v30 = vadd.f32 %v431_v24, %v430_v35 }
 0x149   :  { %v433_v37 = vrot.slane %v432_v30, 1  ;;  %v405_v40 = vadd.f32 %v404_v25, %v403_v36 }
 0x14b   :  { %v434_v17 = vadd.f32 %v433_v37, %v432_v30 }
 0x14d   :  { %v436_v41 = vsel %vm435_vm11, %v405_v40, %v434_v17 }
 0x14e   :  { %438 = vst.msk [vmem:[%s805_s4] sm:$0x3] %vm437_vm12, %v436_v41 }

// kernel: se_res1d_forward.31
= control target key start
LH: loop header
LB: loop body
LE: loop exit
PB: predicated region body
PF: predicated region fallthrough
CT: control target
= control target key end

     0   :  { %v256_v2 = vmov 32.0   ;;  %v257_v21 = vmov 16.0   ;;  %vm74_vm4 = vcmask 130048   ;;  %vm106_vm6 = vcmask 1041409   ;;  %s369_s4 = inlined_call_operand.vmem [shape: f32[16,1], index: 4, kind: input, shape index: {}]   ;;  %s370_s1 = inlined_call_operand.vmem [shape: f32[1,2,16], index: 1, kind: input, shape index: {}]   ;;  %s371_s2 = inlined_call_operand.vmem [shape: f32[2,16], index: 2, kind: input, shape index: {}]   ;;  %s372_s0 = inlined_call_operand.vmem [shape: f32[2,16,16], index: 0, kind: input, shape index: {}]   ;;  %s373_s5 = inlined_call_operand.vmem [shape: f32[1,16], index: 5, kind: input, shape index: {}]   ;;  %s374_s3 = inlined_call_operand.vmem [shape: f32[2,16,16], index: 3, kind: input, shape index: {}]   ;;  %s375_s6 = inlined_call_operand.vmem [shape: f32[2,16,16], index: 6, kind: output, shape index: {}]  }
   0x1   :  { %v103_v0 = vld [vmem:[%s369_s4 + $0x8] sm:$0xff]  ;;  %v102_v1 = vld [vmem:[%s369_s4] sm:$0xff]  ;;  %238 = vrcp.f32 %v256_v2  ;;  %v27_v27 = vld [vmem:[%s372_s0 + $0x10] sm:$0xff]  ;;  %vm136_vm7 = vcmask 1040384   ;;  %vm132_vm8 = vcmask 7168  }
   0x2   :  { %124 = vmatpush.msra.mxu0 %v103_v0  ;;  %v23_v7 = vld [vmem:[%s370_s1] sm:$0x3]  ;;  %v26_v26 = vld [vmem:[%s372_s0 + $0x8] sm:$0xff]  ;;  %v28_v28 = vld [vmem:[%s372_s0 + $0x18] sm:$0xff] }
   0x3   :  { %v29_v19 = vld [vmem:[%s371_s2] sm:$0x3] }
   0x4   :  { %125 = vmatpush.msra.mxu0 %v102_v1  ;;  %v25_v24 = vld [vmem:[%s372_s0] sm:$0xff]  ;;  %v56_v25 = vrot.slane %v29_v19, 7  ;;  %v69_v38 = vperm.slane %v29_v19, 1 }
   0x7   :  { %v239_v3 = vpop.eup %238 }
   0x8   :  { %v31_v4 = vmul.f32 32.0, %v239_v3  ;;  %vm35_vm0 = vweird.f32 %v239_v3 }
   0xa   :  { %v32_v5 = vsub.f32 1.0, %v31_v4 }
   0xc   :  { %v33_v6 = vmul.f32 %v239_v3, %v32_v5 }
   0xe   :  { %v34_v8 = vadd.f32 %v239_v3, %v33_v6 }
  0x10   :  { %v36_v9 = vsel %vm35_vm0, %v239_v3, %v34_v8 }
  0x11   :  { %v37_v10 = vmul.f32 %v36_v9, %v23_v7  ;;  %v131_v9 = vld [vmem:[%s373_s5] sm:$0x1] }
  0x12   :  { %230 = vmatpush.msk.msra.mxu1 %vm136_vm7, %v131_v9 }
  0x13   :  { %v38_v11 = vmul.f32 %v37_v10, %v37_v10  ;;  %v59_v23 = vperm.slane %v37_v10, 0 }
  0x15   :  { %v40_v12 = vrot.slane %v38_v11, 7  ;;  %v60_v31 = vsub.f32 %v25_v24, %v59_v23  ;;  %v61_v34 = vsub.f32 %v26_v26, %v59_v23  ;;  %v62_v35 = vsub.f32 %v27_v27, %v59_v23 }
  0x16   :  { %v63_v36 = vsub.f32 %v28_v28, %v59_v23 }
  0x17   :  { %v42_v13 = vsub.f32 %v37_v10, %v40_v12 }
  0x19   :  { %v43_v14 = vmax.f32 %v42_v13, 0.0 }
  0x1b   :  { %v44_v15 = vadd.f32 1e-05, %v43_v14 }
  0x1d   :  { %240 = vrsqrt.f32 %v44_v15  ;;  %vm51_vm1 = vweird.f32 %v44_v15 }
  0x1e   :  { %242 = vrcp.f32 %v257_v21 }
  0x23   :  { %v241_v16 = vpop.eup %240 }
  0x24   :  { %v46_v17 = vmul.f32 %v241_v16, %v44_v15  ;;  %vm52_vm2 = vweird.f32 %v241_v16  ;;  %v243_v32 = vpop.eup %242 }
  0x25   :  { %vm53_vm3 = vmor %vm51_vm1, %vm52_vm2  ;;  %v94_v39 = vmul.f32 16.0, %v243_v32  ;;  %vm98_vm5 = vweird.f32 %v243_v32 }
  0x26   :  { %v47_v18 = vmul.f32 %v241_v16, %v46_v17 }
  0x27   :  { %v95_v48 = vsub.f32 1.0, %v94_v39 }
  0x28   :  { %v48_v20 = vmul.f32 0.5, %v47_v18 }
  0x29   :  { %v96_v57 = vmul.f32 %v243_v32, %v95_v48 }
  0x2a   :  { %v49_v22 = vsub.f32 1.5, %v48_v20 }
  0x2b   :  { %v97_v62 = vadd.f32 %v243_v32, %v96_v57 }
  0x2c   :  { %v50_v29 = vmul.f32 %v241_v16, %v49_v22 }
  0x2d   :  { %v99_v3 = vsel %vm98_vm5, %v243_v32, %v97_v62 }
  0x2e   :  { %v54_v30 = vsel %vm53_vm3, %v241_v16, %v50_v29  ;;  %v189_v29 = vld [vmem:[%s374_s3] sm:$0xff] }
  0x2f   :  { %v58_v33 = vmul.f32 %v56_v25, %v54_v30  ;;  %v190_v30 = vld [vmem:[%s374_s3 + $0x8] sm:$0xff] }
  0x31   :  { %v64_v37 = vperm.slane %v58_v33, 1 }
  0x33   :  { %v65_v40 = vmul.f32 %v64_v37, %v60_v31  ;;  %v66_v41 = vmul.f32 %v64_v37, %v61_v34  ;;  %v67_v42 = vmul.f32 %v64_v37, %v62_v35  ;;  %v68_v43 = vmul.f32 %v64_v37, %v63_v36  ;;  %v191_v34 = vld [vmem:[%s374_s3 + $0x10] sm:$0xff]  ;;  %v192_v35 = vld [vmem:[%s374_s3 + $0x18] sm:$0xff] }
  0x35   :  { %v317_v44 = vadd.f32 %v69_v38, %v65_v40  ;;  %v319_v45 = vadd.f32 %v69_v38, %v66_v41  ;;  %v321_v46 = vadd.f32 %v69_v38, %v67_v42  ;;  %v323_v47 = vadd.f32 %v69_v38, %v68_v43 }
  0x37   :  { %v75_v49 = vsel %vm74_vm4, %v317_v44, 0.0  ;;  %v76_v50 = vsel %vm74_vm4, %v319_v45, 0.0  ;;  %v84_v51 = vsel %vm74_vm4, %v321_v46, 0.0  ;;  %v85_v52 = vsel %vm74_vm4, %v323_v47, 0.0 }
  0x38   :  { %v77_v53 = vadd.f32 %v76_v50, %v75_v49  ;;  %v86_v54 = vadd.f32 %v85_v52, %v84_v51 }
  0x3a   :  { %v78_v55 = vrot.slane %v77_v53, 4  ;;  %v87_v56 = vrot.slane %v86_v54, 4 }
  0x3c   :  { %v79_v58 = vadd.f32 %v78_v55, %v77_v53  ;;  %v88_v59 = vadd.f32 %v87_v56, %v86_v54 }
  0x3e   :  { %v80_v60 = vrot.slane %v79_v58, 2  ;;  %v89_v61 = vrot.slane %v88_v59, 2 }
  0x40   :  { %v81_v63 = vadd.f32 %v80_v60, %v79_v58  ;;  %v90_v0 = vadd.f32 %v89_v61, %v88_v59 }
  0x42   :  { %v82_v1 = vrot.slane %v81_v63, 1  ;;  %v91_v2 = vrot.slane %v90_v0, 1 }
  0x44   :  { %v83_v4 = vadd.f32 %v82_v1, %v81_v63  ;;  %v92_v5 = vadd.f32 %v91_v2, %v90_v0 }
  0x46   :  { %v100_v6 = vmul.f32 %v99_v3, %v83_v4  ;;  %v101_v7 = vmul.f32 %v99_v3, %v92_v5 }
  0x48   :  { %v107_v8 = vsel %vm106_vm6, %v101_v7, %v100_v6 }
  0x49   :  { %229 = vmatmul.msk.f32.vlgmr.msra.gmra.mxu0 %vm74_vm4, %v107_v8 }
  0xc6   :  { %v127_v10 = vpop.f32.mrf.mxu0 }
  0xc7   :  { %v130_v11 = vmax.f32 %v127_v10, 0.0 }
  0xc9   :  { %231 = vmatmul.msk.f32.vlgmr.msra.gmra.mxu1 %vm132_vm8, %v130_v11 }
 0x146   :  { %v157_v12 = vpop.f32.mrf.mxu1 }
 0x147   :  { %v160_v13 = vsub.f32 0.0, %v157_v12 }
 0x149   :  { %v161_v14 = vmul.f32 1.442695, %v160_v13 }
 0x14b   :  { %244 = vpow2.f32 %v161_v14 }
 0x151   :  { %v245_v15 = vpop.eup %244 }
 0x152   :  { %v163_v16 = vadd.f32 1.0, %v245_v15 }
 0x154   :  { %246 = vrcp.f32 %v163_v16  ;;  %v175_v20 = vand.u32 2147483648, %v163_v16  ;;  %v173_v22 = vand.u32 2147483647, %v163_v16  ;;  %vm169_vm10 = vweird.f32 %v163_v16 }
 0x156   :  { %v176_v24 = vor.u32 1.1754944e-38, %v175_v20  ;;  %vm174_vm12 = vcmp.eq.f32.partialorder %v173_v22, 8.507059e+37 }
 0x15a   :  { %v247_v17 = vpop.eup %246 }
 0x15b   :  { %v165_v18 = vmul.f32 %v247_v17, %v163_v16  ;;  %vm170_vm9 = vweird.f32 %v247_v17 }
 0x15c   :  { %vm171_vm11 = vmor %vm169_vm10, %vm170_vm9 }
 0x15d   :  { %v166_v19 = vsub.f32 1.0, %v165_v18 }
 0x15f   :  { %v167_v21 = vmul.f32 %v247_v17, %v166_v19 }
 0x161   :  { %v168_v23 = vadd.f32 %v247_v17, %v167_v21 }
 0x163   :  { %v172_v25 = vsel %vm171_vm11, %v247_v17, %v168_v23 }
 0x164   :  { %v177_v26 = vsel %vm174_vm12, %v176_v24, %v172_v25 }
 0x165   :  { %v180_v27 = vrot.slane %v177_v26, 1  ;;  %v181_v28 = vperm.slane %v177_v26, 0 }
 0x167   :  { %v182_v31 = vperm.slane %v180_v27, 0  ;;  %v185_v32 = vmul.f32 %v181_v28, %v317_v44  ;;  %v186_v33 = vmul.f32 %v181_v28, %v319_v45 }
 0x169   :  { %v187_v36 = vmul.f32 %v182_v31, %v321_v46  ;;  %v188_v37 = vmul.f32 %v182_v31, %v323_v47  ;;  %v193_v38 = vadd.f32 %v189_v29, %v185_v32  ;;  %v194_v39 = vadd.f32 %v190_v30, %v186_v33 }
 0x16b   :  { %v195_v40 = vadd.f32 %v191_v34, %v187_v36  ;;  %v196_v41 = vadd.f32 %v192_v35, %v188_v37  ;;  %v201_v42 = vmin.f32 %v193_v38, 0.0  ;;  %v202_v43 = vmin.f32 %v194_v39, 0.0 }
 0x16c   :  { %vm197_vm13 = vcmp.gt.f32.partialorder %v193_v38, 0.0  ;;  %vm198_vm14 = vcmp.gt.f32.partialorder %v194_v39, 0.0 }
 0x16d   :  { %v203_v44 = vmin.f32 %v195_v40, 0.0  ;;  %v204_v45 = vmin.f32 %v196_v41, 0.0  ;;  %v205_v48 = vmul.f32 1.442695, %v201_v42  ;;  %v207_v49 = vmul.f32 1.442695, %v202_v43 }
 0x16e   :  { %vm199_vm15 = vcmp.gt.f32.partialorder %v195_v40, 0.0  ;;  %vm200_vm0 = vcmp.gt.f32.partialorder %v196_v41, 0.0 }
 0x16f   :  { %v209_v50 = vmul.f32 1.442695, %v203_v44  ;;  %v211_v51 = vmul.f32 1.442695, %v204_v45  ;;  %248 = vpow2.f32 %v205_v48 }
 0x170   :  { %250 = vpow2.f32 %v207_v49 }
 0x171   :  { %252 = vpow2.f32 %v209_v50 }
 0x172   :  { %254 = vpow2.f32 %v211_v51 }
 0x175   :  { %v249_v52 = vpop.eup %248 }
 0x176   :  { %v251_v46 = vpop.eup %250  ;;  %v232_v53 = vadd.f32 -1.0, %v249_v52 }
 0x177   :  { %v253_v47 = vpop.eup %252  ;;  %v233_v54 = vadd.f32 -1.0, %v251_v46 }
 0x178   :  { %v255_v55 = vpop.eup %254  ;;  %v234_v56 = vadd.f32 -1.0, %v253_v47  ;;  %v217_v57 = vsel %vm197_vm13, %v193_v38, %v232_v53 }
 0x179   :  { %v235_v58 = vadd.f32 -1.0, %v255_v55  ;;  %v218_v59 = vsel %vm198_vm14, %v194_v39, %v233_v54  ;;  %221 = vst.msk [vmem:[%s375_s6] sm:$0xff] %vm74_vm4, %v217_v57 }
 0x17a   :  { %v219_v60 = vsel %vm199_vm15, %v195_v40, %v234_v56  ;;  %222 = vst.msk [vmem:[%s375_s6 + $0x8] sm:$0xff] %vm74_vm4, %v218_v59 }
 0x17b   :  { %v220_v61 = vsel %vm200_vm0, %v196_v41, %v235_v58  ;;  %223 = vst.msk [vmem:[%s375_s6 + $0x10] sm:$0xff] %vm74_vm4, %v219_v60 }
 0x17c   :  { %224 = vst.msk [vmem:[%s375_s6 + $0x18] sm:$0xff] %vm74_vm4, %v220_v61 }

// kernel: se_res1d_forward.35
= control target key start
LH: loop header
LB: loop body
LE: loop exit
PB: predicated region body
PF: predicated region fallthrough
CT: control target
= control target key end

     0   :  { %vm66_vm0 = vcmask 130048   ;;  %s251_s14 = smov 16   ;;  %s252_s15 = smov 32   ;;  %vm73_vm1 = vcmask 261120   ;;  %vm107_vm2 = vcmask 392192   ;;  %vm147_vm3 = vcmask 1040384   ;;  %s368_s1 = inlined_call_operand.vmem [shape: bf16[2,9,16], index: 1, kind: input, shape index: {}]   ;;  %s369_s0 = inlined_call_operand.vmem [shape: bf16[2,9,16], index: 0, kind: input, shape index: {}]   ;;  %s370_s3 = inlined_call_operand.vmem [shape: bf16[16,32], index: 3, kind: input, shape index: {}]   ;;  %s371_s2 = inlined_call_operand.vmem [shape: bf16[48,32], index: 2, kind: input, shape index: {}]   ;;  %s372_s6 = inlined_call_operand.vmem [shape: f32[2,8,32], index: 6, kind: output, shape index: {2}]   ;;  %s373_s7 = inlined_call_operand.vmem [shape: f32[1,2,32], index: 7, kind: output, shape index: {3}]   ;;  %s374_s4 = inlined_call_operand.vmem [shape: f32[2,8,32], index: 4, kind: output, shape index: {0}]   ;;  %s375_s5 = inlined_call_operand.vmem [shape: f32[1,2,32], index: 5, kind: output, shape index: {1}]  }
   0x1   :  { %v26_v0 = vld [vmem:[%s368_s1] sm:$0xf]  ;;  %v27_v1 = vld [vmem:[%s368_s1 + $0x8] sm:$0xf]  ;;  %v243_v4 = vld [vmem:[%s369_s0] sm:$0x10] }
   0x2   :  { %v219_v2 = vld [vmem:[%s369_s0] sm:$0xf]  ;;  %v30_v3 = vunpack.c.l.b16 %v26_v0  ;;  %v31_v5 = vunpack.c.l.b16 %v27_v1  ;;  %v223_v6 = vld [vmem:[%s369_s0 + $0x8] sm:$0xf]  ;;  %v244_v7 = vld [vmem:[%s369_s0 + $0x8] sm:$0x10] }
   0x3   :  { %v220_v8 = vor.u32 %v243_v4, %v219_v2  ;;  %v224_v9 = vor.u32 %v244_v7, %v223_v6  ;;  %v248_v10 = vld [vmem:[%s370_s3] sm:$0xff]  ;;  %v247_v22 = vld [vmem:[%s371_s2 + $0x10] sm:$0xff]  ;;  %v246_v23 = vld [vmem:[%s371_s2 + $0x8] sm:$0xff]  ;;  %vm149_vm4 = vcmask 254976  }
   0x4   :  { %v32_v11 = vpack.c.b16 %v30_v3, %v30_v3  ;;  %v153_v12 = vpack.c.b16 %v31_v5, %v30_v3  ;;  %170 = vmatpush.bf16.msra.mxu1 %v248_v10  ;;  %v33_v18 = vpack.c.b16 %v31_v5, %v31_v5  ;;  %116 = vmatpush.bf16.msra.mxu0 %v247_v22  ;;  %v245_v24 = vld [vmem:[%s371_s2] sm:$0xff]  ;;  %v24_v29 = vld [vmem:[%s369_s0 + $0x8] sm:$0xf] }
   0x5   :  { %v49_v13 = vshrl.u32 %v220_v8, 16  ;;  %v51_v14 = vshll.u32 %v220_v8, 16  ;;  %v58_v16 = vshll.u32 %v224_v9, 16  ;;  %v56_v19 = vshrl.u32 %v224_v9, 16  ;;  %v22_v27 = vld [vmem:[%s369_s0] sm:$0xf] }
   0x6   :  { %34 = vrot.lane.b32.xlu0 %v32_v11, %s251_s14 }
   0x7   :  { %v53_v15 = vrot.slane %v51_v14, 1  ;;  %242 = vmatmul.msk.bf16.vlgmr.msra.gmra.mxu1 %vm66_vm0, %v153_v12  ;;  %v60_v20 = vrot.slane %v58_v16, 1 }
   0x8   :  { %117 = vmatpush.bf16.msra.mxu0 %v246_v23 }
   0x9   :  { %v54_v17 = vor.u32 %v53_v15, %v49_v13  ;;  %v61_v21 = vor.u32 %v60_v20, %v56_v19 }
   0xb   :  { %62 = vrot.lane.b32.xlu1 %v54_v17, %s252_s15 }
   0xc   :  { %118 = vmatpush.bf16.msra.mxu0 %v245_v24 }
   0xe   :  { %36 = vrot.lane.b32.xlu0 %v33_v18, %s251_s14 }
  0x13   :  { %64 = vrot.lane.b32.xlu1 %v61_v21, %s252_s15 }
  0x78   :  { %v35_v25 = vpop.permute.xlu0 %34 }
  0x79   :  { %v69_v30 = vsel %vm66_vm0, %v22_v27, %v35_v25 }
  0x7d   :  { %v63_v26 = vpop.permute.xlu1 %62 }
  0x7e   :  { %v75_v32 = vsel %vm73_vm1, %v69_v30, %v63_v26 }
  0x7f   :  { %v86_v36 = vunpack.c.l.b16 %v75_v32 }
  0x80   :  { %v37_v28 = vpop.permute.xlu0 %36 }
  0x81   :  { %v72_v31 = vsel %vm66_vm0, %v24_v29, %v37_v28 }
  0x84   :  { %v172_v34 = vpop.f32.mrf.mxu1 }
  0x85   :  { %v65_v33 = vpop.permute.xlu1 %64  ;;  %177 = vst.msk [vmem:[%s372_s6] sm:$0xff] %vm73_vm1, %v172_v34  ;;  %v188_v39 = vmul.f32 %v172_v34, %v172_v34  ;;  %v179_v40 = vsel %vm73_vm1, %v172_v34, 0.0 }
  0x86   :  { %v77_v35 = vsel %vm73_vm1, %v72_v31, %v65_v33 }
  0x87   :  { %v87_v37 = vunpack.c.l.b16 %v77_v35  ;;  %v190_v42 = vsel %vm73_vm1, %v188_v39, 0.0 }
  0x89   :  { %v88_v38 = vpack.c.b16 %v87_v37, %v86_v36 }
  0x8b   :  { %237 = vmatmul.msk.bf16.vlgmr.msra.gmra.mxu0 %vm107_vm2, %v88_v38 }
  0x8c   :  { %v174_v41 = vpop.f32.mrf.mxu1 }
  0x8d   :  { %178 = vst.msk [vmem:[%s372_s6 + $0x8] sm:$0xff] %vm73_vm1, %v174_v41  ;;  %v180_v43 = vsel %vm73_vm1, %v174_v41, 0.0  ;;  %v189_v44 = vmul.f32 %v174_v41, %v174_v41 }
  0x8e   :  { %v181_v45 = vadd.f32 %v180_v43, %v179_v40 }
  0x8f   :  { %v191_v46 = vsel %vm73_vm1, %v189_v44, 0.0 }
  0x90   :  { %v182_v47 = vrot.slane %v181_v45, 4  ;;  %v192_v48 = vadd.f32 %v191_v46, %v190_v42 }
  0x92   :  { %v183_v49 = vadd.f32 %v182_v47, %v181_v45  ;;  %v193_v50 = vrot.slane %v192_v48, 4 }
  0x94   :  { %v184_v51 = vrot.slane %v183_v49, 2  ;;  %v194_v52 = vadd.f32 %v193_v50, %v192_v48 }
  0x96   :  { %v185_v53 = vadd.f32 %v184_v51, %v183_v49  ;;  %v195_v54 = vrot.slane %v194_v52, 2 }
  0x98   :  { %v186_v55 = vrot.slane %v185_v53, 1  ;;  %v196_v56 = vadd.f32 %v195_v54, %v194_v52 }
  0x9a   :  { %v187_v57 = vadd.f32 %v186_v55, %v185_v53  ;;  %v197_v58 = vrot.slane %v196_v56, 1 }
  0x9c   :  { %v198_v59 = vadd.f32 %v197_v58, %v196_v56 }
  0x9e   :  { %v199_v60 = vsel %vm147_vm3, %v187_v57, %v198_v59 }
  0x9f   :  { %200 = vst.msk [vmem:[%s373_s7] sm:$0x3] %vm149_vm4, %v199_v60 }
 0x108   :  { %v120_v61 = vpop.f32.mrf.mxu0 }
 0x109   :  { %125 = vst.msk [vmem:[%s374_s4] sm:$0xff] %vm73_vm1, %v120_v61  ;;  %v136_v62 = vmul.f32 %v120_v61, %v120_v61  ;;  %v127_v0 = vsel %vm73_vm1, %v120_v61, 0.0 }
 0x10b   :  { %v138_v4 = vsel %vm73_vm1, %v136_v62, 0.0 }
 0x110   :  { %v122_v63 = vpop.f32.mrf.mxu0 }
 0x111   :  { %126 = vst.msk [vmem:[%s374_s4 + $0x8] sm:$0xff] %vm73_vm1, %v122_v63  ;;  %v128_v1 = vsel %vm73_vm1, %v122_v63, 0.0  ;;  %v137_v2 = vmul.f32 %v122_v63, %v122_v63 }
 0x112   :  { %v129_v3 = vadd.f32 %v128_v1, %v127_v0 }
 0x113   :  { %v139_v5 = vsel %vm73_vm1, %v137_v2, 0.0 }
 0x114   :  { %v130_v6 = vrot.slane %v129_v3, 4  ;;  %v140_v7 = vadd.f32 %v139_v5, %v138_v4 }
 0x116   :  { %v131_v8 = vadd.f32 %v130_v6, %v129_v3  ;;  %v141_v9 = vrot.slane %v140_v7, 4 }
 0x118   :  { %v132_v10 = vrot.slane %v131_v8, 2  ;;  %v142_v11 = vadd.f32 %v141_v9, %v140_v7 }
 0x11a   :  { %v133_v12 = vadd.f32 %v132_v10, %v131_v8  ;;  %v143_v13 = vrot.slane %v142_v11, 2 }
 0x11c   :  { %v134_v14 = vrot.slane %v133_v12, 1  ;;  %v144_v15 = vadd.f32 %v143_v13, %v142_v11 }
 0x11e   :  { %v145_v16 = vrot.slane %v144_v15, 1  ;;  %v135_v17 = vadd.f32 %v134_v14, %v133_v12 }
 0x120   :  { %v146_v18 = vadd.f32 %v145_v16, %v144_v15 }
 0x122   :  { %v148_v19 = vsel %vm147_vm3, %v135_v17, %v146_v18 }
 0x123   :  { %150 = vst.msk [vmem:[%s375_s5] sm:$0x3] %vm149_vm4, %v148_v19 }

// kernel: se_res1d_forward.36
= control target key start
LH: loop header
LB: loop body
LE: loop exit
PB: predicated region body
PF: predicated region fallthrough
CT: control target
= control target key end

     0   :  { %v294_v0 = vmov 16.0   ;;  %vm99_vm6 = vcmask 1040384   ;;  %vm100_vm7 = vsmask.f32 256  ;;  %vm104_vm8 = vcmask 1044480   ;;  %s295_s29 = smov 64   ;;  %s376_s1 = inlined_call_operand.vmem [shape: f32[1,2,32], index: 1, kind: input, shape index: {}]   ;;  %s377_s2 = inlined_call_operand.vmem [shape: f32[2,32], index: 2, kind: input, shape index: {}]   ;;  %s378_s0 = inlined_call_operand.vmem [shape: f32[2,8,32], index: 0, kind: input, shape index: {}]   ;;  %s379_s3 = inlined_call_operand.vmem [shape: bf16[96,32], index: 3, kind: input, shape index: {}]   ;;  %s380_s4 = inlined_call_operand.vmem [shape: f32[2,8,32], index: 4, kind: output, shape index: {0}]   ;;  %s381_s5 = inlined_call_operand.vmem [shape: f32[1,2,32], index: 5, kind: output, shape index: {1}]  }
   0x1   :  { %286 = vrcp.f32 %v294_v0  ;;  %v20_v5 = vld [vmem:[%s376_s1] sm:$0x3]  ;;  %v23_v23 = vld [vmem:[%s378_s0 + $0x8] sm:$0xff]  ;;  %v280_v50 = vld [vmem:[%s379_s3 + $0x18] sm:$0xff]  ;;  %vm105_vm9 = vsmask.f32 4352 }
   0x2   :  { %v24_v17 = vld [vmem:[%s377_s2] sm:$0x3]  ;;  %v282_v40 = vld [vmem:[%s379_s3 + $0x28] sm:$0xff]  ;;  %vm101_vm10 = vmand %vm99_vm6, %vm100_vm7  ;;  %s296_s30 = smov 32   ;;  %vm135_vm12 = vcmask 261120   ;;  %vm140_vm13 = vcmask 523264  }
   0x3   :  { %v51_v20 = vrot.slane %v24_v17, 7  ;;  %v22_v22 = vld [vmem:[%s378_s0] sm:$0xff]  ;;  %v60_v30 = vperm.slane %v24_v17, 1  ;;  %204 = vmatpush.bf16.msra.mxu0 %v282_v40  ;;  %vm106_vm11 = vmand %vm104_vm8, %vm105_vm9  ;;  %vm198_vm14 = vcmask 785408   ;;  %vm240_vm15 = vcmask 254976  }
   0x4   :  { %v281_v44 = vld [vmem:[%s379_s3 + $0x20] sm:$0xff] }
   0x7   :  { %v287_v1 = vpop.eup %286  ;;  %205 = vmatpush.bf16.msra.mxu0 %v281_v44 }
   0x8   :  { %v26_v2 = vmul.f32 16.0, %v287_v1  ;;  %vm30_vm0 = vweird.f32 %v287_v1 }
   0xa   :  { %v27_v3 = vsub.f32 1.0, %v26_v2 }
   0xb   :  { %206 = vmatpush.bf16.msra.mxu0 %v280_v50 }
   0xc   :  { %v28_v4 = vmul.f32 %v287_v1, %v27_v3 }
   0xe   :  { %v29_v6 = vadd.f32 %v287_v1, %v28_v4 }
  0x10   :  { %v31_v7 = vsel %vm30_vm0, %v287_v1, %v29_v6 }
  0x11   :  { %v32_v8 = vmul.f32 %v31_v7, %v20_v5 }
  0x13   :  { %v33_v9 = vmul.f32 %v32_v8, %v32_v8  ;;  %v54_v21 = vperm.slane %v32_v8, 0 }
  0x15   :  { %v35_v10 = vrot.slane %v33_v9, 7  ;;  %v55_v27 = vsub.f32 %v22_v22, %v54_v21  ;;  %v56_v28 = vsub.f32 %v23_v23, %v54_v21 }
  0x17   :  { %v37_v11 = vsub.f32 %v32_v8, %v35_v10 }
  0x19   :  { %v38_v12 = vmax.f32 %v37_v11, 0.0 }
  0x1b   :  { %v39_v13 = vadd.f32 1e-05, %v38_v12  ;;  %v279_v12 = vld [vmem:[%s379_s3 + $0x10] sm:$0xff] }
  0x1c   :  { %207 = vmatpush.bf16.msra.mxu0 %v279_v12 }
  0x1d   :  { %288 = vrsqrt.f32 %v39_v13  ;;  %vm46_vm1 = vweird.f32 %v39_v13 }
  0x23   :  { %v289_v14 = vpop.eup %288 }
  0x24   :  { %v41_v15 = vmul.f32 %v289_v14, %v39_v13  ;;  %vm47_vm2 = vweird.f32 %v289_v14  ;;  %v278_v13 = vld [vmem:[%s379_s3 + $0x8] sm:$0xff] }
  0x25   :  { %vm48_vm3 = vmor %vm46_vm1, %vm47_vm2  ;;  %208 = vmatpush.bf16.msra.mxu0 %v278_v13 }
  0x26   :  { %v42_v16 = vmul.f32 %v289_v14, %v41_v15 }
  0x28   :  { %v43_v18 = vmul.f32 0.5, %v42_v16 }
  0x2a   :  { %v44_v19 = vsub.f32 1.5, %v43_v18 }
  0x2c   :  { %v45_v24 = vmul.f32 %v289_v14, %v44_v19 }
  0x2e   :  { %v49_v25 = vsel %vm48_vm3, %v289_v14, %v45_v24  ;;  %v277_v14 = vld [vmem:[%s379_s3] sm:$0xff] }
  0x2f   :  { %v53_v26 = vmul.f32 %v51_v20, %v49_v25  ;;  %209 = vmatpush.bf16.msra.mxu0 %v277_v14 }
  0x31   :  { %v57_v29 = vperm.slane %v53_v26, 1 }
  0x33   :  { %v58_v31 = vmul.f32 %v57_v29, %v55_v27  ;;  %v59_v32 = vmul.f32 %v57_v29, %v56_v28 }
  0x35   :  { %v61_v33 = vadd.f32 %v60_v30, %v58_v31  ;;  %v62_v34 = vadd.f32 %v60_v30, %v59_v32 }
  0x37   :  { %v65_v35 = vmin.f32 %v61_v33, 0.0  ;;  %v66_v36 = vmin.f32 %v62_v34, 0.0  ;;  %vm63_vm4 = vcmp.gt.f32.partialorder %v61_v33, 0.0  ;;  %vm64_vm5 = vcmp.gt.f32.partialorder %v62_v34, 0.0 }
  0x39   :  { %v67_v37 = vmul.f32 1.442695, %v65_v35  ;;  %v69_v38 = vmul.f32 1.442695, %v66_v36 }
  0x3b   :  { %290 = vpow2.f32 %v67_v37 }
  0x3c   :  { %292 = vpow2.f32 %v69_v38 }
  0x41   :  { %v291_v39 = vpop.eup %290 }
  0x42   :  { %v293_v41 = vpop.eup %292  ;;  %v250_v42 = vadd.f32 -1.0, %v291_v39 }
  0x43   :  { %v251_v43 = vadd.f32 -1.0, %v293_v41 }
  0x44   :  { %v73_v45 = vsel %vm63_vm4, %v61_v33, %v250_v42 }
  0x45   :  { %v74_v46 = vsel %vm64_vm5, %v62_v34, %v251_v43  ;;  %v75_v47 = vpack.c.bf16 %v73_v45, %v73_v45 }
  0x46   :  { %v76_v48 = vpack.c.bf16 %v74_v46, %v74_v46 }
  0x47   :  { %v79_v49 = vunpack.c.l.b16 %v75_v47 }
  0x48   :  { %v80_v51 = vunpack.c.l.b16 %v76_v48 }
  0x49   :  { %v81_v52 = vpack.c.b16 %v79_v49, %v79_v49 }
  0x4a   :  { %v82_v53 = vpack.c.b16 %v80_v51, %v80_v51 }
  0x4b   :  { %v84_v54 = vshrl.u32 %v81_v52, 16  ;;  %v87_v55 = vshll.u32 %v81_v52, 16 }
  0x4c   :  { %v91_v56 = vshrl.u32 %v82_v53, 16  ;;  %v94_v57 = vshll.u32 %v82_v53, 16 }
  0x4d   :  { %v86_v58 = vrot.slane %v84_v54, 7 }
  0x4e   :  { %v93_v59 = vrot.slane %v91_v56, 7 }
  0x4f   :  { %v89_v60 = vor.u32 %v87_v55, %v86_v58 }
  0x50   :  { %v96_v61 = vor.u32 %v94_v57, %v93_v59 }
  0x51   :  { %v102_v62 = vsel %vm101_vm10, 0, %v89_v60 }
  0x52   :  { %v103_v63 = vsel %vm101_vm10, 0, %v96_v61  ;;  %v107_v0 = vsel %vm106_vm11, %v102_v62, 0 }
  0x53   :  { %v108_v1 = vsel %vm106_vm11, %v103_v63, 0  ;;  %v110_v2 = vshrl.u32 %v107_v0, 16  ;;  %v112_v3 = vshll.u32 %v107_v0, 16  ;;  %v129_v4 = vrot.slane %v107_v0, 1 }
  0x54   :  { %v119_v6 = vshll.u32 %v108_v1, 16  ;;  %v117_v8 = vshrl.u32 %v108_v1, 16  ;;  %v130_v10 = vrot.slane %v108_v1, 1 }
  0x55   :  { %v114_v5 = vrot.slane %v112_v3, 1  ;;  %131 = vrot.lane.b32.xlu1 %v129_v4, %s295_s29 }
  0x56   :  { %v121_v9 = vrot.slane %v119_v6, 1 }
  0x57   :  { %v115_v7 = vor.u32 %v114_v5, %v110_v2 }
  0x58   :  { %v122_v11 = vor.u32 %v121_v9, %v117_v8 }
  0x59   :  { %123 = vrot.lane.b32.xlu0 %v115_v7, %s296_s30 }
  0x5d   :  { %133 = vrot.lane.b32.xlu1 %v130_v10, %s295_s29 }
  0x61   :  { %125 = vrot.lane.b32.xlu0 %v122_v11, %s296_s30 }
  0xc7   :  { %v132_v15 = vpop.permute.xlu1 %131 }
  0xcb   :  { %v124_v16 = vpop.permute.xlu0 %123 }
  0xcc   :  { %v137_v17 = vsel %vm135_vm12, %v107_v0, %v124_v16 }
  0xcd   :  { %v142_v19 = vsel %vm140_vm13, %v137_v17, %v132_v15 }
  0xce   :  { %v159_v23 = vunpack.c.l.b16 %v142_v19 }
  0xcf   :  { %v134_v18 = vpop.permute.xlu1 %133 }
  0xd3   :  { %v126_v20 = vpop.permute.xlu0 %125 }
  0xd4   :  { %v139_v21 = vsel %vm135_vm12, %v108_v1, %v126_v20 }
  0xd5   :  { %v144_v22 = vsel %vm140_vm13, %v139_v21, %v134_v18 }
  0xd6   :  { %v160_v24 = vunpack.c.l.b16 %v144_v22 }
  0xd8   :  { %v161_v25 = vpack.c.b16 %v160_v24, %v159_v23 }
  0xda   :  { %276 = vmatmul.msk.bf16.vlgmr.msra.gmra.mxu0 %vm198_vm14, %v161_v25 }
 0x157   :  { %v211_v26 = vpop.f32.mrf.mxu0 }
 0x158   :  { %216 = vst.msk [vmem:[%s380_s4] sm:$0xff] %vm135_vm12, %v211_v26  ;;  %v227_v27 = vmul.f32 %v211_v26, %v211_v26  ;;  %v218_v29 = vsel %vm135_vm12, %v211_v26, 0.0 }
 0x15a   :  { %v229_v33 = vsel %vm135_vm12, %v227_v27, 0.0 }
 0x15f   :  { %v213_v28 = vpop.f32.mrf.mxu0 }
 0x160   :  { %217 = vst.msk [vmem:[%s380_s4 + $0x8] sm:$0xff] %vm135_vm12, %v213_v28  ;;  %v219_v30 = vsel %vm135_vm12, %v213_v28, 0.0  ;;  %v228_v31 = vmul.f32 %v213_v28, %v213_v28 }
 0x161   :  { %v220_v32 = vadd.f32 %v219_v30, %v218_v29 }
 0x162   :  { %v230_v34 = vsel %vm135_vm12, %v228_v31, 0.0 }
 0x163   :  { %v221_v35 = vrot.slane %v220_v32, 4  ;;  %v231_v36 = vadd.f32 %v230_v34, %v229_v33 }
 0x165   :  { %v222_v37 = vadd.f32 %v221_v35, %v220_v32  ;;  %v232_v38 = vrot.slane %v231_v36, 4 }
 0x167   :  { %v223_v39 = vrot.slane %v222_v37, 2  ;;  %v233_v40 = vadd.f32 %v232_v38, %v231_v36 }
 0x169   :  { %v224_v41 = vadd.f32 %v223_v39, %v222_v37  ;;  %v234_v42 = vrot.slane %v233_v40, 2 }
 0x16b   :  { %v225_v43 = vrot.slane %v224_v41, 1  ;;  %v235_v44 = vadd.f32 %v234_v42, %v233_v40 }
 0x16d   :  { %v236_v45 = vrot.slane %v235_v44, 1  ;;  %v226_v46 = vadd.f32 %v225_v43, %v224_v41 }
 0x16f   :  { %v237_v47 = vadd.f32 %v236_v45, %v235_v44 }
 0x171   :  { %v239_v48 = vsel %vm99_vm6, %v226_v46, %v237_v47 }
 0x172   :  { %241 = vst.msk [vmem:[%s381_s5] sm:$0x3] %vm240_vm15, %v239_v48 }

// kernel: se_res1d_forward.37
= control target key start
LH: loop header
LB: loop body
LE: loop exit
PB: predicated region body
PF: predicated region fallthrough
CT: control target
= control target key end

     0   :  { %v262_v2 = vmov 16.0   ;;  %v263_v23 = vmov 8.0   ;;  %vm108_vm4 = vcmask 261120   ;;  %vm138_vm6 = vcmask 1041409   ;;  %s371_s6 = inlined_call_operand.vmem [shape: f32[32,2], index: 6, kind: input, shape index: {}]   ;;  %s372_s1 = inlined_call_operand.vmem [shape: f32[1,2,32], index: 1, kind: input, shape index: {}]   ;;  %s373_s2 = inlined_call_operand.vmem [shape: f32[2,32], index: 2, kind: input, shape index: {}]   ;;  %s374_s0 = inlined_call_operand.vmem [shape: f32[2,8,32], index: 0, kind: input, shape index: {}]   ;;  %s375_s7 = inlined_call_operand.vmem [shape: f32[2,32], index: 7, kind: input, shape index: {}]   ;;  %s376_s4 = inlined_call_operand.vmem [shape: f32[1,2,32], index: 4, kind: input, shape index: {}]   ;;  %s377_s5 = inlined_call_operand.vmem [shape: f32[2,32], index: 5, kind: input, shape index: {}]   ;;  %s378_s3 = inlined_call_operand.vmem [shape: f32[2,8,32], index: 3, kind: input, shape index: {}]   ;;  %s379_s8 = inlined_call_operand.vmem [shape: f32[2,8,32], index: 8, kind: output, shape index: {}]  }
   0x1   :  { %v135_v0 = vld [vmem:[%s371_s6 + $0x18] sm:$0xff]  ;;  %v134_v1 = vld [vmem:[%s371_s6 + $0x10] sm:$0xff]  ;;  %246 = vrcp.f32 %v262_v2  ;;  %v133_v3 = vld [vmem:[%s371_s6 + $0x8] sm:$0xff]  ;;  %vm168_vm7 = vcmask 1041408   ;;  %vm164_vm8 = vcmask 15360  }
   0x2   :  { %154 = vmatpush.msra.mxu0 %v135_v0  ;;  %v132_v4 = vld [vmem:[%s371_s6] sm:$0xff]  ;;  %v34_v28 = vld [vmem:[%s374_s0 + $0x8] sm:$0xff] }
   0x3   :  { %v29_v9 = vld [vmem:[%s372_s1] sm:$0x3] }
   0x4   :  { %155 = vmatpush.msra.mxu0 %v134_v1  ;;  %v35_v21 = vld [vmem:[%s373_s2] sm:$0x3] }
   0x5   :  { %v62_v25 = vrot.slane %v35_v21, 7  ;;  %v33_v27 = vld [vmem:[%s374_s0] sm:$0xff]  ;;  %v71_v36 = vperm.slane %v35_v21, 1 }
   0x6   :  { %156 = vmatpush.msra.mxu0 %v133_v3  ;;  %v163_v63 = vld [vmem:[%s375_s7] sm:$0x3] }
   0x7   :  { %v247_v5 = vpop.eup %246  ;;  %240 = vmatpush.msk.msra.mxu1 %vm168_vm7, %v163_v63  ;;  %v31_v2 = vld [vmem:[%s376_s4] sm:$0x3] }
   0x8   :  { %157 = vmatpush.msra.mxu0 %v132_v4  ;;  %v37_v6 = vmul.f32 16.0, %v247_v5  ;;  %vm41_vm0 = vweird.f32 %v247_v5 }
   0xa   :  { %v38_v7 = vsub.f32 1.0, %v37_v6 }
   0xc   :  { %v39_v8 = vmul.f32 %v247_v5, %v38_v7 }
   0xe   :  { %v40_v10 = vadd.f32 %v247_v5, %v39_v8 }
  0x10   :  { %v324_v11 = vsel %vm41_vm0, %v247_v5, %v40_v10 }
  0x11   :  { %v43_v12 = vmul.f32 %v324_v11, %v29_v9  ;;  %v77_v3 = vmul.f32 %v324_v11, %v31_v2  ;;  %v76_v11 = vld [vmem:[%s377_s5] sm:$0x3] }
  0x12   :  { %v96_v21 = vrot.slane %v76_v11, 7 }
  0x13   :  { %v44_v13 = vmul.f32 %v43_v12, %v43_v12  ;;  %v65_v26 = vperm.slane %v43_v12, 0  ;;  %v78_v4 = vmul.f32 %v77_v3, %v77_v3 }
  0x15   :  { %v46_v14 = vrot.slane %v44_v13, 7  ;;  %v66_v33 = vsub.f32 %v33_v27, %v65_v26  ;;  %v67_v34 = vsub.f32 %v34_v28, %v65_v26  ;;  %v80_v5 = vrot.slane %v78_v4, 7  ;;  %v74_v26 = vld [vmem:[%s378_s3] sm:$0xff]  ;;  %v75_v28 = vld [vmem:[%s378_s3 + $0x8] sm:$0xff] }
  0x17   :  { %v48_v15 = vsub.f32 %v43_v12, %v46_v14  ;;  %v82_v6 = vsub.f32 %v77_v3, %v80_v5 }
  0x19   :  { %v49_v16 = vmax.f32 %v48_v15, 0.0  ;;  %v83_v7 = vmax.f32 %v82_v6, 0.0 }
  0x1b   :  { %v50_v17 = vadd.f32 1e-05, %v49_v16  ;;  %v84_v8 = vadd.f32 1e-05, %v83_v7 }
  0x1d   :  { %248 = vrsqrt.f32 %v50_v17  ;;  %vm57_vm1 = vweird.f32 %v50_v17  ;;  %vm91_vm9 = vweird.f32 %v84_v8 }
  0x1e   :  { %250 = vrcp.f32 %v263_v23 }
  0x1f   :  { %252 = vrsqrt.f32 %v84_v8 }
  0x23   :  { %v249_v18 = vpop.eup %248 }
  0x24   :  { %v52_v19 = vmul.f32 %v249_v18, %v50_v17  ;;  %vm58_vm2 = vweird.f32 %v249_v18  ;;  %v251_v30 = vpop.eup %250 }
  0x25   :  { %vm59_vm3 = vmor %vm57_vm1, %vm58_vm2  ;;  %v124_v37 = vmul.f32 8.0, %v251_v30  ;;  %vm128_vm5 = vweird.f32 %v251_v30  ;;  %v253_v9 = vpop.eup %252 }
  0x26   :  { %v53_v20 = vmul.f32 %v249_v18, %v52_v19  ;;  %v86_v10 = vmul.f32 %v253_v9, %v84_v8  ;;  %vm92_vm10 = vweird.f32 %v253_v9 }
  0x27   :  { %v125_v42 = vsub.f32 1.0, %v124_v37  ;;  %vm93_vm11 = vmor %vm91_vm9, %vm92_vm10  ;;  %v105_v37 = vperm.slane %v76_v11, 1 }
  0x28   :  { %v54_v22 = vmul.f32 0.5, %v53_v20  ;;  %v87_v12 = vmul.f32 %v253_v9, %v86_v10 }
  0x29   :  { %v126_v47 = vmul.f32 %v251_v30, %v125_v42 }
  0x2a   :  { %v55_v24 = vsub.f32 1.5, %v54_v22  ;;  %v88_v16 = vmul.f32 0.5, %v87_v12 }
  0x2b   :  { %v127_v52 = vadd.f32 %v251_v30, %v126_v47 }
  0x2c   :  { %v56_v29 = vmul.f32 %v249_v18, %v55_v24  ;;  %v89_v17 = vsub.f32 1.5, %v88_v16  ;;  %v99_v24 = vperm.slane %v77_v3, 0 }
  0x2d   :  { %v129_v57 = vsel %vm128_vm5, %v251_v30, %v127_v52 }
  0x2e   :  { %v60_v31 = vsel %vm59_vm3, %v249_v18, %v56_v29  ;;  %v90_v19 = vmul.f32 %v253_v9, %v89_v17  ;;  %v100_v29 = vsub.f32 %v74_v26, %v99_v24 }
  0x2f   :  { %v64_v32 = vmul.f32 %v62_v25, %v60_v31 }
  0x30   :  { %v94_v22 = vsel %vm93_vm11, %v253_v9, %v90_v19 }
  0x31   :  { %v68_v35 = vperm.slane %v64_v32, 1  ;;  %v98_v23 = vmul.f32 %v96_v21, %v94_v22 }
  0x33   :  { %v69_v38 = vmul.f32 %v68_v35, %v66_v33  ;;  %v70_v39 = vmul.f32 %v68_v35, %v67_v34  ;;  %v102_v30 = vperm.slane %v98_v23, 1  ;;  %v101_v33 = vsub.f32 %v75_v28, %v99_v24 }
  0x35   :  { %v336_v40 = vadd.f32 %v71_v36, %v69_v38  ;;  %v338_v41 = vadd.f32 %v71_v36, %v70_v39  ;;  %v103_v36 = vmul.f32 %v102_v30, %v100_v29  ;;  %v104_v42 = vmul.f32 %v102_v30, %v101_v33 }
  0x37   :  { %v109_v43 = vsel %vm108_vm4, %v336_v40, 0.0  ;;  %v116_v44 = vsel %vm108_vm4, %v338_v41, 0.0 }
  0x38   :  { %v110_v45 = vrot.slane %v109_v43, 4  ;;  %v117_v46 = vrot.slane %v116_v44, 4 }
  0x3a   :  { %v111_v48 = vadd.f32 %v110_v45, %v109_v43  ;;  %v118_v49 = vadd.f32 %v117_v46, %v116_v44  ;;  %v106_v45 = vadd.f32 %v105_v37, %v103_v36 }
  0x3c   :  { %v112_v50 = vrot.slane %v111_v48, 2  ;;  %v119_v51 = vrot.slane %v118_v49, 2 }
  0x3e   :  { %v113_v53 = vadd.f32 %v112_v50, %v111_v48  ;;  %v120_v54 = vadd.f32 %v119_v51, %v118_v49  ;;  %v107_v48 = vadd.f32 %v105_v37, %v104_v42 }
  0x40   :  { %v114_v55 = vrot.slane %v113_v53, 1  ;;  %v121_v56 = vrot.slane %v120_v54, 1 }
  0x42   :  { %v115_v58 = vadd.f32 %v114_v55, %v113_v53  ;;  %v122_v59 = vadd.f32 %v121_v56, %v120_v54 }
  0x44   :  { %v130_v60 = vmul.f32 %v129_v57, %v115_v58  ;;  %v131_v61 = vmul.f32 %v129_v57, %v122_v59 }
  0x46   :  { %v139_v62 = vsel %vm138_vm6, %v131_v61, %v130_v60 }
  0x47   :  { %239 = vmatmul.msk.f32.vlgmr.msra.gmra.mxu0 %vm108_vm4, %v139_v62 }
  0xc4   :  { %v159_v0 = vpop.f32.mrf.mxu0 }
  0xc5   :  { %v162_v1 = vmax.f32 %v159_v0, 0.0 }
  0xc7   :  { %241 = vmatmul.msk.f32.vlgmr.msra.gmra.mxu1 %vm164_vm8, %v162_v1 }
 0x144   :  { %v189_v13 = vpop.f32.mrf.mxu1 }
 0x145   :  { %v192_v14 = vsub.f32 0.0, %v189_v13 }
 0x147   :  { %v193_v15 = vmul.f32 1.442695, %v192_v14 }
 0x149   :  { %254 = vpow2.f32 %v193_v15 }
 0x14f   :  { %v255_v18 = vpop.eup %254 }
 0x150   :  { %v195_v20 = vadd.f32 1.0, %v255_v18 }
 0x152   :  { %256 = vrcp.f32 %v195_v20  ;;  %v207_v32 = vand.u32 2147483648, %v195_v20  ;;  %v205_v35 = vand.u32 2147483647, %v195_v20  ;;  %vm201_vm13 = vweird.f32 %v195_v20 }
 0x154   :  { %v208_v39 = vor.u32 1.1754944e-38, %v207_v32  ;;  %vm206_vm15 = vcmp.eq.f32.partialorder %v205_v35, 8.507059e+37 }
 0x158   :  { %v257_v25 = vpop.eup %256 }
 0x159   :  { %v197_v27 = vmul.f32 %v257_v25, %v195_v20  ;;  %vm202_vm12 = vweird.f32 %v257_v25 }
 0x15a   :  { %vm203_vm14 = vmor %vm201_vm13, %vm202_vm12 }
 0x15b   :  { %v198_v31 = vsub.f32 1.0, %v197_v27 }
 0x15d   :  { %v199_v34 = vmul.f32 %v257_v25, %v198_v31 }
 0x15f   :  { %v200_v38 = vadd.f32 %v257_v25, %v199_v34 }
 0x161   :  { %v204_v43 = vsel %vm203_vm14, %v257_v25, %v200_v38 }
 0x162   :  { %v209_v44 = vsel %vm206_vm15, %v208_v39, %v204_v43 }
 0x163   :  { %v212_v46 = vrot.slane %v209_v44, 1  ;;  %v213_v47 = vperm.slane %v209_v44, 0 }
 0x165   :  { %v214_v49 = vperm.slane %v212_v46, 0  ;;  %v217_v50 = vmul.f32 %v213_v47, %v336_v40 }
 0x167   :  { %v218_v51 = vmul.f32 %v214_v49, %v338_v41  ;;  %v219_v52 = vadd.f32 %v217_v50, %v106_v45 }
 0x169   :  { %v220_v53 = vadd.f32 %v218_v51, %v107_v48  ;;  %v223_v54 = vmin.f32 %v219_v52, 0.0  ;;  %vm221_vm0 = vcmp.gt.f32.partialorder %v219_v52, 0.0 }
 0x16b   :  { %v224_v55 = vmin.f32 %v220_v53, 0.0  ;;  %v225_v56 = vmul.f32 1.442695, %v223_v54  ;;  %vm222_vm1 = vcmp.gt.f32.partialorder %v220_v53, 0.0 }
 0x16d   :  { %258 = vpow2.f32 %v225_v56  ;;  %v227_v57 = vmul.f32 1.442695, %v224_v55 }
 0x16f   :  { %260 = vpow2.f32 %v227_v57 }
 0x173   :  { %v259_v58 = vpop.eup %258 }
 0x174   :  { %v242_v59 = vadd.f32 -1.0, %v259_v58 }
 0x175   :  { %v261_v60 = vpop.eup %260 }
 0x176   :  { %v243_v61 = vadd.f32 -1.0, %v261_v60  ;;  %v231_v62 = vsel %vm221_vm0, %v219_v52, %v242_v59 }
 0x177   :  { %233 = vst.msk [vmem:[%s379_s8] sm:$0xff] %vm108_vm4, %v231_v62 }
 0x178   :  { %v232_v40 = vsel %vm222_vm1, %v220_v53, %v243_v61 }
 0x179   :  { %234 = vst.msk [vmem:[%s379_s8 + $0x8] sm:$0xff] %vm108_vm4, %v232_v40 }

// kernel: se_res1d_forward.38
= control target key start
LH: loop header
LB: loop body
LE: loop exit
PB: predicated region body
PF: predicated region fallthrough
CT: control target
= control target key end

     0   :  { %s212_s24 = smov 64   ;;  %s213_s27 = smov 32   ;;  %vm52_vm0 = vcmask 261120   ;;  %vm59_vm1 = vcmask 523264   ;;  %vm117_vm2 = vcmask 785408   ;;  %vm157_vm3 = vcmask 1040384   ;;  %s287_s0 = inlined_call_operand.vmem [shape: bf16[2,10,32], index: 0, kind: input, shape index: {}]   ;;  %s288_s1 = inlined_call_operand.vmem [shape: bf16[96,32], index: 1, kind: input, shape index: {}]   ;;  %s289_s2 = inlined_call_operand.vmem [shape: f32[2,8,32], index: 2, kind: output, shape index: {0}]   ;;  %s290_s3 = inlined_call_operand.vmem [shape: f32[1,2,32], index: 3, kind: output, shape index: {1}]  }
   0x1   :  { %v171_v0 = vld [vmem:[%s287_s0] sm:$0xf]  ;;  %v202_v1 = vld [vmem:[%s287_s0] sm:$0x10]  ;;  %v175_v2 = vld [vmem:[%s287_s0 + $0x8] sm:$0xf] }
   0x2   :  { %v172_v3 = vor.u32 %v202_v1, %v171_v0  ;;  %v203_v4 = vld [vmem:[%s287_s0 + $0x8] sm:$0x10]  ;;  %v208_v10 = vld [vmem:[%s288_s1 + $0x20] sm:$0xff]  ;;  %v207_v14 = vld [vmem:[%s288_s1 + $0x18] sm:$0xff]  ;;  %vm159_vm4 = vcmask 254976  }
   0x3   :  { %v209_v5 = vld [vmem:[%s288_s1 + $0x28] sm:$0xff]  ;;  %v176_v6 = vor.u32 %v203_v4, %v175_v2  ;;  %v206_v19 = vld [vmem:[%s288_s1 + $0x10] sm:$0xff]  ;;  %v204_v21 = vld [vmem:[%s288_s1] sm:$0xff] }
   0x4   :  { %v29_v7 = vshrl.u32 %v172_v3, 16  ;;  %v31_v8 = vshll.u32 %v172_v3, 16  ;;  %v46_v9 = vrot.slane %v172_v3, 1  ;;  %123 = vmatpush.bf16.msra.mxu0 %v209_v5  ;;  %v205_v20 = vld [vmem:[%s288_s1 + $0x8] sm:$0xff]  ;;  %v14_v24 = vld [vmem:[%s287_s0] sm:$0xf] }
   0x5   :  { %v38_v12 = vshll.u32 %v176_v6, 16  ;;  %v36_v15 = vshrl.u32 %v176_v6, 16  ;;  %v47_v17 = vrot.slane %v176_v6, 1  ;;  %v16_v26 = vld [vmem:[%s287_s0 + $0x8] sm:$0xf] }
   0x6   :  { %v33_v11 = vrot.slane %v31_v8, 1  ;;  %48 = vrot.lane.b32.xlu1 %v46_v9, %s212_s24 }
   0x7   :  { %v40_v16 = vrot.slane %v38_v12, 1 }
   0x8   :  { %v34_v13 = vor.u32 %v33_v11, %v29_v7  ;;  %124 = vmatpush.bf16.msra.mxu0 %v208_v10 }
   0x9   :  { %v41_v18 = vor.u32 %v40_v16, %v36_v15 }
   0xa   :  { %42 = vrot.lane.b32.xlu0 %v34_v13, %s213_s27 }
   0xc   :  { %125 = vmatpush.bf16.msra.mxu0 %v207_v14 }
   0xe   :  { %50 = vrot.lane.b32.xlu1 %v47_v17, %s212_s24 }
  0x10   :  { %126 = vmatpush.bf16.msra.mxu0 %v206_v19 }
  0x12   :  { %44 = vrot.lane.b32.xlu0 %v41_v18, %s213_s27 }
  0x14   :  { %127 = vmatpush.bf16.msra.mxu0 %v205_v20 }
  0x18   :  { %128 = vmatpush.bf16.msra.mxu0 %v204_v21 }
  0x78   :  { %v49_v22 = vpop.permute.xlu1 %48 }
  0x7c   :  { %v43_v23 = vpop.permute.xlu0 %42 }
  0x7d   :  { %v55_v25 = vsel %vm52_vm0, %v14_v24, %v43_v23 }
  0x7e   :  { %v61_v28 = vsel %vm59_vm1, %v55_v25, %v49_v22 }
  0x7f   :  { %v78_v32 = vunpack.c.l.b16 %v61_v28 }
  0x80   :  { %v51_v27 = vpop.permute.xlu1 %50 }
  0x84   :  { %v45_v29 = vpop.permute.xlu0 %44 }
  0x85   :  { %v58_v30 = vsel %vm52_vm0, %v16_v26, %v45_v29 }
  0x86   :  { %v63_v31 = vsel %vm59_vm1, %v58_v30, %v51_v27 }
  0x87   :  { %v79_v33 = vunpack.c.l.b16 %v63_v31 }
  0x89   :  { %v80_v34 = vpack.c.b16 %v79_v33, %v78_v32 }
  0x8b   :  { %201 = vmatmul.msk.bf16.vlgmr.msra.gmra.mxu0 %vm117_vm2, %v80_v34 }
 0x108   :  { %v130_v35 = vpop.f32.mrf.mxu0 }
 0x109   :  { %135 = vst.msk [vmem:[%s289_s2] sm:$0xff] %vm52_vm0, %v130_v35  ;;  %v146_v36 = vmul.f32 %v130_v35, %v130_v35  ;;  %v137_v38 = vsel %vm52_vm0, %v130_v35, 0.0 }
 0x10b   :  { %v148_v42 = vsel %vm52_vm0, %v146_v36, 0.0 }
 0x110   :  { %v132_v37 = vpop.f32.mrf.mxu0 }
 0x111   :  { %136 = vst.msk [vmem:[%s289_s2 + $0x8] sm:$0xff] %vm52_vm0, %v132_v37  ;;  %v138_v39 = vsel %vm52_vm0, %v132_v37, 0.0  ;;  %v147_v40 = vmul.f32 %v132_v37, %v132_v37 }
 0x112   :  { %v139_v41 = vadd.f32 %v138_v39, %v137_v38 }
 0x113   :  { %v149_v43 = vsel %vm52_vm0, %v147_v40, 0.0 }
 0x114   :  { %v140_v44 = vrot.slane %v139_v41, 4  ;;  %v150_v45 = vadd.f32 %v149_v43, %v148_v42 }
 0x116   :  { %v141_v46 = vadd.f32 %v140_v44, %v139_v41  ;;  %v151_v47 = vrot.slane %v150_v45, 4 }
 0x118   :  { %v142_v48 = vrot.slane %v141_v46, 2  ;;  %v152_v49 = vadd.f32 %v151_v47, %v150_v45 }
 0x11a   :  { %v143_v50 = vadd.f32 %v142_v48, %v141_v46  ;;  %v153_v51 = vrot.slane %v152_v49, 2 }
 0x11c   :  { %v144_v52 = vrot.slane %v143_v50, 1  ;;  %v154_v53 = vadd.f32 %v153_v51, %v152_v49 }
 0x11e   :  { %v155_v54 = vrot.slane %v154_v53, 1  ;;  %v145_v55 = vadd.f32 %v144_v52, %v143_v50 }
 0x120   :  { %v156_v56 = vadd.f32 %v155_v54, %v154_v53 }
 0x122   :  { %v158_v57 = vsel %vm157_vm3, %v145_v55, %v156_v56 }
 0x123   :  { %160 = vst.msk [vmem:[%s290_s3] sm:$0x3] %vm159_vm4, %v158_v57 }

// kernel: se_res1d_forward.40
= control target key start
LH: loop header
LB: loop body
LE: loop exit
PB: predicated region body
PF: predicated region fallthrough
CT: control target
= control target key end

     0   :  { %v220_v2 = vmov 16.0   ;;  %v221_v23 = vmov 8.0   ;;  %vm66_vm4 = vcmask 261120   ;;  %vm96_vm6 = vcmask 1041409   ;;  %s301_s4 = inlined_call_operand.vmem [shape: f32[32,2], index: 4, kind: input, shape index: {}]   ;;  %s302_s1 = inlined_call_operand.vmem [shape: f32[1,2,32], index: 1, kind: input, shape index: {}]   ;;  %s303_s2 = inlined_call_operand.vmem [shape: f32[2,32], index: 2, kind: input, shape index: {}]   ;;  %s304_s0 = inlined_call_operand.vmem [shape: f32[2,8,32], index: 0, kind: input, shape index: {}]   ;;  %s305_s5 = inlined_call_operand.vmem [shape: f32[2,32], index: 5, kind: input, shape index: {}]   ;;  %s306_s3 = inlined_call_operand.vmem [shape: f32[2,8,32], index: 3, kind: input, shape index: {}]   ;;  %s307_s6 = inlined_call_operand.vmem [shape: f32[2,8,32], index: 6, kind: output, shape index: {}]  }
   0x1   :  { %v93_v0 = vld [vmem:[%s301_s4 + $0x18] sm:$0xff]  ;;  %v92_v1 = vld [vmem:[%s301_s4 + $0x10] sm:$0xff]  ;;  %206 = vrcp.f32 %v220_v2  ;;  %v91_v3 = vld [vmem:[%s301_s4 + $0x8] sm:$0xff]  ;;  %vm126_vm7 = vcmask 1041408   ;;  %vm122_vm8 = vcmask 15360  }
   0x2   :  { %112 = vmatpush.msra.mxu0 %v93_v0  ;;  %v90_v4 = vld [vmem:[%s301_s4] sm:$0xff]  ;;  %v26_v28 = vld [vmem:[%s304_s0 + $0x8] sm:$0xff] }
   0x3   :  { %v23_v9 = vld [vmem:[%s302_s1] sm:$0x3] }
   0x4   :  { %113 = vmatpush.msra.mxu0 %v92_v1  ;;  %v27_v21 = vld [vmem:[%s303_s2] sm:$0x3] }
   0x5   :  { %v54_v25 = vrot.slane %v27_v21, 7  ;;  %v25_v27 = vld [vmem:[%s304_s0] sm:$0xff]  ;;  %v63_v36 = vperm.slane %v27_v21, 1 }
   0x6   :  { %114 = vmatpush.msra.mxu0 %v91_v3  ;;  %v121_v63 = vld [vmem:[%s305_s5] sm:$0x3] }
   0x7   :  { %v207_v5 = vpop.eup %206  ;;  %200 = vmatpush.msk.msra.mxu1 %vm126_vm7, %v121_v63 }
   0x8   :  { %115 = vmatpush.msra.mxu0 %v90_v4  ;;  %v29_v6 = vmul.f32 16.0, %v207_v5  ;;  %vm33_vm0 = vweird.f32 %v207_v5 }
   0xa   :  { %v30_v7 = vsub.f32 1.0, %v29_v6 }
   0xc   :  { %v31_v8 = vmul.f32 %v207_v5, %v30_v7 }
   0xe   :  { %v32_v10 = vadd.f32 %v207_v5, %v31_v8 }
  0x10   :  { %v34_v11 = vsel %vm33_vm0, %v207_v5, %v32_v10 }
  0x11   :  { %v35_v12 = vmul.f32 %v34_v11, %v23_v9 }
  0x13   :  { %v36_v13 = vmul.f32 %v35_v12, %v35_v12  ;;  %v57_v26 = vperm.slane %v35_v12, 0 }
  0x15   :  { %v38_v14 = vrot.slane %v36_v13, 7  ;;  %v58_v33 = vsub.f32 %v25_v27, %v57_v26  ;;  %v59_v34 = vsub.f32 %v26_v28, %v57_v26 }
  0x17   :  { %v40_v15 = vsub.f32 %v35_v12, %v38_v14 }
  0x19   :  { %v41_v16 = vmax.f32 %v40_v15, 0.0 }
  0x1b   :  { %v42_v17 = vadd.f32 1e-05, %v41_v16 }
  0x1d   :  { %208 = vrsqrt.f32 %v42_v17  ;;  %vm49_vm1 = vweird.f32 %v42_v17 }
  0x1e   :  { %210 = vrcp.f32 %v221_v23 }
  0x23   :  { %v209_v18 = vpop.eup %208 }
  0x24   :  { %v44_v19 = vmul.f32 %v209_v18, %v42_v17  ;;  %vm50_vm2 = vweird.f32 %v209_v18  ;;  %v211_v30 = vpop.eup %210 }
  0x25   :  { %vm51_vm3 = vmor %vm49_vm1, %vm50_vm2  ;;  %v82_v37 = vmul.f32 8.0, %v211_v30  ;;  %vm86_vm5 = vweird.f32 %v211_v30 }
  0x26   :  { %v45_v20 = vmul.f32 %v209_v18, %v44_v19  ;;  %v177_v19 = vld [vmem:[%s306_s3] sm:$0xff] }
  0x27   :  { %v83_v42 = vsub.f32 1.0, %v82_v37 }
  0x28   :  { %v46_v22 = vmul.f32 0.5, %v45_v20 }
  0x29   :  { %v84_v47 = vmul.f32 %v211_v30, %v83_v42 }
  0x2a   :  { %v47_v24 = vsub.f32 1.5, %v46_v22  ;;  %v178_v22 = vld [vmem:[%s306_s3 + $0x8] sm:$0xff] }
  0x2b   :  { %v85_v52 = vadd.f32 %v211_v30, %v84_v47 }
  0x2c   :  { %v48_v29 = vmul.f32 %v209_v18, %v47_v24 }
  0x2d   :  { %v87_v57 = vsel %vm86_vm5, %v211_v30, %v85_v52 }
  0x2e   :  { %v52_v31 = vsel %vm51_vm3, %v209_v18, %v48_v29 }
  0x2f   :  { %v56_v32 = vmul.f32 %v54_v25, %v52_v31 }
  0x31   :  { %v60_v35 = vperm.slane %v56_v32, 1 }
  0x33   :  { %v61_v38 = vmul.f32 %v60_v35, %v58_v33  ;;  %v62_v39 = vmul.f32 %v60_v35, %v59_v34 }
  0x35   :  { %v64_v40 = vadd.f32 %v63_v36, %v61_v38  ;;  %v65_v41 = vadd.f32 %v63_v36, %v62_v39 }
  0x37   :  { %v67_v43 = vsel %vm66_vm4, %v64_v40, 0.0  ;;  %v74_v44 = vsel %vm66_vm4, %v65_v41, 0.0 }
  0x38   :  { %v68_v45 = vrot.slane %v67_v43, 4  ;;  %v75_v46 = vrot.slane %v74_v44, 4 }
  0x3a   :  { %v69_v48 = vadd.f32 %v68_v45, %v67_v43  ;;  %v76_v49 = vadd.f32 %v75_v46, %v74_v44 }
  0x3c   :  { %v70_v50 = vrot.slane %v69_v48, 2  ;;  %v77_v51 = vrot.slane %v76_v49, 2 }
  0x3e   :  { %v71_v53 = vadd.f32 %v70_v50, %v69_v48  ;;  %v78_v54 = vadd.f32 %v77_v51, %v76_v49 }
  0x40   :  { %v72_v55 = vrot.slane %v71_v53, 1  ;;  %v79_v56 = vrot.slane %v78_v54, 1 }
  0x42   :  { %v73_v58 = vadd.f32 %v72_v55, %v71_v53  ;;  %v80_v59 = vadd.f32 %v79_v56, %v78_v54 }
  0x44   :  { %v88_v60 = vmul.f32 %v87_v57, %v73_v58  ;;  %v89_v61 = vmul.f32 %v87_v57, %v80_v59 }
  0x46   :  { %v97_v62 = vsel %vm96_vm6, %v89_v61, %v88_v60 }
  0x47   :  { %199 = vmatmul.msk.f32.vlgmr.msra.gmra.mxu0 %vm66_vm4, %v97_v62 }
  0xc4   :  { %v117_v0 = vpop.f32.mrf.mxu0 }
  0xc5   :  { %v120_v1 = vmax.f32 %v117_v0, 0.0 }
  0xc7   :  { %201 = vmatmul.msk.f32.vlgmr.msra.gmra.mxu1 %vm122_vm8, %v120_v1 }
 0x144   :  { %v147_v2 = vpop.f32.mrf.mxu1 }
 0x145   :  { %v150_v3 = vsub.f32 0.0, %v147_v2 }
 0x147   :  { %v151_v4 = vmul.f32 1.442695, %v150_v3 }
 0x149   :  { %212 = vpow2.f32 %v151_v4 }
 0x14f   :  { %v213_v5 = vpop.eup %212 }
 0x150   :  { %v153_v6 = vadd.f32 1.0, %v213_v5 }
 0x152   :  { %214 = vrcp.f32 %v153_v6  ;;  %v165_v10 = vand.u32 2147483648, %v153_v6  ;;  %v163_v12 = vand.u32 2147483647, %v153_v6  ;;  %vm159_vm10 = vweird.f32 %v153_v6 }
 0x154   :  { %v166_v14 = vor.u32 1.1754944e-38, %v165_v10  ;;  %vm164_vm12 = vcmp.eq.f32.partialorder %v163_v12, 8.507059e+37 }
 0x158   :  { %v215_v7 = vpop.eup %214 }
 0x159   :  { %v155_v8 = vmul.f32 %v215_v7, %v153_v6  ;;  %vm160_vm9 = vweird.f32 %v215_v7 }
 0x15a   :  { %vm161_vm11 = vmor %vm159_vm10, %vm160_vm9 }
 0x15b   :  { %v156_v9 = vsub.f32 1.0, %v155_v8 }
 0x15d   :  { %v157_v11 = vmul.f32 %v215_v7, %v156_v9 }
 0x15f   :  { %v158_v13 = vadd.f32 %v215_v7, %v157_v11 }
 0x161   :  { %v162_v15 = vsel %vm161_vm11, %v215_v7, %v158_v13 }
 0x162   :  { %v167_v16 = vsel %vm164_vm12, %v166_v14, %v162_v15 }
 0x163   :  { %v170_v17 = vrot.slane %v167_v16, 1  ;;  %v171_v18 = vperm.slane %v167_v16, 0 }
 0x165   :  { %v172_v20 = vperm.slane %v170_v17, 0  ;;  %v175_v21 = vmul.f32 %v171_v18, %v64_v40 }
 0x167   :  { %v176_v23 = vmul.f32 %v172_v20, %v65_v41  ;;  %v179_v24 = vadd.f32 %v177_v19, %v175_v21 }
 0x169   :  { %v180_v25 = vadd.f32 %v178_v22, %v176_v23  ;;  %v183_v26 = vmin.f32 %v179_v24, 0.0  ;;  %vm181_vm13 = vcmp.gt.f32.partialorder %v179_v24, 0.0 }
 0x16b   :  { %v184_v27 = vmin.f32 %v180_v25, 0.0  ;;  %v185_v28 = vmul.f32 1.442695, %v183_v26  ;;  %vm182_vm14 = vcmp.gt.f32.partialorder %v180_v25, 0.0 }
 0x16d   :  { %216 = vpow2.f32 %v185_v28  ;;  %v187_v29 = vmul.f32 1.442695, %v184_v27 }
 0x16f   :  { %218 = vpow2.f32 %v187_v29 }
 0x173   :  { %v217_v30 = vpop.eup %216 }
 0x174   :  { %v202_v31 = vadd.f32 -1.0, %v217_v30 }
 0x175   :  { %v219_v32 = vpop.eup %218 }
 0x176   :  { %v203_v33 = vadd.f32 -1.0, %v219_v32  ;;  %v191_v34 = vsel %vm181_vm13, %v179_v24, %v202_v31 }
 0x177   :  { %193 = vst.msk [vmem:[%s307_s6] sm:$0xff] %vm66_vm4, %v191_v34 }
 0x178   :  { %v192_v35 = vsel %vm182_vm14, %v180_v25, %v203_v33 }
 0x179   :  { %194 = vst.msk [vmem:[%s307_s6 + $0x8] sm:$0xff] %vm66_vm4, %v192_v35 }

// kernel: se_res1d_forward.41
= control target key start
LH: loop header
LB: loop body
LE: loop exit
PB: predicated region body
PF: predicated region fallthrough
CT: control target
= control target key end

     0   :  { %s284_s13 = smov 32   ;;  %vm60_vm0 = vcmask 261120   ;;  %vm67_vm1 = vcmask 523264   ;;  %vm124_vm2 = vcmask 785408   ;;  %vm143_vm3 = vcmask 519168   ;;  %s397_s1 = inlined_call_operand.vmem [shape: bf16[2,5,32], index: 1, kind: input, shape index: {}]   ;;  %s398_s0 = inlined_call_operand.vmem [shape: bf16[2,5,32], index: 0, kind: input, shape index: {}]   ;;  %s399_s2 = inlined_call_operand.vmem [shape: bf16[96,64], index: 2, kind: input, shape index: {}]   ;;  %s400_s3 = inlined_call_operand.vmem [shape: bf16[32,64], index: 3, kind: input, shape index: {}]   ;;  %s401_s4 = inlined_call_operand.vmem [shape: f32[2,4,64], index: 4, kind: output, shape index: {0}]   ;;  %s402_s6 = inlined_call_operand.vmem [shape: f32[2,4,64], index: 6, kind: output, shape index: {2}]   ;;  %s403_s5 = inlined_call_operand.vmem [shape: f32[1,2,64], index: 5, kind: output, shape index: {1}]   ;;  %s404_s7 = inlined_call_operand.vmem [shape: f32[1,2,64], index: 7, kind: output, shape index: {3}]  }
   0x1   :  { %v24_v0 = vld [vmem:[%s397_s1] sm:$0x7]  ;;  %v23_v3 = vld [vmem:[%s398_s0 + $0x4] sm:$0x7]  ;;  %v279_v5 = vld [vmem:[%s399_s2 + $0x28] sm:$0xff]  ;;  %vm161_vm4 = vcmask 1040384  }
   0x2   :  { %v22_v1 = vld [vmem:[%s398_s0] sm:$0x7]  ;;  %v28_v2 = vunpack.c.l.b16 %v24_v0  ;;  %v25_v6 = vld [vmem:[%s397_s1 + $0x4] sm:$0x7]  ;;  %v39_v7 = vunpack.c.l.b16 %v23_v3  ;;  %129 = vmatpush.bf16.msra.mxu0 %v279_v5  ;;  %s285_s0 = smov 64   ;;  %v277_v22 = vld [vmem:[%s399_s2 + $0x18] sm:$0xff] }
   0x3   :  { %v38_v4 = vunpack.c.l.b16 %v22_v1  ;;  %v278_v10 = vld [vmem:[%s399_s2 + $0x20] sm:$0xff]  ;;  %v29_v14 = vunpack.c.l.b16 %v25_v6  ;;  %v276_v23 = vld [vmem:[%s399_s2 + $0x10] sm:$0xff]  ;;  %v275_v24 = vld [vmem:[%s399_s2 + $0x8] sm:$0xff]  ;;  %vm163_vm5 = vcmask 517120  }
   0x4   :  { %v30_v8 = vpack.c.b16 %v28_v2, %v28_v2  ;;  %v41_v11 = vpack.c.b16 %v39_v7, %v39_v7  ;;  %v274_v25 = vld [vmem:[%s399_s2] sm:$0xff]  ;;  %v281_v26 = vld [vmem:[%s400_s3 + $0x8] sm:$0xff] }
   0x5   :  { %v40_v9 = vpack.c.b16 %v38_v4, %v38_v4  ;;  %v31_v18 = vpack.c.b16 %v29_v14, %v29_v14  ;;  %195 = vmatpush.bf16.msra.mxu1 %v281_v26  ;;  %v280_v27 = vld [vmem:[%s400_s3] sm:$0xff] }
   0x6   :  { %32 = vrot.lane.b32.xlu0 %v30_v8, %s284_s13  ;;  %v52_v16 = vshll.u32 %v41_v11, 16  ;;  %130 = vmatpush.bf16.msra.mxu0 %v278_v10  ;;  %v50_v19 = vshrl.u32 %v41_v11, 16 }
   0x7   :  { %v43_v12 = vshrl.u32 %v40_v9, 16  ;;  %v45_v13 = vshll.u32 %v40_v9, 16 }
   0x8   :  { %v54_v20 = vrot.slane %v52_v16, 1 }
   0x9   :  { %v47_v15 = vrot.slane %v45_v13, 1  ;;  %196 = vmatpush.bf16.msra.mxu1 %v280_v27 }
   0xa   :  { %v55_v21 = vor.u32 %v54_v20, %v50_v19  ;;  %131 = vmatpush.bf16.msra.mxu0 %v277_v22 }
   0xb   :  { %v48_v17 = vor.u32 %v47_v15, %v43_v12 }
   0xd   :  { %56 = vrot.lane.b32.xlu1 %v48_v17, %s285_s0 }
   0xe   :  { %34 = vrot.lane.b32.xlu0 %v31_v18, %s284_s13  ;;  %132 = vmatpush.bf16.msra.mxu0 %v276_v23 }
  0x12   :  { %133 = vmatpush.bf16.msra.mxu0 %v275_v24 }
  0x15   :  { %58 = vrot.lane.b32.xlu1 %v55_v21, %s285_s0 }
  0x16   :  { %134 = vmatpush.bf16.msra.mxu0 %v274_v25 }
  0x78   :  { %v33_v28 = vpop.permute.xlu0 %32 }
  0x79   :  { %v63_v29 = vsel %vm60_vm0, %v22_v1, %v33_v28 }
  0x7f   :  { %v57_v30 = vpop.permute.xlu1 %56 }
  0x80   :  { %v69_v31 = vsel %vm67_vm1, %v63_v29, %v57_v30  ;;  %v35_v32 = vpop.permute.xlu0 %34 }
  0x81   :  { %84 = vst [vmem:[#allocation1] ss:$4 sm:$0xff] %v69_v31  ;;  %v66_v33 = vsel %vm60_vm0, %v23_v3, %v35_v32 }
  0x87   :  { %v59_v34 = vpop.permute.xlu1 %58 }
  0x88   :  { %v71_v35 = vsel %vm67_vm1, %v66_v33, %v59_v34 }
  0x89   :  { %86 = vst [vmem:[#allocation1 + $0x1] ss:$4 sm:$0xff] %v71_v35 }
  0x90   :  { %v87_v36 = vld.sshfl [vmem:[#allocation1] sm:$0xff pattern:$0x73625140] }
  0x91   :  { %264 = vmatmul.msk.bf16.vlgmr.msra.gmra.mxu0 %vm124_vm2, %v87_v36  ;;  %170 = vst [vmem:[#allocation1] ss:$4 sm:$0xff] %v24_v0 }
  0x92   :  { %173 = vst [vmem:[#allocation1 + $0x1] ss:$4 sm:$0xff] %v25_v6 }
  0x99   :  { %v174_v37 = vld.sshfl [vmem:[#allocation1] sm:$0xff pattern:$0x73625140] }
  0x9a   :  { %273 = vmatmul.msk.bf16.vlgmr.msra.gmra.mxu1 %vm60_vm0, %v174_v37 }
 0x10e   :  { %v136_v38 = vpop.f32.mrf.mxu0 }
 0x10f   :  { %v141_v39 = vrot.slane %v136_v38, 4  ;;  %144 = vst.msk [vmem:[%s401_s4] sm:$0xf] %vm143_vm3, %v136_v38  ;;  %v146_v40 = vsel %vm67_vm1, %v136_v38, 0.0  ;;  %v153_v41 = vmul.f32 %v136_v38, %v136_v38 }
 0x110   :  { %v147_v42 = vrot.slane %v146_v40, 4 }
 0x111   :  { %145 = vst.msk [vmem:[%s401_s4 + $0x4] sm:$0xf] %vm143_vm3, %v141_v39  ;;  %v154_v43 = vsel %vm67_vm1, %v153_v41, 0.0 }
 0x112   :  { %v148_v44 = vadd.f32 %v147_v42, %v146_v40  ;;  %v155_v45 = vrot.slane %v154_v43, 4 }
 0x114   :  { %v149_v46 = vrot.slane %v148_v44, 2  ;;  %v156_v47 = vadd.f32 %v155_v45, %v154_v43 }
 0x116   :  { %v150_v48 = vadd.f32 %v149_v46, %v148_v44  ;;  %v157_v49 = vrot.slane %v156_v47, 2  ;;  %v138_v50 = vpop.f32.mrf.mxu0 }
 0x117   :  { %v198_v51 = vpop.f32.mrf.mxu1 }
 0x118   :  { %v151_v52 = vrot.slane %v150_v48, 1  ;;  %v158_v53 = vadd.f32 %v157_v49, %v156_v47  ;;  %v203_v54 = vrot.slane %v198_v51, 4  ;;  %205 = vst.msk [vmem:[%s402_s6] sm:$0xf] %vm143_vm3, %v198_v51  ;;  %v207_v55 = vsel %vm67_vm1, %v198_v51, 0.0 }
 0x119   :  { %v208_v56 = vrot.slane %v207_v55, 4  ;;  %v214_v57 = vmul.f32 %v198_v51, %v198_v51 }
 0x11a   :  { %v159_v58 = vrot.slane %v158_v53, 1  ;;  %206 = vst.msk [vmem:[%s402_s6 + $0x4] sm:$0xf] %vm143_vm3, %v203_v54  ;;  %v152_v61 = vadd.f32 %v151_v52, %v150_v48 }
 0x11b   :  { %v209_v59 = vadd.f32 %v208_v56, %v207_v55  ;;  %v215_v60 = vsel %vm67_vm1, %v214_v57, 0.0 }
 0x11c   :  { %v160_v62 = vadd.f32 %v159_v58, %v158_v53  ;;  %v216_v63 = vrot.slane %v215_v60, 4 }
 0x11d   :  { %v210_v0 = vrot.slane %v209_v59, 2 }
 0x11e   :  { %v162_v1 = vsel %vm161_vm4, %v152_v61, %v160_v62  ;;  %v217_v2 = vadd.f32 %v216_v63, %v215_v60 }
 0x11f   :  { %164 = vst.msk [vmem:[%s403_s5] sm:$0x3] %vm163_vm5, %v162_v1  ;;  %v211_v3 = vadd.f32 %v210_v0, %v209_v59  ;;  %v200_v4 = vpop.f32.mrf.mxu1 }
 0x120   :  { %v218_v5 = vrot.slane %v217_v2, 2 }
 0x121   :  { %v212_v6 = vrot.slane %v211_v3, 1 }
 0x122   :  { %v219_v7 = vadd.f32 %v218_v5, %v217_v2 }
 0x123   :  { %v213_v9 = vadd.f32 %v212_v6, %v211_v3 }
 0x124   :  { %v220_v8 = vrot.slane %v219_v7, 1 }
 0x126   :  { %v221_v10 = vadd.f32 %v220_v8, %v219_v7 }
 0x128   :  { %v222_v11 = vsel %vm161_vm4, %v213_v9, %v221_v10 }
 0x129   :  { %223 = vst.msk [vmem:[%s404_s7] sm:$0x3] %vm163_vm5, %v222_v11 }

// kernel: se_res1d_forward.42
= control target key start
LH: loop header
LB: loop body
LE: loop exit
PB: predicated region body
PF: predicated region fallthrough
CT: control target
= control target key end

     0   :  { %v381_v0 = vmov 8.0   ;;  %vm99_vm6 = vcmask 1040384   ;;  %vm100_vm7 = vsmask.f32 256  ;;  %vm104_vm8 = vcmask 1042432   ;;  %s382_s6 = smov 64   ;;  %s477_s1 = inlined_call_operand.vmem [shape: f32[1,2,64], index: 1, kind: input, shape index: {}]   ;;  %s478_s2 = inlined_call_operand.vmem [shape: f32[2,64], index: 2, kind: input, shape index: {}]   ;;  %s479_s0 = inlined_call_operand.vmem [shape: f32[2,4,64], index: 0, kind: input, shape index: {}]   ;;  %s480_s3 = inlined_call_operand.vmem [shape: bf16[192,64], index: 3, kind: input, shape index: {}]   ;;  %s481_s4 = inlined_call_operand.vmem [shape: f32[2,4,64], index: 4, kind: output, shape index: {0}]   ;;  %s482_s5 = inlined_call_operand.vmem [shape: f32[1,2,64], index: 5, kind: output, shape index: {1}]  }
   0x1   :  { %373 = vrcp.f32 %v381_v0  ;;  %v20_v5 = vld [vmem:[%s477_s1] sm:$0x3]  ;;  %v23_v23 = vld [vmem:[%s479_s0 + $0x4] sm:$0xf]  ;;  %v366_v40 = vld [vmem:[%s480_s3 + $0x38] sm:$0xff]  ;;  %vm131_vm12 = vcmask 523264  }
   0x2   :  { %v24_v17 = vld [vmem:[%s478_s2] sm:$0x3]  ;;  %247 = vmatpush.bf16.msra.mxu0 %v366_v40  ;;  %v365_v44 = vld [vmem:[%s480_s3 + $0x30] sm:$0xff]  ;;  %v364_v50 = vld [vmem:[%s480_s3 + $0x28] sm:$0xff]  ;;  %vm105_vm9 = vsmask.f32 2304 }
   0x3   :  { %v51_v20 = vrot.slane %v24_v17, 7  ;;  %v22_v22 = vld [vmem:[%s479_s0] sm:$0xf]  ;;  %v60_v30 = vperm.slane %v24_v17, 1  ;;  %vm101_vm10 = vmand %vm99_vm6, %vm100_vm7  ;;  %vm138_vm13 = vcmask 1041408   ;;  %vm276_vm14 = vcmask 519168  }
   0x4   :  { %v363_v56 = vld [vmem:[%s480_s3 + $0x20] sm:$0xff]  ;;  %vm106_vm11 = vmand %vm104_vm8, %vm105_vm9  ;;  %vm296_vm15 = vcmask 517120  }
   0x5   :  { %v359_v17 = vld [vmem:[%s480_s3] sm:$0xff] }
   0x6   :  { %248 = vmatpush.bf16.msra.mxu0 %v365_v44 }
   0x7   :  { %v374_v1 = vpop.eup %373 }
   0x8   :  { %v26_v2 = vmul.f32 8.0, %v374_v1  ;;  %vm30_vm0 = vweird.f32 %v374_v1 }
   0xa   :  { %v27_v3 = vsub.f32 1.0, %v26_v2  ;;  %249 = vmatpush.bf16.msra.mxu0 %v364_v50 }
   0xc   :  { %v28_v4 = vmul.f32 %v374_v1, %v27_v3 }
   0xe   :  { %v29_v6 = vadd.f32 %v374_v1, %v28_v4  ;;  %250 = vmatpush.bf16.msra.mxu0 %v363_v56 }
  0x10   :  { %v31_v7 = vsel %vm30_vm0, %v374_v1, %v29_v6 }
  0x11   :  { %v32_v8 = vmul.f32 %v31_v7, %v20_v5 }
  0x13   :  { %v33_v9 = vmul.f32 %v32_v8, %v32_v8  ;;  %v54_v21 = vperm.slane %v32_v8, 0 }
  0x15   :  { %v35_v10 = vrot.slane %v33_v9, 7  ;;  %v55_v27 = vsub.f32 %v22_v22, %v54_v21  ;;  %v56_v28 = vsub.f32 %v23_v23, %v54_v21 }
  0x17   :  { %v37_v11 = vsub.f32 %v32_v8, %v35_v10 }
  0x19   :  { %v38_v12 = vmax.f32 %v37_v11, 0.0  ;;  %v362_v11 = vld [vmem:[%s480_s3 + $0x18] sm:$0xff] }
  0x1a   :  { %251 = vmatpush.bf16.msra.mxu0 %v362_v11 }
  0x1b   :  { %v39_v13 = vadd.f32 1e-05, %v38_v12  ;;  %v370_v12 = vld [vmem:[%s480_s3 + $0x58] sm:$0xff] }
  0x1c   :  { %264 = vmatpush.bf16.msra.mxu1 %v370_v12 }
  0x1d   :  { %375 = vrsqrt.f32 %v39_v13  ;;  %vm46_vm1 = vweird.f32 %v39_v13 }
  0x23   :  { %v376_v14 = vpop.eup %375 }
  0x24   :  { %v41_v15 = vmul.f32 %v376_v14, %v39_v13  ;;  %vm47_vm2 = vweird.f32 %v376_v14  ;;  %v361_v13 = vld [vmem:[%s480_s3 + $0x10] sm:$0xff] }
  0x25   :  { %vm48_vm3 = vmor %vm46_vm1, %vm47_vm2  ;;  %252 = vmatpush.bf16.msra.mxu0 %v361_v13 }
  0x26   :  { %v42_v16 = vmul.f32 %v376_v14, %v41_v15  ;;  %v360_v15 = vld [vmem:[%s480_s3 + $0x8] sm:$0xff] }
  0x28   :  { %v43_v18 = vmul.f32 0.5, %v42_v16  ;;  %v368_v16 = vld [vmem:[%s480_s3 + $0x48] sm:$0xff] }
  0x29   :  { %253 = vmatpush.bf16.msra.mxu0 %v360_v15 }
  0x2a   :  { %v44_v19 = vsub.f32 1.5, %v43_v18  ;;  %v367_v18 = vld [vmem:[%s480_s3 + $0x40] sm:$0xff] }
  0x2c   :  { %v45_v24 = vmul.f32 %v376_v14, %v44_v19 }
  0x2d   :  { %254 = vmatpush.bf16.msra.mxu0 %v359_v17 }
  0x2e   :  { %v49_v25 = vsel %vm48_vm3, %v376_v14, %v45_v24  ;;  %v369_v14 = vld [vmem:[%s480_s3 + $0x50] sm:$0xff] }
  0x2f   :  { %v53_v26 = vmul.f32 %v51_v20, %v49_v25  ;;  %265 = vmatpush.bf16.msra.mxu1 %v369_v14 }
  0x31   :  { %v57_v29 = vperm.slane %v53_v26, 1 }
  0x33   :  { %v58_v31 = vmul.f32 %v57_v29, %v55_v27  ;;  %v59_v32 = vmul.f32 %v57_v29, %v56_v28  ;;  %266 = vmatpush.bf16.msra.mxu1 %v368_v16 }
  0x35   :  { %v61_v33 = vadd.f32 %v60_v30, %v58_v31  ;;  %v62_v34 = vadd.f32 %v60_v30, %v59_v32 }
  0x37   :  { %v65_v35 = vmin.f32 %v61_v33, 0.0  ;;  %v66_v36 = vmin.f32 %v62_v34, 0.0  ;;  %vm63_vm4 = vcmp.gt.f32.partialorder %v61_v33, 0.0  ;;  %vm64_vm5 = vcmp.gt.f32.partialorder %v62_v34, 0.0  ;;  %267 = vmatpush.bf16.msra.mxu1 %v367_v18 }
  0x39   :  { %v67_v37 = vmul.f32 1.442695, %v65_v35  ;;  %v69_v38 = vmul.f32 1.442695, %v66_v36 }
  0x3b   :  { %377 = vpow2.f32 %v67_v37 }
  0x3c   :  { %379 = vpow2.f32 %v69_v38 }
  0x41   :  { %v378_v39 = vpop.eup %377 }
  0x42   :  { %v380_v41 = vpop.eup %379  ;;  %v306_v42 = vadd.f32 -1.0, %v378_v39 }
  0x43   :  { %v307_v43 = vadd.f32 -1.0, %v380_v41 }
  0x44   :  { %v73_v45 = vsel %vm63_vm4, %v61_v33, %v306_v42 }
  0x45   :  { %v74_v46 = vsel %vm64_vm5, %v62_v34, %v307_v43  ;;  %v75_v47 = vpack.c.bf16 %v73_v45, %v73_v45 }
  0x46   :  { %v76_v48 = vpack.c.bf16 %v74_v46, %v74_v46 }
  0x47   :  { %v79_v49 = vunpack.c.l.b16 %v75_v47 }
  0x48   :  { %v80_v51 = vunpack.c.l.b16 %v76_v48 }
  0x49   :  { %v81_v52 = vpack.c.b16 %v79_v49, %v79_v49 }
  0x4a   :  { %v82_v53 = vpack.c.b16 %v80_v51, %v80_v51 }
  0x4b   :  { %v84_v54 = vshrl.u32 %v81_v52, 16  ;;  %v87_v55 = vshll.u32 %v81_v52, 16 }
  0x4c   :  { %v91_v57 = vshrl.u32 %v82_v53, 16  ;;  %v94_v58 = vshll.u32 %v82_v53, 16 }
  0x4d   :  { %v86_v59 = vrot.slane %v84_v54, 7 }
  0x4e   :  { %v93_v60 = vrot.slane %v91_v57, 7 }
  0x4f   :  { %v89_v61 = vor.u32 %v87_v55, %v86_v59 }
  0x50   :  { %v96_v62 = vor.u32 %v94_v58, %v93_v60 }
  0x51   :  { %v102_v63 = vsel %vm101_vm10, 0, %v89_v61 }
  0x52   :  { %v103_v0 = vsel %vm101_vm10, 0, %v96_v62  ;;  %v107_v1 = vsel %vm106_vm11, %v102_v63, 0 }
  0x53   :  { %v108_v2 = vsel %vm106_vm11, %v103_v0, 0  ;;  %v110_v3 = vshrl.u32 %v107_v1, 16  ;;  %v112_v4 = vshll.u32 %v107_v1, 16  ;;  %v308_v19 = vrot.slane %v107_v1, 7 }
  0x54   :  { %v119_v6 = vshll.u32 %v108_v2, 16  ;;  %v117_v8 = vshrl.u32 %v108_v2, 16  ;;  %v309_v23 = vrot.slane %v108_v2, 7 }
  0x55   :  { %v114_v5 = vrot.slane %v112_v4, 1 }
  0x56   :  { %v121_v9 = vrot.slane %v119_v6, 1 }
  0x57   :  { %v115_v7 = vor.u32 %v114_v5, %v110_v3 }
  0x58   :  { %v122_v10 = vor.u32 %v121_v9, %v117_v8 }
  0x59   :  { %123 = vrot.lane.b32.xlu0 %v115_v7, %s382_s6 }
  0x61   :  { %125 = vrot.lane.b32.xlu0 %v122_v10, %s382_s6 }
  0xcb   :  { %v124_v20 = vpop.permute.xlu0 %123 }
  0xcc   :  { %v133_v21 = vsel %vm131_vm12, %v107_v1, %v124_v20 }
  0xcd   :  { %v140_v22 = vsel %vm138_vm13, %v133_v21, %v308_v19 }
  0xce   :  { %167 = vst [vmem:[#allocation1] ss:$4 sm:$0xff] %v140_v22 }
  0xd3   :  { %v126_v24 = vpop.permute.xlu0 %125 }
  0xd4   :  { %v135_v25 = vsel %vm131_vm12, %v108_v2, %v126_v24 }
  0xd5   :  { %v142_v26 = vsel %vm138_vm13, %v135_v25, %v309_v23 }
  0xd6   :  { %169 = vst [vmem:[#allocation1 + $0x1] ss:$4 sm:$0xff] %v142_v26 }
  0xdd   :  { %v170_v27 = vld.sshfl [vmem:[#allocation1] sm:$0xff pattern:$0x73625140]  ;;  %v171_v28 = vld.sshfl [vmem:[#allocation1 + $0x8] sm:$0xff pattern:$0x73625140] }
  0xde   :  { %255 = vmatmul.bf16.vlgmr.msra.gmra.mxu0 %v170_v27  ;;  %358 = vmatmul.msk.bf16.vlgmr.msra.gmra.mxu1 %vm131_vm12, %v171_v28 }
 0x15b   :  { %v256_v29 = vpop.f32.mrf.mxu0  ;;  %v269_v30 = vpop.f32.mrf.mxu1 }
 0x15c   :  { %v270_v31 = vadd.f32 %v269_v30, %v256_v29 }
 0x15e   :  { %v274_v32 = vrot.slane %v270_v31, 4  ;;  %277 = vst.msk [vmem:[%s481_s4] sm:$0xf] %vm276_vm14, %v270_v31  ;;  %v279_v33 = vsel %vm131_vm12, %v270_v31, 0.0  ;;  %v286_v34 = vmul.f32 %v270_v31, %v270_v31 }
 0x15f   :  { %v280_v35 = vrot.slane %v279_v33, 4 }
 0x160   :  { %278 = vst.msk [vmem:[%s481_s4 + $0x4] sm:$0xf] %vm276_vm14, %v274_v32  ;;  %v287_v36 = vsel %vm131_vm12, %v286_v34, 0.0 }
 0x161   :  { %v281_v37 = vadd.f32 %v280_v35, %v279_v33  ;;  %v288_v38 = vrot.slane %v287_v36, 4 }
 0x163   :  { %v282_v39 = vrot.slane %v281_v37, 2  ;;  %v289_v40 = vadd.f32 %v288_v38, %v287_v36  ;;  %v258_v41 = vpop.f32.mrf.mxu0  ;;  %v271_v42 = vpop.f32.mrf.mxu1 }
 0x165   :  { %v283_v43 = vadd.f32 %v282_v39, %v281_v37  ;;  %v290_v44 = vrot.slane %v289_v40, 2 }
 0x167   :  { %v284_v45 = vrot.slane %v283_v43, 1  ;;  %v291_v46 = vadd.f32 %v290_v44, %v289_v40 }
 0x169   :  { %v292_v47 = vrot.slane %v291_v46, 1  ;;  %v285_v48 = vadd.f32 %v284_v45, %v283_v43 }
 0x16b   :  { %v293_v49 = vadd.f32 %v292_v47, %v291_v46 }
 0x16d   :  { %v295_v50 = vsel %vm99_vm6, %v285_v48, %v293_v49 }
 0x16e   :  { %297 = vst.msk [vmem:[%s482_s5] sm:$0x3] %vm296_vm15, %v295_v50 }

// kernel: se_res1d_forward.43
= control target key start
LH: loop header
LB: loop body
LE: loop exit
PB: predicated region body
PF: predicated region fallthrough
CT: control target
= control target key end

     0   :  { %v267_v2 = vmov 8.0   ;;  %v268_v27 = vmov 4.0   ;;  %vm108_vm4 = vcmask 519168   ;;  %vm142_vm6 = vcmask 1041409   ;;  %s387_s6 = inlined_call_operand.vmem [shape: f32[64,4], index: 6, kind: input, shape index: {}]   ;;  %s388_s1 = inlined_call_operand.vmem [shape: f32[1,2,64], index: 1, kind: input, shape index: {}]   ;;  %s389_s2 = inlined_call_operand.vmem [shape: f32[2,64], index: 2, kind: input, shape index: {}]   ;;  %s390_s0 = inlined_call_operand.vmem [shape: f32[2,4,64], index: 0, kind: input, shape index: {}]   ;;  %s391_s7 = inlined_call_operand.vmem [shape: f32[4,64], index: 7, kind: input, shape index: {}]   ;;  %s392_s4 = inlined_call_operand.vmem [shape: f32[1,2,64], index: 4, kind: input, shape index: {}]   ;;  %s393_s5 = inlined_call_operand.vmem [shape: f32[2,64], index: 5, kind: input, shape index: {}]   ;;  %s394_s3 = inlined_call_operand.vmem [shape: f32[2,4,64], index: 3, kind: input, shape index: {}]   ;;  %s395_s8 = inlined_call_operand.vmem [shape: f32[2,4,64], index: 8, kind: output, shape index: {}]  }
   0x1   :  { %v139_v0 = vld [vmem:[%s387_s6 + $0x38] sm:$0xff]  ;;  %v138_v1 = vld [vmem:[%s387_s6 + $0x30] sm:$0xff]  ;;  %251 = vrcp.f32 %v267_v2  ;;  %v137_v3 = vld [vmem:[%s387_s6 + $0x28] sm:$0xff]  ;;  %vm144_vm7 = vcmask 523264   ;;  %vm173_vm8 = vcmask 1043456   ;;  %vm169_vm9 = vcmask 31744  }
   0x2   :  { %155 = vmatpush.msra.mxu0 %v139_v0  ;;  %v136_v4 = vld [vmem:[%s387_s6 + $0x20] sm:$0xff]  ;;  %v135_v6 = vld [vmem:[%s387_s6 + $0x18] sm:$0xff]  ;;  %v134_v8 = vld [vmem:[%s387_s6 + $0x10] sm:$0xff] }
   0x3   :  { %v133_v10 = vld [vmem:[%s387_s6 + $0x8] sm:$0xff]  ;;  %v132_v12 = vld [vmem:[%s387_s6] sm:$0xff] }
   0x4   :  { %156 = vmatpush.msra.mxu0 %v138_v1  ;;  %v29_v13 = vld [vmem:[%s388_s1] sm:$0x3]  ;;  %v34_v32 = vld [vmem:[%s390_s0 + $0x4] sm:$0xf] }
   0x5   :  { %v35_v25 = vld [vmem:[%s389_s2] sm:$0x3] }
   0x6   :  { %157 = vmatpush.msra.mxu0 %v137_v3  ;;  %v62_v29 = vrot.slane %v35_v25, 7  ;;  %v33_v31 = vld [vmem:[%s390_s0] sm:$0xf]  ;;  %v71_v40 = vperm.slane %v35_v25, 1 }
   0x7   :  { %v252_v5 = vpop.eup %251  ;;  %v168_v3 = vld [vmem:[%s391_s7] sm:$0xf] }
   0x8   :  { %158 = vmatpush.msra.mxu0 %v136_v4  ;;  %v37_v7 = vmul.f32 8.0, %v252_v5  ;;  %vm41_vm0 = vweird.f32 %v252_v5  ;;  %245 = vmatpush.msk.msra.mxu1 %vm173_vm8, %v168_v3 }
   0xa   :  { %159 = vmatpush.msra.mxu0 %v135_v6  ;;  %v38_v9 = vsub.f32 1.0, %v37_v7  ;;  %v31_v6 = vld [vmem:[%s392_s4] sm:$0x3] }
   0xc   :  { %160 = vmatpush.msra.mxu0 %v134_v8  ;;  %v39_v11 = vmul.f32 %v252_v5, %v38_v9 }
   0xe   :  { %161 = vmatpush.msra.mxu0 %v133_v10  ;;  %v40_v14 = vadd.f32 %v252_v5, %v39_v11 }
  0x10   :  { %162 = vmatpush.msra.mxu0 %v132_v12  ;;  %v341_v15 = vsel %vm41_vm0, %v252_v5, %v40_v14 }
  0x11   :  { %v43_v16 = vmul.f32 %v341_v15, %v29_v13  ;;  %v77_v7 = vmul.f32 %v341_v15, %v31_v6  ;;  %v76_v15 = vld [vmem:[%s393_s5] sm:$0x3] }
  0x12   :  { %v96_v25 = vrot.slane %v76_v15, 7 }
  0x13   :  { %v44_v17 = vmul.f32 %v43_v16, %v43_v16  ;;  %v65_v30 = vperm.slane %v43_v16, 0  ;;  %v78_v8 = vmul.f32 %v77_v7, %v77_v7 }
  0x15   :  { %v46_v18 = vrot.slane %v44_v17, 7  ;;  %v66_v37 = vsub.f32 %v33_v31, %v65_v30  ;;  %v67_v38 = vsub.f32 %v34_v32, %v65_v30  ;;  %v80_v9 = vrot.slane %v78_v8, 7  ;;  %v74_v30 = vld [vmem:[%s394_s3] sm:$0xf]  ;;  %v75_v32 = vld [vmem:[%s394_s3 + $0x4] sm:$0xf] }
  0x17   :  { %v48_v19 = vsub.f32 %v43_v16, %v46_v18  ;;  %v82_v10 = vsub.f32 %v77_v7, %v80_v9 }
  0x19   :  { %v49_v20 = vmax.f32 %v48_v19, 0.0  ;;  %v83_v11 = vmax.f32 %v82_v10, 0.0 }
  0x1b   :  { %v50_v21 = vadd.f32 1e-05, %v49_v20  ;;  %v84_v12 = vadd.f32 1e-05, %v83_v11 }
  0x1d   :  { %253 = vrsqrt.f32 %v50_v21  ;;  %vm57_vm1 = vweird.f32 %v50_v21  ;;  %vm91_vm10 = vweird.f32 %v84_v12 }
  0x1e   :  { %255 = vrcp.f32 %v268_v27 }
  0x1f   :  { %257 = vrsqrt.f32 %v84_v12 }
  0x23   :  { %v254_v22 = vpop.eup %253 }
  0x24   :  { %v52_v23 = vmul.f32 %v254_v22, %v50_v21  ;;  %vm58_vm2 = vweird.f32 %v254_v22  ;;  %v256_v34 = vpop.eup %255 }
  0x25   :  { %vm59_vm3 = vmor %vm57_vm1, %vm58_vm2  ;;  %v124_v41 = vmul.f32 4.0, %v256_v34  ;;  %vm128_vm5 = vweird.f32 %v256_v34  ;;  %v258_v13 = vpop.eup %257 }
  0x26   :  { %v53_v24 = vmul.f32 %v254_v22, %v52_v23  ;;  %v86_v14 = vmul.f32 %v258_v13, %v84_v12  ;;  %vm92_vm11 = vweird.f32 %v258_v13 }
  0x27   :  { %v125_v46 = vsub.f32 1.0, %v124_v41  ;;  %vm93_vm12 = vmor %vm91_vm10, %vm92_vm11  ;;  %v105_v41 = vperm.slane %v76_v15, 1 }
  0x28   :  { %v54_v26 = vmul.f32 0.5, %v53_v24  ;;  %v87_v16 = vmul.f32 %v258_v13, %v86_v14 }
  0x29   :  { %v126_v51 = vmul.f32 %v256_v34, %v125_v46 }
  0x2a   :  { %v55_v28 = vsub.f32 1.5, %v54_v26  ;;  %v88_v20 = vmul.f32 0.5, %v87_v16 }
  0x2b   :  { %v127_v56 = vadd.f32 %v256_v34, %v126_v51 }
  0x2c   :  { %v56_v33 = vmul.f32 %v254_v22, %v55_v28  ;;  %v89_v21 = vsub.f32 1.5, %v88_v20  ;;  %v99_v28 = vperm.slane %v77_v7, 0 }
  0x2d   :  { %v129_v61 = vsel %vm128_vm5, %v256_v34, %v127_v56 }
  0x2e   :  { %v60_v35 = vsel %vm59_vm3, %v254_v22, %v56_v33  ;;  %v90_v23 = vmul.f32 %v258_v13, %v89_v21  ;;  %v100_v33 = vsub.f32 %v74_v30, %v99_v28 }
  0x2f   :  { %v64_v36 = vmul.f32 %v62_v29, %v60_v35 }
  0x30   :  { %v94_v26 = vsel %vm93_vm12, %v258_v13, %v90_v23 }
  0x31   :  { %v68_v39 = vperm.slane %v64_v36, 1  ;;  %v98_v27 = vmul.f32 %v96_v25, %v94_v26 }
  0x33   :  { %v69_v42 = vmul.f32 %v68_v39, %v66_v37  ;;  %v70_v43 = vmul.f32 %v68_v39, %v67_v38  ;;  %v102_v34 = vperm.slane %v98_v27, 1  ;;  %v101_v37 = vsub.f32 %v75_v32, %v99_v28 }
  0x35   :  { %v353_v44 = vadd.f32 %v71_v40, %v69_v42  ;;  %v355_v45 = vadd.f32 %v71_v40, %v70_v43  ;;  %v103_v40 = vmul.f32 %v102_v34, %v100_v33  ;;  %v104_v46 = vmul.f32 %v102_v34, %v101_v37 }
  0x37   :  { %v109_v47 = vsel %vm108_vm4, %v353_v44, 0.0  ;;  %v116_v48 = vsel %vm108_vm4, %v355_v45, 0.0 }
  0x38   :  { %v110_v49 = vrot.slane %v109_v47, 4  ;;  %v117_v50 = vrot.slane %v116_v48, 4 }
  0x3a   :  { %v111_v52 = vadd.f32 %v110_v49, %v109_v47  ;;  %v118_v53 = vadd.f32 %v117_v50, %v116_v48  ;;  %v106_v49 = vadd.f32 %v105_v41, %v103_v40 }
  0x3c   :  { %v112_v54 = vrot.slane %v111_v52, 2  ;;  %v119_v55 = vrot.slane %v118_v53, 2 }
  0x3e   :  { %v113_v57 = vadd.f32 %v112_v54, %v111_v52  ;;  %v120_v58 = vadd.f32 %v119_v55, %v118_v53  ;;  %v107_v52 = vadd.f32 %v105_v41, %v104_v46 }
  0x40   :  { %v114_v59 = vrot.slane %v113_v57, 1  ;;  %v121_v60 = vrot.slane %v120_v58, 1 }
  0x42   :  { %v115_v62 = vadd.f32 %v114_v59, %v113_v57  ;;  %v122_v63 = vadd.f32 %v121_v60, %v120_v58 }
  0x44   :  { %v130_v0 = vmul.f32 %v129_v61, %v115_v62  ;;  %v131_v1 = vmul.f32 %v129_v61, %v122_v63 }
  0x46   :  { %v143_v2 = vsel %vm142_vm6, %v131_v1, %v130_v0 }
  0x47   :  { %244 = vmatmul.msk.f32.vlgmr.msra.gmra.mxu0 %vm144_vm7, %v143_v2 }
  0xc4   :  { %v164_v4 = vpop.f32.mrf.mxu0 }
  0xc5   :  { %v167_v5 = vmax.f32 %v164_v4, 0.0 }
  0xc7   :  { %246 = vmatmul.msk.f32.vlgmr.msra.gmra.mxu1 %vm169_vm9, %v167_v5 }
 0x144   :  { %v194_v17 = vpop.f32.mrf.mxu1 }
 0x145   :  { %v197_v18 = vsub.f32 0.0, %v194_v17 }
 0x147   :  { %v198_v19 = vmul.f32 1.442695, %v197_v18 }
 0x149   :  { %259 = vpow2.f32 %v198_v19 }
 0x14f   :  { %v260_v22 = vpop.eup %259 }
 0x150   :  { %v200_v24 = vadd.f32 1.0, %v260_v22 }
 0x152   :  { %261 = vrcp.f32 %v200_v24  ;;  %v212_v36 = vand.u32 2147483648, %v200_v24  ;;  %v210_v39 = vand.u32 2147483647, %v200_v24  ;;  %vm206_vm14 = vweird.f32 %v200_v24 }
 0x154   :  { %v213_v43 = vor.u32 1.1754944e-38, %v212_v36  ;;  %vm211_vm0 = vcmp.eq.f32.partialorder %v210_v39, 8.507059e+37 }
 0x158   :  { %v262_v29 = vpop.eup %261 }
 0x159   :  { %v202_v31 = vmul.f32 %v262_v29, %v200_v24  ;;  %vm207_vm13 = vweird.f32 %v262_v29 }
 0x15a   :  { %vm208_vm15 = vmor %vm206_vm14, %vm207_vm13 }
 0x15b   :  { %v203_v35 = vsub.f32 1.0, %v202_v31 }
 0x15d   :  { %v204_v38 = vmul.f32 %v262_v29, %v203_v35 }
 0x15f   :  { %v205_v42 = vadd.f32 %v262_v29, %v204_v38 }
 0x161   :  { %v209_v47 = vsel %vm208_vm15, %v262_v29, %v205_v42 }
 0x162   :  { %v214_v48 = vsel %vm211_vm0, %v213_v43, %v209_v47 }
 0x163   :  { %v217_v50 = vrot.slane %v214_v48, 1  ;;  %v218_v51 = vperm.slane %v214_v48, 0 }
 0x165   :  { %v219_v53 = vperm.slane %v217_v50, 0  ;;  %v222_v54 = vmul.f32 %v218_v51, %v353_v44 }
 0x167   :  { %v223_v55 = vmul.f32 %v219_v53, %v355_v45  ;;  %v224_v56 = vadd.f32 %v222_v54, %v106_v49 }
 0x169   :  { %v225_v57 = vadd.f32 %v223_v55, %v107_v52  ;;  %v228_v58 = vmin.f32 %v224_v56, 0.0  ;;  %vm226_vm1 = vcmp.gt.f32.partialorder %v224_v56, 0.0 }
 0x16b   :  { %v229_v59 = vmin.f32 %v225_v57, 0.0  ;;  %v230_v60 = vmul.f32 1.442695, %v228_v58  ;;  %vm227_vm2 = vcmp.gt.f32.partialorder %v225_v57, 0.0 }
 0x16d   :  { %263 = vpow2.f32 %v230_v60  ;;  %v232_v61 = vmul.f32 1.442695, %v229_v59 }
 0x16f   :  { %265 = vpow2.f32 %v232_v61 }
 0x173   :  { %v264_v62 = vpop.eup %263 }
 0x174   :  { %v247_v63 = vadd.f32 -1.0, %v264_v62 }
 0x175   :  { %v266_v0 = vpop.eup %265 }
 0x176   :  { %v248_v1 = vadd.f32 -1.0, %v266_v0  ;;  %v236_v2 = vsel %vm226_vm1, %v224_v56, %v247_v63 }
 0x177   :  { %238 = vst.msk [vmem:[%s395_s8] sm:$0xf] %vm108_vm4, %v236_v2 }
 0x178   :  { %v237_v44 = vsel %vm227_vm2, %v225_v57, %v248_v1 }
 0x179   :  { %239 = vst.msk [vmem:[%s395_s8 + $0x4] sm:$0xf] %vm108_vm4, %v237_v44 }

// kernel: se_res1d_forward.44
= control target key start
LH: loop header
LB: loop body
LE: loop exit
PB: predicated region body
PF: predicated region fallthrough
CT: control target
= control target key end

     0   :  { %s283_s23 = smov 64   ;;  %vm42_vm0 = vcmask 523264   ;;  %vm51_vm1 = vcmask 1041408   ;;  %vm189_vm2 = vcmask 519168   ;;  %vm207_vm3 = vcmask 1040384   ;;  %s360_s0 = inlined_call_operand.vmem [shape: bf16[2,6,64], index: 0, kind: input, shape index: {}]   ;;  %s361_s1 = inlined_call_operand.vmem [shape: bf16[192,64], index: 1, kind: input, shape index: {}]   ;;  %s362_s2 = inlined_call_operand.vmem [shape: f32[2,4,64], index: 2, kind: output, shape index: {0}]   ;;  %s363_s3 = inlined_call_operand.vmem [shape: f32[1,2,64], index: 3, kind: output, shape index: {1}]  }
   0x1   :  { %v14_v0 = vld [vmem:[%s360_s0] sm:$0x7]  ;;  %v15_v1 = vld [vmem:[%s360_s0 + $0x4] sm:$0x7]  ;;  %v277_v2 = vld [vmem:[%s361_s1 + $0x38] sm:$0xff]  ;;  %vm209_vm4 = vcmask 517120  }
   0x2   :  { %v18_v3 = vunpack.c.l.b16 %v14_v0  ;;  %v19_v4 = vunpack.c.l.b16 %v15_v1  ;;  %160 = vmatpush.bf16.msra.mxu0 %v277_v2  ;;  %v276_v5 = vld [vmem:[%s361_s1 + $0x30] sm:$0xff]  ;;  %v275_v10 = vld [vmem:[%s361_s1 + $0x28] sm:$0xff]  ;;  %v274_v14 = vld [vmem:[%s361_s1 + $0x20] sm:$0xff] }
   0x3   :  { %v273_v18 = vld [vmem:[%s361_s1 + $0x18] sm:$0xff]  ;;  %v272_v20 = vld [vmem:[%s361_s1 + $0x10] sm:$0xff]  ;;  %v271_v22 = vld [vmem:[%s361_s1 + $0x8] sm:$0xff] }
   0x4   :  { %v20_v6 = vpack.c.b16 %v18_v3, %v18_v3  ;;  %v21_v7 = vpack.c.b16 %v19_v4, %v19_v4  ;;  %v281_v19 = vld [vmem:[%s361_s1 + $0x58] sm:$0xff]  ;;  %v280_v21 = vld [vmem:[%s361_s1 + $0x50] sm:$0xff]  ;;  %v279_v23 = vld [vmem:[%s361_s1 + $0x48] sm:$0xff] }
   0x5   :  { %177 = vmatpush.bf16.msra.mxu1 %v281_v19  ;;  %v270_v24 = vld [vmem:[%s361_s1] sm:$0xff] }
   0x6   :  { %v23_v8 = vshrl.u32 %v20_v6, 16  ;;  %v25_v9 = vshll.u32 %v20_v6, 16  ;;  %161 = vmatpush.bf16.msra.mxu0 %v276_v5  ;;  %v32_v12 = vshll.u32 %v21_v7, 16  ;;  %v30_v15 = vshrl.u32 %v21_v7, 16  ;;  %v278_v25 = vld [vmem:[%s361_s1 + $0x40] sm:$0xff] }
   0x7   :  { %v219_v26 = vrot.slane %v20_v6, 7  ;;  %v220_v30 = vrot.slane %v21_v7, 7 }
   0x8   :  { %v27_v11 = vrot.slane %v25_v9, 1  ;;  %v34_v16 = vrot.slane %v32_v12, 1 }
   0x9   :  { %178 = vmatpush.bf16.msra.mxu1 %v280_v21 }
   0xa   :  { %v28_v13 = vor.u32 %v27_v11, %v23_v8  ;;  %162 = vmatpush.bf16.msra.mxu0 %v275_v10  ;;  %v35_v17 = vor.u32 %v34_v16, %v30_v15 }
   0xc   :  { %36 = vrot.lane.b32.xlu0 %v28_v13, %s283_s23 }
   0xd   :  { %179 = vmatpush.bf16.msra.mxu1 %v279_v23 }
   0xe   :  { %163 = vmatpush.bf16.msra.mxu0 %v274_v14 }
  0x11   :  { %180 = vmatpush.bf16.msra.mxu1 %v278_v25 }
  0x12   :  { %164 = vmatpush.bf16.msra.mxu0 %v273_v18 }
  0x14   :  { %38 = vrot.lane.b32.xlu0 %v35_v17, %s283_s23 }
  0x16   :  { %165 = vmatpush.bf16.msra.mxu0 %v272_v20 }
  0x1a   :  { %166 = vmatpush.bf16.msra.mxu0 %v271_v22 }
  0x1e   :  { %167 = vmatpush.bf16.msra.mxu0 %v270_v24 }
  0x7e   :  { %v37_v27 = vpop.permute.xlu0 %36 }
  0x7f   :  { %v45_v28 = vsel %vm42_vm0, %v14_v0, %v37_v27 }
  0x80   :  { %v53_v29 = vsel %vm51_vm1, %v45_v28, %v219_v26 }
  0x81   :  { %80 = vst [vmem:[#allocation1] ss:$4 sm:$0xff] %v53_v29 }
  0x86   :  { %v39_v31 = vpop.permute.xlu0 %38 }
  0x87   :  { %v48_v32 = vsel %vm42_vm0, %v15_v1, %v39_v31 }
  0x88   :  { %v55_v33 = vsel %vm51_vm1, %v48_v32, %v220_v30 }
  0x89   :  { %82 = vst [vmem:[#allocation1 + $0x1] ss:$4 sm:$0xff] %v55_v33 }
  0x90   :  { %v83_v34 = vld.sshfl [vmem:[#allocation1] sm:$0xff pattern:$0x73625140]  ;;  %v84_v35 = vld.sshfl [vmem:[#allocation1 + $0x8] sm:$0xff pattern:$0x73625140] }
  0x91   :  { %168 = vmatmul.bf16.vlgmr.msra.gmra.mxu0 %v83_v34  ;;  %269 = vmatmul.msk.bf16.vlgmr.msra.gmra.mxu1 %vm42_vm0, %v84_v35 }
 0x10e   :  { %v169_v36 = vpop.f32.mrf.mxu0  ;;  %v182_v37 = vpop.f32.mrf.mxu1 }
 0x10f   :  { %v183_v38 = vadd.f32 %v182_v37, %v169_v36 }
 0x111   :  { %v187_v39 = vrot.slane %v183_v38, 4  ;;  %190 = vst.msk [vmem:[%s362_s2] sm:$0xf] %vm189_vm2, %v183_v38  ;;  %v192_v40 = vsel %vm42_vm0, %v183_v38, 0.0  ;;  %v199_v41 = vmul.f32 %v183_v38, %v183_v38 }
 0x112   :  { %v193_v42 = vrot.slane %v192_v40, 4 }
 0x113   :  { %191 = vst.msk [vmem:[%s362_s2 + $0x4] sm:$0xf] %vm189_vm2, %v187_v39  ;;  %v200_v43 = vsel %vm42_vm0, %v199_v41, 0.0 }
 0x114   :  { %v194_v44 = vadd.f32 %v193_v42, %v192_v40  ;;  %v201_v45 = vrot.slane %v200_v43, 4 }
 0x116   :  { %v195_v46 = vrot.slane %v194_v44, 2  ;;  %v202_v47 = vadd.f32 %v201_v45, %v200_v43  ;;  %v171_v48 = vpop.f32.mrf.mxu0  ;;  %v184_v49 = vpop.f32.mrf.mxu1 }
 0x118   :  { %v196_v50 = vadd.f32 %v195_v46, %v194_v44  ;;  %v203_v51 = vrot.slane %v202_v47, 2 }
 0x11a   :  { %v197_v52 = vrot.slane %v196_v50, 1  ;;  %v204_v53 = vadd.f32 %v203_v51, %v202_v47 }
 0x11c   :  { %v205_v54 = vrot.slane %v204_v53, 1  ;;  %v198_v55 = vadd.f32 %v197_v52, %v196_v50 }
 0x11e   :  { %v206_v56 = vadd.f32 %v205_v54, %v204_v53 }
 0x120   :  { %v208_v57 = vsel %vm207_vm3, %v198_v55, %v206_v56 }
 0x121   :  { %210 = vst.msk [vmem:[%s363_s3] sm:$0x3] %vm209_vm4, %v208_v57 }

// kernel: se_res1d_forward.46
= control target key start
LH: loop header
LB: loop body
LE: loop exit
PB: predicated region body
PF: predicated region fallthrough
CT: control target
= control target key end

     0   :  { %v225_v2 = vmov 8.0   ;;  %v226_v27 = vmov 4.0   ;;  %vm66_vm4 = vcmask 519168   ;;  %vm100_vm6 = vcmask 1041409   ;;  %s317_s4 = inlined_call_operand.vmem [shape: f32[64,4], index: 4, kind: input, shape index: {}]   ;;  %s318_s1 = inlined_call_operand.vmem [shape: f32[1,2,64], index: 1, kind: input, shape index: {}]   ;;  %s319_s2 = inlined_call_operand.vmem [shape: f32[2,64], index: 2, kind: input, shape index: {}]   ;;  %s320_s0 = inlined_call_operand.vmem [shape: f32[2,4,64], index: 0, kind: input, shape index: {}]   ;;  %s321_s5 = inlined_call_operand.vmem [shape: f32[4,64], index: 5, kind: input, shape index: {}]   ;;  %s322_s3 = inlined_call_operand.vmem [shape: f32[2,4,64], index: 3, kind: input, shape index: {}]   ;;  %s323_s6 = inlined_call_operand.vmem [shape: f32[2,4,64], index: 6, kind: output, shape index: {}]  }
   0x1   :  { %v97_v0 = vld [vmem:[%s317_s4 + $0x38] sm:$0xff]  ;;  %v96_v1 = vld [vmem:[%s317_s4 + $0x30] sm:$0xff]  ;;  %211 = vrcp.f32 %v225_v2  ;;  %v95_v3 = vld [vmem:[%s317_s4 + $0x28] sm:$0xff]  ;;  %vm102_vm7 = vcmask 523264   ;;  %vm131_vm8 = vcmask 1043456   ;;  %vm127_vm9 = vcmask 31744  }
   0x2   :  { %113 = vmatpush.msra.mxu0 %v97_v0  ;;  %v94_v4 = vld [vmem:[%s317_s4 + $0x20] sm:$0xff]  ;;  %v93_v6 = vld [vmem:[%s317_s4 + $0x18] sm:$0xff]  ;;  %v92_v8 = vld [vmem:[%s317_s4 + $0x10] sm:$0xff] }
   0x3   :  { %v91_v10 = vld [vmem:[%s317_s4 + $0x8] sm:$0xff]  ;;  %v90_v12 = vld [vmem:[%s317_s4] sm:$0xff] }
   0x4   :  { %114 = vmatpush.msra.mxu0 %v96_v1  ;;  %v23_v13 = vld [vmem:[%s318_s1] sm:$0x3]  ;;  %v26_v32 = vld [vmem:[%s320_s0 + $0x4] sm:$0xf] }
   0x5   :  { %v27_v25 = vld [vmem:[%s319_s2] sm:$0x3] }
   0x6   :  { %115 = vmatpush.msra.mxu0 %v95_v3  ;;  %v54_v29 = vrot.slane %v27_v25, 7  ;;  %v25_v31 = vld [vmem:[%s320_s0] sm:$0xf]  ;;  %v63_v40 = vperm.slane %v27_v25, 1 }
   0x7   :  { %v212_v5 = vpop.eup %211  ;;  %v126_v3 = vld [vmem:[%s321_s5] sm:$0xf] }
   0x8   :  { %116 = vmatpush.msra.mxu0 %v94_v4  ;;  %v29_v7 = vmul.f32 8.0, %v212_v5  ;;  %vm33_vm0 = vweird.f32 %v212_v5  ;;  %205 = vmatpush.msk.msra.mxu1 %vm131_vm8, %v126_v3 }
   0xa   :  { %117 = vmatpush.msra.mxu0 %v93_v6  ;;  %v30_v9 = vsub.f32 1.0, %v29_v7 }
   0xc   :  { %118 = vmatpush.msra.mxu0 %v92_v8  ;;  %v31_v11 = vmul.f32 %v212_v5, %v30_v9 }
   0xe   :  { %119 = vmatpush.msra.mxu0 %v91_v10  ;;  %v32_v14 = vadd.f32 %v212_v5, %v31_v11 }
  0x10   :  { %120 = vmatpush.msra.mxu0 %v90_v12  ;;  %v34_v15 = vsel %vm33_vm0, %v212_v5, %v32_v14 }
  0x11   :  { %v35_v16 = vmul.f32 %v34_v15, %v23_v13 }
  0x13   :  { %v36_v17 = vmul.f32 %v35_v16, %v35_v16  ;;  %v57_v30 = vperm.slane %v35_v16, 0 }
  0x15   :  { %v38_v18 = vrot.slane %v36_v17, 7  ;;  %v58_v37 = vsub.f32 %v25_v31, %v57_v30  ;;  %v59_v38 = vsub.f32 %v26_v32, %v57_v30 }
  0x17   :  { %v40_v19 = vsub.f32 %v35_v16, %v38_v18 }
  0x19   :  { %v41_v20 = vmax.f32 %v40_v19, 0.0 }
  0x1b   :  { %v42_v21 = vadd.f32 1e-05, %v41_v20 }
  0x1d   :  { %213 = vrsqrt.f32 %v42_v21  ;;  %vm49_vm1 = vweird.f32 %v42_v21 }
  0x1e   :  { %215 = vrcp.f32 %v226_v27 }
  0x23   :  { %v214_v22 = vpop.eup %213 }
  0x24   :  { %v44_v23 = vmul.f32 %v214_v22, %v42_v21  ;;  %vm50_vm2 = vweird.f32 %v214_v22  ;;  %v216_v34 = vpop.eup %215 }
  0x25   :  { %vm51_vm3 = vmor %vm49_vm1, %vm50_vm2  ;;  %v82_v41 = vmul.f32 4.0, %v216_v34  ;;  %vm86_vm5 = vweird.f32 %v216_v34 }
  0x26   :  { %v45_v24 = vmul.f32 %v214_v22, %v44_v23  ;;  %v182_v23 = vld [vmem:[%s322_s3] sm:$0xf] }
  0x27   :  { %v83_v46 = vsub.f32 1.0, %v82_v41 }
  0x28   :  { %v46_v26 = vmul.f32 0.5, %v45_v24 }
  0x29   :  { %v84_v51 = vmul.f32 %v216_v34, %v83_v46 }
  0x2a   :  { %v47_v28 = vsub.f32 1.5, %v46_v26  ;;  %v183_v26 = vld [vmem:[%s322_s3 + $0x4] sm:$0xf] }
  0x2b   :  { %v85_v56 = vadd.f32 %v216_v34, %v84_v51 }
  0x2c   :  { %v48_v33 = vmul.f32 %v214_v22, %v47_v28 }
  0x2d   :  { %v87_v61 = vsel %vm86_vm5, %v216_v34, %v85_v56 }
  0x2e   :  { %v52_v35 = vsel %vm51_vm3, %v214_v22, %v48_v33 }
  0x2f   :  { %v56_v36 = vmul.f32 %v54_v29, %v52_v35 }
  0x31   :  { %v60_v39 = vperm.slane %v56_v36, 1 }
  0x33   :  { %v61_v42 = vmul.f32 %v60_v39, %v58_v37  ;;  %v62_v43 = vmul.f32 %v60_v39, %v59_v38 }
  0x35   :  { %v64_v44 = vadd.f32 %v63_v40, %v61_v42  ;;  %v65_v45 = vadd.f32 %v63_v40, %v62_v43 }
  0x37   :  { %v67_v47 = vsel %vm66_vm4, %v64_v44, 0.0  ;;  %v74_v48 = vsel %vm66_vm4, %v65_v45, 0.0 }
  0x38   :  { %v68_v49 = vrot.slane %v67_v47, 4  ;;  %v75_v50 = vrot.slane %v74_v48, 4 }
  0x3a   :  { %v69_v52 = vadd.f32 %v68_v49, %v67_v47  ;;  %v76_v53 = vadd.f32 %v75_v50, %v74_v48 }
  0x3c   :  { %v70_v54 = vrot.slane %v69_v52, 2  ;;  %v77_v55 = vrot.slane %v76_v53, 2 }
  0x3e   :  { %v71_v57 = vadd.f32 %v70_v54, %v69_v52  ;;  %v78_v58 = vadd.f32 %v77_v55, %v76_v53 }
  0x40   :  { %v72_v59 = vrot.slane %v71_v57, 1  ;;  %v79_v60 = vrot.slane %v78_v58, 1 }
  0x42   :  { %v73_v62 = vadd.f32 %v72_v59, %v71_v57  ;;  %v80_v63 = vadd.f32 %v79_v60, %v78_v58 }
  0x44   :  { %v88_v0 = vmul.f32 %v87_v61, %v73_v62  ;;  %v89_v1 = vmul.f32 %v87_v61, %v80_v63 }
  0x46   :  { %v101_v2 = vsel %vm100_vm6, %v89_v1, %v88_v0 }
  0x47   :  { %204 = vmatmul.msk.f32.vlgmr.msra.gmra.mxu0 %vm102_vm7, %v101_v2 }
  0xc4   :  { %v122_v4 = vpop.f32.mrf.mxu0 }
  0xc5   :  { %v125_v5 = vmax.f32 %v122_v4, 0.0 }
  0xc7   :  { %206 = vmatmul.msk.f32.vlgmr.msra.gmra.mxu1 %vm127_vm9, %v125_v5 }
 0x144   :  { %v152_v6 = vpop.f32.mrf.mxu1 }
 0x145   :  { %v155_v7 = vsub.f32 0.0, %v152_v6 }
 0x147   :  { %v156_v8 = vmul.f32 1.442695, %v155_v7 }
 0x149   :  { %217 = vpow2.f32 %v156_v8 }
 0x14f   :  { %v218_v9 = vpop.eup %217 }
 0x150   :  { %v158_v10 = vadd.f32 1.0, %v218_v9 }
 0x152   :  { %219 = vrcp.f32 %v158_v10  ;;  %v170_v14 = vand.u32 2147483648, %v158_v10  ;;  %v168_v16 = vand.u32 2147483647, %v158_v10  ;;  %vm164_vm11 = vweird.f32 %v158_v10 }
 0x154   :  { %v171_v18 = vor.u32 1.1754944e-38, %v170_v14  ;;  %vm169_vm13 = vcmp.eq.f32.partialorder %v168_v16, 8.507059e+37 }
 0x158   :  { %v220_v11 = vpop.eup %219 }
 0x159   :  { %v160_v12 = vmul.f32 %v220_v11, %v158_v10  ;;  %vm165_vm10 = vweird.f32 %v220_v11 }
 0x15a   :  { %vm166_vm12 = vmor %vm164_vm11, %vm165_vm10 }
 0x15b   :  { %v161_v13 = vsub.f32 1.0, %v160_v12 }
 0x15d   :  { %v162_v15 = vmul.f32 %v220_v11, %v161_v13 }
 0x15f   :  { %v163_v17 = vadd.f32 %v220_v11, %v162_v15 }
 0x161   :  { %v167_v19 = vsel %vm166_vm12, %v220_v11, %v163_v17 }
 0x162   :  { %v172_v20 = vsel %vm169_vm13, %v171_v18, %v167_v19 }
 0x163   :  { %v175_v21 = vrot.slane %v172_v20, 1  ;;  %v176_v22 = vperm.slane %v172_v20, 0 }
 0x165   :  { %v177_v24 = vperm.slane %v175_v21, 0  ;;  %v180_v25 = vmul.f32 %v176_v22, %v64_v44 }
 0x167   :  { %v181_v27 = vmul.f32 %v177_v24, %v65_v45  ;;  %v184_v28 = vadd.f32 %v182_v23, %v180_v25 }
 0x169   :  { %v185_v29 = vadd.f32 %v183_v26, %v181_v27  ;;  %v188_v30 = vmin.f32 %v184_v28, 0.0  ;;  %vm186_vm14 = vcmp.gt.f32.partialorder %v184_v28, 0.0 }
 0x16b   :  { %v189_v31 = vmin.f32 %v185_v29, 0.0  ;;  %v190_v32 = vmul.f32 1.442695, %v188_v30  ;;  %vm187_vm15 = vcmp.gt.f32.partialorder %v185_v29, 0.0 }
 0x16d   :  { %221 = vpow2.f32 %v190_v32  ;;  %v192_v33 = vmul.f32 1.442695, %v189_v31 }
 0x16f   :  { %223 = vpow2.f32 %v192_v33 }
 0x173   :  { %v222_v34 = vpop.eup %221 }
 0x174   :  { %v207_v35 = vadd.f32 -1.0, %v222_v34 }
 0x175   :  { %v224_v36 = vpop.eup %223 }
 0x176   :  { %v208_v37 = vadd.f32 -1.0, %v224_v36  ;;  %v196_v38 = vsel %vm186_vm14, %v184_v28, %v207_v35 }
 0x177   :  { %198 = vst.msk [vmem:[%s323_s6] sm:$0xf] %vm66_vm4, %v196_v38 }
 0x178   :  { %v197_v39 = vsel %vm187_vm15, %v185_v29, %v208_v37 }
 0x179   :  { %199 = vst.msk [vmem:[%s323_s6 + $0x4] sm:$0xf] %vm66_vm4, %v197_v39 }

// kernel: se_res1d_forward.47
= control target key start
LH: loop header
LB: loop body
LE: loop exit
PB: predicated region body
PF: predicated region fallthrough
CT: control target
= control target key end

     0   :  { %vm58_vm0 = vcmask 523264   ;;  %vm65_vm1 = vcmask 1040384   ;;  %vm205_vm2 = vcmask 1043456   ;;  %s534_s1 = inlined_call_operand.vmem [shape: bf16[2,3,64], index: 1, kind: input, shape index: {}]   ;;  %s535_s2 = inlined_call_operand.vmem [shape: bf16[192,128], index: 2, kind: input, shape index: {}]   ;;  %s536_s0 = inlined_call_operand.vmem [shape: bf16[2,3,64], index: 0, kind: input, shape index: {}]   ;;  %s537_s3 = inlined_call_operand.vmem [shape: bf16[64,128], index: 3, kind: input, shape index: {}]   ;;  %s538_s4 = inlined_call_operand.vmem [shape: f32[2,2,128], index: 4, kind: output, shape index: {0}]   ;;  %s539_s6 = inlined_call_operand.vmem [shape: f32[2,2,128], index: 6, kind: output, shape index: {2}]   ;;  %s540_s5 = inlined_call_operand.vmem [shape: f32[1,2,128], index: 5, kind: output, shape index: {1}]   ;;  %s541_s7 = inlined_call_operand.vmem [shape: f32[1,2,128], index: 7, kind: output, shape index: {3}]  }
   0x1   :  { %v439_v0 = vld [vmem:[%s534_s1] sm:$0x3]  ;;  %v444_v1 = vld [vmem:[%s534_s1 + $0x2] sm:$0x3]  ;;  %v385_v2 = vld [vmem:[%s535_s2 + $0x38] sm:$0xff]  ;;  %s395_s1 = smov 64  }
   0x2   :  { %27 = vst [vmem:[#allocation1] ss:$4 sm:$0xff] %v439_v0  ;;  %174 = vmatpush.bf16.msra.mxu0 %v385_v2  ;;  %v384_v3 = vld [vmem:[%s535_s2 + $0x30] sm:$0xff]  ;;  %v383_v4 = vld [vmem:[%s535_s2 + $0x28] sm:$0xff]  ;;  %v382_v6 = vld [vmem:[%s535_s2 + $0x20] sm:$0xff] }
   0x3   :  { %32 = vst [vmem:[#allocation1 + $0x20] ss:$4 sm:$0xff] %v444_v1  ;;  %v22_v8 = vld [vmem:[%s536_s0] sm:$0x3]  ;;  %v23_v9 = vld [vmem:[%s536_s0 + $0x2] sm:$0x3] }
   0x4   :  { %v381_v10 = vld [vmem:[%s535_s2 + $0x18] sm:$0xff]  ;;  %v380_v12 = vld [vmem:[%s535_s2 + $0x10] sm:$0xff]  ;;  %v379_v14 = vld [vmem:[%s535_s2 + $0x8] sm:$0xff] }
   0x5   :  { %v389_v11 = vld [vmem:[%s535_s2 + $0x58] sm:$0xff]  ;;  %v388_v13 = vld [vmem:[%s535_s2 + $0x50] sm:$0xff]  ;;  %v387_v15 = vld [vmem:[%s535_s2 + $0x48] sm:$0xff] }
   0x6   :  { %175 = vmatpush.bf16.msra.mxu0 %v384_v3  ;;  %191 = vmatpush.bf16.msra.mxu1 %v389_v11  ;;  %v393_v16 = vld [vmem:[%s537_s3 + $0x18] sm:$0xff]  ;;  %v378_v17 = vld [vmem:[%s535_s2] sm:$0xff]  ;;  %v392_v19 = vld [vmem:[%s537_s3 + $0x10] sm:$0xff] }
   0x7   :  { %v386_v18 = vld [vmem:[%s535_s2 + $0x40] sm:$0xff]  ;;  %265 = vmatpush.bf16.msra.mxu2 %v393_v16  ;;  %v391_v22 = vld [vmem:[%s537_s3 + $0x8] sm:$0xff] }
   0x8   :  { %v390_v23 = vld [vmem:[%s537_s3] sm:$0xff] }
   0x9   :  { %v28_v5 = vld.sshfl [vmem:[#allocation1] sm:$0xff pattern:$0x73625140] }
   0xa   :  { %35 = vrot.lane.b32.xlu0 %v28_v5, %s395_s1  ;;  %176 = vmatpush.bf16.msra.mxu0 %v383_v4  ;;  %v33_v7 = vld.sshfl [vmem:[#allocation1 + $0x20] sm:$0xff pattern:$0x73625140]  ;;  %40 = vst [vmem:[#allocation1] ss:$4 sm:$0xff] %v22_v8 }
   0xb   :  { %44 = vst [vmem:[#allocation1 + $0x20] ss:$4 sm:$0xff] %v23_v9  ;;  %192 = vmatpush.bf16.msra.mxu1 %v388_v13  ;;  %266 = vmatpush.bf16.msra.mxu2 %v392_v19 }
   0xe   :  { %177 = vmatpush.bf16.msra.mxu0 %v382_v6 }
   0xf   :  { %193 = vmatpush.bf16.msra.mxu1 %v387_v15  ;;  %267 = vmatpush.bf16.msra.mxu2 %v391_v22 }
  0x11   :  { %v41_v20 = vld.sshfl [vmem:[#allocation1] sm:$0xff pattern:$0x73625140] }
  0x12   :  { %37 = vrot.lane.b32.xlu0 %v33_v7, %s395_s1  ;;  %178 = vmatpush.bf16.msra.mxu0 %v381_v10  ;;  %v48_v21 = vshll.u32 %v41_v20, 16  ;;  %v46_v24 = vshrl.u32 %v41_v20, 16  ;;  %v45_v26 = vld.sshfl [vmem:[#allocation1 + $0x20] sm:$0xff pattern:$0x73625140] }
  0x13   :  { %194 = vmatpush.bf16.msra.mxu1 %v386_v18  ;;  %268 = vmatpush.bf16.msra.mxu2 %v390_v23  ;;  %v54_v28 = vshll.u32 %v45_v26, 16  ;;  %v52_v30 = vshrl.u32 %v45_v26, 16 }
  0x14   :  { %v50_v25 = vrot.slane %v48_v21, 1 }
  0x15   :  { %v56_v31 = vrot.slane %v54_v28, 1 }
  0x16   :  { %179 = vmatpush.bf16.msra.mxu0 %v380_v12  ;;  %v51_v27 = vor.u32 %v50_v25, %v46_v24 }
  0x17   :  { %v57_v35 = vor.u32 %v56_v31, %v52_v30 }
  0x18   :  { %v63_v29 = vrot.slane %v51_v27, 7 }
  0x19   :  { %v64_v36 = vrot.slane %v57_v35, 7 }
  0x1a   :  { %180 = vmatpush.bf16.msra.mxu0 %v379_v14 }
  0x1e   :  { %181 = vmatpush.bf16.msra.mxu0 %v378_v17 }
  0x7c   :  { %v36_v32 = vpop.permute.xlu0 %35 }
  0x7d   :  { %v60_v33 = vsel %vm58_vm0, %v22_v8, %v36_v32 }
  0x7e   :  { %v67_v34 = vsel %vm65_vm1, %v60_v33, %v63_v29 }
  0x7f   :  { %94 = vst [vmem:[#allocation1] ss:$9 sm:$0xff] %v67_v34 }
  0x84   :  { %v38_v37 = vpop.permute.xlu0 %37 }
  0x85   :  { %v62_v38 = vsel %vm58_vm0, %v23_v9, %v38_v37 }
  0x86   :  { %v69_v39 = vsel %vm65_vm1, %v62_v38, %v64_v36 }
  0x87   :  { %96 = vst [vmem:[#allocation1 + $0x1] ss:$9 sm:$0xff] %v69_v39 }
  0x8e   :  { %v97_v40 = vld [vmem:[#allocation1] sm:$0xff]  ;;  %v98_v41 = vld [vmem:[#allocation1 + $0x9] sm:$0xff] }
  0x8f   :  { %182 = vmatmul.bf16.vlgmr.msra.gmra.mxu0 %v97_v40  ;;  %360 = vmatmul.msk.bf16.vlgmr.msra.gmra.mxu1 %vm58_vm0, %v98_v41  ;;  %231 = vst [vmem:[#allocation1] ss:$9 sm:$0xff] %v439_v0 }
  0x90   :  { %233 = vst [vmem:[#allocation1 + $0x1] ss:$9 sm:$0xff] %v444_v1 }
  0x97   :  { %v234_v42 = vld [vmem:[#allocation1] sm:$0xff] }
  0x98   :  { %377 = vmatmul.msk.bf16.vlgmr.msra.gmra.mxu2 %vm58_vm0, %v234_v42 }
 0x10c   :  { %v183_v43 = vpop.f32.mrf.mxu0  ;;  %v196_v44 = vpop.f32.mrf.mxu1 }
 0x10d   :  { %v197_v45 = vadd.f32 %v196_v44, %v183_v43 }
 0x10f   :  { %v201_v46 = vrot.slane %v197_v45, 2  ;;  %203 = vst [vmem:[%s538_s4] sm:$0x3] %v197_v45  ;;  %v206_v47 = vsel %vm205_vm2, %v197_v45, 0.0  ;;  %v213_v48 = vmul.f32 %v197_v45, %v197_v45 }
 0x110   :  { %v207_v49 = vrot.slane %v206_v47, 4 }
 0x111   :  { %204 = vst [vmem:[%s538_s4 + $0x2] sm:$0x3] %v201_v46  ;;  %v214_v50 = vsel %vm205_vm2, %v213_v48, 0.0 }
 0x112   :  { %v208_v51 = vadd.f32 %v207_v49, %v206_v47  ;;  %v215_v52 = vrot.slane %v214_v50, 4 }
 0x114   :  { %v209_v53 = vrot.slane %v208_v51, 2  ;;  %v216_v54 = vadd.f32 %v215_v52, %v214_v50  ;;  %v185_v55 = vpop.f32.mrf.mxu0  ;;  %v198_v56 = vpop.f32.mrf.mxu1 }
 0x116   :  { %v210_v57 = vadd.f32 %v209_v53, %v208_v51  ;;  %v217_v58 = vrot.slane %v216_v54, 2 }
 0x118   :  { %v211_v59 = vrot.slane %v210_v57, 1  ;;  %v218_v60 = vadd.f32 %v217_v58, %v216_v54 }
 0x11a   :  { %v219_v61 = vrot.slane %v218_v60, 1  ;;  %v212_v62 = vadd.f32 %v211_v59, %v210_v57 }
 0x11b   :  { %v270_v63 = vpop.f32.mrf.mxu2 }
 0x11c   :  { %v220_v0 = vadd.f32 %v219_v61, %v218_v60  ;;  %v275_v1 = vrot.slane %v270_v63, 2  ;;  %277 = vst [vmem:[%s539_s6] sm:$0x3] %v270_v63  ;;  %v279_v2 = vsel %vm205_vm2, %v270_v63, 0.0  ;;  %v286_v3 = vmul.f32 %v270_v63, %v270_v63 }
 0x11d   :  { %v280_v4 = vrot.slane %v279_v2, 4 }
 0x11e   :  { %v221_v5 = vsel %vm65_vm1, %v212_v62, %v220_v0  ;;  %278 = vst [vmem:[%s539_s6 + $0x2] sm:$0x3] %v275_v1  ;;  %v287_v6 = vsel %vm205_vm2, %v286_v3, 0.0 }
 0x11f   :  { %222 = vst [vmem:[%s540_s5] sm:$0x3] %v221_v5  ;;  %v281_v7 = vadd.f32 %v280_v4, %v279_v2  ;;  %v288_v8 = vrot.slane %v287_v6, 4 }
 0x121   :  { %v282_v9 = vrot.slane %v281_v7, 2  ;;  %v289_v10 = vadd.f32 %v288_v8, %v287_v6 }
 0x123   :  { %v283_v11 = vadd.f32 %v282_v9, %v281_v7  ;;  %v290_v12 = vrot.slane %v289_v10, 2  ;;  %v272_v13 = vpop.f32.mrf.mxu2 }
 0x125   :  { %v284_v14 = vrot.slane %v283_v11, 1  ;;  %v291_v15 = vadd.f32 %v290_v12, %v289_v10 }
 0x127   :  { %v292_v16 = vrot.slane %v291_v15, 1  ;;  %v285_v17 = vadd.f32 %v284_v14, %v283_v11 }
 0x129   :  { %v293_v18 = vadd.f32 %v292_v16, %v291_v15 }
 0x12b   :  { %v294_v19 = vsel %vm65_vm1, %v285_v17, %v293_v18 }
 0x12c   :  { %295 = vst [vmem:[%s541_s7] sm:$0x3] %v294_v19 }

// kernel: se_res1d_forward.49
= control target key start
LH: loop header
LB: loop body
LE: loop exit
PB: predicated region body
PF: predicated region fallthrough
CT: control target
= control target key end

     0   :  { %v267_v2 = vmov 4.0   ;;  %v268_v35 = vmov 2.0   ;;  %vm108_vm4 = vcmask 1041408   ;;  %vm150_vm6 = vcmask 1041409   ;;  %s407_s6 = inlined_call_operand.vmem [shape: f32[128,8], index: 6, kind: input, shape index: {}]   ;;  %s408_s1 = inlined_call_operand.vmem [shape: f32[1,2,128], index: 1, kind: input, shape index: {}]   ;;  %s409_s2 = inlined_call_operand.vmem [shape: f32[2,128], index: 2, kind: input, shape index: {}]   ;;  %s410_s0 = inlined_call_operand.vmem [shape: f32[2,2,128], index: 0, kind: input, shape index: {}]   ;;  %s411_s7 = inlined_call_operand.vmem [shape: f32[8,128], index: 7, kind: input, shape index: {}]   ;;  %s412_s4 = inlined_call_operand.vmem [shape: f32[1,2,128], index: 4, kind: input, shape index: {}]   ;;  %s413_s5 = inlined_call_operand.vmem [shape: f32[2,128], index: 5, kind: input, shape index: {}]   ;;  %s414_s3 = inlined_call_operand.vmem [shape: f32[2,2,128], index: 3, kind: input, shape index: {}]   ;;  %s415_s8 = inlined_call_operand.vmem [shape: f32[2,2,128], index: 8, kind: output, shape index: {}]  }
   0x1   :  { %v147_v0 = vld [vmem:[%s407_s6 + $0x78] sm:$0xff]  ;;  %v146_v1 = vld [vmem:[%s407_s6 + $0x70] sm:$0xff]  ;;  %251 = vrcp.f32 %v267_v2  ;;  %v145_v3 = vld [vmem:[%s407_s6 + $0x68] sm:$0xff]  ;;  %vm175_vm7 = vcmask 64512  }
   0x2   :  { %153 = vmatpush.msra.mxu0 %v147_v0  ;;  %v144_v4 = vld [vmem:[%s407_s6 + $0x60] sm:$0xff]  ;;  %v143_v6 = vld [vmem:[%s407_s6 + $0x58] sm:$0xff]  ;;  %v142_v8 = vld [vmem:[%s407_s6 + $0x50] sm:$0xff] }
   0x3   :  { %v141_v10 = vld [vmem:[%s407_s6 + $0x48] sm:$0xff]  ;;  %v140_v12 = vld [vmem:[%s407_s6 + $0x40] sm:$0xff]  ;;  %v139_v15 = vld [vmem:[%s407_s6 + $0x38] sm:$0xff] }
   0x4   :  { %154 = vmatpush.msra.mxu0 %v146_v1  ;;  %v29_v13 = vld [vmem:[%s408_s1] sm:$0x3]  ;;  %v138_v17 = vld [vmem:[%s407_s6 + $0x30] sm:$0xff]  ;;  %v137_v19 = vld [vmem:[%s407_s6 + $0x28] sm:$0xff] }
   0x5   :  { %v136_v21 = vld [vmem:[%s407_s6 + $0x20] sm:$0xff]  ;;  %v135_v23 = vld [vmem:[%s407_s6 + $0x18] sm:$0xff]  ;;  %v134_v25 = vld [vmem:[%s407_s6 + $0x10] sm:$0xff] }
   0x6   :  { %155 = vmatpush.msra.mxu0 %v145_v3  ;;  %v133_v27 = vld [vmem:[%s407_s6 + $0x8] sm:$0xff]  ;;  %v132_v29 = vld [vmem:[%s407_s6] sm:$0xff] }
   0x7   :  { %v252_v5 = vpop.eup %251  ;;  %v35_v33 = vld [vmem:[%s409_s2] sm:$0x3]  ;;  %v34_v40 = vld [vmem:[%s410_s0 + $0x2] sm:$0x3] }
   0x8   :  { %156 = vmatpush.msra.mxu0 %v144_v4  ;;  %v37_v7 = vmul.f32 4.0, %v252_v5  ;;  %vm41_vm0 = vweird.f32 %v252_v5  ;;  %v62_v37 = vrot.slane %v35_v33, 7  ;;  %v33_v39 = vld [vmem:[%s410_s0] sm:$0x3]  ;;  %v71_v48 = vperm.slane %v35_v33, 1 }
   0xa   :  { %157 = vmatpush.msra.mxu0 %v143_v6  ;;  %v38_v9 = vsub.f32 1.0, %v37_v7 }
   0xc   :  { %158 = vmatpush.msra.mxu0 %v142_v8  ;;  %v39_v11 = vmul.f32 %v252_v5, %v38_v9 }
   0xe   :  { %159 = vmatpush.msra.mxu0 %v141_v10  ;;  %v40_v14 = vadd.f32 %v252_v5, %v39_v11  ;;  %v174_v11 = vld [vmem:[%s411_s7] sm:$0xff] }
   0xf   :  { %194 = vmatpush.msra.mxu1 %v174_v11 }
  0x10   :  { %160 = vmatpush.msra.mxu0 %v140_v12  ;;  %v344_v16 = vsel %vm41_vm0, %v252_v5, %v40_v14  ;;  %v31_v14 = vld [vmem:[%s412_s4] sm:$0x3] }
  0x11   :  { %v43_v18 = vmul.f32 %v344_v16, %v29_v13 }
  0x12   :  { %161 = vmatpush.msra.mxu0 %v139_v15  ;;  %v77_v15 = vmul.f32 %v344_v16, %v31_v14  ;;  %v76_v16 = vld [vmem:[%s413_s5] sm:$0x3] }
  0x13   :  { %v44_v20 = vmul.f32 %v43_v18, %v43_v18  ;;  %v65_v38 = vperm.slane %v43_v18, 0  ;;  %v96_v33 = vrot.slane %v76_v16, 7 }
  0x14   :  { %162 = vmatpush.msra.mxu0 %v138_v17  ;;  %v78_v17 = vmul.f32 %v77_v15, %v77_v15 }
  0x15   :  { %v46_v22 = vrot.slane %v44_v20, 7  ;;  %v66_v45 = vsub.f32 %v33_v39, %v65_v38  ;;  %v67_v46 = vsub.f32 %v34_v40, %v65_v38  ;;  %v74_v38 = vld [vmem:[%s414_s3] sm:$0x3]  ;;  %v75_v40 = vld [vmem:[%s414_s3 + $0x2] sm:$0x3] }
  0x16   :  { %163 = vmatpush.msra.mxu0 %v137_v19 }
  0x17   :  { %v48_v24 = vsub.f32 %v43_v18, %v46_v22  ;;  %v80_v18 = vrot.slane %v78_v17, 7 }
  0x18   :  { %164 = vmatpush.msra.mxu0 %v136_v21 }
  0x19   :  { %v49_v26 = vmax.f32 %v48_v24, 0.0  ;;  %v82_v19 = vsub.f32 %v77_v15, %v80_v18 }
  0x1a   :  { %165 = vmatpush.msra.mxu0 %v135_v23 }
  0x1b   :  { %v50_v28 = vadd.f32 1e-05, %v49_v26  ;;  %v83_v20 = vmax.f32 %v82_v19, 0.0 }
  0x1c   :  { %166 = vmatpush.msra.mxu0 %v134_v25 }
  0x1d   :  { %253 = vrsqrt.f32 %v50_v28  ;;  %vm57_vm1 = vweird.f32 %v50_v28  ;;  %v84_v21 = vadd.f32 1e-05, %v83_v20 }
  0x1e   :  { %167 = vmatpush.msra.mxu0 %v133_v27  ;;  %255 = vrcp.f32 %v268_v35 }
  0x1f   :  { %257 = vrsqrt.f32 %v84_v21  ;;  %vm91_vm8 = vweird.f32 %v84_v21 }
  0x20   :  { %168 = vmatpush.msra.mxu0 %v132_v29 }
  0x23   :  { %v254_v30 = vpop.eup %253 }
  0x24   :  { %v52_v31 = vmul.f32 %v254_v30, %v50_v28  ;;  %vm58_vm2 = vweird.f32 %v254_v30  ;;  %v256_v42 = vpop.eup %255 }
  0x25   :  { %vm59_vm3 = vmor %vm57_vm1, %vm58_vm2  ;;  %v124_v49 = vmul.f32 2.0, %v256_v42  ;;  %vm128_vm5 = vweird.f32 %v256_v42  ;;  %v258_v22 = vpop.eup %257 }
  0x26   :  { %v53_v32 = vmul.f32 %v254_v30, %v52_v31  ;;  %v86_v23 = vmul.f32 %v258_v22, %v84_v21  ;;  %vm92_vm9 = vweird.f32 %v258_v22 }
  0x27   :  { %v125_v54 = vsub.f32 1.0, %v124_v49  ;;  %vm93_vm10 = vmor %vm91_vm8, %vm92_vm9  ;;  %v105_v49 = vperm.slane %v76_v16, 1 }
  0x28   :  { %v54_v34 = vmul.f32 0.5, %v53_v32  ;;  %v87_v24 = vmul.f32 %v258_v22, %v86_v23 }
  0x29   :  { %v126_v59 = vmul.f32 %v256_v42, %v125_v54 }
  0x2a   :  { %v55_v36 = vsub.f32 1.5, %v54_v34  ;;  %v88_v28 = vmul.f32 0.5, %v87_v24 }
  0x2b   :  { %v127_v0 = vadd.f32 %v256_v42, %v126_v59 }
  0x2c   :  { %v56_v41 = vmul.f32 %v254_v30, %v55_v36  ;;  %v89_v29 = vsub.f32 1.5, %v88_v28  ;;  %v99_v36 = vperm.slane %v77_v15, 0 }
  0x2d   :  { %v129_v5 = vsel %vm128_vm5, %v256_v42, %v127_v0 }
  0x2e   :  { %v60_v43 = vsel %vm59_vm3, %v254_v30, %v56_v41  ;;  %v90_v31 = vmul.f32 %v258_v22, %v89_v29  ;;  %v100_v41 = vsub.f32 %v74_v38, %v99_v36 }
  0x2f   :  { %v64_v44 = vmul.f32 %v62_v37, %v60_v43 }
  0x30   :  { %v94_v34 = vsel %vm93_vm10, %v258_v22, %v90_v31 }
  0x31   :  { %v68_v47 = vperm.slane %v64_v44, 1  ;;  %v98_v35 = vmul.f32 %v96_v33, %v94_v34 }
  0x33   :  { %v69_v50 = vmul.f32 %v68_v47, %v66_v45  ;;  %v70_v51 = vmul.f32 %v68_v47, %v67_v46  ;;  %v102_v42 = vperm.slane %v98_v35, 1  ;;  %v101_v45 = vsub.f32 %v75_v40, %v99_v36 }
  0x35   :  { %v377_v52 = vadd.f32 %v71_v48, %v69_v50  ;;  %v379_v53 = vadd.f32 %v71_v48, %v70_v51  ;;  %v103_v48 = vmul.f32 %v102_v42, %v100_v41  ;;  %v104_v54 = vmul.f32 %v102_v42, %v101_v45 }
  0x37   :  { %v109_v55 = vsel %vm108_vm4, %v377_v52, 0.0  ;;  %v116_v56 = vsel %vm108_vm4, %v379_v53, 0.0 }
  0x38   :  { %v110_v57 = vrot.slane %v109_v55, 4  ;;  %v117_v58 = vrot.slane %v116_v56, 4 }
  0x3a   :  { %v111_v60 = vadd.f32 %v110_v57, %v109_v55  ;;  %v118_v61 = vadd.f32 %v117_v58, %v116_v56  ;;  %v106_v57 = vadd.f32 %v105_v49, %v103_v48 }
  0x3c   :  { %v112_v62 = vrot.slane %v111_v60, 2  ;;  %v119_v63 = vrot.slane %v118_v61, 2 }
  0x3e   :  { %v113_v1 = vadd.f32 %v112_v62, %v111_v60  ;;  %v120_v2 = vadd.f32 %v119_v63, %v118_v61  ;;  %v107_v60 = vadd.f32 %v105_v49, %v104_v54 }
  0x40   :  { %v114_v3 = vrot.slane %v113_v1, 1  ;;  %v121_v4 = vrot.slane %v120_v2, 1 }
  0x42   :  { %v115_v6 = vadd.f32 %v114_v3, %v113_v1  ;;  %v122_v7 = vadd.f32 %v121_v4, %v120_v2 }
  0x44   :  { %v130_v8 = vmul.f32 %v129_v5, %v115_v6  ;;  %v131_v9 = vmul.f32 %v129_v5, %v122_v7 }
  0x46   :  { %v151_v10 = vsel %vm150_vm6, %v131_v9, %v130_v8 }
  0x47   :  { %169 = vmatmul.f32.vlgmr.msra.gmra.mxu0 %v151_v10 }
  0xc4   :  { %v170_v12 = vpop.f32.mrf.mxu0 }
  0xc5   :  { %v173_v13 = vmax.f32 %v170_v12, 0.0 }
  0xc7   :  { %246 = vmatmul.msk.f32.vlgmr.msra.gmra.mxu1 %vm175_vm7, %v173_v13 }
 0x144   :  { %v196_v25 = vpop.f32.mrf.mxu1 }
 0x145   :  { %v199_v26 = vsub.f32 0.0, %v196_v25 }
 0x147   :  { %v200_v27 = vmul.f32 1.442695, %v199_v26 }
 0x149   :  { %259 = vpow2.f32 %v200_v27 }
 0x14f   :  { %v260_v30 = vpop.eup %259 }
 0x150   :  { %v202_v32 = vadd.f32 1.0, %v260_v30 }
 0x152   :  { %261 = vrcp.f32 %v202_v32  ;;  %v214_v44 = vand.u32 2147483648, %v202_v32  ;;  %v212_v47 = vand.u32 2147483647, %v202_v32  ;;  %vm208_vm12 = vweird.f32 %v202_v32 }
 0x154   :  { %v215_v51 = vor.u32 1.1754944e-38, %v214_v44  ;;  %vm213_vm14 = vcmp.eq.f32.partialorder %v212_v47, 8.507059e+37 }
 0x158   :  { %v262_v37 = vpop.eup %261 }
 0x159   :  { %v204_v39 = vmul.f32 %v262_v37, %v202_v32  ;;  %vm209_vm11 = vweird.f32 %v262_v37 }
 0x15a   :  { %vm210_vm13 = vmor %vm208_vm12, %vm209_vm11 }
 0x15b   :  { %v205_v43 = vsub.f32 1.0, %v204_v39 }
 0x15d   :  { %v206_v46 = vmul.f32 %v262_v37, %v205_v43 }
 0x15f   :  { %v207_v50 = vadd.f32 %v262_v37, %v206_v46 }
 0x161   :  { %v211_v55 = vsel %vm210_vm13, %v262_v37, %v207_v50 }
 0x162   :  { %v216_v56 = vsel %vm213_vm14, %v215_v51, %v211_v55 }
 0x163   :  { %v219_v58 = vrot.slane %v216_v56, 1  ;;  %v220_v59 = vperm.slane %v216_v56, 0 }
 0x165   :  { %v221_v61 = vperm.slane %v219_v58, 0  ;;  %v224_v62 = vmul.f32 %v220_v59, %v377_v52 }
 0x167   :  { %v225_v63 = vmul.f32 %v221_v61, %v379_v53  ;;  %v226_v0 = vadd.f32 %v224_v62, %v106_v57 }
 0x169   :  { %v227_v1 = vadd.f32 %v225_v63, %v107_v60  ;;  %v230_v2 = vmin.f32 %v226_v0, 0.0  ;;  %vm228_vm15 = vcmp.gt.f32.partialorder %v226_v0, 0.0 }
 0x16b   :  { %v231_v3 = vmin.f32 %v227_v1, 0.0  ;;  %v232_v4 = vmul.f32 1.442695, %v230_v2  ;;  %vm229_vm0 = vcmp.gt.f32.partialorder %v227_v1, 0.0 }
 0x16d   :  { %263 = vpow2.f32 %v232_v4  ;;  %v234_v5 = vmul.f32 1.442695, %v231_v3 }
 0x16f   :  { %265 = vpow2.f32 %v234_v5 }
 0x173   :  { %v264_v6 = vpop.eup %263 }
 0x174   :  { %v247_v7 = vadd.f32 -1.0, %v264_v6 }
 0x175   :  { %v266_v8 = vpop.eup %265 }
 0x176   :  { %v248_v9 = vadd.f32 -1.0, %v266_v8  ;;  %v238_v10 = vsel %vm228_vm15, %v226_v0, %v247_v7 }
 0x177   :  { %240 = vst [vmem:[%s415_s8] sm:$0x3] %v238_v10 }
 0x178   :  { %v239_v52 = vsel %vm229_vm0, %v227_v1, %v248_v9 }
 0x179   :  { %241 = vst [vmem:[%s415_s8 + $0x2] sm:$0x3] %v239_v52 }

// kernel: se_res1d_forward.48
= control target key start
LH: loop header
LB: loop body
LE: loop exit
PB: predicated region body
PF: predicated region fallthrough
CT: control target
= control target key end

     0   :  { %v545_v3 = vmov 4.0   ;;  %vm99_vm6 = vcmask 1040384   ;;  %vm100_vm7 = vsmask.f32 256  ;;  %vm104_vm8 = vcmask 1041408   ;;  %s676_s3 = inlined_call_operand.vmem [shape: bf16[384,128], index: 3, kind: input, shape index: {}]   ;;  %s677_s1 = inlined_call_operand.vmem [shape: f32[1,2,128], index: 1, kind: input, shape index: {}]   ;;  %s678_s2 = inlined_call_operand.vmem [shape: f32[2,128], index: 2, kind: input, shape index: {}]   ;;  %s679_s0 = inlined_call_operand.vmem [shape: f32[2,2,128], index: 0, kind: input, shape index: {}]   ;;  %s680_s4 = inlined_call_operand.vmem [shape: f32[2,2,128], index: 4, kind: output, shape index: {0}]   ;;  %s681_s5 = inlined_call_operand.vmem [shape: f32[1,2,128], index: 5, kind: output, shape index: {1}]  }
   0x1   :  { %v519_v0 = vld [vmem:[%s676_s3 + $0x38] sm:$0xff]  ;;  %537 = vrcp.f32 %v545_v3  ;;  %v518_v4 = vld [vmem:[%s676_s3 + $0x30] sm:$0xff]  ;;  %v517_v8 = vld [vmem:[%s676_s3 + $0x28] sm:$0xff]  ;;  %vm105_vm9 = vsmask.f32 1280  ;;  %vm386_vm12 = vcmask 1043456  }
   0x2   :  { %v527_v1 = vld [vmem:[%s676_s3 + $0x78] sm:$0xff]  ;;  %342 = vmatpush.bf16.msra.mxu0 %v519_v0  ;;  %v526_v5 = vld [vmem:[%s676_s3 + $0x70] sm:$0xff]  ;;  %v525_v9 = vld [vmem:[%s676_s3 + $0x68] sm:$0xff] }
   0x3   :  { %v535_v2 = vld [vmem:[%s676_s3 + $0xb8] sm:$0xff]  ;;  %355 = vmatpush.bf16.msra.mxu1 %v527_v1  ;;  %v534_v6 = vld [vmem:[%s676_s3 + $0xb0] sm:$0xff]  ;;  %v533_v10 = vld [vmem:[%s676_s3 + $0xa8] sm:$0xff] }
   0x4   :  { %368 = vmatpush.bf16.msra.mxu2 %v535_v2  ;;  %v516_v13 = vld [vmem:[%s676_s3 + $0x20] sm:$0xff]  ;;  %v515_v19 = vld [vmem:[%s676_s3 + $0x18] sm:$0xff]  ;;  %v514_v24 = vld [vmem:[%s676_s3 + $0x10] sm:$0xff] }
   0x5   :  { %v524_v14 = vld [vmem:[%s676_s3 + $0x60] sm:$0xff]  ;;  %v523_v20 = vld [vmem:[%s676_s3 + $0x58] sm:$0xff]  ;;  %v522_v25 = vld [vmem:[%s676_s3 + $0x50] sm:$0xff] }
   0x6   :  { %343 = vmatpush.bf16.msra.mxu0 %v518_v4  ;;  %v532_v15 = vld [vmem:[%s676_s3 + $0xa0] sm:$0xff]  ;;  %v531_v21 = vld [vmem:[%s676_s3 + $0x98] sm:$0xff]  ;;  %v530_v27 = vld [vmem:[%s676_s3 + $0x90] sm:$0xff] }
   0x7   :  { %v538_v7 = vpop.eup %537  ;;  %356 = vmatpush.bf16.msra.mxu1 %v526_v5  ;;  %v20_v17 = vld [vmem:[%s677_s1] sm:$0x3]  ;;  %v513_v29 = vld [vmem:[%s676_s3 + $0x8] sm:$0xff]  ;;  %v23_v47 = vld [vmem:[%s679_s0 + $0x2] sm:$0x3] }
   0x8   :  { %369 = vmatpush.bf16.msra.mxu2 %v534_v6  ;;  %v26_v11 = vmul.f32 4.0, %v538_v7  ;;  %vm30_vm0 = vweird.f32 %v538_v7  ;;  %v521_v30 = vld [vmem:[%s676_s3 + $0x48] sm:$0xff]  ;;  %v512_v34 = vld [vmem:[%s676_s3] sm:$0xff]  ;;  %vm101_vm10 = vmand %vm99_vm6, %vm100_vm7 }
   0x9   :  { %v529_v32 = vld [vmem:[%s676_s3 + $0x88] sm:$0xff]  ;;  %v520_v35 = vld [vmem:[%s676_s3 + $0x40] sm:$0xff]  ;;  %vm106_vm11 = vmand %vm104_vm8, %vm105_vm9 }
   0xa   :  { %v27_v12 = vsub.f32 1.0, %v26_v11  ;;  %344 = vmatpush.bf16.msra.mxu0 %v517_v8  ;;  %v528_v37 = vld [vmem:[%s676_s3 + $0x80] sm:$0xff] }
   0xb   :  { %357 = vmatpush.bf16.msra.mxu1 %v525_v9  ;;  %v24_v41 = vld [vmem:[%s678_s2] sm:$0x3] }
   0xc   :  { %370 = vmatpush.bf16.msra.mxu2 %v533_v10  ;;  %v28_v16 = vmul.f32 %v538_v7, %v27_v12  ;;  %v51_v44 = vrot.slane %v24_v41, 7  ;;  %v22_v46 = vld [vmem:[%s679_s0] sm:$0x3]  ;;  %v60_v54 = vperm.slane %v24_v41, 1 }
   0xe   :  { %v29_v18 = vadd.f32 %v538_v7, %v28_v16  ;;  %345 = vmatpush.bf16.msra.mxu0 %v516_v13 }
   0xf   :  { %358 = vmatpush.bf16.msra.mxu1 %v524_v14 }
  0x10   :  { %371 = vmatpush.bf16.msra.mxu2 %v532_v15  ;;  %v31_v22 = vsel %vm30_vm0, %v538_v7, %v29_v18 }
  0x11   :  { %v32_v23 = vmul.f32 %v31_v22, %v20_v17 }
  0x12   :  { %346 = vmatpush.bf16.msra.mxu0 %v515_v19 }
  0x13   :  { %359 = vmatpush.bf16.msra.mxu1 %v523_v20  ;;  %v33_v26 = vmul.f32 %v32_v23, %v32_v23  ;;  %v54_v45 = vperm.slane %v32_v23, 0 }
  0x14   :  { %372 = vmatpush.bf16.msra.mxu2 %v531_v21 }
  0x15   :  { %v35_v28 = vrot.slane %v33_v26, 7  ;;  %v55_v51 = vsub.f32 %v22_v46, %v54_v45  ;;  %v56_v52 = vsub.f32 %v23_v47, %v54_v45 }
  0x16   :  { %347 = vmatpush.bf16.msra.mxu0 %v514_v24 }
  0x17   :  { %360 = vmatpush.bf16.msra.mxu1 %v522_v25  ;;  %v37_v31 = vsub.f32 %v32_v23, %v35_v28 }
  0x18   :  { %373 = vmatpush.bf16.msra.mxu2 %v530_v27 }
  0x19   :  { %v38_v33 = vmax.f32 %v37_v31, 0.0 }
  0x1a   :  { %348 = vmatpush.bf16.msra.mxu0 %v513_v29 }
  0x1b   :  { %361 = vmatpush.bf16.msra.mxu1 %v521_v30  ;;  %v39_v36 = vadd.f32 1e-05, %v38_v33 }
  0x1c   :  { %374 = vmatpush.bf16.msra.mxu2 %v529_v32 }
  0x1d   :  { %539 = vrsqrt.f32 %v39_v36  ;;  %vm46_vm1 = vweird.f32 %v39_v36 }
  0x1e   :  { %349 = vmatpush.bf16.msra.mxu0 %v512_v34 }
  0x1f   :  { %362 = vmatpush.bf16.msra.mxu1 %v520_v35 }
  0x20   :  { %375 = vmatpush.bf16.msra.mxu2 %v528_v37 }
  0x23   :  { %v540_v38 = vpop.eup %539 }
  0x24   :  { %v41_v39 = vmul.f32 %v540_v38, %v39_v36  ;;  %vm47_vm2 = vweird.f32 %v540_v38 }
  0x25   :  { %vm48_vm3 = vmor %vm46_vm1, %vm47_vm2 }
  0x26   :  { %v42_v40 = vmul.f32 %v540_v38, %v41_v39 }
  0x28   :  { %v43_v42 = vmul.f32 0.5, %v42_v40 }
  0x2a   :  { %v44_v43 = vsub.f32 1.5, %v43_v42 }
  0x2c   :  { %v45_v48 = vmul.f32 %v540_v38, %v44_v43 }
  0x2e   :  { %v49_v49 = vsel %vm48_vm3, %v540_v38, %v45_v48 }
  0x2f   :  { %v53_v50 = vmul.f32 %v51_v44, %v49_v49 }
  0x31   :  { %v57_v53 = vperm.slane %v53_v50, 1 }
  0x33   :  { %v58_v55 = vmul.f32 %v57_v53, %v55_v51  ;;  %v59_v56 = vmul.f32 %v57_v53, %v56_v52 }
  0x35   :  { %v61_v57 = vadd.f32 %v60_v54, %v58_v55  ;;  %v62_v58 = vadd.f32 %v60_v54, %v59_v56 }
  0x37   :  { %v65_v59 = vmin.f32 %v61_v57, 0.0  ;;  %v66_v60 = vmin.f32 %v62_v58, 0.0  ;;  %vm63_vm4 = vcmp.gt.f32.partialorder %v61_v57, 0.0  ;;  %vm64_vm5 = vcmp.gt.f32.partialorder %v62_v58, 0.0 }
  0x39   :  { %v67_v61 = vmul.f32 1.442695, %v65_v59  ;;  %v69_v62 = vmul.f32 1.442695, %v66_v60 }
  0x3b   :  { %541 = vpow2.f32 %v67_v61 }
  0x3c   :  { %543 = vpow2.f32 %v69_v62 }
  0x41   :  { %v542_v63 = vpop.eup %541 }
  0x42   :  { %v544_v0 = vpop.eup %543  ;;  %v412_v1 = vadd.f32 -1.0, %v542_v63 }
  0x43   :  { %v413_v2 = vadd.f32 -1.0, %v544_v0 }
  0x44   :  { %v73_v3 = vsel %vm63_vm4, %v61_v57, %v412_v1 }
  0x45   :  { %v74_v4 = vsel %vm64_vm5, %v62_v58, %v413_v2  ;;  %v75_v5 = vpack.c.bf16 %v73_v3, %v73_v3 }
  0x46   :  { %v76_v6 = vpack.c.bf16 %v74_v4, %v74_v4 }
  0x47   :  { %v79_v7 = vunpack.c.l.b16 %v75_v5 }
  0x48   :  { %v80_v8 = vunpack.c.l.b16 %v76_v6 }
  0x49   :  { %v81_v9 = vpack.c.b16 %v79_v7, %v79_v7 }
  0x4a   :  { %v82_v10 = vpack.c.b16 %v80_v8, %v80_v8 }
  0x4b   :  { %v84_v11 = vshrl.u32 %v81_v9, 16  ;;  %v87_v12 = vshll.u32 %v81_v9, 16 }
  0x4c   :  { %v91_v13 = vshrl.u32 %v82_v10, 16  ;;  %v94_v14 = vshll.u32 %v82_v10, 16 }
  0x4d   :  { %v86_v15 = vrot.slane %v84_v11, 7 }
  0x4e   :  { %v93_v16 = vrot.slane %v91_v13, 7 }
  0x4f   :  { %v89_v17 = vor.u32 %v87_v12, %v86_v15 }
  0x50   :  { %v96_v18 = vor.u32 %v94_v14, %v93_v16 }
  0x51   :  { %v102_v19 = vsel %vm101_vm10, 0, %v89_v17 }
  0x52   :  { %v103_v20 = vsel %vm101_vm10, 0, %v96_v18  ;;  %v107_v21 = vsel %vm106_vm11, %v102_v19, 0 }
  0x53   :  { %v108_v22 = vsel %vm106_vm11, %v103_v20, 0  ;;  %v110_v23 = vshrl.u32 %v107_v21, 16  ;;  %v112_v24 = vshll.u32 %v107_v21, 16  ;;  %v414_v31 = vrot.slane %v107_v21, 7 }
  0x54   :  { %v117_v25 = vshrl.u32 %v108_v22, 16  ;;  %v119_v26 = vshll.u32 %v108_v22, 16  ;;  %v415_v33 = vrot.slane %v108_v22, 7 }
  0x55   :  { %v114_v27 = vrot.slane %v112_v24, 1 }
  0x56   :  { %v121_v28 = vrot.slane %v119_v26, 1 }
  0x57   :  { %v115_v29 = vor.u32 %v114_v27, %v110_v23 }
  0x58   :  { %v122_v30 = vor.u32 %v121_v28, %v117_v25 }
  0x59   :  { %v127_v32 = vrot.slane %v115_v29, 7 }
  0x5a   :  { %v129_v34 = vrot.slane %v122_v30, 7 }
  0x5b   :  { %v133_v35 = vsel %vm99_vm6, %v107_v21, %v127_v32 }
  0x5c   :  { %v136_v36 = vsel %vm104_vm8, %v133_v35, %v414_v31  ;;  %v138_v37 = vsel %vm99_vm6, %v108_v22, %v129_v34 }
  0x5d   :  { %v140_v38 = vsel %vm104_vm8, %v138_v37, %v415_v33  ;;  %189 = vst [vmem:[#allocation1] ss:$9 sm:$0xff] %v136_v36 }
  0x5e   :  { %191 = vst [vmem:[#allocation1 + $0x1] ss:$9 sm:$0xff] %v140_v38 }
  0x65   :  { %v192_v39 = vld [vmem:[#allocation1] sm:$0xff]  ;;  %v193_v40 = vld [vmem:[#allocation1 + $0x9] sm:$0xff]  ;;  %v194_v41 = vld [vmem:[#allocation1 + $0x12] sm:$0xff] }
  0x66   :  { %350 = vmatmul.bf16.vlgmr.msra.gmra.mxu0 %v192_v39  ;;  %363 = vmatmul.bf16.vlgmr.msra.gmra.mxu1 %v193_v40 }
  0x67   :  { %376 = vmatmul.bf16.vlgmr.msra.gmra.mxu2 %v194_v41 }
  0xe3   :  { %v351_v42 = vpop.f32.mrf.mxu0  ;;  %v364_v43 = vpop.f32.mrf.mxu1 }
  0xe4   :  { %v365_v44 = vadd.f32 %v364_v43, %v351_v42 }
  0xea   :  { %v377_v45 = vpop.f32.mrf.mxu2 }
  0xeb   :  { %v378_v46 = vadd.f32 %v377_v45, %v365_v44  ;;  %v353_v47 = vpop.f32.mrf.mxu0  ;;  %v366_v48 = vpop.f32.mrf.mxu1 }
  0xed   :  { %v382_v49 = vrot.slane %v378_v46, 2  ;;  %384 = vst [vmem:[%s680_s4] sm:$0x3] %v378_v46  ;;  %v387_v50 = vsel %vm386_vm12, %v378_v46, 0.0  ;;  %v394_v51 = vmul.f32 %v378_v46, %v378_v46 }
  0xee   :  { %v388_v52 = vrot.slane %v387_v50, 4 }
  0xef   :  { %385 = vst [vmem:[%s680_s4 + $0x2] sm:$0x3] %v382_v49  ;;  %v395_v53 = vsel %vm386_vm12, %v394_v51, 0.0 }
  0xf0   :  { %v389_v54 = vadd.f32 %v388_v52, %v387_v50  ;;  %v396_v55 = vrot.slane %v395_v53, 4 }
  0xf2   :  { %v390_v56 = vrot.slane %v389_v54, 2  ;;  %v397_v57 = vadd.f32 %v396_v55, %v395_v53  ;;  %v379_v58 = vpop.f32.mrf.mxu2 }
  0xf4   :  { %v391_v59 = vadd.f32 %v390_v56, %v389_v54  ;;  %v398_v60 = vrot.slane %v397_v57, 2 }
  0xf6   :  { %v392_v61 = vrot.slane %v391_v59, 1  ;;  %v399_v62 = vadd.f32 %v398_v60, %v397_v57 }
  0xf8   :  { %v400_v63 = vrot.slane %v399_v62, 1  ;;  %v393_v0 = vadd.f32 %v392_v61, %v391_v59 }
  0xfa   :  { %v401_v1 = vadd.f32 %v400_v63, %v399_v62 }
  0xfc   :  { %v402_v2 = vsel %vm99_vm6, %v393_v0, %v401_v1 }
  0xfd   :  { %403 = vst [vmem:[%s681_s5] sm:$0x3] %v402_v2 }

// kernel: se_res1d_forward.52
= control target key start
LH: loop header
LB: loop body
LE: loop exit
PB: predicated region body
PF: predicated region fallthrough
CT: control target
= control target key end

     0   :  { %v225_v2 = vmov 4.0   ;;  %v226_v35 = vmov 2.0   ;;  %vm66_vm4 = vcmask 1041408   ;;  %vm108_vm6 = vcmask 1041409   ;;  %s337_s4 = inlined_call_operand.vmem [shape: f32[128,8], index: 4, kind: input, shape index: {}]   ;;  %s338_s1 = inlined_call_operand.vmem [shape: f32[1,2,128], index: 1, kind: input, shape index: {}]   ;;  %s339_s2 = inlined_call_operand.vmem [shape: f32[2,128], index: 2, kind: input, shape index: {}]   ;;  %s340_s0 = inlined_call_operand.vmem [shape: f32[2,2,128], index: 0, kind: input, shape index: {}]   ;;  %s341_s5 = inlined_call_operand.vmem [shape: f32[8,128], index: 5, kind: input, shape index: {}]   ;;  %s342_s3 = inlined_call_operand.vmem [shape: f32[2,2,128], index: 3, kind: input, shape index: {}]   ;;  %s343_s6 = inlined_call_operand.vmem [shape: f32[2,2,128], index: 6, kind: output, shape index: {}]  }
   0x1   :  { %v105_v0 = vld [vmem:[%s337_s4 + $0x78] sm:$0xff]  ;;  %v104_v1 = vld [vmem:[%s337_s4 + $0x70] sm:$0xff]  ;;  %211 = vrcp.f32 %v225_v2  ;;  %v103_v3 = vld [vmem:[%s337_s4 + $0x68] sm:$0xff]  ;;  %vm133_vm7 = vcmask 64512  }
   0x2   :  { %111 = vmatpush.msra.mxu0 %v105_v0  ;;  %v102_v4 = vld [vmem:[%s337_s4 + $0x60] sm:$0xff]  ;;  %v101_v6 = vld [vmem:[%s337_s4 + $0x58] sm:$0xff]  ;;  %v100_v8 = vld [vmem:[%s337_s4 + $0x50] sm:$0xff] }
   0x3   :  { %v99_v10 = vld [vmem:[%s337_s4 + $0x48] sm:$0xff]  ;;  %v98_v12 = vld [vmem:[%s337_s4 + $0x40] sm:$0xff]  ;;  %v97_v15 = vld [vmem:[%s337_s4 + $0x38] sm:$0xff] }
   0x4   :  { %112 = vmatpush.msra.mxu0 %v104_v1  ;;  %v23_v13 = vld [vmem:[%s338_s1] sm:$0x3]  ;;  %v96_v17 = vld [vmem:[%s337_s4 + $0x30] sm:$0xff]  ;;  %v95_v19 = vld [vmem:[%s337_s4 + $0x28] sm:$0xff] }
   0x5   :  { %v94_v21 = vld [vmem:[%s337_s4 + $0x20] sm:$0xff]  ;;  %v93_v23 = vld [vmem:[%s337_s4 + $0x18] sm:$0xff]  ;;  %v92_v25 = vld [vmem:[%s337_s4 + $0x10] sm:$0xff] }
   0x6   :  { %113 = vmatpush.msra.mxu0 %v103_v3  ;;  %v91_v27 = vld [vmem:[%s337_s4 + $0x8] sm:$0xff]  ;;  %v90_v29 = vld [vmem:[%s337_s4] sm:$0xff] }
   0x7   :  { %v212_v5 = vpop.eup %211  ;;  %v27_v33 = vld [vmem:[%s339_s2] sm:$0x3]  ;;  %v26_v40 = vld [vmem:[%s340_s0 + $0x2] sm:$0x3] }
   0x8   :  { %114 = vmatpush.msra.mxu0 %v102_v4  ;;  %v29_v7 = vmul.f32 4.0, %v212_v5  ;;  %vm33_vm0 = vweird.f32 %v212_v5  ;;  %v54_v37 = vrot.slane %v27_v33, 7  ;;  %v25_v39 = vld [vmem:[%s340_s0] sm:$0x3]  ;;  %v63_v48 = vperm.slane %v27_v33, 1 }
   0xa   :  { %115 = vmatpush.msra.mxu0 %v101_v6  ;;  %v30_v9 = vsub.f32 1.0, %v29_v7 }
   0xc   :  { %116 = vmatpush.msra.mxu0 %v100_v8  ;;  %v31_v11 = vmul.f32 %v212_v5, %v30_v9 }
   0xe   :  { %117 = vmatpush.msra.mxu0 %v99_v10  ;;  %v32_v14 = vadd.f32 %v212_v5, %v31_v11  ;;  %v132_v11 = vld [vmem:[%s341_s5] sm:$0xff] }
   0xf   :  { %152 = vmatpush.msra.mxu1 %v132_v11 }
  0x10   :  { %118 = vmatpush.msra.mxu0 %v98_v12  ;;  %v34_v16 = vsel %vm33_vm0, %v212_v5, %v32_v14 }
  0x11   :  { %v35_v18 = vmul.f32 %v34_v16, %v23_v13 }
  0x12   :  { %119 = vmatpush.msra.mxu0 %v97_v15 }
  0x13   :  { %v36_v20 = vmul.f32 %v35_v18, %v35_v18  ;;  %v57_v38 = vperm.slane %v35_v18, 0 }
  0x14   :  { %120 = vmatpush.msra.mxu0 %v96_v17 }
  0x15   :  { %v38_v22 = vrot.slane %v36_v20, 7  ;;  %v58_v45 = vsub.f32 %v25_v39, %v57_v38  ;;  %v59_v46 = vsub.f32 %v26_v40, %v57_v38 }
  0x16   :  { %121 = vmatpush.msra.mxu0 %v95_v19 }
  0x17   :  { %v40_v24 = vsub.f32 %v35_v18, %v38_v22 }
  0x18   :  { %122 = vmatpush.msra.mxu0 %v94_v21 }
  0x19   :  { %v41_v26 = vmax.f32 %v40_v24, 0.0 }
  0x1a   :  { %123 = vmatpush.msra.mxu0 %v93_v23 }
  0x1b   :  { %v42_v28 = vadd.f32 1e-05, %v41_v26 }
  0x1c   :  { %124 = vmatpush.msra.mxu0 %v92_v25 }
  0x1d   :  { %213 = vrsqrt.f32 %v42_v28  ;;  %vm49_vm1 = vweird.f32 %v42_v28 }
  0x1e   :  { %125 = vmatpush.msra.mxu0 %v91_v27  ;;  %215 = vrcp.f32 %v226_v35 }
  0x20   :  { %126 = vmatpush.msra.mxu0 %v90_v29 }
  0x23   :  { %v214_v30 = vpop.eup %213 }
  0x24   :  { %v44_v31 = vmul.f32 %v214_v30, %v42_v28  ;;  %vm50_vm2 = vweird.f32 %v214_v30  ;;  %v216_v42 = vpop.eup %215 }
  0x25   :  { %vm51_vm3 = vmor %vm49_vm1, %vm50_vm2  ;;  %v82_v49 = vmul.f32 2.0, %v216_v42  ;;  %vm86_vm5 = vweird.f32 %v216_v42 }
  0x26   :  { %v45_v32 = vmul.f32 %v214_v30, %v44_v31  ;;  %v184_v31 = vld [vmem:[%s342_s3] sm:$0x3] }
  0x27   :  { %v83_v54 = vsub.f32 1.0, %v82_v49 }
  0x28   :  { %v46_v34 = vmul.f32 0.5, %v45_v32 }
  0x29   :  { %v84_v59 = vmul.f32 %v216_v42, %v83_v54 }
  0x2a   :  { %v47_v36 = vsub.f32 1.5, %v46_v34  ;;  %v185_v34 = vld [vmem:[%s342_s3 + $0x2] sm:$0x3] }
  0x2b   :  { %v85_v0 = vadd.f32 %v216_v42, %v84_v59 }
  0x2c   :  { %v48_v41 = vmul.f32 %v214_v30, %v47_v36 }
  0x2d   :  { %v87_v5 = vsel %vm86_vm5, %v216_v42, %v85_v0 }
  0x2e   :  { %v52_v43 = vsel %vm51_vm3, %v214_v30, %v48_v41 }
  0x2f   :  { %v56_v44 = vmul.f32 %v54_v37, %v52_v43 }
  0x31   :  { %v60_v47 = vperm.slane %v56_v44, 1 }
  0x33   :  { %v61_v50 = vmul.f32 %v60_v47, %v58_v45  ;;  %v62_v51 = vmul.f32 %v60_v47, %v59_v46 }
  0x35   :  { %v64_v52 = vadd.f32 %v63_v48, %v61_v50  ;;  %v65_v53 = vadd.f32 %v63_v48, %v62_v51 }
  0x37   :  { %v67_v55 = vsel %vm66_vm4, %v64_v52, 0.0  ;;  %v74_v56 = vsel %vm66_vm4, %v65_v53, 0.0 }
  0x38   :  { %v68_v57 = vrot.slane %v67_v55, 4  ;;  %v75_v58 = vrot.slane %v74_v56, 4 }
  0x3a   :  { %v69_v60 = vadd.f32 %v68_v57, %v67_v55  ;;  %v76_v61 = vadd.f32 %v75_v58, %v74_v56 }
  0x3c   :  { %v70_v62 = vrot.slane %v69_v60, 2  ;;  %v77_v63 = vrot.slane %v76_v61, 2 }
  0x3e   :  { %v71_v1 = vadd.f32 %v70_v62, %v69_v60  ;;  %v78_v2 = vadd.f32 %v77_v63, %v76_v61 }
  0x40   :  { %v72_v3 = vrot.slane %v71_v1, 1  ;;  %v79_v4 = vrot.slane %v78_v2, 1 }
  0x42   :  { %v73_v6 = vadd.f32 %v72_v3, %v71_v1  ;;  %v80_v7 = vadd.f32 %v79_v4, %v78_v2 }
  0x44   :  { %v88_v8 = vmul.f32 %v87_v5, %v73_v6  ;;  %v89_v9 = vmul.f32 %v87_v5, %v80_v7 }
  0x46   :  { %v109_v10 = vsel %vm108_vm6, %v89_v9, %v88_v8 }
  0x47   :  { %127 = vmatmul.f32.vlgmr.msra.gmra.mxu0 %v109_v10 }
  0xc4   :  { %v128_v12 = vpop.f32.mrf.mxu0 }
  0xc5   :  { %v131_v13 = vmax.f32 %v128_v12, 0.0 }
  0xc7   :  { %206 = vmatmul.msk.f32.vlgmr.msra.gmra.mxu1 %vm133_vm7, %v131_v13 }
 0x144   :  { %v154_v14 = vpop.f32.mrf.mxu1 }
 0x145   :  { %v157_v15 = vsub.f32 0.0, %v154_v14 }
 0x147   :  { %v158_v16 = vmul.f32 1.442695, %v157_v15 }
 0x149   :  { %217 = vpow2.f32 %v158_v16 }
 0x14f   :  { %v218_v17 = vpop.eup %217 }
 0x150   :  { %v160_v18 = vadd.f32 1.0, %v218_v17 }
 0x152   :  { %219 = vrcp.f32 %v160_v18  ;;  %v172_v22 = vand.u32 2147483648, %v160_v18  ;;  %v170_v24 = vand.u32 2147483647, %v160_v18  ;;  %vm166_vm9 = vweird.f32 %v160_v18 }
 0x154   :  { %v173_v26 = vor.u32 1.1754944e-38, %v172_v22  ;;  %vm171_vm11 = vcmp.eq.f32.partialorder %v170_v24, 8.507059e+37 }
 0x158   :  { %v220_v19 = vpop.eup %219 }
 0x159   :  { %v162_v20 = vmul.f32 %v220_v19, %v160_v18  ;;  %vm167_vm8 = vweird.f32 %v220_v19 }
 0x15a   :  { %vm168_vm10 = vmor %vm166_vm9, %vm167_vm8 }
 0x15b   :  { %v163_v21 = vsub.f32 1.0, %v162_v20 }
 0x15d   :  { %v164_v23 = vmul.f32 %v220_v19, %v163_v21 }
 0x15f   :  { %v165_v25 = vadd.f32 %v220_v19, %v164_v23 }
 0x161   :  { %v169_v27 = vsel %vm168_vm10, %v220_v19, %v165_v25 }
 0x162   :  { %v174_v28 = vsel %vm171_vm11, %v173_v26, %v169_v27 }
 0x163   :  { %v177_v29 = vrot.slane %v174_v28, 1  ;;  %v178_v30 = vperm.slane %v174_v28, 0 }
 0x165   :  { %v179_v32 = vperm.slane %v177_v29, 0  ;;  %v182_v33 = vmul.f32 %v178_v30, %v64_v52 }
 0x167   :  { %v183_v35 = vmul.f32 %v179_v32, %v65_v53  ;;  %v186_v36 = vadd.f32 %v184_v31, %v182_v33 }
 0x169   :  { %v187_v37 = vadd.f32 %v185_v34, %v183_v35  ;;  %v190_v38 = vmin.f32 %v186_v36, 0.0  ;;  %vm188_vm12 = vcmp.gt.f32.partialorder %v186_v36, 0.0 }
 0x16b   :  { %v191_v39 = vmin.f32 %v187_v37, 0.0  ;;  %v192_v40 = vmul.f32 1.442695, %v190_v38  ;;  %vm189_vm13 = vcmp.gt.f32.partialorder %v187_v37, 0.0 }
 0x16d   :  { %221 = vpow2.f32 %v192_v40  ;;  %v194_v41 = vmul.f32 1.442695, %v191_v39 }
 0x16f   :  { %223 = vpow2.f32 %v194_v41 }
 0x173   :  { %v222_v42 = vpop.eup %221 }
 0x174   :  { %v207_v43 = vadd.f32 -1.0, %v222_v42 }
 0x175   :  { %v224_v44 = vpop.eup %223 }
 0x176   :  { %v208_v45 = vadd.f32 -1.0, %v224_v44  ;;  %v198_v46 = vsel %vm188_vm12, %v186_v36, %v207_v43 }
 0x177   :  { %200 = vst [vmem:[%s343_s6] sm:$0x3] %v198_v46 }
 0x178   :  { %v199_v47 = vsel %vm189_vm13, %v187_v37, %v208_v45 }
 0x179   :  { %201 = vst [vmem:[%s343_s6 + $0x2] sm:$0x3] %v199_v47 }

// kernel: se_res1d_forward.50
= control target key start
LH: loop header
LB: loop body
LE: loop exit
PB: predicated region body
PF: predicated region fallthrough
CT: control target
= control target key end

     0   :  { %vm47_vm0 = vcmask 1040384   ;;  %vm50_vm1 = vcmask 1041408   ;;  %vm302_vm2 = vcmask 1043456   ;;  %s560_s1 = inlined_call_operand.vmem [shape: bf16[384,128], index: 1, kind: input, shape index: {}]   ;;  %s561_s0 = inlined_call_operand.vmem [shape: bf16[2,4,128], index: 0, kind: input, shape index: {}]   ;;  %s562_s2 = inlined_call_operand.vmem [shape: f32[2,2,128], index: 2, kind: output, shape index: {0}]   ;;  %s563_s3 = inlined_call_operand.vmem [shape: f32[1,2,128], index: 3, kind: output, shape index: {1}]  }
   0x1   :  { %v433_v0 = vld [vmem:[%s560_s1 + $0x38] sm:$0xff]  ;;  %v432_v3 = vld [vmem:[%s560_s1 + $0x30] sm:$0xff]  ;;  %v431_v6 = vld [vmem:[%s560_s1 + $0x28] sm:$0xff] }
   0x2   :  { %v441_v1 = vld [vmem:[%s560_s1 + $0x78] sm:$0xff]  ;;  %258 = vmatpush.bf16.msra.mxu0 %v433_v0  ;;  %v440_v4 = vld [vmem:[%s560_s1 + $0x70] sm:$0xff]  ;;  %v439_v7 = vld [vmem:[%s560_s1 + $0x68] sm:$0xff] }
   0x3   :  { %v449_v2 = vld [vmem:[%s560_s1 + $0xb8] sm:$0xff]  ;;  %271 = vmatpush.bf16.msra.mxu1 %v441_v1  ;;  %v448_v5 = vld [vmem:[%s560_s1 + $0xb0] sm:$0xff]  ;;  %v447_v8 = vld [vmem:[%s560_s1 + $0xa8] sm:$0xff] }
   0x4   :  { %284 = vmatpush.bf16.msra.mxu2 %v449_v2  ;;  %v13_v9 = vld [vmem:[%s561_s0] sm:$0x3]  ;;  %v14_v10 = vld [vmem:[%s561_s0 + $0x2] sm:$0x3]  ;;  %v429_v14 = vld [vmem:[%s560_s1 + $0x18] sm:$0xff] }
   0x5   :  { %16 = vst [vmem:[#allocation1] ss:$4 sm:$0xff] %v13_v9  ;;  %v430_v11 = vld [vmem:[%s560_s1 + $0x20] sm:$0xff]  ;;  %v437_v15 = vld [vmem:[%s560_s1 + $0x58] sm:$0xff]  ;;  %v428_v21 = vld [vmem:[%s560_s1 + $0x10] sm:$0xff] }
   0x6   :  { %259 = vmatpush.bf16.msra.mxu0 %v432_v3  ;;  %v438_v12 = vld [vmem:[%s560_s1 + $0x60] sm:$0xff]  ;;  %20 = vst [vmem:[#allocation1 + $0x20] ss:$4 sm:$0xff] %v14_v10  ;;  %v445_v16 = vld [vmem:[%s560_s1 + $0x98] sm:$0xff]  ;;  %v436_v22 = vld [vmem:[%s560_s1 + $0x50] sm:$0xff] }
   0x7   :  { %272 = vmatpush.bf16.msra.mxu1 %v440_v4  ;;  %v446_v13 = vld [vmem:[%s560_s1 + $0xa0] sm:$0xff]  ;;  %v444_v25 = vld [vmem:[%s560_s1 + $0x90] sm:$0xff]  ;;  %v427_v29 = vld [vmem:[%s560_s1 + $0x8] sm:$0xff] }
   0x8   :  { %285 = vmatpush.bf16.msra.mxu2 %v448_v5  ;;  %v435_v30 = vld [vmem:[%s560_s1 + $0x48] sm:$0xff]  ;;  %v426_v37 = vld [vmem:[%s560_s1] sm:$0xff] }
   0x9   :  { %v443_v32 = vld [vmem:[%s560_s1 + $0x88] sm:$0xff]  ;;  %v434_v38 = vld [vmem:[%s560_s1 + $0x40] sm:$0xff] }
   0xa   :  { %260 = vmatpush.bf16.msra.mxu0 %v431_v6  ;;  %v442_v42 = vld [vmem:[%s560_s1 + $0x80] sm:$0xff] }
   0xb   :  { %273 = vmatpush.bf16.msra.mxu1 %v439_v7 }
   0xc   :  { %286 = vmatpush.bf16.msra.mxu2 %v447_v8  ;;  %v17_v17 = vld.sshfl [vmem:[#allocation1] sm:$0xff pattern:$0x73625140] }
   0xd   :  { %v21_v18 = vld.sshfl [vmem:[#allocation1 + $0x20] sm:$0xff pattern:$0x73625140]  ;;  %v22_v19 = vshrl.u32 %v17_v17, 16  ;;  %v24_v20 = vshll.u32 %v17_v17, 16 }
   0xe   :  { %261 = vmatpush.bf16.msra.mxu0 %v430_v11  ;;  %v28_v23 = vshrl.u32 %v21_v18, 16  ;;  %v30_v24 = vshll.u32 %v21_v18, 16  ;;  %34 = vst [vmem:[#allocation1] ss:$4 sm:$0xff] %v13_v9 }
   0xf   :  { %274 = vmatpush.bf16.msra.mxu1 %v438_v12  ;;  %v26_v26 = vrot.slane %v24_v20, 1  ;;  %38 = vst [vmem:[#allocation1 + $0x20] ss:$4 sm:$0xff] %v14_v10 }
  0x10   :  { %287 = vmatpush.bf16.msra.mxu2 %v446_v13  ;;  %v32_v27 = vrot.slane %v30_v24, 1 }
  0x11   :  { %v27_v28 = vor.u32 %v26_v26, %v22_v19 }
  0x12   :  { %262 = vmatpush.bf16.msra.mxu0 %v429_v14  ;;  %v33_v31 = vor.u32 %v32_v27, %v28_v23 }
  0x13   :  { %275 = vmatpush.bf16.msra.mxu1 %v437_v15  ;;  %v43_v33 = vrot.slane %v27_v28, 7 }
  0x14   :  { %288 = vmatpush.bf16.msra.mxu2 %v445_v16  ;;  %v45_v34 = vrot.slane %v33_v31, 7 }
  0x15   :  { %v35_v35 = vld.sshfl [vmem:[#allocation1] sm:$0xff pattern:$0x73625140]  ;;  %v49_v36 = vsel %vm47_vm0, %v13_v9, %v43_v33 }
  0x16   :  { %263 = vmatpush.bf16.msra.mxu0 %v428_v21  ;;  %v39_v39 = vld.sshfl [vmem:[#allocation1 + $0x20] sm:$0xff pattern:$0x73625140]  ;;  %v328_v40 = vrot.slane %v35_v35, 7  ;;  %v54_v41 = vsel %vm47_vm0, %v14_v10, %v45_v34 }
  0x17   :  { %276 = vmatpush.bf16.msra.mxu1 %v436_v22  ;;  %v329_v43 = vrot.slane %v39_v39, 7 }
  0x18   :  { %289 = vmatpush.bf16.msra.mxu2 %v444_v25  ;;  %v52_v44 = vsel %vm50_vm1, %v49_v36, %v328_v40 }
  0x19   :  { %v56_v45 = vsel %vm50_vm1, %v54_v41, %v329_v43  ;;  %105 = vst [vmem:[#allocation1] ss:$9 sm:$0xff] %v52_v44 }
  0x1a   :  { %264 = vmatpush.bf16.msra.mxu0 %v427_v29  ;;  %107 = vst [vmem:[#allocation1 + $0x1] ss:$9 sm:$0xff] %v56_v45 }
  0x1b   :  { %277 = vmatpush.bf16.msra.mxu1 %v435_v30 }
  0x1c   :  { %290 = vmatpush.bf16.msra.mxu2 %v443_v32 }
  0x1e   :  { %265 = vmatpush.bf16.msra.mxu0 %v426_v37 }
  0x1f   :  { %278 = vmatpush.bf16.msra.mxu1 %v434_v38 }
  0x20   :  { %291 = vmatpush.bf16.msra.mxu2 %v442_v42 }
  0x21   :  { %v108_v46 = vld [vmem:[#allocation1] sm:$0xff]  ;;  %v109_v47 = vld [vmem:[#allocation1 + $0x9] sm:$0xff]  ;;  %v110_v48 = vld [vmem:[#allocation1 + $0x12] sm:$0xff] }
  0x22   :  { %266 = vmatmul.bf16.vlgmr.msra.gmra.mxu0 %v108_v46  ;;  %279 = vmatmul.bf16.vlgmr.msra.gmra.mxu1 %v109_v47 }
  0x23   :  { %292 = vmatmul.bf16.vlgmr.msra.gmra.mxu2 %v110_v48 }
  0x9f   :  { %v267_v49 = vpop.f32.mrf.mxu0  ;;  %v280_v50 = vpop.f32.mrf.mxu1 }
  0xa0   :  { %v281_v51 = vadd.f32 %v280_v50, %v267_v49 }
  0xa6   :  { %v293_v52 = vpop.f32.mrf.mxu2 }
  0xa7   :  { %v294_v53 = vadd.f32 %v293_v52, %v281_v51  ;;  %v269_v54 = vpop.f32.mrf.mxu0  ;;  %v282_v55 = vpop.f32.mrf.mxu1 }
  0xa9   :  { %v298_v56 = vrot.slane %v294_v53, 2  ;;  %300 = vst [vmem:[%s562_s2] sm:$0x3] %v294_v53  ;;  %v303_v57 = vsel %vm302_vm2, %v294_v53, 0.0  ;;  %v310_v58 = vmul.f32 %v294_v53, %v294_v53 }
  0xaa   :  { %v304_v59 = vrot.slane %v303_v57, 4 }
  0xab   :  { %301 = vst [vmem:[%s562_s2 + $0x2] sm:$0x3] %v298_v56  ;;  %v311_v60 = vsel %vm302_vm2, %v310_v58, 0.0 }
  0xac   :  { %v305_v61 = vadd.f32 %v304_v59, %v303_v57  ;;  %v312_v62 = vrot.slane %v311_v60, 4 }
  0xae   :  { %v306_v63 = vrot.slane %v305_v61, 2  ;;  %v313_v0 = vadd.f32 %v312_v62, %v311_v60  ;;  %v295_v1 = vpop.f32.mrf.mxu2 }
  0xb0   :  { %v307_v2 = vadd.f32 %v306_v63, %v305_v61  ;;  %v314_v3 = vrot.slane %v313_v0, 2 }
  0xb2   :  { %v308_v4 = vrot.slane %v307_v2, 1  ;;  %v315_v5 = vadd.f32 %v314_v3, %v313_v0 }
  0xb4   :  { %v316_v6 = vrot.slane %v315_v5, 1  ;;  %v309_v7 = vadd.f32 %v308_v4, %v307_v2 }
  0xb6   :  { %v317_v8 = vadd.f32 %v316_v6, %v315_v5 }
  0xb8   :  { %v318_v9 = vsel %vm47_vm0, %v309_v7, %v317_v8 }
  0xb9   :  { %319 = vst [vmem:[%s563_s3] sm:$0x3] %v318_v9 }

// kernel: se_res1d_forward.53
= control target key start
LH: loop header
LB: loop body
LE: loop exit
PB: predicated region body
PF: predicated region fallthrough
CT: control target
= control target key end

     0   :  { %v135_v2 = vmov 2.0   ;;  %vm17_vm0 = vcmask 1041408   ;;  %s217_s0 = inlined_call_operand.vmem [shape: f32[2,2,128], index: 0, kind: input, shape index: {}]   ;;  %s218_s1 = inlined_call_operand.vmem [shape: f32[128,5], index: 1, kind: input, shape index: {}]   ;;  %s219_s2 = inlined_call_operand.vmem [shape: f32[1,5], index: 2, kind: input, shape index: {}]   ;;  %s220_s3 = inlined_call_operand.hbm [shape: f32[2,5], index: 3, kind: output, shape index: {}]  }
   0x1   :  { %v56_v0 = vld [vmem:[%s218_s1 + $0x78] sm:$0xff]  ;;  %v55_v1 = vld [vmem:[%s218_s1 + $0x70] sm:$0xff]  ;;  %107 = vrcp.f32 %v135_v2  ;;  %v54_v3 = vld [vmem:[%s218_s1 + $0x68] sm:$0xff] }
   0x2   :  { %66 = vmatpush.msra.mxu0 %v56_v0  ;;  %v53_v4 = vld [vmem:[%s218_s1 + $0x60] sm:$0xff]  ;;  %v52_v7 = vld [vmem:[%s218_s1 + $0x58] sm:$0xff] }
   0x3   :  { %v15_v5 = vld [vmem:[%s217_s0] sm:$0x3]  ;;  %v16_v6 = vld [vmem:[%s217_s0 + $0x2] sm:$0x3] }
   0x4   :  { %67 = vmatpush.msra.mxu0 %v55_v1  ;;  %v18_v8 = vsel %vm17_vm0, %v15_v5, 0.0  ;;  %v25_v9 = vsel %vm17_vm0, %v16_v6, 0.0 }
   0x5   :  { %v19_v11 = vrot.slane %v18_v8, 4  ;;  %v26_v12 = vrot.slane %v25_v9, 4 }
   0x6   :  { %68 = vmatpush.msra.mxu0 %v54_v3 }
   0x7   :  { %v108_v10 = vpop.eup %107 }
   0x8   :  { %69 = vmatpush.msra.mxu0 %v53_v4 }
   0x9   :  { %8 = vsyncpa [#allocation3], 0  ;;  %v51_v13 = vld [vmem:[%s218_s1 + $0x50] sm:$0xff]  ;;  %v33_v14 = vmul.f32 2.0, %v108_v10  ;;  %v20_v15 = vadd.f32 %v19_v11, %v18_v8  ;;  %v27_v16 = vadd.f32 %v26_v12, %v25_v9  ;;  %v50_v17 = vld [vmem:[%s218_s1 + $0x48] sm:$0xff]  ;;  %vm37_vm1 = vweird.f32 %v108_v10  ;;  %s136_s22 = smov [#allocation2]  }
   0xa   :  { %70 = vmatpush.msra.mxu0 %v52_v7  ;;  %v49_v21 = vld [vmem:[%s218_s1 + $0x40] sm:$0xff]  ;;  %v48_v24 = vld [vmem:[%s218_s1 + $0x38] sm:$0xff]  ;;  %v47_v26 = vld [vmem:[%s218_s1 + $0x30] sm:$0xff]  ;;  %vm63_vm2 = vcmask 1041409   ;;  %s93_s23 = sshll.u32 %s136_s22, 4  ;;  %s95_s26 = sshll.u32 %s220_s3, 4  ;;  %s94_s23 = int_to_ptr.vmem [resolvable:$true] %s93_s23  ;;  %s96_s26 = int_to_ptr.hbm [resolvable:$true] %s95_s26 }
   0xb   :  { %v34_v18 = vsub.f32 1.0, %v33_v14  ;;  %v21_v19 = vrot.slane %v20_v15, 2  ;;  %v28_v20 = vrot.slane %v27_v16, 2  ;;  %v46_v29 = vld [vmem:[%s218_s1 + $0x28] sm:$0xff]  ;;  %v45_v31 = vld [vmem:[%s218_s1 + $0x20] sm:$0xff]  ;;  %v44_v34 = vld [vmem:[%s218_s1 + $0x18] sm:$0xff] }
   0xc   :  { %71 = vmatpush.msra.mxu0 %v51_v13  ;;  %v43_v36 = vld [vmem:[%s218_s1 + $0x10] sm:$0xff]  ;;  %v42_v39 = vld [vmem:[%s218_s1 + $0x8] sm:$0xff]  ;;  %v41_v40 = vld [vmem:[%s218_s1] sm:$0xff]  ;;  %vm86_vm3 = vcmask 33792  }
   0xd   :  { %v22_v22 = vadd.f32 %v21_v19, %v20_v15  ;;  %v29_v23 = vadd.f32 %v28_v20, %v27_v16  ;;  %v35_v25 = vmul.f32 %v108_v10, %v34_v18  ;;  %v106_v42 = vld [vmem:[%s219_s2] ss:$0 sm:$0xff] }
   0xe   :  { %72 = vmatpush.msra.mxu0 %v50_v17 }
   0xf   :  { %v23_v27 = vrot.slane %v22_v22, 1  ;;  %v30_v28 = vrot.slane %v29_v23, 1  ;;  %v36_v30 = vadd.f32 %v108_v10, %v35_v25 }
  0x10   :  { %73 = vmatpush.msra.mxu0 %v49_v21 }
  0x11   :  { %v24_v32 = vadd.f32 %v23_v27, %v22_v22  ;;  %v31_v33 = vadd.f32 %v30_v28, %v29_v23  ;;  %v38_v35 = vsel %vm37_vm1, %v108_v10, %v36_v30 }
  0x12   :  { %74 = vmatpush.msra.mxu0 %v48_v24 }
  0x13   :  { %v39_v37 = vmul.f32 %v38_v35, %v24_v32  ;;  %v40_v38 = vmul.f32 %v38_v35, %v31_v33 }
  0x14   :  { %75 = vmatpush.msra.mxu0 %v47_v26 }
  0x15   :  { %v64_v41 = vsel %vm63_vm2, %v40_v38, %v39_v37 }
  0x16   :  { %76 = vmatpush.msra.mxu0 %v46_v29 }
  0x18   :  { %77 = vmatpush.msra.mxu0 %v45_v31 }
  0x1a   :  { %78 = vmatpush.msra.mxu0 %v44_v34 }
  0x1c   :  { %79 = vmatpush.msra.mxu0 %v43_v36 }
  0x1e   :  { %80 = vmatpush.msra.mxu0 %v42_v39 }
  0x20   :  { %81 = vmatpush.msra.mxu0 %v41_v40 }
  0x21   :  { %82 = vmatmul.f32.vlgmr.msra.gmra.mxu0 %v64_v41 }
  0x9e   :  { %v83_v43 = vpop.f32.mrf.mxu0 }
  0x9f   :  { %v84_v44 = vadd.f32 %v106_v42, %v83_v43 }
  0xa1   :  { %87 = vst.msk [vmem:[#allocation2] sm:$0x3] %vm86_vm3, %v84_v44 }
  0xa2   :  { %98 = dma.vmem_to_hbm [thread:$0]  %s94_s23, 32, %s96_s26, [#allocation3]  }
  0xa3   :  { %133 = dma.done.wait [#allocation3], 32  }
  0xa4   :  { %134 = vsyncadd [#allocation3], 4294967264 }
  0xa5   :  { %103 = vsyncpa [#allocation3], 1 }

</bundles_post_ra>
